<compile_context>
chip_gen: v7x
topology: tpu7x:2x2x1
jax: 0.10.0
libtpu: 0.0.40
codegen_flags: <defaults>
</compile_context>

<pallas_src>
import jax
import jax.numpy as jnp
from jax.experimental import pallas as pl
from jax.experimental.pallas import tpu as pltpu

EPS = 1e-5               # BatchNorm2d default eps
H = W = 28               # conv output spatial size
C = 32                   # conv output channels
KW = 5                   # conv kernel size
WPAD = W + 4             # zero-padded input width
KIN = KW * WPAD          # 160  : fused conv contraction (5 h-taps x 32 cols)
LANES = W * C            # 896  : conv lane layout  [ew*448 + wp*32 + c]
GLANES = 2 * LANES       # 1792 : per-hp lane group [eh*896 + ew*448 + wp*32 + c]
ALANES = H * LANES       # 25088: whole-image activation lanes (h-major)
HP = WP = 14             # pooled spatial size
PLANES = WP * C          # 448  : pooled lane layout [wp*32 + c]
NOUT = 10
NPAD = 128               # FC output padded to a full lane tile


# ------------------------------- kernels ------------------------------------
def conv_stats_kernel(xs_ref, kstack_ref, bias_ref, act_ref, stats_ref):
    """Pass 1: 5x5 conv (one fused matmul per block) + bias + BN partial stats.

    xs_ref    : (BT*28, 160)  row-shifted padded input rows (image-major)
    kstack_ref: (160, 896)    stacked banded conv weights            (resident)
    bias_ref  : (1, 896)      conv bias tiled over (ew, wp)          (resident)
    act_ref   : (BT*28, 896)  conv output, lane = ew*448 + wp*32 + c
    stats_ref : (1, 2, 896)   per-block per-lane [sum, sum_sq]     (lane-dense)
    """
    conv = jnp.dot(xs_ref[...], kstack_ref[...],
                   preferred_element_type=jnp.float32)             # (BT*28, 896)
    conv = conv + bias_ref[...]
    act_ref[...] = conv
    s1 = jnp.sum(conv, axis=0, keepdims=True)                      # (1, 896)
    s2 = jnp.sum(conv * conv, axis=0, keepdims=True)               # (1, 896)
    stats_ref[0] = jnp.concatenate([s1, s2], axis=0)               # (2, 896)
    # TODO(synk): BatchNorm2d's running_mean/var momentum update (a training
    # side effect) is not materialized; it does not affect the forward output.


def bn_pool_fc_kernel(a_ref, bn_ref, wf_ref, fb_ref, o_ref):
    """Pass 2: BN affine + ReLU + MaxPool2d(2) + Linear for BT images, fused.

    a_ref  : (BT, 25088)    activation, lane = h*896 + ew*448 + wp*32 + c
    bn_ref : (2, 1792)      per-lane BN [scale; shift] for one hp group (resident)
    wf_ref : (14, 448, 128) FC weight [hp, wp*32 + c, n] (n padded)     (resident)
    fb_ref : (1, 128)       FC bias, padded                             (resident)
    o_ref  : (BT, 128)      logits (cols 10..127 are zero padding)
    """
    bt = o_ref.shape[0]
    scale = bn_ref[0:1, :]                                          # (1, 1792)
    shift = bn_ref[1:2, :]
    out = jnp.zeros((bt, NPAD), jnp.float32) + fb_ref[...]          # (BT, 128)
    for hp in range(HP):
        base = hp * GLANES
        y = a_ref[:, base:base + GLANES] * scale + shift            # BN affine
        # MaxPool2d(2): the four (eh, ew) window members of this hp live in
        # the four contiguous 448-lane quarters -> pure elementwise max,
        # no selection matmuls, no lane compaction needed.
        p = jnp.maximum(
            jnp.maximum(y[:, 0:PLANES], y[:, PLANES:2 * PLANES]),
            jnp.maximum(y[:, 2 * PLANES:3 * PLANES], y[:, 3 * PLANES:]))
        p = jnp.maximum(p, 0.0)                                     # ReLU
        out = out + jnp.dot(p, wf_ref[hp],
                            preferred_element_type=jnp.float32)     # (BT, 128)
    o_ref[...] = out


# --------------------------- parameter packing -------------------------------
def pack_params(p):
    """One-time packing / lane permutation (hoisted out of the hot path)."""
    f32 = jnp.float32
    conv_w = p["conv_w"].astype(f32)                          # (32, 1, 5, 5)
    wd = conv_w.reshape(C, KW, KW).transpose(1, 2, 0)         # (di, dj, c)
    k_idx = jnp.arange(WPAD)[:, None]                         # padded-width col
    w_idx = jnp.arange(W)[None, :]                            # output-width col
    dj = k_idx - w_idx                                        # (32, 28)
    valid = ((dj >= 0) & (dj < KW)).astype(f32)
    # kb[di, k, w, c] = conv_w[c, 0, di, k - w] if 0 <= k - w < 5 else 0
    kb = wd[:, jnp.clip(dj, 0, KW - 1), :] * valid[None, :, :, None]
    # Permute output lanes to [ew, wp, c] so MaxPool is a contiguous-slice max.
    kb = kb.reshape(KW, WPAD, WP, 2, C).transpose(0, 1, 3, 2, 4)
    kstack = kb.reshape(KIN, LANES)                           # (160, 896)

    bias_rep = jnp.tile(p["conv_b"].astype(f32), 2 * WP).reshape(1, LANES)

    # FC weight: PyTorch flatten order of the pooled map is (c, hp, wp); ours
    # is [hp, wp*32 + c] (pool already compacted -> no zero lanes needed).
    wf = p["fc_w"].astype(f32).reshape(NOUT, C, HP, WP)
    wf = wf.transpose(2, 3, 1, 0).reshape(HP, PLANES, NOUT)
    wf = jnp.pad(wf, ((0, 0), (0, 0), (0, NPAD - NOUT)))      # (14, 448, 128)
    fcb = jnp.pad(p["fc_b"].astype(f32), (0, NPAD - NOUT)).reshape(1, NPAD)

    return dict(kstack=kstack, bias_rep=bias_rep, wf=wf, fcb=fcb,
                gamma=p["gamma"].astype(f32), beta=p["beta"].astype(f32))


# ------------------------------- forward -------------------------------------
def _pick_block(B, candidates):
    """Largest candidate batch-block that divides B with >= 2 grid steps
    (keeps both v7x TensorCores busy); falls back to one full block, which is
    always layout-legal (block dim == full array dim)."""
    for bt in candidates:
        if bt < B and B % bt == 0:
            return bt
    return B


@jax.jit
def cnn_forward(x, pk):
    """x: (B, 1, 28, 28) float32 (NCHW, like the PyTorch module)."""
    B = x.shape[0]
    # Batch-block sizes: pass-1 blocks keep bt1*28 a multiple of 8, pass-2
    # blocks keep bt2 a multiple of 8 (second-minor (8,128) legality).
    bt1 = _pick_block(B, (16, 8, 4, 2))
    bt2 = _pick_block(B, (16, 8))
    nb1, nb2 = B // bt1, B // bt2

    cparams = pltpu.CompilerParams(dimension_semantics=("parallel",),
                                   vmem_limit_bytes=32 * 1024 * 1024)

    # Row-shifted conv LHS (layout plumbing, built once by XLA): row b*28+h
    # holds the five h-taps of the zero-padded image side by side (K = 160).
    x_pad = jnp.pad(x[:, 0].astype(jnp.float32), ((0, 0), (2, 2), (2, 2)))
    xs = jnp.concatenate([x_pad[:, d:d + H, :] for d in range(KW)], axis=-1)
    xs = xs.reshape(B * H, KIN)                                # (B*28, 160)

    # Pass 1: conv + bias (single fused matmul per block) + lane-dense stats.
    act, stats = pl.pallas_call(
        conv_stats_kernel,
        grid=(nb1,),
        in_specs=[
            pl.BlockSpec((bt1 * H, KIN), lambda b: (b, 0)),
            pl.BlockSpec((KIN, LANES), lambda b: (0, 0)),
            pl.BlockSpec((1, LANES), lambda b: (0, 0)),
        ],
        out_specs=[
            pl.BlockSpec((bt1 * H, LANES), lambda b: (b, 0)),
            pl.BlockSpec((1, 2, LANES), lambda b: (b, 0, 0)),
        ],
        out_shape=[
            jax.ShapeDtypeStruct((B * H, LANES), jnp.float32),
            jax.ShapeDtypeStruct((nb1, 2, LANES), jnp.float32),
        ],
        compiler_params=cparams,
    )(xs, pk["kstack"], pk["bias_rep"])

    # Two-pass-BN finish (tiny): fold mean/var/gamma/beta into one per-lane
    # scale & shift consumed by pass 2.
    s = jnp.sum(stats, axis=0).reshape(2, 2 * WP, C).sum(axis=1)   # (2, 32)
    cnt = jnp.float32(B * H * W)
    mean = s[0] / cnt
    var = s[1] / cnt - mean * mean        # biased batch variance, as in PyTorch
    scale = pk["gamma"] * jax.lax.rsqrt(var + EPS)
    shift = pk["beta"] - mean * scale
    bn_rep = jnp.stack([jnp.tile(scale, 4 * WP),
                        jnp.tile(shift, 4 * WP)], axis=0)          # (2, 1792)

    # (B*28, 896) -> (B, 25088): collapse of minor dims, a pure bitcast.
    act2 = act.reshape(B, ALANES)

    # Pass 2: BN apply + ReLU + MaxPool2d(2) + Linear, fused per block.
    out = pl.pallas_call(
        bn_pool_fc_kernel,
        grid=(nb2,),
        in_specs=[
            pl.BlockSpec((bt2, ALANES), lambda b: (b, 0)),
            pl.BlockSpec((2, GLANES), lambda b: (0, 0)),
            pl.BlockSpec((HP, PLANES, NPAD), lambda b: (0, 0, 0)),
            pl.BlockSpec((1, NPAD), lambda b: (0, 0)),
        ],
        out_specs=pl.BlockSpec((bt2, NPAD), lambda b: (b, 0)),
        out_shape=jax.ShapeDtypeStruct((B, NPAD), jnp.float32),
        compiler_params=cparams,
    )(act2, bn_rep, pk["wf"], pk["fcb"])
    return out[:, :NOUT]


# --------------------------- pure-JAX reference ------------------------------
def cnn_reference(x, p):
    y = jax.lax.conv_general_dilated(
        x, p["conv_w"], window_strides=(1, 1), padding=((2, 2), (2, 2)),
        dimension_numbers=("NCHW", "OIHW", "NCHW"))
    y = y + p["conv_b"][None, :, None, None]
    mean = y.mean(axis=(0, 2, 3), keepdims=True)
    var = ((y - mean) ** 2).mean(axis=(0, 2, 3), keepdims=True)
    y = (y - mean) / jnp.sqrt(var + EPS)
    y = y * p["gamma"][None, :, None, None] + p["beta"][None, :, None, None]
    y = jnp.maximum(y, 0.0)
    B = x.shape[0]
    y = y.reshape(B, 32, 14, 2, 14, 2).max(axis=(3, 5))        # MaxPool2d(2)
    y = y.reshape(B, -1)                                       # (c, hp, wp) flat
    return y @ p["fc_w"].T + p["fc_b"]


# ------------------------------- params --------------------------------------
def init_params(key):
    k0, k1, k2, k3, k4, k5 = jax.random.split(key, 6)
    return dict(
        conv_w=0.1 * jax.random.normal(k0, (32, 1, 5, 5), jnp.float32),
        conv_b=0.1 * jax.random.normal(k1, (32,), jnp.float32),
        gamma=1.0 + 0.1 * jax.random.normal(k2, (32,), jnp.float32),
        beta=0.1 * jax.random.normal(k3, (32,), jnp.float32),
        fc_w=0.01 * jax.random.normal(k4, (10, 14 * 14 * 32), jnp.float32),
        fc_b=0.1 * jax.random.normal(k5, (10,), jnp.float32),
    )


if __name__ == "__main__":
    key = jax.random.PRNGKey(0)
    kx, kp = jax.random.split(key)
    # The fc layer (14*14*32 -> 10) implies 28x28 single-channel input.
    x = jax.random.normal(kx, (8, 1, 28, 28), jnp.float32)
    params = init_params(kp)
    packed = pack_params(params)     # one-time packing, outside the hot path

    out = jax.block_until_ready(cnn_forward(x, packed))
    ref = jax.block_until_ready(cnn_reference(x, params))

    assert out.shape == (8, 10), out.shape
    assert jnp.allclose(out, ref, rtol=1e-4, atol=1e-4), (
        float(jnp.max(jnp.abs(out - ref))))
    print("KERNEL_OK")
</pallas_src>

<mosaic_0001>
module attributes {stable_mosaic.version = 11 : i64} {
  func.func @conv_stats_kernel(%arg0: i32, %arg1: memref<112x160xf32, #tpu.memory_space<vmem>>, %arg2: memref<160x896xf32, #tpu.memory_space<vmem>>, %arg3: memref<1x896xf32, #tpu.memory_space<vmem>>, %arg4: memref<112x896xf32, #tpu.memory_space<vmem>>, %arg5: memref<1x2x896xf32, #tpu.memory_space<vmem>>) attributes {dimension_semantics = [#tpu.dimension_semantics<parallel>], iteration_bounds = array<i64: 2>, scalar_prefetch = 0 : i64, scratch_operands = 0 : i64, tpu.core_type = #tpu.core_type<tc>, window_params = [{transform_indices = @transform_0, window_bounds = array<i64: 112, 160>}, {pipeline_mode = #tpu.pipeline_mode<synchronous>, transform_indices = @transform_1, window_bounds = array<i64: 160, 896>}, {pipeline_mode = #tpu.pipeline_mode<synchronous>, transform_indices = @transform_2, window_bounds = array<i64: 1, 896>}, {transform_indices = @transform_3, window_bounds = array<i64: 112, 896>}, {transform_indices = @transform_4, window_bounds = array<i64: 1, 2, 896>}]} {
    %c0 = arith.constant 0 : index
    %c0_0 = arith.constant 0 : index
    %0 = vector.load %arg1[%c0, %c0_0] : memref<112x160xf32, #tpu.memory_space<vmem>>, vector<112x160xf32>
    %c0_1 = arith.constant 0 : index
    %c0_2 = arith.constant 0 : index
    %1 = vector.load %arg2[%c0_1, %c0_2] : memref<160x896xf32, #tpu.memory_space<vmem>>, vector<160x896xf32>
    %cst = arith.constant dense<0.000000e+00> : vector<112x896xf32>
    %2 = tpu.matmul %0, %1, %cst {dimension_numbers = #tpu.dot_dimension_numbers<[1], [0], [0], [1], [0, 0, 1, 1], [], []>} : vector<112x160xf32>, vector<160x896xf32>, vector<112x896xf32> -> vector<112x896xf32>
    %c0_3 = arith.constant 0 : index
    %c0_4 = arith.constant 0 : index
    %3 = vector.load %arg3[%c0_3, %c0_4] : memref<1x896xf32, #tpu.memory_space<vmem>>, vector<1x896xf32>
    %4 = vector.broadcast %3 : vector<1x896xf32> to vector<112x896xf32>
    %5 = arith.addf %2, %4 : vector<112x896xf32>
    %c0_5 = arith.constant 0 : index
    %c0_6 = arith.constant 0 : index
    %6 = vector.load %arg4[%c0_5, %c0_6] : memref<112x896xf32, #tpu.memory_space<vmem>>, vector<112x896xf32>
    tpu.vector_store %arg4[%c0_5, %c0_6], %5 {strides = array<i32>} : memref<112x896xf32, #tpu.memory_space<vmem>>, vector<112x896xf32>,
    %cst_7 = arith.constant dense<0.000000e+00> : vector<896xf32>
    %7 = vector.multi_reduction <add>, %5, %cst_7 [0] : vector<112x896xf32> to vector<896xf32>
    %8 = vector.shape_cast %7 : vector<896xf32> to vector<1x896xf32>
    %9 = arith.mulf %5, %5 : vector<112x896xf32>
    %cst_8 = arith.constant dense<0.000000e+00> : vector<896xf32>
    %10 = vector.multi_reduction <add>, %9, %cst_8 [0] : vector<112x896xf32> to vector<896xf32>
    %11 = vector.shape_cast %10 : vector<896xf32> to vector<1x896xf32>
    %12 = tpu.concatenate %8, %11 in 0 : vector<1x896xf32>, vector<1x896xf32> -> vector<2x896xf32>
    %c0_9 = arith.constant 0 : index
    %c0_10 = arith.constant 0 : index
    %c0_11 = arith.constant 0 : index
    %13 = vector.load %arg5[%c0_9, %c0_10, %c0_11] : memref<1x2x896xf32, #tpu.memory_space<vmem>>, vector<1x2x896xf32>
    %14 = vector.shape_cast %13 : vector<1x2x896xf32> to vector<2x896xf32>
    %15 = vector.shape_cast %12 : vector<2x896xf32> to vector<1x2x896xf32>
    tpu.vector_store %arg5[%c0_9, %c0_10, %c0_11], %15 {strides = array<i32>} : memref<1x2x896xf32, #tpu.memory_space<vmem>>, vector<1x2x896xf32>,
    return
  }
  func.func @transform_0(%arg0: i32) -> (i32, i32) {
    %c0_i32 = arith.constant 0 : i32
    %c0_i32_0 = arith.constant 0 : i32
    return %arg0, %c0_i32 : i32, i32
  }
  func.func @transform_1(%arg0: i32) -> (i32, i32) {
    %c0_i32 = arith.constant 0 : i32
    %c0_i32_0 = arith.constant 0 : i32
    %c0_i32_1 = arith.constant 0 : i32
    return %c0_i32, %c0_i32_0 : i32, i32
  }
  func.func @transform_2(%arg0: i32) -> (i32, i32) {
    %c0_i32 = arith.constant 0 : i32
    %c0_i32_0 = arith.constant 0 : i32
    %c0_i32_1 = arith.constant 0 : i32
    return %c0_i32, %c0_i32_0 : i32, i32
  }
  func.func @transform_3(%arg0: i32) -> (i32, i32) {
    %c0_i32 = arith.constant 0 : i32
    %c0_i32_0 = arith.constant 0 : i32
    return %arg0, %c0_i32 : i32, i32
  }
  func.func @transform_4(%arg0: i32) -> (i32, i32, i32) {
    %c0_i32 = arith.constant 0 : i32
    %c0_i32_0 = arith.constant 0 : i32
    %c0_i32_1 = arith.constant 0 : i32
    return %arg0, %c0_i32, %c0_i32_0 : i32, i32, i32
  }
}

module attributes {stable_mosaic.version = 11 : i64} {
  func.func @bn_pool_fc_kernel(%arg0: i32, %arg1: memref<8x25088xf32, #tpu.memory_space<vmem>>, %arg2: memref<2x1792xf32, #tpu.memory_space<vmem>>, %arg3: memref<14x448x128xf32, #tpu.memory_space<vmem>>, %arg4: memref<1x128xf32, #tpu.memory_space<vmem>>, %arg5: memref<8x128xf32, #tpu.memory_space<vmem>>) attributes {dimension_semantics = [#tpu.dimension_semantics<parallel>], iteration_bounds = array<i64: 1>, scalar_prefetch = 0 : i64, scratch_operands = 0 : i64, tpu.core_type = #tpu.core_type<tc>, window_params = [{transform_indices = @transform_0, window_bounds = array<i64: 8, 25088>}, {pipeline_mode = #tpu.pipeline_mode<synchronous>, transform_indices = @transform_1, window_bounds = array<i64: 2, 1792>}, {pipeline_mode = #tpu.pipeline_mode<synchronous>, transform_indices = @transform_2, window_bounds = array<i64: 14, 448, 128>}, {pipeline_mode = #tpu.pipeline_mode<synchronous>, transform_indices = @transform_3, window_bounds = array<i64: 1, 128>}, {transform_indices = @transform_4, window_bounds = array<i64: 8, 128>}]} {
    %c0 = arith.constant 0 : index
    %c0_0 = arith.constant 0 : index
    %0 = vector.load %arg2[%c0, %c0_0] : memref<2x1792xf32, #tpu.memory_space<vmem>>, vector<1x1792xf32>
    %c1 = arith.constant 1 : index
    %c0_1 = arith.constant 0 : index
    %1 = vector.load %arg2[%c1, %c0_1] : memref<2x1792xf32, #tpu.memory_space<vmem>>, vector<1x1792xf32>
    %cst = arith.constant 0.000000e+00 : f32
    %2 = vector.broadcast %cst : f32 to vector<8x128xf32>
    %c0_2 = arith.constant 0 : index
    %c0_3 = arith.constant 0 : index
    %3 = vector.load %arg4[%c0_2, %c0_3] : memref<1x128xf32, #tpu.memory_space<vmem>>, vector<1x128xf32>
    %4 = vector.broadcast %3 : vector<1x128xf32> to vector<8x128xf32>
    %5 = arith.addf %2, %4 : vector<8x128xf32>
    %c0_4 = arith.constant 0 : index
    %c0_5 = arith.constant 0 : index
    %6 = vector.load %arg1[%c0_4, %c0_5] : memref<8x25088xf32, #tpu.memory_space<vmem>>, vector<8x1792xf32>
    %7 = vector.broadcast %0 : vector<1x1792xf32> to vector<8x1792xf32>
    %8 = arith.mulf %6, %7 : vector<8x1792xf32>
    %9 = vector.broadcast %1 : vector<1x1792xf32> to vector<8x1792xf32>
    %10 = arith.addf %8, %9 : vector<8x1792xf32>
    %11 = vector.extract_strided_slice %10 {offsets = [0, 0], sizes = [8, 448], strides = [1, 1]} : vector<8x1792xf32> to vector<8x448xf32>
    %12 = vector.extract_strided_slice %10 {offsets = [0, 448], sizes = [8, 448], strides = [1, 1]} : vector<8x1792xf32> to vector<8x448xf32>
    %13 = arith.maximumf %11, %12 : vector<8x448xf32>
    %14 = vector.extract_strided_slice %10 {offsets = [0, 896], sizes = [8, 448], strides = [1, 1]} : vector<8x1792xf32> to vector<8x448xf32>
    %15 = vector.extract_strided_slice %10 {offsets = [0, 1344], sizes = [8, 448], strides = [1, 1]} : vector<8x1792xf32> to vector<8x448xf32>
    %16 = arith.maximumf %14, %15 : vector<8x448xf32>
    %17 = arith.maximumf %13, %16 : vector<8x448xf32>
    %cst_6 = arith.constant 0.000000e+00 : f32
    %18 = vector.broadcast %cst_6 : f32 to vector<8x448xf32>
    %19 = arith.maximumf %17, %18 : vector<8x448xf32>
    %c0_7 = arith.constant 0 : index
    %c0_8 = arith.constant 0 : index
    %c0_9 = arith.constant 0 : index
    %20 = vector.load %arg3[%c0_7, %c0_8, %c0_9] : memref<14x448x128xf32, #tpu.memory_space<vmem>>, vector<1x448x128xf32>
    %21 = vector.shape_cast %20 : vector<1x448x128xf32> to vector<448x128xf32>
    %cst_10 = arith.constant dense<0.000000e+00> : vector<8x128xf32>
    %22 = tpu.matmul %19, %21, %cst_10 {dimension_numbers = #tpu.dot_dimension_numbers<[1], [0], [0], [1], [0, 0, 1, 1], [], []>} : vector<8x448xf32>, vector<448x128xf32>, vector<8x128xf32> -> vector<8x128xf32>
    %23 = arith.addf %5, %22 : vector<8x128xf32>
    %c0_11 = arith.constant 0 : index
    %c1792 = arith.constant 1792 : index
    %24 = vector.load %arg1[%c0_11, %c1792] : memref<8x25088xf32, #tpu.memory_space<vmem>>, vector<8x1792xf32>
    %25 = vector.broadcast %0 : vector<1x1792xf32> to vector<8x1792xf32>
    %26 = arith.mulf %24, %25 : vector<8x1792xf32>
    %27 = vector.broadcast %1 : vector<1x1792xf32> to vector<8x1792xf32>
    %28 = arith.addf %26, %27 : vector<8x1792xf32>
    %29 = vector.extract_strided_slice %28 {offsets = [0, 0], sizes = [8, 448], strides = [1, 1]} : vector<8x1792xf32> to vector<8x448xf32>
    %30 = vector.extract_strided_slice %28 {offsets = [0, 448], sizes = [8, 448], strides = [1, 1]} : vector<8x1792xf32> to vector<8x448xf32>
    %31 = arith.maximumf %29, %30 : vector<8x448xf32>
    %32 = vector.extract_strided_slice %28 {offsets = [0, 896], sizes = [8, 448], strides = [1, 1]} : vector<8x1792xf32> to vector<8x448xf32>
    %33 = vector.extract_strided_slice %28 {offsets = [0, 1344], sizes = [8, 448], strides = [1, 1]} : vector<8x1792xf32> to vector<8x448xf32>
    %34 = arith.maximumf %32, %33 : vector<8x448xf32>
    %35 = arith.maximumf %31, %34 : vector<8x448xf32>
    %cst_12 = arith.constant 0.000000e+00 : f32
    %36 = vector.broadcast %cst_12 : f32 to vector<8x448xf32>
    %37 = arith.maximumf %35, %36 : vector<8x448xf32>
    %c1_13 = arith.constant 1 : index
    %c0_14 = arith.constant 0 : index
    %c0_15 = arith.constant 0 : index
    %38 = vector.load %arg3[%c1_13, %c0_14, %c0_15] : memref<14x448x128xf32, #tpu.memory_space<vmem>>, vector<1x448x128xf32>
    %39 = vector.shape_cast %38 : vector<1x448x128xf32> to vector<448x128xf32>
    %cst_16 = arith.constant dense<0.000000e+00> : vector<8x128xf32>
    %40 = tpu.matmul %37, %39, %cst_16 {dimension_numbers = #tpu.dot_dimension_numbers<[1], [0], [0], [1], [0, 0, 1, 1], [], []>} : vector<8x448xf32>, vector<448x128xf32>, vector<8x128xf32> -> vector<8x128xf32>
    %41 = arith.addf %23, %40 : vector<8x128xf32>
    %c0_17 = arith.constant 0 : index
    %c3584 = arith.constant 3584 : index
    %42 = vector.load %arg1[%c0_17, %c3584] : memref<8x25088xf32, #tpu.memory_space<vmem>>, vector<8x1792xf32>
    %43 = vector.broadcast %0 : vector<1x1792xf32> to vector<8x1792xf32>
    %44 = arith.mulf %42, %43 : vector<8x1792xf32>
    %45 = vector.broadcast %1 : vector<1x1792xf32> to vector<8x1792xf32>
    %46 = arith.addf %44, %45 : vector<8x1792xf32>
    %47 = vector.extract_strided_slice %46 {offsets = [0, 0], sizes = [8, 448], strides = [1, 1]} : vector<8x1792xf32> to vector<8x448xf32>
    %48 = vector.extract_strided_slice %46 {offsets = [0, 448], sizes = [8, 448], strides = [1, 1]} : vector<8x1792xf32> to vector<8x448xf32>
    %49 = arith.maximumf %47, %48 : vector<8x448xf32>
    %50 = vector.extract_strided_slice %46 {offsets = [0, 896], sizes = [8, 448], strides = [1, 1]} : vector<8x1792xf32> to vector<8x448xf32>
    %51 = vector.extract_strided_slice %46 {offsets = [0, 1344], sizes = [8, 448], strides = [1, 1]} : vector<8x1792xf32> to vector<8x448xf32>
    %52 = arith.maximumf %50, %51 : vector<8x448xf32>
    %53 = arith.maximumf %49, %52 : vector<8x448xf32>
    %cst_18 = arith.constant 0.000000e+00 : f32
    %54 = vector.broadcast %cst_18 : f32 to vector<8x448xf32>
    %55 = arith.maximumf %53, %54 : vector<8x448xf32>
    %c2 = arith.constant 2 : index
    %c0_19 = arith.constant 0 : index
    %c0_20 = arith.constant 0 : index
    %56 = vector.load %arg3[%c2, %c0_19, %c0_20] : memref<14x448x128xf32, #tpu.memory_space<vmem>>, vector<1x448x128xf32>
    %57 = vector.shape_cast %56 : vector<1x448x128xf32> to vector<448x128xf32>
    %cst_21 = arith.constant dense<0.000000e+00> : vector<8x128xf32>
    %58 = tpu.matmul %55, %57, %cst_21 {dimension_numbers = #tpu.dot_dimension_numbers<[1], [0], [0], [1], [0, 0, 1, 1], [], []>} : vector<8x448xf32>, vector<448x128xf32>, vector<8x128xf32> -> vector<8x128xf32>
    %59 = arith.addf %41, %58 : vector<8x128xf32>
    %c0_22 = arith.constant 0 : index
    %c5376 = arith.constant 5376 : index
    %60 = vector.load %arg1[%c0_22, %c5376] : memref<8x25088xf32, #tpu.memory_space<vmem>>, vector<8x1792xf32>
    %61 = vector.broadcast %0 : vector<1x1792xf32> to vector<8x1792xf32>
    %62 = arith.mulf %60, %61 : vector<8x1792xf32>
    %63 = vector.broadcast %1 : vector<1x1792xf32> to vector<8x1792xf32>
    %64 = arith.addf %62, %63 : vector<8x1792xf32>
    %65 = vector.extract_strided_slice %64 {offsets = [0, 0], sizes = [8, 448], strides = [1, 1]} : vector<8x1792xf32> to vector<8x448xf32>
    %66 = vector.extract_strided_slice %64 {offsets = [0, 448], sizes = [8, 448], strides = [1, 1]} : vector<8x1792xf32> to vector<8x448xf32>
    %67 = arith.maximumf %65, %66 : vector<8x448xf32>
    %68 = vector.extract_strided_slice %64 {offsets = [0, 896], sizes = [8, 448], strides = [1, 1]} : vector<8x1792xf32> to vector<8x448xf32>
    %69 = vector.extract_strided_slice %64 {offsets = [0, 1344], sizes = [8, 448], strides = [1, 1]} : vector<8x1792xf32> to vector<8x448xf32>
    %70 = arith.maximumf %68, %69 : vector<8x448xf32>
    %71 = arith.maximumf %67, %70 : vector<8x448xf32>
    %cst_23 = arith.constant 0.000000e+00 : f32
    %72 = vector.broadcast %cst_23 : f32 to vector<8x448xf32>
    %73 = arith.maximumf %71, %72 : vector<8x448xf32>
    %c3 = arith.constant 3 : index
    %c0_24 = arith.constant 0 : index
    %c0_25 = arith.constant 0 : index
    %74 = vector.load %arg3[%c3, %c0_24, %c0_25] : memref<14x448x128xf32, #tpu.memory_space<vmem>>, vector<1x448x128xf32>
    %75 = vector.shape_cast %74 : vector<1x448x128xf32> to vector<448x128xf32>
    %cst_26 = arith.constant dense<0.000000e+00> : vector<8x128xf32>
    %76 = tpu.matmul %73, %75, %cst_26 {dimension_numbers = #tpu.dot_dimension_numbers<[1], [0], [0], [1], [0, 0, 1, 1], [], []>} : vector<8x448xf32>, vector<448x128xf32>, vector<8x128xf32> -> vector<8x128xf32>
    %77 = arith.addf %59, %76 : vector<8x128xf32>
    %c0_27 = arith.constant 0 : index
    %c7168 = arith.constant 7168 : index
    %78 = vector.load %arg1[%c0_27, %c7168] : memref<8x25088xf32, #tpu.memory_space<vmem>>, vector<8x1792xf32>
    %79 = vector.broadcast %0 : vector<1x1792xf32> to vector<8x1792xf32>
    %80 = arith.mulf %78, %79 : vector<8x1792xf32>
    %81 = vector.broadcast %1 : vector<1x1792xf32> to vector<8x1792xf32>
    %82 = arith.addf %80, %81 : vector<8x1792xf32>
    %83 = vector.extract_strided_slice %82 {offsets = [0, 0], sizes = [8, 448], strides = [1, 1]} : vector<8x1792xf32> to vector<8x448xf32>
    %84 = vector.extract_strided_slice %82 {offsets = [0, 448], sizes = [8, 448], strides = [1, 1]} : vector<8x1792xf32> to vector<8x448xf32>
    %85 = arith.maximumf %83, %84 : vector<8x448xf32>
    %86 = vector.extract_strided_slice %82 {offsets = [0, 896], sizes = [8, 448], strides = [1, 1]} : vector<8x1792xf32> to vector<8x448xf32>
    %87 = vector.extract_strided_slice %82 {offsets = [0, 1344], sizes = [8, 448], strides = [1, 1]} : vector<8x1792xf32> to vector<8x448xf32>
    %88 = arith.maximumf %86, %87 : vector<8x448xf32>
    %89 = arith.maximumf %85, %88 : vector<8x448xf32>
    %cst_28 = arith.constant 0.000000e+00 : f32
    %90 = vector.broadcast %cst_28 : f32 to vector<8x448xf32>
    %91 = arith.maximumf %89, %90 : vector<8x448xf32>
    %c4 = arith.constant 4 : index
    %c0_29 = arith.constant 0 : index
    %c0_30 = arith.constant 0 : index
    %92 = vector.load %arg3[%c4, %c0_29, %c0_30] : memref<14x448x128xf32, #tpu.memory_space<vmem>>, vector<1x448x128xf32>
    %93 = vector.shape_cast %92 : vector<1x448x128xf32> to vector<448x128xf32>
    %cst_31 = arith.constant dense<0.000000e+00> : vector<8x128xf32>
    %94 = tpu.matmul %91, %93, %cst_31 {dimension_numbers = #tpu.dot_dimension_numbers<[1], [0], [0], [1], [0, 0, 1, 1], [], []>} : vector<8x448xf32>, vector<448x128xf32>, vector<8x128xf32> -> vector<8x128xf32>
    %95 = arith.addf %77, %94 : vector<8x128xf32>
    %c0_32 = arith.constant 0 : index
    %c8960 = arith.constant 8960 : index
    %96 = vector.load %arg1[%c0_32, %c8960] : memref<8x25088xf32, #tpu.memory_space<vmem>>, vector<8x1792xf32>
    %97 = vector.broadcast %0 : vector<1x1792xf32> to vector<8x1792xf32>
    %98 = arith.mulf %96, %97 : vector<8x1792xf32>
    %99 = vector.broadcast %1 : vector<1x1792xf32> to vector<8x1792xf32>
    %100 = arith.addf %98, %99 : vector<8x1792xf32>
    %101 = vector.extract_strided_slice %100 {offsets = [0, 0], sizes = [8, 448], strides = [1, 1]} : vector<8x1792xf32> to vector<8x448xf32>
    %102 = vector.extract_strided_slice %100 {offsets = [0, 448], sizes = [8, 448], strides = [1, 1]} : vector<8x1792xf32> to vector<8x448xf32>
    %103 = arith.maximumf %101, %102 : vector<8x448xf32>
    %104 = vector.extract_strided_slice %100 {offsets = [0, 896], sizes = [8, 448], strides = [1, 1]} : vector<8x1792xf32> to vector<8x448xf32>
    %105 = vector.extract_strided_slice %100 {offsets = [0, 1344], sizes = [8, 448], strides = [1, 1]} : vector<8x1792xf32> to vector<8x448xf32>
    %106 = arith.maximumf %104, %105 : vector<8x448xf32>
    %107 = arith.maximumf %103, %106 : vector<8x448xf32>
    %cst_33 = arith.constant 0.000000e+00 : f32
    %108 = vector.broadcast %cst_33 : f32 to vector<8x448xf32>
    %109 = arith.maximumf %107, %108 : vector<8x448xf32>
    %c5 = arith.constant 5 : index
    %c0_34 = arith.constant 0 : index
    %c0_35 = arith.constant 0 : index
    %110 = vector.load %arg3[%c5, %c0_34, %c0_35] : memref<14x448x128xf32, #tpu.memory_space<vmem>>, vector<1x448x128xf32>
    %111 = vector.shape_cast %110 : vector<1x448x128xf32> to vector<448x128xf32>
    %cst_36 = arith.constant dense<0.000000e+00> : vector<8x128xf32>
    %112 = tpu.matmul %109, %111, %cst_36 {dimension_numbers = #tpu.dot_dimension_numbers<[1], [0], [0], [1], [0, 0, 1, 1], [], []>} : vector<8x448xf32>, vector<448x128xf32>, vector<8x128xf32> -> vector<8x128xf32>
    %113 = arith.addf %95, %112 : vector<8x128xf32>
    %c0_37 = arith.constant 0 : index
    %c10752 = arith.constant 10752 : index
    %114 = vector.load %arg1[%c0_37, %c10752] : memref<8x25088xf32, #tpu.memory_space<vmem>>, vector<8x1792xf32>
    %115 = vector.broadcast %0 : vector<1x1792xf32> to vector<8x1792xf32>
    %116 = arith.mulf %114, %115 : vector<8x1792xf32>
    %117 = vector.broadcast %1 : vector<1x1792xf32> to vector<8x1792xf32>
    %118 = arith.addf %116, %117 : vector<8x1792xf32>
    %119 = vector.extract_strided_slice %118 {offsets = [0, 0], sizes = [8, 448], strides = [1, 1]} : vector<8x1792xf32> to vector<8x448xf32>
    %120 = vector.extract_strided_slice %118 {offsets = [0, 448], sizes = [8, 448], strides = [1, 1]} : vector<8x1792xf32> to vector<8x448xf32>
    %121 = arith.maximumf %119, %120 : vector<8x448xf32>
    %122 = vector.extract_strided_slice %118 {offsets = [0, 896], sizes = [8, 448], strides = [1, 1]} : vector<8x1792xf32> to vector<8x448xf32>
    %123 = vector.extract_strided_slice %118 {offsets = [0, 1344], sizes = [8, 448], strides = [1, 1]} : vector<8x1792xf32> to vector<8x448xf32>
    %124 = arith.maximumf %122, %123 : vector<8x448xf32>
    %125 = arith.maximumf %121, %124 : vector<8x448xf32>
    %cst_38 = arith.constant 0.000000e+00 : f32
    %126 = vector.broadcast %cst_38 : f32 to vector<8x448xf32>
    %127 = arith.maximumf %125, %126 : vector<8x448xf32>
    %c6 = arith.constant 6 : index
    %c0_39 = arith.constant 0 : index
    %c0_40 = arith.constant 0 : index
    %128 = vector.load %arg3[%c6, %c0_39, %c0_40] : memref<14x448x128xf32, #tpu.memory_space<vmem>>, vector<1x448x128xf32>
    %129 = vector.shape_cast %128 : vector<1x448x128xf32> to vector<448x128xf32>
    %cst_41 = arith.constant dense<0.000000e+00> : vector<8x128xf32>
    %130 = tpu.matmul %127, %129, %cst_41 {dimension_numbers = #tpu.dot_dimension_numbers<[1], [0], [0], [1], [0, 0, 1, 1], [], []>} : vector<8x448xf32>, vector<448x128xf32>, vector<8x128xf32> -> vector<8x128xf32>
    %131 = arith.addf %113, %130 : vector<8x128xf32>
    %c0_42 = arith.constant 0 : index
    %c12544 = arith.constant 12544 : index
    %132 = vector.load %arg1[%c0_42, %c12544] : memref<8x25088xf32, #tpu.memory_space<vmem>>, vector<8x1792xf32>
    %133 = vector.broadcast %0 : vector<1x1792xf32> to vector<8x1792xf32>
    %134 = arith.mulf %132, %133 : vector<8x1792xf32>
    %135 = vector.broadcast %1 : vector<1x1792xf32> to vector<8x1792xf32>
    %136 = arith.addf %134, %135 : vector<8x1792xf32>
    %137 = vector.extract_strided_slice %136 {offsets = [0, 0], sizes = [8, 448], strides = [1, 1]} : vector<8x1792xf32> to vector<8x448xf32>
    %138 = vector.extract_strided_slice %136 {offsets = [0, 448], sizes = [8, 448], strides = [1, 1]} : vector<8x1792xf32> to vector<8x448xf32>
    %139 = arith.maximumf %137, %138 : vector<8x448xf32>
    %140 = vector.extract_strided_slice %136 {offsets = [0, 896], sizes = [8, 448], strides = [1, 1]} : vector<8x1792xf32> to vector<8x448xf32>
    %141 = vector.extract_strided_slice %136 {offsets = [0, 1344], sizes = [8, 448], strides = [1, 1]} : vector<8x1792xf32> to vector<8x448xf32>
    %142 = arith.maximumf %140, %141 : vector<8x448xf32>
    %143 = arith.maximumf %139, %142 : vector<8x448xf32>
    %cst_43 = arith.constant 0.000000e+00 : f32
    %144 = vector.broadcast %cst_43 : f32 to vector<8x448xf32>
    %145 = arith.maximumf %143, %144 : vector<8x448xf32>
    %c7 = arith.constant 7 : index
    %c0_44 = arith.constant 0 : index
    %c0_45 = arith.constant 0 : index
    %146 = vector.load %arg3[%c7, %c0_44, %c0_45] : memref<14x448x128xf32, #tpu.memory_space<vmem>>, vector<1x448x128xf32>
    %147 = vector.shape_cast %146 : vector<1x448x128xf32> to vector<448x128xf32>
    %cst_46 = arith.constant dense<0.000000e+00> : vector<8x128xf32>
    %148 = tpu.matmul %145, %147, %cst_46 {dimension_numbers = #tpu.dot_dimension_numbers<[1], [0], [0], [1], [0, 0, 1, 1], [], []>} : vector<8x448xf32>, vector<448x128xf32>, vector<8x128xf32> -> vector<8x128xf32>
    %149 = arith.addf %131, %148 : vector<8x128xf32>
    %c0_47 = arith.constant 0 : index
    %c14336 = arith.constant 14336 : index
    %150 = vector.load %arg1[%c0_47, %c14336] : memref<8x25088xf32, #tpu.memory_space<vmem>>, vector<8x1792xf32>
    %151 = vector.broadcast %0 : vector<1x1792xf32> to vector<8x1792xf32>
    %152 = arith.mulf %150, %151 : vector<8x1792xf32>
    %153 = vector.broadcast %1 : vector<1x1792xf32> to vector<8x1792xf32>
    %154 = arith.addf %152, %153 : vector<8x1792xf32>
    %155 = vector.extract_strided_slice %154 {offsets = [0, 0], sizes = [8, 448], strides = [1, 1]} : vector<8x1792xf32> to vector<8x448xf32>
    %156 = vector.extract_strided_slice %154 {offsets = [0, 448], sizes = [8, 448], strides = [1, 1]} : vector<8x1792xf32> to vector<8x448xf32>
    %157 = arith.maximumf %155, %156 : vector<8x448xf32>
    %158 = vector.extract_strided_slice %154 {offsets = [0, 896], sizes = [8, 448], strides = [1, 1]} : vector<8x1792xf32> to vector<8x448xf32>
    %159 = vector.extract_strided_slice %154 {offsets = [0, 1344], sizes = [8, 448], strides = [1, 1]} : vector<8x1792xf32> to vector<8x448xf32>
    %160 = arith.maximumf %158, %159 : vector<8x448xf32>
    %161 = arith.maximumf %157, %160 : vector<8x448xf32>
    %cst_48 = arith.constant 0.000000e+00 : f32
    %162 = vector.broadcast %cst_48 : f32 to vector<8x448xf32>
    %163 = arith.maximumf %161, %162 : vector<8x448xf32>
    %c8 = arith.constant 8 : index
    %c0_49 = arith.constant 0 : index
    %c0_50 = arith.constant 0 : index
    %164 = vector.load %arg3[%c8, %c0_49, %c0_50] : memref<14x448x128xf32, #tpu.memory_space<vmem>>, vector<1x448x128xf32>
    %165 = vector.shape_cast %164 : vector<1x448x128xf32> to vector<448x128xf32>
    %cst_51 = arith.constant dense<0.000000e+00> : vector<8x128xf32>
    %166 = tpu.matmul %163, %165, %cst_51 {dimension_numbers = #tpu.dot_dimension_numbers<[1], [0], [0], [1], [0, 0, 1, 1], [], []>} : vector<8x448xf32>, vector<448x128xf32>, vector<8x128xf32> -> vector<8x128xf32>
    %167 = arith.addf %149, %166 : vector<8x128xf32>
    %c0_52 = arith.constant 0 : index
    %c16128 = arith.constant 16128 : index
    %168 = vector.load %arg1[%c0_52, %c16128] : memref<8x25088xf32, #tpu.memory_space<vmem>>, vector<8x1792xf32>
    %169 = vector.broadcast %0 : vector<1x1792xf32> to vector<8x1792xf32>
    %170 = arith.mulf %168, %169 : vector<8x1792xf32>
    %171 = vector.broadcast %1 : vector<1x1792xf32> to vector<8x1792xf32>
    %172 = arith.addf %170, %171 : vector<8x1792xf32>
    %173 = vector.extract_strided_slice %172 {offsets = [0, 0], sizes = [8, 448], strides = [1, 1]} : vector<8x1792xf32> to vector<8x448xf32>
    %174 = vector.extract_strided_slice %172 {offsets = [0, 448], sizes = [8, 448], strides = [1, 1]} : vector<8x1792xf32> to vector<8x448xf32>
    %175 = arith.maximumf %173, %174 : vector<8x448xf32>
    %176 = vector.extract_strided_slice %172 {offsets = [0, 896], sizes = [8, 448], strides = [1, 1]} : vector<8x1792xf32> to vector<8x448xf32>
    %177 = vector.extract_strided_slice %172 {offsets = [0, 1344], sizes = [8, 448], strides = [1, 1]} : vector<8x1792xf32> to vector<8x448xf32>
    %178 = arith.maximumf %176, %177 : vector<8x448xf32>
    %179 = arith.maximumf %175, %178 : vector<8x448xf32>
    %cst_53 = arith.constant 0.000000e+00 : f32
    %180 = vector.broadcast %cst_53 : f32 to vector<8x448xf32>
    %181 = arith.maximumf %179, %180 : vector<8x448xf32>
    %c9 = arith.constant 9 : index
    %c0_54 = arith.constant 0 : index
    %c0_55 = arith.constant 0 : index
    %182 = vector.load %arg3[%c9, %c0_54, %c0_55] : memref<14x448x128xf32, #tpu.memory_space<vmem>>, vector<1x448x128xf32>
    %183 = vector.shape_cast %182 : vector<1x448x128xf32> to vector<448x128xf32>
    %cst_56 = arith.constant dense<0.000000e+00> : vector<8x128xf32>
    %184 = tpu.matmul %181, %183, %cst_56 {dimension_numbers = #tpu.dot_dimension_numbers<[1], [0], [0], [1], [0, 0, 1, 1], [], []>} : vector<8x448xf32>, vector<448x128xf32>, vector<8x128xf32> -> vector<8x128xf32>
    %185 = arith.addf %167, %184 : vector<8x128xf32>
    %c0_57 = arith.constant 0 : index
    %c17920 = arith.constant 17920 : index
    %186 = vector.load %arg1[%c0_57, %c17920] : memref<8x25088xf32, #tpu.memory_space<vmem>>, vector<8x1792xf32>
    %187 = vector.broadcast %0 : vector<1x1792xf32> to vector<8x1792xf32>
    %188 = arith.mulf %186, %187 : vector<8x1792xf32>
    %189 = vector.broadcast %1 : vector<1x1792xf32> to vector<8x1792xf32>
    %190 = arith.addf %188, %189 : vector<8x1792xf32>
    %191 = vector.extract_strided_slice %190 {offsets = [0, 0], sizes = [8, 448], strides = [1, 1]} : vector<8x1792xf32> to vector<8x448xf32>
    %192 = vector.extract_strided_slice %190 {offsets = [0, 448], sizes = [8, 448], strides = [1, 1]} : vector<8x1792xf32> to vector<8x448xf32>
    %193 = arith.maximumf %191, %192 : vector<8x448xf32>
    %194 = vector.extract_strided_slice %190 {offsets = [0, 896], sizes = [8, 448], strides = [1, 1]} : vector<8x1792xf32> to vector<8x448xf32>
    %195 = vector.extract_strided_slice %190 {offsets = [0, 1344], sizes = [8, 448], strides = [1, 1]} : vector<8x1792xf32> to vector<8x448xf32>
    %196 = arith.maximumf %194, %195 : vector<8x448xf32>
    %197 = arith.maximumf %193, %196 : vector<8x448xf32>
    %cst_58 = arith.constant 0.000000e+00 : f32
    %198 = vector.broadcast %cst_58 : f32 to vector<8x448xf32>
    %199 = arith.maximumf %197, %198 : vector<8x448xf32>
    %c10 = arith.constant 10 : index
    %c0_59 = arith.constant 0 : index
    %c0_60 = arith.constant 0 : index
    %200 = vector.load %arg3[%c10, %c0_59, %c0_60] : memref<14x448x128xf32, #tpu.memory_space<vmem>>, vector<1x448x128xf32>
    %201 = vector.shape_cast %200 : vector<1x448x128xf32> to vector<448x128xf32>
    %cst_61 = arith.constant dense<0.000000e+00> : vector<8x128xf32>
    %202 = tpu.matmul %199, %201, %cst_61 {dimension_numbers = #tpu.dot_dimension_numbers<[1], [0], [0], [1], [0, 0, 1, 1], [], []>} : vector<8x448xf32>, vector<448x128xf32>, vector<8x128xf32> -> vector<8x128xf32>
    %203 = arith.addf %185, %202 : vector<8x128xf32>
    %c0_62 = arith.constant 0 : index
    %c19712 = arith.constant 19712 : index
    %204 = vector.load %arg1[%c0_62, %c19712] : memref<8x25088xf32, #tpu.memory_space<vmem>>, vector<8x1792xf32>
    %205 = vector.broadcast %0 : vector<1x1792xf32> to vector<8x1792xf32>
    %206 = arith.mulf %204, %205 : vector<8x1792xf32>
    %207 = vector.broadcast %1 : vector<1x1792xf32> to vector<8x1792xf32>
    %208 = arith.addf %206, %207 : vector<8x1792xf32>
    %209 = vector.extract_strided_slice %208 {offsets = [0, 0], sizes = [8, 448], strides = [1, 1]} : vector<8x1792xf32> to vector<8x448xf32>
    %210 = vector.extract_strided_slice %208 {offsets = [0, 448], sizes = [8, 448], strides = [1, 1]} : vector<8x1792xf32> to vector<8x448xf32>
    %211 = arith.maximumf %209, %210 : vector<8x448xf32>
    %212 = vector.extract_strided_slice %208 {offsets = [0, 896], sizes = [8, 448], strides = [1, 1]} : vector<8x1792xf32> to vector<8x448xf32>
    %213 = vector.extract_strided_slice %208 {offsets = [0, 1344], sizes = [8, 448], strides = [1, 1]} : vector<8x1792xf32> to vector<8x448xf32>
    %214 = arith.maximumf %212, %213 : vector<8x448xf32>
    %215 = arith.maximumf %211, %214 : vector<8x448xf32>
    %cst_63 = arith.constant 0.000000e+00 : f32
    %216 = vector.broadcast %cst_63 : f32 to vector<8x448xf32>
    %217 = arith.maximumf %215, %216 : vector<8x448xf32>
    %c11 = arith.constant 11 : index
    %c0_64 = arith.constant 0 : index
    %c0_65 = arith.constant 0 : index
    %218 = vector.load %arg3[%c11, %c0_64, %c0_65] : memref<14x448x128xf32, #tpu.memory_space<vmem>>, vector<1x448x128xf32>
    %219 = vector.shape_cast %218 : vector<1x448x128xf32> to vector<448x128xf32>
    %cst_66 = arith.constant dense<0.000000e+00> : vector<8x128xf32>
    %220 = tpu.matmul %217, %219, %cst_66 {dimension_numbers = #tpu.dot_dimension_numbers<[1], [0], [0], [1], [0, 0, 1, 1], [], []>} : vector<8x448xf32>, vector<448x128xf32>, vector<8x128xf32> -> vector<8x128xf32>
    %221 = arith.addf %203, %220 : vector<8x128xf32>
    %c0_67 = arith.constant 0 : index
    %c21504 = arith.constant 21504 : index
    %222 = vector.load %arg1[%c0_67, %c21504] : memref<8x25088xf32, #tpu.memory_space<vmem>>, vector<8x1792xf32>
    %223 = vector.broadcast %0 : vector<1x1792xf32> to vector<8x1792xf32>
    %224 = arith.mulf %222, %223 : vector<8x1792xf32>
    %225 = vector.broadcast %1 : vector<1x1792xf32> to vector<8x1792xf32>
    %226 = arith.addf %224, %225 : vector<8x1792xf32>
    %227 = vector.extract_strided_slice %226 {offsets = [0, 0], sizes = [8, 448], strides = [1, 1]} : vector<8x1792xf32> to vector<8x448xf32>
    %228 = vector.extract_strided_slice %226 {offsets = [0, 448], sizes = [8, 448], strides = [1, 1]} : vector<8x1792xf32> to vector<8x448xf32>
    %229 = arith.maximumf %227, %228 : vector<8x448xf32>
    %230 = vector.extract_strided_slice %226 {offsets = [0, 896], sizes = [8, 448], strides = [1, 1]} : vector<8x1792xf32> to vector<8x448xf32>
    %231 = vector.extract_strided_slice %226 {offsets = [0, 1344], sizes = [8, 448], strides = [1, 1]} : vector<8x1792xf32> to vector<8x448xf32>
    %232 = arith.maximumf %230, %231 : vector<8x448xf32>
    %233 = arith.maximumf %229, %232 : vector<8x448xf32>
    %cst_68 = arith.constant 0.000000e+00 : f32
    %234 = vector.broadcast %cst_68 : f32 to vector<8x448xf32>
    %235 = arith.maximumf %233, %234 : vector<8x448xf32>
    %c12 = arith.constant 12 : index
    %c0_69 = arith.constant 0 : index
    %c0_70 = arith.constant 0 : index
    %236 = vector.load %arg3[%c12, %c0_69, %c0_70] : memref<14x448x128xf32, #tpu.memory_space<vmem>>, vector<1x448x128xf32>
    %237 = vector.shape_cast %236 : vector<1x448x128xf32> to vector<448x128xf32>
    %cst_71 = arith.constant dense<0.000000e+00> : vector<8x128xf32>
    %238 = tpu.matmul %235, %237, %cst_71 {dimension_numbers = #tpu.dot_dimension_numbers<[1], [0], [0], [1], [0, 0, 1, 1], [], []>} : vector<8x448xf32>, vector<448x128xf32>, vector<8x128xf32> -> vector<8x128xf32>
    %239 = arith.addf %221, %238 : vector<8x128xf32>
    %c0_72 = arith.constant 0 : index
    %c23296 = arith.constant 23296 : index
    %240 = vector.load %arg1[%c0_72, %c23296] : memref<8x25088xf32, #tpu.memory_space<vmem>>, vector<8x1792xf32>
    %241 = vector.broadcast %0 : vector<1x1792xf32> to vector<8x1792xf32>
    %242 = arith.mulf %240, %241 : vector<8x1792xf32>
    %243 = vector.broadcast %1 : vector<1x1792xf32> to vector<8x1792xf32>
    %244 = arith.addf %242, %243 : vector<8x1792xf32>
    %245 = vector.extract_strided_slice %244 {offsets = [0, 0], sizes = [8, 448], strides = [1, 1]} : vector<8x1792xf32> to vector<8x448xf32>
    %246 = vector.extract_strided_slice %244 {offsets = [0, 448], sizes = [8, 448], strides = [1, 1]} : vector<8x1792xf32> to vector<8x448xf32>
    %247 = arith.maximumf %245, %246 : vector<8x448xf32>
    %248 = vector.extract_strided_slice %244 {offsets = [0, 896], sizes = [8, 448], strides = [1, 1]} : vector<8x1792xf32> to vector<8x448xf32>
    %249 = vector.extract_strided_slice %244 {offsets = [0, 1344], sizes = [8, 448], strides = [1, 1]} : vector<8x1792xf32> to vector<8x448xf32>
    %250 = arith.maximumf %248, %249 : vector<8x448xf32>
    %251 = arith.maximumf %247, %250 : vector<8x448xf32>
    %cst_73 = arith.constant 0.000000e+00 : f32
    %252 = vector.broadcast %cst_73 : f32 to vector<8x448xf32>
    %253 = arith.maximumf %251, %252 : vector<8x448xf32>
    %c13 = arith.constant 13 : index
    %c0_74 = arith.constant 0 : index
    %c0_75 = arith.constant 0 : index
    %254 = vector.load %arg3[%c13, %c0_74, %c0_75] : memref<14x448x128xf32, #tpu.memory_space<vmem>>, vector<1x448x128xf32>
    %255 = vector.shape_cast %254 : vector<1x448x128xf32> to vector<448x128xf32>
    %cst_76 = arith.constant dense<0.000000e+00> : vector<8x128xf32>
    %256 = tpu.matmul %253, %255, %cst_76 {dimension_numbers = #tpu.dot_dimension_numbers<[1], [0], [0], [1], [0, 0, 1, 1], [], []>} : vector<8x448xf32>, vector<448x128xf32>, vector<8x128xf32> -> vector<8x128xf32>
    %257 = arith.addf %239, %256 : vector<8x128xf32>
    %c0_77 = arith.constant 0 : index
    %c0_78 = arith.constant 0 : index
    %258 = vector.load %arg5[%c0_77, %c0_78] : memref<8x128xf32, #tpu.memory_space<vmem>>, vector<8x128xf32>
    tpu.vector_store %arg5[%c0_77, %c0_78], %257 {strides = array<i32>} : memref<8x128xf32, #tpu.memory_space<vmem>>, vector<8x128xf32>,
    return
  }
  func.func @transform_0(%arg0: i32) -> (i32, i32) {
    %c0_i32 = arith.constant 0 : i32
    %c0_i32_0 = arith.constant 0 : i32
    return %arg0, %c0_i32 : i32, i32
  }
  func.func @transform_1(%arg0: i32) -> (i32, i32) {
    %c0_i32 = arith.constant 0 : i32
    %c0_i32_0 = arith.constant 0 : i32
    %c0_i32_1 = arith.constant 0 : i32
    return %c0_i32, %c0_i32_0 : i32, i32
  }
  func.func @transform_2(%arg0: i32) -> (i32, i32, i32) {
    %c0_i32 = arith.constant 0 : i32
    %c0_i32_0 = arith.constant 0 : i32
    %c0_i32_1 = arith.constant 0 : i32
    %c0_i32_2 = arith.constant 0 : i32
    return %c0_i32, %c0_i32_0, %c0_i32_1 : i32, i32, i32
  }
  func.func @transform_3(%arg0: i32) -> (i32, i32) {
    %c0_i32 = arith.constant 0 : i32
    %c0_i32_0 = arith.constant 0 : i32
    %c0_i32_1 = arith.constant 0 : i32
    return %c0_i32, %c0_i32_0 : i32, i32
  }
  func.func @transform_4(%arg0: i32) -> (i32, i32) {
    %c0_i32 = arith.constant 0 : i32
    %c0_i32_0 = arith.constant 0 : i32
    return %arg0, %c0_i32 : i32, i32
  }
}

</mosaic_0001>

<bundles_post_ra>
// kernel: tile.17
= control target key start
LH: loop header
LB: loop body
LE: loop exit
PB: predicated region body
PF: predicated region fallthrough
CT: control target
= control target key end

     0   :  { %s58_s0 = inlined_call_operand.vmem [shape: f32[32], index: 0, kind: input, shape index: {}]   ;;  %s59_s1 = inlined_call_operand.vmem [shape: f32[56,32], index: 1, kind: output, shape index: {}]  }
   0x1   :  { %v4_v0 = vld [vmem:[%s58_s0] ss:$0 sm:$0xff] }
   0x2   :  { %5 = vst [vmem:[%s59_s1] sm:$0xff] %v4_v0  ;;  %18 = vst [vmem:[%s59_s1 + $0x8] sm:$0xff] %v4_v0 }
   0x3   :  { %19 = vst [vmem:[%s59_s1 + $0x10] sm:$0xff] %v4_v0  ;;  %20 = vst [vmem:[%s59_s1 + $0x18] sm:$0xff] %v4_v0 }
   0x4   :  { %21 = vst [vmem:[%s59_s1 + $0x20] sm:$0xff] %v4_v0  ;;  %22 = vst [vmem:[%s59_s1 + $0x28] sm:$0xff] %v4_v0 }
   0x5   :  { %23 = vst [vmem:[%s59_s1 + $0x30] sm:$0xff] %v4_v0 }

// kernel: tile.19
= control target key start
LH: loop header
LB: loop body
LE: loop exit
PB: predicated region body
PF: predicated region fallthrough
CT: control target
= control target key end

     0   :  { %s179_s10 = smov 64   ;;  %s180_s11 = smov 96   ;;  %vm3_vm0 = vcmask 261120   ;;  %vm17_vm1 = vcmask 1048320   ;;  %vm33_vm2 = vcmask 785920   ;;  %vm49_vm3 = vcmask 523520   ;;  %s258_s0 = inlined_call_operand.vmem [shape: f32[56,32], index: 0, kind: input, shape index: {}]   ;;  %s259_s1 = inlined_call_operand.vmem [shape: f32[1,1792], index: 1, kind: output, shape index: {}]  }
   0x1   :  { %v159_v0 = vld [vmem:[%s258_s0 + $0x2] ss:$4 sm:$0xff]   ;;  %v157_v1 = vld [vmem:[%s258_s0 + $0x3] ss:$4 sm:$0xff]   ;;  %v2_v4 = vld [vmem:[%s258_s0] ss:$4 sm:$0xff]  }
   0x2   :  { %31 = vrot.lane.b32.xlu1 %v159_v0, %s179_s10  ;;  %15 = vrot.lane.b32.xlu0 %v157_v1, %s180_s11  ;;  %v160_v2 = vld [vmem:[%s258_s0 + $0x22] ss:$4 sm:$0x3f]   ;;  %v158_v3 = vld [vmem:[%s258_s0 + $0x23] ss:$4 sm:$0x3f]  }
   0x3   :  { %4 = vst.msk [vmem:[#allocation0] ss:$8 sm:$0xf] %vm3_vm0, %v2_v4   ;;  %5 = vst.msk [vmem:[#allocation0] ss:$8 sm:$0xf0] %vm3_vm0, %v2_v4  }
   0x4   :  { %v156_v5 = vld [vmem:[%s258_s0 + $0x20] ss:$4 sm:$0x3f]   ;;  %v162_v6 = vld [vmem:[%s258_s0 + $0x21] ss:$4 sm:$0x3f]  }
   0x5   :  { %10 = vst.msk [vmem:[#allocation0 + $0x40] ss:$8 sm:$0xf] %vm3_vm0, %v156_v5   ;;  %12 = vst.msk [vmem:[#allocation0 + $0x40] ss:$8 sm:$0x30] %vm3_vm0, %v156_v5  }
   0x6   :  { %38 = vrot.lane.b32.xlu1 %v160_v2, %s179_s10  ;;  %22 = vrot.lane.b32.xlu0 %v158_v3, %s180_s11  ;;  %v161_v7 = vld [vmem:[%s258_s0 + $0x1] ss:$4 sm:$0xff]   ;;  %s181_s0 = smov 32  }
   0xa   :  { %54 = vrot.lane.b32.xlu1 %v162_v6, %s181_s0  ;;  %47 = vrot.lane.b32.xlu0 %v161_v7, %s181_s0 }
  0x74   :  { %v32_v8 = vpop.permute.xlu1 %31   ;;  %v16_v9 = vpop.permute.xlu0 %15  }
  0x75   :  { %18 = vst.msk [vmem:[#allocation0] ss:$8 sm:$0xf] %vm17_vm1, %v16_v9   ;;  %19 = vst.msk [vmem:[#allocation0] ss:$8 sm:$0xf0] %vm17_vm1, %v16_v9  }
  0x76   :  { %34 = vst.msk [vmem:[#allocation0] ss:$8 sm:$0xf] %vm33_vm2, %v32_v8   ;;  %35 = vst.msk [vmem:[#allocation0] ss:$8 sm:$0xf0] %vm33_vm2, %v32_v8  }
  0x78   :  { %v39_v10 = vpop.permute.xlu1 %38   ;;  %v23_v11 = vpop.permute.xlu0 %22  }
  0x79   :  { %26 = vst.msk [vmem:[#allocation0 + $0x40] ss:$8 sm:$0xf] %vm17_vm1, %v23_v11   ;;  %28 = vst.msk [vmem:[#allocation0 + $0x40] ss:$8 sm:$0x30] %vm17_vm1, %v23_v11  }
  0x7a   :  { %42 = vst.msk [vmem:[#allocation0 + $0x40] ss:$8 sm:$0xf] %vm33_vm2, %v39_v10   ;;  %44 = vst.msk [vmem:[#allocation0 + $0x40] ss:$8 sm:$0x30] %vm33_vm2, %v39_v10  }
  0x7c   :  { %v55_v12 = vpop.permute.xlu1 %54   ;;  %v48_v13 = vpop.permute.xlu0 %47  }
  0x7d   :  { %58 = vst.msk [vmem:[#allocation0 + $0x40] ss:$8 sm:$0xf] %vm49_vm3, %v55_v12   ;;  %60 = vst.msk [vmem:[#allocation0 + $0x40] ss:$8 sm:$0x30] %vm49_vm3, %v55_v12  }
  0x7e   :  { %50 = vst.msk [vmem:[#allocation0] ss:$8 sm:$0xf] %vm49_vm3, %v48_v13   ;;  %51 = vst.msk [vmem:[#allocation0] ss:$8 sm:$0xf0] %vm49_vm3, %v48_v13  }
  0x84   :  { %v109_v14 = vld [vmem:[#allocation0 + $0x40] sm:$0x1]  ;;  %v115_v15 = vld [vmem:[#allocation0 + $0x48] sm:$0x1]  ;;  %v121_v16 = vld [vmem:[#allocation0 + $0x50] sm:$0x1] }
  0x85   :  { %170 = vst [vmem:[%s259_s1 + $0x8] sm:$0x1] %v109_v14  ;;  %171 = vst [vmem:[%s259_s1 + $0x9] sm:$0x1] %v115_v15  ;;  %v127_v17 = vld [vmem:[#allocation0 + $0x58] sm:$0x1] }
  0x86   :  { %172 = vst [vmem:[%s259_s1 + $0xa] sm:$0x1] %v121_v16  ;;  %v133_v18 = vld [vmem:[#allocation0 + $0x60] sm:$0x1]  ;;  %v139_v19 = vld [vmem:[#allocation0 + $0x68] sm:$0x1] }
  0x87   :  { %173 = vst [vmem:[%s259_s1 + $0xb] sm:$0x1] %v127_v17  ;;  %174 = vst [vmem:[%s259_s1 + $0xc] sm:$0x1] %v133_v18  ;;  %v64_v20 = vld [vmem:[#allocation0] sm:$0x1] }
  0x88   :  { %175 = vst [vmem:[%s259_s1 + $0xd] sm:$0x1] %v139_v19  ;;  %v68_v21 = vld [vmem:[#allocation0 + $0x8] sm:$0x1]  ;;  %v73_v22 = vld [vmem:[#allocation0 + $0x10] sm:$0x1] }
  0x89   :  { %66 = vst [vmem:[%s259_s1] sm:$0x1] %v64_v20  ;;  %163 = vst [vmem:[%s259_s1 + $0x1] sm:$0x1] %v68_v21  ;;  %v79_v23 = vld [vmem:[#allocation0 + $0x18] sm:$0x1] }
  0x8a   :  { %164 = vst [vmem:[%s259_s1 + $0x2] sm:$0x1] %v73_v22  ;;  %v85_v24 = vld [vmem:[#allocation0 + $0x20] sm:$0x1]  ;;  %v91_v25 = vld [vmem:[#allocation0 + $0x28] sm:$0x1] }
  0x8b   :  { %165 = vst [vmem:[%s259_s1 + $0x3] sm:$0x1] %v79_v23  ;;  %166 = vst [vmem:[%s259_s1 + $0x4] sm:$0x1] %v85_v24  ;;  %v97_v26 = vld [vmem:[#allocation0 + $0x30] sm:$0x1] }
  0x8c   :  { %167 = vst [vmem:[%s259_s1 + $0x5] sm:$0x1] %v91_v25  ;;  %v103_v27 = vld [vmem:[#allocation0 + $0x38] sm:$0x1]  ;;  %168 = vst [vmem:[%s259_s1 + $0x6] sm:$0x1] %v97_v26 }
  0x8d   :  { %169 = vst [vmem:[%s259_s1 + $0x7] sm:$0x1] %v103_v27 }

// kernel: cnn_forward.2
= control target key start
LH: loop header
LB: loop body
LE: loop exit
PB: predicated region body
PF: predicated region fallthrough
CT: control target
= control target key end

     0   :  { %10 = vsyncpa [#allocation3], 0  ;;  %s2677_s0 = inlined_call_operand.vmem [shape: f32[224,160], index: 0, kind: input, shape index: {}]   ;;  %s2678_s1 = inlined_call_operand.hbm [shape: f32[160,896], index: 1, kind: input, shape index: {}]   ;;  %s2679_s2 = inlined_call_operand.hbm [shape: f32[1,896], index: 2, kind: input, shape index: {}]   ;;  %s2680_s3 = inlined_call_operand.vmem [shape: f32[224,896], index: 3, kind: output, shape index: {0}]   ;;  %s2681_s4 = inlined_call_operand.vmem [shape: f32[2,2,896], index: 4, kind: output, shape index: {1}]  }
   0x1   :  { %11 = vsyncpa [#allocation5], 0  ;;  %s2064_s15 = smov 0  }
   0x2 LB: > { %s2070_s16 = sadd.s32 4294967295, %s2031_s15   ;;  %p1706_p0 = scmp.ge.s32.totalorder %s2031_s15, 1  ;;  %s2031_s15 = sphi %s2064_s15, %s17_s15  }
   0x3   : > { %p142_p1 = scmp.lt.s32.totalorder %s2031_s15, 3  ;;  %s2033_s17 = smov [#allocation2]  }
   0x4   : > { %s154_s18 = sshll.u32 %s2033_s17, 4  ;;  %p2682_p3 = scmp.eq.s32.totalorder %s2070_s16, 0  ;;  %s155_s18 = int_to_ptr.vmem [resolvable:$true] %s154_s18 }
   0x5   : > { %p2074_p2 = pnand %p1706_p0, %p142_p1  ;;  %s2034_s20 = smov [#allocation4]  }
   0x6   : > { %s168_s21 = sshll.u32 %s2034_s20, 4  ;;  %s1961_s25 = scalar_lea.hbm %s2678_s1, 17920  ;;  %s2087_s21 = int_to_ptr.vmem [resolvable:$true] %s168_s21 }
   0x7   : > { %s2684_s19 = scalar_select %p2074_p2, 1, 0 }
   0x8   : > { %p1936_p4 = pneg %p2074_p2  ;;  %p1962_p6 = scmp.ne.s32.totalorder %s2678_s1, %s1961_s25 }
   0x9   : > { %p1968_p10 = scmp.lt.u32.totalorder %s1961_s25, %s2678_s1 }
   0xa   : > { %p2083_p5 = pnand %p2682_p3, %p1936_p4 }
   0xc   : > { %p1963_p7 = pneg %p2083_p5 }
   0xe   : > { %p1964_p8 = pnand %p1963_p7, %p1962_p6 }
  0x10   : > { %p1965_p9 = pneg %p1964_p8 }
  0x12   : > { %p1970_p11 = pnand %p1968_p10, %p1965_p9 }
  0x14   : > { %1973 = shalt.err (!%p1970_p11)
}
  0x15   : > { %s1974_s30 = scalar_lea.vmem %s155_s18, 17920  ;;  %p1982_p1 = scmp.lt.s32.totalorder %s155_s18, %s155_s18 }
  0x16   : > { %p1975_p12 = scmp.ne.s32.totalorder %s155_s18, %s1974_s30  ;;  %p1983_p4 = scmp.lt.s32.totalorder %s1974_s30, %s1974_s30 }
  0x18   : > { %p1977_p13 = pnand %p1975_p12, %p1963_p7  ;;  %p1984_p3 = por %p1983_p4, %p1982_p1 }
  0x1a   : > { %p1978_p0 = pneg %p1977_p13 }
  0x1c   : > { %p1985_p2 = pnand %p1984_p3, %p1978_p0 }
  0x1e   : > { %1988 = shalt.err (!%p1985_p2)
}
  0x1f   : > { %s2035_s5 = smov 896   ;;  %s2036_s6 = smov 56  }
  0x20   : > { %1939 = dma.hbm_to_vmem [thread:$0]  (!%p2083_p5), %s2678_s1, 17920, %s155_s18, [#allocation3], %s2035_s5, %s2035_s5, %s2036_s6  }
  0x21   : > { %s1989_s11 = scalar_lea.hbm %s2679_s2, 112 }
  0x22   : > { %p1990_p6 = scmp.ne.s32.totalorder %s2679_s2, %s1989_s11  ;;  %p1996_p8 = scmp.lt.u32.totalorder %s1989_s11, %s2679_s2 }
  0x24   : > { %p1992_p2 = pnand %p1990_p6, %p1963_p7 }
  0x26   : > { %p1993_p3 = pneg %p1992_p2 }
  0x28   : > { %p1998_p9 = pnand %p1996_p8, %p1993_p3 }
  0x2a   : > { %2001 = shalt.err (!%p1998_p9)
}
  0x2b   : > { %s2002_s18 = scalar_lea.vmem %s2087_s21, 112  ;;  %s2009_s20 = scalar_lea.vmem %s2087_s21, 128 }
  0x2c   : > { %p2003_p10 = scmp.ne.s32.totalorder %s2087_s21, %s2002_s18  ;;  %p2010_p13 = scmp.lt.s32.totalorder %s2087_s21, %s2087_s21 }
  0x2d   : > { %p2011_p0 = scmp.lt.s32.totalorder %s2009_s20, %s2002_s18 }
  0x2e   : > { %p2005_p11 = pnand %p2003_p10, %p1963_p7 }
  0x2f   : > { %p2012_p1 = por %p2011_p0, %p2010_p13 }
  0x30   : > { %p2006_p12 = pneg %p2005_p11 }
  0x32   : > { %p2013_p4 = pnand %p2012_p1, %p2006_p12 }
  0x34   : > { %2016 = shalt.err (!%p2013_p4)
}
  0x35   : > { %1942 = dma.hbm_to_vmem [thread:$0]  (!%p2083_p5), %s2679_s2, 112, %s2087_s21, [#allocation5]  }
  0x36   : > { %p2686_p6 = scmp.ne.s32.totalorder %s2684_s19, 0 }
  0x37   : > { %p2687_p7 = scmp.eq.s32.totalorder (!%p2686_p6), %s2070_s16, 0 }
  0x38   : > { %191 = sbr.rel (%p2686_p6) target bundleno = 465 (0x1d1), region = 32 }
  0x3f   : > { %2022 = dma.done.wait (%p2687_p7), [#allocation3], 17920   ;;  %p2688_p2 = pmov %p2687_p7 }
  0x41   : > { %2024 = vsyncadd (%p2688_p2), [#allocation3], 4294949376  ;;  %p2689_p3 = pmov %p2688_p2 }
  0x42   : > { %p2690_p8 = pmov %p2688_p2 }
  0x43   : > { %2026 = dma.done.wait (%p2689_p3), [#allocation5], 112  }
  0x44   : > { %2028 = vsyncadd (%p2690_p8), [#allocation5], 4294967184  ;;  %v276_v0 = vld [vmem:[#allocation2 + $0x8] sm:$0xff]  ;;  %v283_v1 = vld [vmem:[#allocation2 + $0x40] sm:$0xff]  ;;  %s228_s19 = smul.u32 14, %s2070_s16  ;;  %vm452_vm0 = vcmask 261120  }
  0x45   : > { %v278_v2 = vld [vmem:[#allocation2 + $0x18] sm:$0xff]  ;;  %v1776_v3 = vpack.c.bf16 %v283_v1, %v276_v0  ;;  %v285_v4 = vld [vmem:[#allocation2 + $0x50] sm:$0xff]  ;;  %v275_v5 = vld [vmem:[#allocation2] sm:$0xff]  ;;  %vm1539_vm1 = vcmask 1040384   ;;  %p242_p9 = scmp.lt.s32.totalorder %s2070_s16, 1 }
  0x46   : > { %v282_v6 = vld [vmem:[#allocation2 + $0x38] sm:$0xff]  ;;  %v1816_v7 = vpack.c.bf16 %v285_v4, %v278_v2  ;;  %v277_v9 = vld [vmem:[#allocation2 + $0x10] sm:$0xff]  ;;  %v284_v10 = vld [vmem:[#allocation2 + $0x48] sm:$0xff]  ;;  %p2150_p5 = scmp.lt.s32.totalorder %s228_s19, 27 }
  0x47   : > { %v1778_v8 = vpack.c.bf16 %v282_v6, %v275_v5  ;;  %v290_v11 = vld [vmem:[#allocation2 + $0x78] sm:$0xff]  ;;  %1777 = vmatprep.subr.bf16.mxu0 %v1776_v3  ;;  %v1818_v12 = vpack.c.bf16 %v284_v10, %v277_v9  ;;  %v297_v13 = vld [vmem:[#allocation2 + $0xb0] sm:$0xff]  ;;  %v292_v14 = vld [vmem:[#allocation2 + $0x88] sm:$0xff]  ;;  %s2695_s16 = smov (!%p242_p9, %s2070_s16), 1 }
  0x48   : > { %v299_v15 = vld [vmem:[#allocation2 + $0xc0] sm:$0xff]  ;;  %1817 = vmatprep.subr.bf16.mxu1 %v1816_v7  ;;  %v1780_v16 = vpack.c.bf16 %v297_v13, %v290_v11  ;;  %v289_v18 = vld [vmem:[#allocation2 + $0x70] sm:$0xff]  ;;  %v296_v19 = vld [vmem:[#allocation2 + $0xa8] sm:$0xff]  ;;  %s2693_s19 = smov (!%p2150_p5, %s228_s19), 27  ;;  %s1927_s6 = smul.u32 14, %s2695_s16 }
  0x49   : > { %1779 = vmatpush1.bf16.msra.mxu0 %v1778_v8  ;;  %v1820_v17 = vpack.c.bf16 %v299_v15, %v292_v14  ;;  %v291_v20 = vld [vmem:[#allocation2 + $0x80] sm:$0xff]  ;;  %1819 = vmatpush1.bf16.msra.mxu1 %v1818_v12  ;;  %v1782_v21 = vpack.c.bf16 %v296_v19, %v289_v18  ;;  %v298_v22 = vld [vmem:[#allocation2 + $0xb8] sm:$0xff]  ;;  %v304_v23 = vld [vmem:[#allocation2 + $0xe8] sm:$0xff]  ;;  %s1775_s22 = sshll.u32 %s2693_s19, 4  ;;  %s1926_s28 = smul.u32 56, %s2693_s19 }
  0x4a   : > { %v311_v24 = vld [vmem:[#allocation2 + $0x120] sm:$0xff]  ;;  %1781 = vmatprep.subr.bf16.mxu0 %v1780_v16  ;;  %v1822_v25 = vpack.c.bf16 %v298_v22, %v291_v20  ;;  %v306_v27 = vld [vmem:[#allocation2 + $0xf8] sm:$0xff]  ;;  %v313_v28 = vld [vmem:[#allocation2 + $0x130] sm:$0xff]  ;;  %s2164_s27 = scalar_lea.vmem %s2677_s0, %s1775_s22  ;;  %s2593_s8 = scalar_lea.vmem %s2681_s4, %s1927_s6 }
  0x4b   : > { %1821 = vmatprep.subr.bf16.mxu1 %v1820_v17  ;;  %v1784_v26 = vpack.c.bf16 %v311_v24, %v304_v23  ;;  %v303_v29 = vld [vmem:[#allocation2 + $0xe0] sm:$0xff]  ;;  %v1824_v30 = vpack.c.bf16 %v313_v28, %v306_v27  ;;  %v310_v31 = vld [vmem:[#allocation2 + $0x118] sm:$0xff]  ;;  %v305_v32 = vld [vmem:[#allocation2 + $0xf0] sm:$0xff]  ;;  %s2416_s5 = scalar_lea.vmem %s2680_s3, %s1926_s28 }
  0x4c   : > { %v312_v33 = vld [vmem:[#allocation2 + $0x128] sm:$0xff]  ;;  %v1786_v34 = vpack.c.bf16 %v310_v31, %v303_v29  ;;  %v318_v35 = vld [vmem:[#allocation2 + $0x158] sm:$0xff]  ;;  %v325_v36 = vld [vmem:[#allocation2 + $0x190] sm:$0xff] }
  0x4d   : > { %1783 = vmatpush1.bf16.msra.mxu0 %v1782_v21  ;;  %v320_v37 = vld [vmem:[#allocation2 + $0x168] sm:$0xff]  ;;  %1823 = vmatpush1.bf16.msra.mxu1 %v1822_v25  ;;  %v1826_v38 = vpack.c.bf16 %v312_v33, %v305_v32  ;;  %v1788_v39 = vpack.c.bf16 %v325_v36, %v318_v35  ;;  %v327_v40 = vld [vmem:[#allocation2 + $0x1a0] sm:$0xff]  ;;  %v317_v41 = vld [vmem:[#allocation2 + $0x150] sm:$0xff] }
  0x4e   : > { %1785 = vmatprep.subr.bf16.mxu0 %v1784_v26  ;;  %v324_v42 = vld [vmem:[#allocation2 + $0x188] sm:$0xff]  ;;  %1825 = vmatprep.subr.bf16.mxu1 %v1824_v30  ;;  %v1828_v43 = vpack.c.bf16 %v327_v40, %v320_v37  ;;  %v319_v44 = vld [vmem:[#allocation2 + $0x160] sm:$0xff]  ;;  %v326_v45 = vld [vmem:[#allocation2 + $0x198] sm:$0xff] }
  0x4f   : > { %v332_v46 = vld [vmem:[#allocation2 + $0x1c8] sm:$0xff]  ;;  %v339_v47 = vld [vmem:[#allocation2 + $0x200] sm:$0xff]  ;;  %v334_v48 = vld [vmem:[#allocation2 + $0x1d8] sm:$0xff]  ;;  %v1790_v50 = vpack.c.bf16 %v324_v42, %v317_v41  ;;  %v1830_v51 = vpack.c.bf16 %v326_v45, %v319_v44 }
  0x50   : > { %v341_v49 = vld [vmem:[#allocation2 + $0x210] sm:$0xff]  ;;  %v1792_v52 = vpack.c.bf16 %v339_v47, %v332_v46  ;;  %v331_v53 = vld [vmem:[#allocation2 + $0x1c0] sm:$0xff]  ;;  %v338_v54 = vld [vmem:[#allocation2 + $0x1f8] sm:$0xff] }
  0x51   : > { %1787 = vmatpush1.bf16.msra.mxu0 %v1786_v34  ;;  %1827 = vmatpush1.bf16.msra.mxu1 %v1826_v38  ;;  %v333_v55 = vld [vmem:[#allocation2 + $0x1d0] sm:$0xff]  ;;  %v1832_v56 = vpack.c.bf16 %v341_v49, %v334_v48  ;;  %v340_v57 = vld [vmem:[#allocation2 + $0x208] sm:$0xff]  ;;  %v346_v58 = vld [vmem:[#allocation2 + $0x238] sm:$0xff]  ;;  %v1794_v62 = vpack.c.bf16 %v338_v54, %v331_v53 }
  0x52   : > { %1789 = vmatprep.subr.bf16.mxu0 %v1788_v39  ;;  %1829 = vmatprep.subr.bf16.mxu1 %v1828_v43  ;;  %v353_v59 = vld [vmem:[#allocation2 + $0x270] sm:$0xff]  ;;  %v348_v60 = vld [vmem:[#allocation2 + $0x248] sm:$0xff]  ;;  %v355_v61 = vld [vmem:[#allocation2 + $0x280] sm:$0xff]  ;;  %v1834_v63 = vpack.c.bf16 %v340_v57, %v333_v55 }
  0x53   : > { %v1796_v0 = vpack.c.bf16 %v353_v59, %v346_v58  ;;  %v345_v1 = vld [vmem:[#allocation2 + $0x230] sm:$0xff]  ;;  %v352_v2 = vld [vmem:[#allocation2 + $0x268] sm:$0xff]  ;;  %v347_v3 = vld [vmem:[#allocation2 + $0x240] sm:$0xff]  ;;  %v1836_v4 = vpack.c.bf16 %v355_v61, %v348_v60 }
  0x54   : > { %v354_v5 = vld [vmem:[#allocation2 + $0x278] sm:$0xff]  ;;  %v360_v6 = vld [vmem:[#allocation2 + $0x2a8] sm:$0xff]  ;;  %v367_v7 = vld [vmem:[#allocation2 + $0x2e0] sm:$0xff]  ;;  %v1798_v10 = vpack.c.bf16 %v352_v2, %v345_v1 }
  0x55   : > { %1791 = vmatpush1.bf16.msra.mxu0 %v1790_v50  ;;  %1831 = vmatpush1.bf16.msra.mxu1 %v1830_v51  ;;  %v362_v8 = vld [vmem:[#allocation2 + $0x2b8] sm:$0xff]  ;;  %v369_v9 = vld [vmem:[#allocation2 + $0x2f0] sm:$0xff]  ;;  %v1838_v11 = vpack.c.bf16 %v354_v5, %v347_v3  ;;  %v1800_v12 = vpack.c.bf16 %v367_v7, %v360_v6  ;;  %v359_v13 = vld [vmem:[#allocation2 + $0x2a0] sm:$0xff]  ;;  %v2037_v5 = vmov 0.0|0.0  }
  0x56   : > { %1793 = vmatprep.subr.bf16.mxu0 %v1792_v52  ;;  %1833 = vmatprep.subr.bf16.mxu1 %v1832_v56  ;;  %v366_v14 = vld [vmem:[#allocation2 + $0x2d8] sm:$0xff]  ;;  %v361_v15 = vld [vmem:[#allocation2 + $0x2b0] sm:$0xff]  ;;  %v1840_v16 = vpack.c.bf16 %v369_v9, %v362_v8  ;;  %v368_v17 = vld [vmem:[#allocation2 + $0x2e8] sm:$0xff] }
  0x57   : > { %v374_v18 = vld [vmem:[#allocation2 + $0x318] sm:$0xff]  ;;  %v381_v19 = vld [vmem:[#allocation2 + $0x350] sm:$0xff]  ;;  %v376_v20 = vld [vmem:[#allocation2 + $0x328] sm:$0xff]  ;;  %v1802_v22 = vpack.c.bf16 %v366_v14, %v359_v13  ;;  %v1842_v24 = vpack.c.bf16 %v368_v17, %v361_v15 }
  0x58   : > { %v383_v21 = vld [vmem:[#allocation2 + $0x360] sm:$0xff]  ;;  %v373_v23 = vld [vmem:[#allocation2 + $0x310] sm:$0xff]  ;;  %v1804_v25 = vpack.c.bf16 %v381_v19, %v374_v18  ;;  %v380_v26 = vld [vmem:[#allocation2 + $0x348] sm:$0xff] }
  0x59   : > { %1795 = vmatpush1.bf16.msra.mxu0 %v1794_v62  ;;  %1835 = vmatpush1.bf16.msra.mxu1 %v1834_v63  ;;  %v375_v27 = vld [vmem:[#allocation2 + $0x320] sm:$0xff]  ;;  %v382_v28 = vld [vmem:[#allocation2 + $0x358] sm:$0xff]  ;;  %v1844_v29 = vpack.c.bf16 %v383_v21, %v376_v20  ;;  %v388_v30 = vld [vmem:[#allocation2 + $0x388] sm:$0xff]  ;;  %v1806_v35 = vpack.c.bf16 %v380_v26, %v373_v23 }
  0x5a   : > { %1797 = vmatprep.subr.bf16.mxu0 %v1796_v0  ;;  %1837 = vmatprep.subr.bf16.mxu1 %v1836_v4  ;;  %v395_v31 = vld [vmem:[#allocation2 + $0x3c0] sm:$0xff]  ;;  %v2167_v32 = vld [vmem:[%s2164_s27 + $0x8] sm:$0xff]  ;;  %v390_v33 = vld [vmem:[#allocation2 + $0x398] sm:$0xff]  ;;  %v1846_v36 = vpack.c.bf16 %v382_v28, %v375_v27 }
  0x5b   : > { %v397_v34 = vld [vmem:[#allocation2 + $0x3d0] sm:$0xff]  ;;  %1717 = vmatprep.mubr.msk.f32.mxu0 %vm452_vm0, %v2167_v32  ;;  %1731 = vmatprep.mubr.msk.f32.mxu1 %vm452_vm0, %v2167_v32  ;;  %v1808_v37 = vpack.c.bf16 %v395_v31, %v388_v30  ;;  %v387_v38 = vld [vmem:[#allocation2 + $0x380] sm:$0xff]  ;;  %v394_v39 = vld [vmem:[#allocation2 + $0x3b8] sm:$0xff] }
  0x5c   : > { %v389_v40 = vld [vmem:[#allocation2 + $0x390] sm:$0xff]  ;;  %v1848_v41 = vpack.c.bf16 %v397_v34, %v390_v33  ;;  %v396_v42 = vld [vmem:[#allocation2 + $0x3c8] sm:$0xff]  ;;  %v402_v43 = vld [vmem:[#allocation2 + $0x3f8] sm:$0xff]  ;;  %v1810_v47 = vpack.c.bf16 %v394_v39, %v387_v38 }
  0x5d   : > { %1799 = vmatpush1.bf16.msra.mxu0 %v1798_v10  ;;  %1839 = vmatpush1.bf16.msra.mxu1 %v1838_v11  ;;  %v409_v44 = vld [vmem:[#allocation2 + $0x430] sm:$0xff]  ;;  %v404_v45 = vld [vmem:[#allocation2 + $0x408] sm:$0xff]  ;;  %v411_v46 = vld [vmem:[#allocation2 + $0x440] sm:$0xff]  ;;  %v1850_v48 = vpack.c.bf16 %v396_v42, %v389_v40 }
  0x5e   : > { %1801 = vmatprep.subr.bf16.mxu0 %v1800_v12  ;;  %1841 = vmatprep.subr.bf16.mxu1 %v1840_v16  ;;  %v1812_v49 = vpack.c.bf16 %v409_v44, %v402_v43  ;;  %v401_v50 = vld [vmem:[#allocation2 + $0x3f0] sm:$0xff]  ;;  %v408_v51 = vld [vmem:[#allocation2 + $0x428] sm:$0xff]  ;;  %v403_v52 = vld [vmem:[#allocation2 + $0x400] sm:$0xff]  ;;  %v1852_v53 = vpack.c.bf16 %v411_v46, %v404_v45 }
  0x5f   : > { %v410_v54 = vld [vmem:[#allocation2 + $0x438] sm:$0xff]  ;;  %v280_v55 = vld [vmem:[#allocation2 + $0x28] sm:$0xff]  ;;  %v287_v56 = vld [vmem:[#allocation2 + $0x60] sm:$0xff]  ;;  %v1814_v57 = vpack.c.bf16 %v408_v51, %v401_v50 }
  0x60   : > { %v1854_v58 = vpack.c.bf16 %v410_v54, %v403_v52  ;;  %v1856_v59 = vpack.c.bf16 %v287_v56, %v280_v55  ;;  %v279_v60 = vld [vmem:[#allocation2 + $0x20] sm:$0xff]  ;;  %v286_v61 = vld [vmem:[#allocation2 + $0x58] sm:$0xff]  ;;  %v281_v62 = vld [vmem:[#allocation2 + $0x30] sm:$0xff] }
  0x61   : > { %1803 = vmatpush1.bf16.msra.mxu0 %v1802_v22  ;;  %1843 = vmatpush1.bf16.msra.mxu1 %v1842_v24  ;;  %v288_v63 = vld [vmem:[#allocation2 + $0x68] sm:$0xff]  ;;  %v294_v0 = vld [vmem:[#allocation2 + $0x98] sm:$0xff]  ;;  %v301_v1 = vld [vmem:[#allocation2 + $0xd0] sm:$0xff]  ;;  %v1858_v3 = vpack.c.bf16 %v286_v61, %v279_v60 }
  0x62   : > { %1805 = vmatprep.subr.bf16.mxu0 %v1804_v25  ;;  %1845 = vmatprep.subr.bf16.mxu1 %v1844_v29  ;;  %v2174_v2 = vld [vmem:[%s2164_s27] sm:$0xff]  ;;  %v2177_v4 = vld [vmem:[%s2164_s27 + $0x18] sm:$0xff]  ;;  %v1897_v6 = vpack.c.bf16 %v288_v63, %v281_v62  ;;  %v1860_v7 = vpack.c.bf16 %v301_v1, %v294_v0  ;;  %v293_v8 = vld [vmem:[#allocation2 + $0x90] sm:$0xff] }
  0x63   : > { %v300_v9 = vld [vmem:[#allocation2 + $0xc8] sm:$0xff]  ;;  %v295_v10 = vld [vmem:[#allocation2 + $0xa0] sm:$0xff]  ;;  %v302_v11 = vld [vmem:[#allocation2 + $0xd8] sm:$0xff] }
  0x64   : > { %v308_v12 = vld [vmem:[#allocation2 + $0x108] sm:$0xff]  ;;  %v315_v13 = vld [vmem:[#allocation2 + $0x140] sm:$0xff]  ;;  %v2183_v14 = vld [vmem:[%s2164_s27 + $0x10] sm:$0xff]  ;;  %v1862_v16 = vpack.c.bf16 %v300_v9, %v293_v8  ;;  %v1900_v17 = vpack.c.bf16 %v302_v11, %v295_v10 }
  0x65   : > { %1807 = vmatpush1.bf16.msra.mxu0 %v1806_v35  ;;  %1847 = vmatpush1.bf16.msra.mxu1 %v1846_v36  ;;  %v2190_v15 = vld [vmem:[%s2164_s27 + $0x28] sm:$0xff]  ;;  %v1864_v18 = vpack.c.bf16 %v315_v13, %v308_v12  ;;  %v307_v19 = vld [vmem:[#allocation2 + $0x100] sm:$0xff]  ;;  %v314_v20 = vld [vmem:[#allocation2 + $0x138] sm:$0xff] }
  0x66   : > { %1809 = vmatprep.subr.bf16.mxu0 %v1808_v37  ;;  %1849 = vmatprep.subr.bf16.mxu1 %v1848_v41  ;;  %v309_v21 = vld [vmem:[#allocation2 + $0x110] sm:$0xff]  ;;  %v316_v22 = vld [vmem:[#allocation2 + $0x148] sm:$0xff]  ;;  %v322_v23 = vld [vmem:[#allocation2 + $0x178] sm:$0xff]  ;;  %v1866_v27 = vpack.c.bf16 %v314_v20, %v307_v19 }
  0x67   : > { %v329_v24 = vld [vmem:[#allocation2 + $0x1b0] sm:$0xff]  ;;  %v2198_v25 = vld [vmem:[%s2164_s27 + $0x20] sm:$0xff]  ;;  %v2203_v26 = vld [vmem:[%s2164_s27 + $0x38] sm:$0xff]  ;;  %v1903_v28 = vpack.c.bf16 %v316_v22, %v309_v21 }
  0x68   : > { %v1868_v29 = vpack.c.bf16 %v329_v24, %v322_v23  ;;  %v321_v30 = vld [vmem:[#allocation2 + $0x170] sm:$0xff]  ;;  %v328_v31 = vld [vmem:[#allocation2 + $0x1a8] sm:$0xff]  ;;  %v323_v33 = vld [vmem:[#allocation2 + $0x180] sm:$0xff] }
  0x69   : > { %1811 = vmatpush1.bf16.msra.mxu0 %v1810_v47  ;;  %1851 = vmatpush1.bf16.msra.mxu1 %v1850_v48  ;;  %v330_v34 = vld [vmem:[#allocation2 + $0x1b8] sm:$0xff]  ;;  %v336_v35 = vld [vmem:[#allocation2 + $0x1e8] sm:$0xff]  ;;  %v343_v36 = vld [vmem:[#allocation2 + $0x220] sm:$0xff]  ;;  %v1870_v39 = vpack.c.bf16 %v328_v31, %v321_v30 }
  0x6a   : > { %1813 = vmatprep.subr.bf16.mxu0 %v1812_v49  ;;  %1853 = vmatprep.subr.bf16.mxu1 %v1852_v53  ;;  %v2211_v37 = vld [vmem:[%s2164_s27 + $0x30] sm:$0xff]  ;;  %v2216_v38 = vld [vmem:[%s2164_s27 + $0x48] sm:$0xff]  ;;  %v1906_v40 = vpack.c.bf16 %v330_v34, %v323_v33  ;;  %v1872_v41 = vpack.c.bf16 %v343_v36, %v336_v35  ;;  %v335_v42 = vld [vmem:[#allocation2 + $0x1e0] sm:$0xff] }
  0x6b   : > { %v342_v43 = vld [vmem:[#allocation2 + $0x218] sm:$0xff]  ;;  %v337_v44 = vld [vmem:[#allocation2 + $0x1f0] sm:$0xff]  ;;  %v344_v45 = vld [vmem:[#allocation2 + $0x228] sm:$0xff] }
  0x6c   : > { %v350_v46 = vld [vmem:[#allocation2 + $0x258] sm:$0xff]  ;;  %v357_v47 = vld [vmem:[#allocation2 + $0x290] sm:$0xff]  ;;  %v2224_v48 = vld [vmem:[%s2164_s27 + $0x40] sm:$0xff]  ;;  %v1874_v50 = vpack.c.bf16 %v342_v43, %v335_v42  ;;  %v1909_v51 = vpack.c.bf16 %v344_v45, %v337_v44 }
  0x6d   : > { %1815 = vmatpush1.bf16.msra.mxu0 %v1814_v57  ;;  %1855 = vmatpush1.bf16.msra.mxu1 %v1854_v58  ;;  %v2229_v49 = vld [vmem:[%s2164_s27 + $0x58] sm:$0xff]  ;;  %v1876_v52 = vpack.c.bf16 %v357_v47, %v350_v46  ;;  %v349_v53 = vld [vmem:[#allocation2 + $0x250] sm:$0xff]  ;;  %v356_v54 = vld [vmem:[#allocation2 + $0x288] sm:$0xff] }
  0x6e   : > { %1857 = vmatprep.subr.bf16.mxu0 %v1856_v59  ;;  %1896 = vmatprep.subr.bf16.mxu1 %v2037_v5  ;;  %v351_v55 = vld [vmem:[#allocation2 + $0x260] sm:$0xff]  ;;  %v358_v56 = vld [vmem:[#allocation2 + $0x298] sm:$0xff]  ;;  %v364_v57 = vld [vmem:[#allocation2 + $0x2c8] sm:$0xff]  ;;  %v1878_v61 = vpack.c.bf16 %v356_v54, %v349_v53 }
  0x6f   : > { %v371_v58 = vld [vmem:[#allocation2 + $0x300] sm:$0xff]  ;;  %v2237_v59 = vld [vmem:[%s2164_s27 + $0x50] sm:$0xff]  ;;  %v2242_v60 = vld [vmem:[%s2164_s27 + $0x68] sm:$0xff]  ;;  %v1912_v62 = vpack.c.bf16 %v358_v56, %v351_v55 }
  0x70   : > { %560 = vmatmul.mubr.f32.vlgmr.msra.gmra.mrb[0].mxu0 %v2174_v2  ;;  %709 = vmatmul.mubr.f32.vlgmr.msra.gmra.mrb[0].mxu1 %v2174_v2  ;;  %v1880_v63 = vpack.c.bf16 %v371_v58, %v364_v57  ;;  %v363_v0 = vld [vmem:[#allocation2 + $0x2c0] sm:$0xff]  ;;  %v370_v1 = vld [vmem:[#allocation2 + $0x2f8] sm:$0xff]  ;;  %v385_v8 = vld [vmem:[#allocation2 + $0x370] sm:$0xff] }
  0x71   : > { %1859 = vmatpush1.bf16.msra.mxu0 %v1858_v3  ;;  %1718 = vmatprep.mubr.msk.f32.mxu0 %vm452_vm0, %v2177_v4  ;;  %v365_v3 = vld [vmem:[#allocation2 + $0x2d0] sm:$0xff]  ;;  %v2250_v9 = vld [vmem:[%s2164_s27 + $0x60] sm:$0xff]  ;;  %v2255_v10 = vld [vmem:[%s2164_s27 + $0x78] sm:$0xff]  ;;  %v1882_v11 = vpack.c.bf16 %v370_v1, %v363_v0 }
  0x72   : > { %1732 = vmatprep.mubr.msk.f32.mxu1 %vm452_vm0, %v2177_v4  ;;  %1898 = vmatpush1.bf16.msra.mxu1 %v1897_v6  ;;  %v372_v6 = vld [vmem:[#allocation2 + $0x308] sm:$0xff]  ;;  %v386_v19 = vld [vmem:[#allocation2 + $0x378] sm:$0xff]  ;;  %v399_v21 = vld [vmem:[#allocation2 + $0x3e0] sm:$0xff] }
  0x73   : > { %1861 = vmatprep.subr.bf16.mxu0 %v1860_v7  ;;  %1899 = vmatprep.subr.bf16.mxu1 %v2037_v5  ;;  %v378_v7 = vld [vmem:[#allocation2 + $0x338] sm:$0xff]  ;;  %v1915_v12 = vpack.c.bf16 %v372_v6, %v365_v3  ;;  %v392_v20 = vld [vmem:[#allocation2 + $0x3a8] sm:$0xff]  ;;  %v2263_v22 = vld [vmem:[%s2164_s27 + $0x70] sm:$0xff] }
  0x74   : > { %566 = vmatmul.mubr.f32.gmra.mrb[2].mxu0 %v2183_v14  ;;  %715 = vmatmul.mubr.f32.gmra.mrb[2].mxu1 %v2183_v14  ;;  %v1884_v13 = vpack.c.bf16 %v385_v8, %v378_v7  ;;  %v2268_v23 = vld [vmem:[%s2164_s27 + $0x88] sm:$0xff]  ;;  %v398_v30 = vld [vmem:[#allocation2 + $0x3d8] sm:$0xff]  ;;  %v393_v31 = vld [vmem:[#allocation2 + $0x3b0] sm:$0xff] }
  0x75   : > { %1719 = vmatprep.mubr.msk.f32.mxu0 %vm452_vm0, %v2190_v15  ;;  %1733 = vmatprep.mubr.msk.f32.mxu1 %vm452_vm0, %v2190_v15  ;;  %v400_v33 = vld [vmem:[#allocation2 + $0x3e8] sm:$0xff]  ;;  %v406_v34 = vld [vmem:[#allocation2 + $0x418] sm:$0xff]  ;;  %v413_v35 = vld [vmem:[#allocation2 + $0x450] sm:$0xff] }
  0x76   : > { %1863 = vmatpush1.bf16.msra.mxu0 %v1862_v16  ;;  %1901 = vmatpush1.bf16.msra.mxu1 %v1900_v17  ;;  %v377_v16 = vld [vmem:[#allocation2 + $0x330] sm:$0xff]  ;;  %v384_v17 = vld [vmem:[#allocation2 + $0x368] sm:$0xff]  ;;  %v2276_v36 = vld [vmem:[%s2164_s27 + $0x80] sm:$0xff]  ;;  %v1892_v42 = vpack.c.bf16 %v413_v35, %v406_v34 }
  0x77   : > { %1865 = vmatprep.subr.bf16.mxu0 %v1864_v18  ;;  %1902 = vmatprep.subr.bf16.mxu1 %v2037_v5  ;;  %v379_v18 = vld [vmem:[#allocation2 + $0x340] sm:$0xff]  ;;  %v1886_v24 = vpack.c.bf16 %v384_v17, %v377_v16  ;;  %v405_v43 = vld [vmem:[#allocation2 + $0x410] sm:$0xff]  ;;  %v412_v44 = vld [vmem:[#allocation2 + $0x448] sm:$0xff] }
  0x78   : > { %572 = vmatmul.mubr.f32.gmra.mrb[4].mxu0 %v2198_v25  ;;  %721 = vmatmul.mubr.f32.gmra.mrb[4].mxu1 %v2198_v25  ;;  %v407_v45 = vld [vmem:[#allocation2 + $0x420] sm:$0xff]  ;;  %v414_v46 = vld [vmem:[#allocation2 + $0x458] sm:$0xff]  ;;  %v2289_v47 = vld [vmem:[%s2164_s27 + $0x90] sm:$0xff] }
  0x79   : > { %1720 = vmatprep.mubr.msk.f32.mxu0 %vm452_vm0, %v2203_v26  ;;  %1734 = vmatprep.mubr.msk.f32.mxu1 %vm452_vm0, %v2203_v26  ;;  %v2302_v53 = vld [vmem:[%s2164_s27 + $0xa0] sm:$0xff]  ;;  %v2307_v54 = vld [vmem:[%s2164_s27 + $0xb8] sm:$0xff]  ;;  %v2317_v55 = vld [vmem:[%s2164_s27 + $0xc8] sm:$0xff] }
  0x7a   : > { %1867 = vmatpush1.bf16.msra.mxu0 %v1866_v27  ;;  %1904 = vmatpush1.bf16.msra.mxu1 %v1903_v28  ;;  %v1918_v27 = vpack.c.bf16 %v386_v19, %v379_v18  ;;  %v1888_v28 = vpack.c.bf16 %v399_v21, %v392_v20  ;;  %v271_v56 = vld [vmem:[%s2164_s27 + $0xc0] sm:$0xff]  ;;  %v274_v57 = vld [vmem:[%s2164_s27 + $0xd8] sm:$0xff]  ;;  %v273_v58 = vld [vmem:[%s2164_s27 + $0xd0] sm:$0xff] }
  0x7b   : > { %1869 = vmatprep.subr.bf16.mxu0 %v1868_v29  ;;  %1905 = vmatprep.subr.bf16.mxu1 %v2037_v5  ;;  %v391_v29 = vld [vmem:[#allocation2 + $0x3a0] sm:$0xff] }
  0x7c   : > { %578 = vmatmul.mubr.f32.gmra.mrb[6].mxu0 %v2211_v37  ;;  %727 = vmatmul.mubr.f32.gmra.mrb[6].mxu1 %v2211_v37 }
  0x7d   : > { %1721 = vmatprep.mubr.msk.f32.mxu0 %vm452_vm0, %v2216_v38  ;;  %1735 = vmatprep.mubr.msk.f32.mxu1 %vm452_vm0, %v2216_v38 }
  0x7e   : > { %1871 = vmatpush1.bf16.msra.mxu0 %v1870_v39  ;;  %1907 = vmatpush1.bf16.msra.mxu1 %v1906_v40  ;;  %v2281_v39 = vld [vmem:[%s2164_s27 + $0x98] sm:$0xff]  ;;  %v1890_v40 = vpack.c.bf16 %v398_v30, %v391_v29 }
  0x7f   : > { %1873 = vmatprep.subr.bf16.mxu0 %v1872_v41  ;;  %1908 = vmatprep.subr.bf16.mxu1 %v2037_v5  ;;  %v1921_v41 = vpack.c.bf16 %v400_v33, %v393_v31 }
  0x80   : > { %584 = vmatmul.mubr.f32.gmra.mrb[8].mxu0 %v2224_v48  ;;  %733 = vmatmul.mubr.f32.gmra.mrb[8].mxu1 %v2224_v48 }
  0x81   : > { %1722 = vmatprep.mubr.msk.f32.mxu0 %vm452_vm0, %v2229_v49  ;;  %1736 = vmatprep.mubr.msk.f32.mxu1 %vm452_vm0, %v2229_v49 }
  0x82   : > { %1875 = vmatpush1.bf16.msra.mxu0 %v1874_v50  ;;  %1910 = vmatpush1.bf16.msra.mxu1 %v1909_v51  ;;  %v2294_v50 = vld [vmem:[%s2164_s27 + $0xa8] sm:$0xff]  ;;  %v1894_v51 = vpack.c.bf16 %v412_v44, %v405_v43 }
  0x83   : > { %1877 = vmatprep.subr.bf16.mxu0 %v1876_v52  ;;  %1911 = vmatprep.subr.bf16.mxu1 %v2037_v5  ;;  %v1924_v52 = vpack.c.bf16 %v414_v46, %v407_v45 }
  0x84   : > { %590 = vmatmul.mubr.f32.gmra.mrb[10].mxu0 %v2237_v59  ;;  %739 = vmatmul.mubr.f32.gmra.mrb[10].mxu1 %v2237_v59 }
  0x85   : > { %1723 = vmatprep.mubr.msk.f32.mxu0 %vm452_vm0, %v2242_v60  ;;  %1737 = vmatprep.mubr.msk.f32.mxu1 %vm452_vm0, %v2242_v60 }
  0x86   : > { %1879 = vmatpush1.bf16.msra.mxu0 %v1878_v61  ;;  %1913 = vmatpush1.bf16.msra.mxu1 %v1912_v62 }
  0x87   : > { %1881 = vmatprep.subr.bf16.mxu0 %v1880_v63  ;;  %1914 = vmatprep.subr.bf16.mxu1 %v2037_v5 }
  0x88   : > { %596 = vmatmul.mubr.f32.gmra.mrb[12].mxu0 %v2250_v9  ;;  %745 = vmatmul.mubr.f32.gmra.mrb[12].mxu1 %v2250_v9 }
  0x89   : > { %1724 = vmatprep.mubr.msk.f32.mxu0 %vm452_vm0, %v2255_v10  ;;  %1738 = vmatprep.mubr.msk.f32.mxu1 %vm452_vm0, %v2255_v10 }
  0x8a   : > { %1883 = vmatpush1.bf16.msra.mxu0 %v1882_v11  ;;  %1916 = vmatpush1.bf16.msra.mxu1 %v1915_v12 }
  0x8b   : > { %1885 = vmatprep.subr.bf16.mxu0 %v1884_v13  ;;  %1917 = vmatprep.subr.bf16.mxu1 %v2037_v5 }
  0x8c   : > { %602 = vmatmul.mubr.f32.gmra.mrb[14].mxu0 %v2263_v22  ;;  %751 = vmatmul.mubr.f32.gmra.mrb[14].mxu1 %v2263_v22 }
  0x8d   : > { %1725 = vmatprep.mubr.msk.f32.mxu0 %vm452_vm0, %v2268_v23  ;;  %1739 = vmatprep.mubr.msk.f32.mxu1 %vm452_vm0, %v2268_v23 }
  0x8e   : > { %1887 = vmatpush1.bf16.msra.mxu0 %v1886_v24  ;;  %1919 = vmatpush1.bf16.msra.mxu1 %v1918_v27 }
  0x8f   : > { %1889 = vmatprep.subr.bf16.mxu0 %v1888_v28  ;;  %1920 = vmatprep.subr.bf16.mxu1 %v2037_v5 }
  0x90   : > { %608 = vmatmul.mubr.f32.gmra.mrb[16].mxu0 %v2276_v36  ;;  %757 = vmatmul.mubr.f32.gmra.mrb[16].mxu1 %v2276_v36 }
  0x91   : > { %1726 = vmatprep.mubr.msk.f32.mxu0 %vm452_vm0, %v2281_v39  ;;  %1740 = vmatprep.mubr.msk.f32.mxu1 %vm452_vm0, %v2281_v39 }
  0x92   : > { %1891 = vmatpush1.bf16.msra.mxu0 %v1890_v40  ;;  %1922 = vmatpush1.bf16.msra.mxu1 %v1921_v41 }
  0x93   : > { %1893 = vmatprep.subr.bf16.mxu0 %v1892_v42  ;;  %1923 = vmatprep.subr.bf16.mxu1 %v2037_v5  ;;  %v269_v5 = vld [vmem:[%s2164_s27 + $0xb0] sm:$0xff] }
  0x94   : > { %614 = vmatmul.mubr.f32.gmra.mrb[18].mxu0 %v2289_v47  ;;  %763 = vmatmul.mubr.f32.gmra.mrb[18].mxu1 %v2289_v47 }
  0x95   : > { %1727 = vmatprep.mubr.msk.f32.mxu0 %vm452_vm0, %v2294_v50  ;;  %1741 = vmatprep.mubr.msk.f32.mxu1 %vm452_vm0, %v2294_v50 }
  0x96   : > { %1895 = vmatpush1.bf16.msra.mxu0 %v1894_v51  ;;  %1925 = vmatpush1.bf16.msra.mxu1 %v1924_v52 }
  0x98   : > { %620 = vmatmul.mubr.f32.gmra.mrb[20].mxu0 %v2302_v53  ;;  %769 = vmatmul.mubr.f32.gmra.mrb[20].mxu1 %v2302_v53 }
  0x99   : > { %1728 = vmatprep.mubr.msk.f32.mxu0 %vm452_vm0, %v2307_v54  ;;  %1742 = vmatprep.mubr.msk.f32.mxu1 %vm452_vm0, %v2307_v54 }
  0x9c   : > { %626 = vmatmul.mubr.f32.gmra.mrb[22].mxu0 %v269_v5  ;;  %775 = vmatmul.mubr.f32.gmra.mrb[22].mxu1 %v269_v5 }
  0x9d   : > { %1729 = vmatprep.mubr.msk.f32.mxu0 %vm452_vm0, %v2317_v55  ;;  %1743 = vmatprep.mubr.msk.f32.mxu1 %vm452_vm0, %v2317_v55 }
  0xa0   : > { %632 = vmatmul.mubr.f32.gmra.mrb[24].mxu0 %v271_v56  ;;  %781 = vmatmul.mubr.f32.gmra.mrb[24].mxu1 %v271_v56 }
  0xa1   : > { %1730 = vmatprep.mubr.msk.f32.mxu0 %vm452_vm0, %v274_v57  ;;  %1744 = vmatprep.mubr.msk.f32.mxu1 %vm452_vm0, %v274_v57 }
  0xa4   : > { %638 = vmatmul.mubr.f32.gmra.mrb[26].mxu0 %v273_v58  ;;  %787 = vmatmul.mubr.f32.gmra.mrb[26].mxu1 %v273_v58 }
  0xa5   : > { %1745 = vmatprep.mubr.msk.f32.mxu0 %vm452_vm0, %v2167_v32  ;;  %1759 = vmatprep.mubr.msk.f32.mxu1 %vm452_vm0, %v2167_v32  ;;  %v417_v32 = vlaneseq }
  0xa8   : > { %858 = vmatmul.mubr.f32.vlgmr.msra.gmra.mrb[28].mxu0 %v2174_v2  ;;  %1007 = vmatmul.mubr.f32.vlgmr.msra.gmra.mrb[28].mxu1 %v2174_v2  ;;  %v418_v2 = vshrl.u32 %v417_v32, 7 }
  0xa9   : > { %1746 = vmatprep.mubr.msk.f32.mxu0 %vm452_vm0, %v2177_v4  ;;  %1760 = vmatprep.mubr.msk.f32.mxu1 %vm452_vm0, %v2177_v4 }
  0xaa   : > { %v419_v4 = vsub.s32 0, %v418_v2  ;;  %v435_v62 = vsub.s32 4, %v418_v2  ;;  %v439_v63 = vsub.s32 5, %v418_v2  ;;  %v443_v7 = vsub.s32 6, %v418_v2 }
  0xac   : > { %864 = vmatmul.mubr.f32.gmra.mrb[30].mxu0 %v2183_v14  ;;  %1012 = vmatmul.mubr.f32.gmra.mrb[30].mxu1 %v2183_v14  ;;  %v415_v14 = vld [vmem:[#allocation4] sm:$0xff] }
  0xad   : > { %1747 = vmatprep.mubr.msk.f32.mxu0 %vm452_vm0, %v2190_v15  ;;  %1761 = vmatprep.mubr.msk.f32.mxu1 %vm452_vm0, %v2190_v15  ;;  %v423_v15 = vsub.s32 1, %v418_v2  ;;  %v2425_v13 = vrot.slane %v415_v14, %v435_v62  ;;  %v2427_v16 = vrot.slane %v415_v14, %v439_v63 }
  0xb0   : > { %870 = vmatmul.mubr.f32.gmra.mrb[32].mxu0 %v2198_v25  ;;  %1017 = vmatmul.mubr.f32.gmra.mrb[32].mxu1 %v2198_v25  ;;  %v427_v25 = vsub.s32 2, %v418_v2 }
  0xb1   : > { %1748 = vmatprep.mubr.msk.f32.mxu0 %vm452_vm0, %v2203_v26  ;;  %1762 = vmatprep.mubr.msk.f32.mxu1 %vm452_vm0, %v2203_v26  ;;  %v431_v26 = vsub.s32 3, %v418_v2 }
  0xb4   : > { %876 = vmatmul.mubr.f32.gmra.mrb[34].mxu0 %v2211_v37  ;;  %1022 = vmatmul.mubr.f32.gmra.mrb[34].mxu1 %v2211_v37  ;;  %v2405_v37 = vrot.slane %v415_v14, %v419_v4 }
  0xb5   : > { %1749 = vmatprep.mubr.msk.f32.mxu0 %vm452_vm0, %v2216_v38  ;;  %1763 = vmatprep.mubr.msk.f32.mxu1 %vm452_vm0, %v2216_v38  ;;  %v2038_v38 = vmov 1983009808  }
  0xb8   : > { %882 = vmatmul.mubr.f32.gmra.mrb[36].mxu0 %v2224_v48  ;;  %1027 = vmatmul.mubr.f32.gmra.mrb[36].mxu1 %v2224_v48  ;;  %v1557_v48 = vunpack.c.l.s4 %v2038_v38 }
  0xb9   : > { %1750 = vmatprep.mubr.msk.f32.mxu0 %vm452_vm0, %v2229_v49  ;;  %1764 = vmatprep.mubr.msk.f32.mxu1 %vm452_vm0, %v2229_v49  ;;  %v2407_v49 = vrot.slane %v415_v14, %v423_v15 }
  0xba   : > { %v1558_v6 = vunpack.c.0.s8 %v1557_v48 }
  0xbc   : > { %888 = vmatmul.mubr.f32.gmra.mrb[38].mxu0 %v2237_v59  ;;  %1032 = vmatmul.mubr.f32.gmra.mrb[38].mxu1 %v2237_v59  ;;  %v2409_v59 = vrot.slane %v415_v14, %v427_v25  ;;  %v2431_v21 = vsub.s32 %v1558_v6, %v418_v2 }
  0xbd   : > { %1751 = vmatprep.mubr.msk.f32.mxu0 %vm452_vm0, %v2242_v60  ;;  %1765 = vmatprep.mubr.msk.f32.mxu1 %vm452_vm0, %v2242_v60  ;;  %v2411_v60 = vrot.slane %v415_v14, %v431_v26 }
  0xc0   : > { %894 = vmatmul.mubr.f32.gmra.mrb[40].mxu0 %v2250_v9  ;;  %1037 = vmatmul.mubr.f32.gmra.mrb[40].mxu1 %v2250_v9 }
  0xc1   : > { %1752 = vmatprep.mubr.msk.f32.mxu0 %vm452_vm0, %v2255_v10  ;;  %1766 = vmatprep.mubr.msk.f32.mxu1 %vm452_vm0, %v2255_v10 }
  0xc4   : > { %900 = vmatmul.mubr.f32.gmra.mrb[42].mxu0 %v2263_v22  ;;  %1042 = vmatmul.mubr.f32.gmra.mrb[42].mxu1 %v2263_v22  ;;  %v2433_v22 = vrot.slane %v415_v14, %v443_v7 }
  0xc5   : > { %1753 = vmatprep.mubr.msk.f32.mxu0 %vm452_vm0, %v2268_v23  ;;  %1767 = vmatprep.mubr.msk.f32.mxu1 %vm452_vm0, %v2268_v23 }
  0xc8   : > { %906 = vmatmul.mubr.f32.gmra.mrb[44].mxu0 %v2276_v36  ;;  %1047 = vmatmul.mubr.f32.gmra.mrb[44].mxu1 %v2276_v36 }
  0xc9   : > { %1754 = vmatprep.mubr.msk.f32.mxu0 %vm452_vm0, %v2281_v39  ;;  %1768 = vmatprep.mubr.msk.f32.mxu1 %vm452_vm0, %v2281_v39 }
  0xcc   : > { %912 = vmatmul.mubr.f32.gmra.mrb[46].mxu0 %v2289_v47  ;;  %1052 = vmatmul.mubr.f32.gmra.mrb[46].mxu1 %v2289_v47 }
  0xcd   : > { %1755 = vmatprep.mubr.msk.f32.mxu0 %vm452_vm0, %v2294_v50  ;;  %1769 = vmatprep.mubr.msk.f32.mxu1 %vm452_vm0, %v2294_v50 }
  0xd0   : > { %918 = vmatmul.mubr.f32.gmra.mrb[48].mxu0 %v2302_v53  ;;  %1057 = vmatmul.mubr.f32.gmra.mrb[48].mxu1 %v2302_v53 }
  0xd1   : > { %1756 = vmatprep.mubr.msk.f32.mxu0 %vm452_vm0, %v2307_v54  ;;  %1770 = vmatprep.mubr.msk.f32.mxu1 %vm452_vm0, %v2307_v54 }
  0xd4   : > { %924 = vmatmul.mubr.f32.gmra.mrb[50].mxu0 %v269_v5  ;;  %1062 = vmatmul.mubr.f32.gmra.mrb[50].mxu1 %v269_v5 }
  0xd5   : > { %1757 = vmatprep.mubr.msk.f32.mxu0 %vm452_vm0, %v2317_v55  ;;  %1771 = vmatprep.mubr.msk.f32.mxu1 %vm452_vm0, %v2317_v55 }
  0xd8   : > { %930 = vmatmul.mubr.f32.gmra.mrb[52].mxu0 %v271_v56  ;;  %1067 = vmatmul.mubr.f32.gmra.mrb[52].mxu1 %v271_v56 }
  0xd9   : > { %1758 = vmatprep.mubr.msk.f32.mxu0 %vm452_vm0, %v274_v57  ;;  %1772 = vmatprep.mubr.msk.f32.mxu1 %vm452_vm0, %v274_v57 }
  0xdc   : > { %936 = vmatmul.mubr.f32.gmra.mrb[54].mxu0 %v273_v58  ;;  %1072 = vmatmul.mubr.f32.gmra.mrb[54].mxu1 %v273_v58 }
 0x143   : > { %v561_v61 = vpop.f32.mrb[0].mxu0  ;;  %v710_v3 = vpop.f32.mrb[0].mxu1 }
 0x144   : > { %v562_v0 = vadd.f32 %v561_v61, %v2405_v37  ;;  %v563_v1 = vpop.f32.mrb[1].mxu0  ;;  %v711_v9 = vadd.f32 %v710_v3, %v2409_v59  ;;  %v712_v10 = vpop.f32.mrb[1].mxu1 }
 0x145   : > { %v564_v8 = vadd.f32 %v563_v1, %v2407_v49  ;;  %v713_v11 = vadd.f32 %v712_v10, %v2411_v60 }
 0x146   : > { %1077 = vst [vmem:[%s2416_s5] sm:$0xff] %v562_v0  ;;  %1079 = vst [vmem:[%s2416_s5 + $0x10] sm:$0xff] %v711_v9  ;;  %v1308_v17 = vmul.f32 %v562_v0, %v562_v0  ;;  %v1310_v24 = vmul.f32 %v711_v9, %v711_v9 }
 0x147   : > { %1078 = vst [vmem:[%s2416_s5 + $0x8] sm:$0xff] %v564_v8  ;;  %v567_v12 = vpop.f32.mrb[2].mxu0  ;;  %1080 = vst [vmem:[%s2416_s5 + $0x18] sm:$0xff] %v713_v11  ;;  %v716_v19 = vpop.f32.mrb[2].mxu1  ;;  %v1309_v23 = vmul.f32 %v564_v8, %v564_v8  ;;  %v1311_v30 = vmul.f32 %v713_v11, %v713_v11 }
 0x148   : > { %v568_v18 = vadd.f32 %v567_v12, %v2405_v37  ;;  %v569_v20 = vpop.f32.mrb[3].mxu0  ;;  %v717_v27 = vadd.f32 %v716_v19, %v2409_v59  ;;  %v718_v29 = vpop.f32.mrb[3].mxu1 }
 0x149   : > { %v570_v28 = vadd.f32 %v569_v20, %v2407_v49  ;;  %v719_v34 = vadd.f32 %v718_v29, %v2411_v60 }
 0x14a   : > { %1084 = vst [vmem:[%s2416_s5 + $0x38] sm:$0xff] %v568_v18  ;;  %v1175_v31 = vadd.f32 %v568_v18, %v562_v0  ;;  %v1315_v33 = vmul.f32 %v568_v18, %v568_v18  ;;  %1086 = vst [vmem:[%s2416_s5 + $0x48] sm:$0xff] %v717_v27  ;;  %v1213_v35 = vadd.f32 %v717_v27, %v711_v9 }
 0x14b   : > { %v1317_v36 = vmul.f32 %v717_v27, %v717_v27  ;;  %1085 = vst [vmem:[%s2416_s5 + $0x40] sm:$0xff] %v570_v28  ;;  %v1194_v39 = vadd.f32 %v570_v28, %v564_v8  ;;  %v1316_v40 = vmul.f32 %v570_v28, %v570_v28  ;;  %v573_v41 = vpop.f32.mrb[4].mxu0  ;;  %1087 = vst [vmem:[%s2416_s5 + $0x50] sm:$0xff] %v719_v34  ;;  %v722_v46 = vpop.f32.mrb[4].mxu1 }
 0x14c   : > { %v1406_v42 = vadd.f32 %v1315_v33, %v1308_v17  ;;  %v1232_v43 = vadd.f32 %v719_v34, %v713_v11  ;;  %v1318_v44 = vmul.f32 %v719_v34, %v719_v34  ;;  %v574_v45 = vadd.f32 %v573_v41, %v2405_v37  ;;  %v575_v47 = vpop.f32.mrb[5].mxu0  ;;  %v724_v54 = vpop.f32.mrb[5].mxu1 }
 0x14d   : > { %v1444_v50 = vadd.f32 %v1317_v36, %v1310_v24  ;;  %v1425_v51 = vadd.f32 %v1316_v40, %v1309_v23  ;;  %v723_v52 = vadd.f32 %v722_v46, %v2409_v59  ;;  %v576_v53 = vadd.f32 %v575_v47, %v2407_v49 }
 0x14e   : > { %v1463_v5 = vadd.f32 %v1318_v44, %v1311_v30  ;;  %1091 = vst [vmem:[%s2416_s5 + $0x70] sm:$0xff] %v574_v45  ;;  %v1176_v55 = vadd.f32 %v1175_v31, %v574_v45  ;;  %v1322_v56 = vmul.f32 %v574_v45, %v574_v45  ;;  %v725_v57 = vadd.f32 %v724_v54, %v2411_v60 }
 0x14f   : > { %1093 = vst [vmem:[%s2416_s5 + $0x80] sm:$0xff] %v723_v52  ;;  %v1214_v58 = vadd.f32 %v1213_v35, %v723_v52  ;;  %v1324_v32 = vmul.f32 %v723_v52, %v723_v52  ;;  %1092 = vst [vmem:[%s2416_s5 + $0x78] sm:$0xff] %v576_v53  ;;  %v1195_v2 = vadd.f32 %v1194_v39, %v576_v53  ;;  %v579_v14 = vpop.f32.mrb[6].mxu0  ;;  %v728_v48 = vpop.f32.mrb[6].mxu1 }
 0x150   : > { %v1323_v4 = vmul.f32 %v576_v53, %v576_v53  ;;  %v1407_v15 = vadd.f32 %v1406_v42, %v1322_v56  ;;  %1094 = vst [vmem:[%s2416_s5 + $0x88] sm:$0xff] %v725_v57  ;;  %v1233_v25 = vadd.f32 %v1232_v43, %v725_v57  ;;  %v1325_v26 = vmul.f32 %v725_v57, %v725_v57  ;;  %v581_v61 = vpop.f32.mrb[7].mxu0  ;;  %v730_v3 = vpop.f32.mrb[7].mxu1 }
 0x151   : > { %v580_v38 = vadd.f32 %v579_v14, %v2405_v37  ;;  %v1445_v62 = vadd.f32 %v1444_v50, %v1324_v32  ;;  %v729_v0 = vadd.f32 %v728_v48, %v2409_v59  ;;  %v582_v1 = vadd.f32 %v581_v61, %v2407_v49 }
 0x152   : > { %v1426_v63 = vadd.f32 %v1425_v51, %v1323_v4  ;;  %v1464_v6 = vadd.f32 %v1463_v5, %v1325_v26  ;;  %v731_v9 = vadd.f32 %v730_v3, %v2411_v60 }
 0x153   : > { %1098 = vst [vmem:[%s2416_s5 + $0xa8] sm:$0xff] %v580_v38  ;;  %v1177_v7 = vadd.f32 %v1176_v55, %v580_v38  ;;  %v1329_v8 = vmul.f32 %v580_v38, %v580_v38  ;;  %1100 = vst [vmem:[%s2416_s5 + $0xb8] sm:$0xff] %v729_v0  ;;  %v1215_v10 = vadd.f32 %v1214_v58, %v729_v0  ;;  %v585_v18 = vpop.f32.mrb[8].mxu0  ;;  %v734_v27 = vpop.f32.mrb[8].mxu1 }
 0x154   : > { %v1331_v11 = vmul.f32 %v729_v0, %v729_v0  ;;  %1099 = vst [vmem:[%s2416_s5 + $0xb0] sm:$0xff] %v582_v1  ;;  %v1196_v12 = vadd.f32 %v1195_v2, %v582_v1  ;;  %v1330_v17 = vmul.f32 %v582_v1, %v582_v1  ;;  %1101 = vst [vmem:[%s2416_s5 + $0xc0] sm:$0xff] %v731_v9  ;;  %v587_v28 = vpop.f32.mrb[9].mxu0  ;;  %v736_v34 = vpop.f32.mrb[9].mxu1 }
 0x155   : > { %v1408_v19 = vadd.f32 %v1407_v15, %v1329_v8  ;;  %v1234_v20 = vadd.f32 %v1233_v25, %v731_v9  ;;  %v1332_v23 = vmul.f32 %v731_v9, %v731_v9  ;;  %v586_v24 = vadd.f32 %v585_v18, %v2405_v37 }
 0x156   : > { %v1446_v29 = vadd.f32 %v1445_v62, %v1331_v11  ;;  %v1427_v30 = vadd.f32 %v1426_v63, %v1330_v17  ;;  %v735_v31 = vadd.f32 %v734_v27, %v2409_v59  ;;  %v588_v33 = vadd.f32 %v587_v28, %v2407_v49 }
 0x157   : > { %v1465_v35 = vadd.f32 %v1464_v6, %v1332_v23  ;;  %1105 = vst [vmem:[%s2416_s5 + $0xe0] sm:$0xff] %v586_v24  ;;  %v1178_v36 = vadd.f32 %v1177_v7, %v586_v24  ;;  %v1336_v39 = vmul.f32 %v586_v24, %v586_v24  ;;  %v737_v40 = vadd.f32 %v736_v34, %v2411_v60  ;;  %v591_v45 = vpop.f32.mrb[10].mxu0  ;;  %v740_v52 = vpop.f32.mrb[10].mxu1 }
 0x158   : > { %1107 = vst [vmem:[%s2416_s5 + $0xf0] sm:$0xff] %v735_v31  ;;  %v1216_v41 = vadd.f32 %v1215_v10, %v735_v31  ;;  %v1338_v42 = vmul.f32 %v735_v31, %v735_v31  ;;  %1106 = vst [vmem:[%s2416_s5 + $0xe8] sm:$0xff] %v588_v33  ;;  %v1197_v43 = vadd.f32 %v1196_v12, %v588_v33  ;;  %v593_v53 = vpop.f32.mrb[11].mxu0  ;;  %v742_v57 = vpop.f32.mrb[11].mxu1 }
 0x159   : > { %v1337_v44 = vmul.f32 %v588_v33, %v588_v33  ;;  %v1409_v46 = vadd.f32 %v1408_v19, %v1336_v39  ;;  %1108 = vst [vmem:[%s2416_s5 + $0xf8] sm:$0xff] %v737_v40  ;;  %v1235_v47 = vadd.f32 %v1234_v20, %v737_v40  ;;  %v1339_v50 = vmul.f32 %v737_v40, %v737_v40 }
 0x15a   : > { %v592_v51 = vadd.f32 %v591_v45, %v2405_v37  ;;  %v1447_v54 = vadd.f32 %v1446_v29, %v1338_v42  ;;  %v741_v55 = vadd.f32 %v740_v52, %v2409_v59  ;;  %v594_v56 = vadd.f32 %v593_v53, %v2407_v49 }
 0x15b   : > { %v1428_v5 = vadd.f32 %v1427_v30, %v1337_v44  ;;  %v1466_v58 = vadd.f32 %v1465_v35, %v1339_v50  ;;  %v743_v4 = vadd.f32 %v742_v57, %v2411_v60  ;;  %v597_v38 = vpop.f32.mrb[12].mxu0  ;;  %v746_v0 = vpop.f32.mrb[12].mxu1 }
 0x15c   : > { %1112 = vst [vmem:[%s2416_s5 + $0x118] sm:$0xff] %v592_v51  ;;  %v1179_v32 = vadd.f32 %v1178_v36, %v592_v51  ;;  %v1343_v2 = vmul.f32 %v592_v51, %v592_v51  ;;  %1114 = vst [vmem:[%s2416_s5 + $0x128] sm:$0xff] %v741_v55  ;;  %v1217_v14 = vadd.f32 %v1216_v41, %v741_v55  ;;  %v599_v1 = vpop.f32.mrb[13].mxu0  ;;  %v748_v9 = vpop.f32.mrb[13].mxu1 }
 0x15d   : > { %v1345_v15 = vmul.f32 %v741_v55, %v741_v55  ;;  %1113 = vst [vmem:[%s2416_s5 + $0x120] sm:$0xff] %v594_v56  ;;  %v1198_v25 = vadd.f32 %v1197_v43, %v594_v56  ;;  %v1344_v26 = vmul.f32 %v594_v56, %v594_v56  ;;  %1115 = vst [vmem:[%s2416_s5 + $0x130] sm:$0xff] %v743_v4 }
 0x15e   : > { %v1410_v48 = vadd.f32 %v1409_v46, %v1343_v2  ;;  %v1236_v61 = vadd.f32 %v1235_v47, %v743_v4  ;;  %v1346_v62 = vmul.f32 %v743_v4, %v743_v4  ;;  %v598_v63 = vadd.f32 %v597_v38, %v2405_v37 }
 0x15f   : > { %v1448_v3 = vadd.f32 %v1447_v54, %v1345_v15  ;;  %v1429_v6 = vadd.f32 %v1428_v5, %v1344_v26  ;;  %v747_v7 = vadd.f32 %v746_v0, %v2409_v59  ;;  %v600_v8 = vadd.f32 %v599_v1, %v2407_v49  ;;  %v603_v24 = vpop.f32.mrb[14].mxu0  ;;  %v752_v31 = vpop.f32.mrb[14].mxu1 }
 0x160   : > { %v1467_v10 = vadd.f32 %v1466_v58, %v1346_v62  ;;  %1119 = vst [vmem:[%s2416_s5 + $0x150] sm:$0xff] %v598_v63  ;;  %v1180_v11 = vadd.f32 %v1179_v32, %v598_v63  ;;  %v1350_v12 = vmul.f32 %v598_v63, %v598_v63  ;;  %v749_v17 = vadd.f32 %v748_v9, %v2411_v60  ;;  %v605_v33 = vpop.f32.mrb[15].mxu0  ;;  %v754_v40 = vpop.f32.mrb[15].mxu1 }
 0x161   : > { %1121 = vst [vmem:[%s2416_s5 + $0x160] sm:$0xff] %v747_v7  ;;  %v1218_v18 = vadd.f32 %v1217_v14, %v747_v7  ;;  %v1352_v19 = vmul.f32 %v747_v7, %v747_v7  ;;  %1120 = vst [vmem:[%s2416_s5 + $0x158] sm:$0xff] %v600_v8  ;;  %v1199_v20 = vadd.f32 %v1198_v25, %v600_v8 }
 0x162   : > { %v1351_v23 = vmul.f32 %v600_v8, %v600_v8  ;;  %v1411_v27 = vadd.f32 %v1410_v48, %v1350_v12  ;;  %1122 = vst [vmem:[%s2416_s5 + $0x168] sm:$0xff] %v749_v17  ;;  %v1237_v28 = vadd.f32 %v1236_v61, %v749_v17  ;;  %v1353_v29 = vmul.f32 %v749_v17, %v749_v17 }
 0x163   : > { %v604_v30 = vadd.f32 %v603_v24, %v2405_v37  ;;  %v1449_v34 = vadd.f32 %v1448_v3, %v1352_v19  ;;  %v753_v36 = vadd.f32 %v752_v31, %v2409_v59  ;;  %v606_v39 = vadd.f32 %v605_v33, %v2407_v49  ;;  %v609_v51 = vpop.f32.mrb[16].mxu0  ;;  %v758_v55 = vpop.f32.mrb[16].mxu1 }
 0x164   : > { %v1430_v35 = vadd.f32 %v1429_v6, %v1351_v23  ;;  %v1468_v41 = vadd.f32 %v1467_v10, %v1353_v29  ;;  %v755_v44 = vadd.f32 %v754_v40, %v2411_v60  ;;  %v610_v5 = vadd.f32 %v609_v51, %v2405_v37  ;;  %v611_v56 = vpop.f32.mrb[17].mxu0  ;;  %v760_v4 = vpop.f32.mrb[17].mxu1 }
 0x165   : > { %1126 = vst [vmem:[%s2416_s5 + $0x188] sm:$0xff] %v604_v30  ;;  %v1181_v42 = vadd.f32 %v1180_v11, %v604_v30  ;;  %v1357_v43 = vmul.f32 %v604_v30, %v604_v30  ;;  %1128 = vst [vmem:[%s2416_s5 + $0x198] sm:$0xff] %v753_v36  ;;  %v1219_v45 = vadd.f32 %v1218_v18, %v753_v36 }
 0x166   : > { %v1359_v46 = vmul.f32 %v753_v36, %v753_v36  ;;  %1127 = vst [vmem:[%s2416_s5 + $0x190] sm:$0xff] %v606_v39  ;;  %v1200_v47 = vadd.f32 %v1199_v20, %v606_v39  ;;  %v1358_v50 = vmul.f32 %v606_v39, %v606_v39  ;;  %1129 = vst [vmem:[%s2416_s5 + $0x1a0] sm:$0xff] %v755_v44 }
 0x167   : > { %v1412_v52 = vadd.f32 %v1411_v27, %v1357_v43  ;;  %v1238_v53 = vadd.f32 %v1237_v28, %v755_v44  ;;  %v1360_v54 = vmul.f32 %v755_v44, %v755_v44  ;;  %v759_v32 = vadd.f32 %v758_v55, %v2409_v59  ;;  %1133 = vst [vmem:[%s2416_s5 + $0x1c0] sm:$0xff] %v610_v5  ;;  %v615_v63 = vpop.f32.mrb[18].mxu0  ;;  %v764_v7 = vpop.f32.mrb[18].mxu1 }
 0x168   : > { %v1450_v57 = vadd.f32 %v1449_v34, %v1359_v46  ;;  %v1431_v58 = vadd.f32 %v1430_v35, %v1358_v50  ;;  %v612_v2 = vadd.f32 %v611_v56, %v2407_v49  ;;  %v1182_v15 = vadd.f32 %v1181_v42, %v610_v5  ;;  %v617_v8 = vpop.f32.mrb[19].mxu0  ;;  %v766_v17 = vpop.f32.mrb[19].mxu1 }
 0x169   : > { %v1469_v14 = vadd.f32 %v1468_v41, %v1360_v54  ;;  %v1364_v25 = vmul.f32 %v610_v5, %v610_v5  ;;  %v761_v26 = vadd.f32 %v760_v4, %v2411_v60  ;;  %1135 = vst [vmem:[%s2416_s5 + $0x1d0] sm:$0xff] %v759_v32  ;;  %v1220_v38 = vadd.f32 %v1219_v45, %v759_v32 }
 0x16a   : > { %v1366_v48 = vmul.f32 %v759_v32, %v759_v32  ;;  %1134 = vst [vmem:[%s2416_s5 + $0x1c8] sm:$0xff] %v612_v2  ;;  %v1201_v61 = vadd.f32 %v1200_v47, %v612_v2  ;;  %v1365_v62 = vmul.f32 %v612_v2, %v612_v2  ;;  %v616_v6 = vadd.f32 %v615_v63, %v2405_v37 }
 0x16b   : > { %v1413_v0 = vadd.f32 %v1412_v52, %v1364_v25  ;;  %1136 = vst [vmem:[%s2416_s5 + $0x1d8] sm:$0xff] %v761_v26  ;;  %v1239_v1 = vadd.f32 %v1238_v53, %v761_v26  ;;  %v1367_v3 = vmul.f32 %v761_v26, %v761_v26  ;;  %v765_v11 = vadd.f32 %v764_v7, %v2409_v59  ;;  %v621_v30 = vpop.f32.mrb[20].mxu0  ;;  %v770_v36 = vpop.f32.mrb[20].mxu1 }
 0x16c   : > { %v1451_v9 = vadd.f32 %v1450_v57, %v1366_v48  ;;  %v1432_v10 = vadd.f32 %v1431_v58, %v1365_v62  ;;  %v618_v12 = vadd.f32 %v617_v8, %v2407_v49  ;;  %1140 = vst [vmem:[%s2416_s5 + $0x1f8] sm:$0xff] %v616_v6  ;;  %v1183_v19 = vadd.f32 %v1182_v15, %v616_v6  ;;  %v623_v39 = vpop.f32.mrb[21].mxu0  ;;  %v772_v44 = vpop.f32.mrb[21].mxu1 }
 0x16d   : > { %v1470_v18 = vadd.f32 %v1469_v14, %v1367_v3  ;;  %v1371_v20 = vmul.f32 %v616_v6, %v616_v6  ;;  %v767_v23 = vadd.f32 %v766_v17, %v2411_v60  ;;  %1142 = vst [vmem:[%s2416_s5 + $0x208] sm:$0xff] %v765_v11  ;;  %v1221_v24 = vadd.f32 %v1220_v38, %v765_v11 }
 0x16e   : > { %v1373_v27 = vmul.f32 %v765_v11, %v765_v11  ;;  %1141 = vst [vmem:[%s2416_s5 + $0x200] sm:$0xff] %v618_v12  ;;  %v1202_v28 = vadd.f32 %v1201_v61, %v618_v12  ;;  %v1372_v29 = vmul.f32 %v618_v12, %v618_v12  ;;  %v622_v35 = vadd.f32 %v621_v30, %v2405_v37 }
 0x16f   : > { %v1414_v31 = vadd.f32 %v1413_v0, %v1371_v20  ;;  %1143 = vst [vmem:[%s2416_s5 + $0x210] sm:$0xff] %v767_v23  ;;  %v1240_v33 = vadd.f32 %v1239_v1, %v767_v23  ;;  %v1374_v34 = vmul.f32 %v767_v23, %v767_v23  ;;  %v771_v42 = vadd.f32 %v770_v36, %v2409_v59  ;;  %v627_v5 = vpop.f32.mrb[22].mxu0  ;;  %v776_v32 = vpop.f32.mrb[22].mxu1 }
 0x170   : > { %v1452_v40 = vadd.f32 %v1451_v9, %v1373_v27  ;;  %v1433_v41 = vadd.f32 %v1432_v10, %v1372_v29  ;;  %v624_v43 = vadd.f32 %v623_v39, %v2407_v49  ;;  %1147 = vst [vmem:[%s2416_s5 + $0x230] sm:$0xff] %v622_v35  ;;  %v1184_v46 = vadd.f32 %v1183_v19, %v622_v35  ;;  %v629_v2 = vpop.f32.mrb[23].mxu0  ;;  %v778_v26 = vpop.f32.mrb[23].mxu1 }
 0x171   : > { %v1471_v45 = vadd.f32 %v1470_v18, %v1374_v34  ;;  %v1378_v47 = vmul.f32 %v622_v35, %v622_v35  ;;  %v773_v50 = vadd.f32 %v772_v44, %v2411_v60  ;;  %1149 = vst [vmem:[%s2416_s5 + $0x240] sm:$0xff] %v771_v42  ;;  %v1222_v51 = vadd.f32 %v1221_v24, %v771_v42 }
 0x172   : > { %v1380_v52 = vmul.f32 %v771_v42, %v771_v42  ;;  %1148 = vst [vmem:[%s2416_s5 + $0x238] sm:$0xff] %v624_v43  ;;  %v1203_v53 = vadd.f32 %v1202_v28, %v624_v43  ;;  %v1379_v54 = vmul.f32 %v624_v43, %v624_v43  ;;  %v628_v58 = vadd.f32 %v627_v5, %v2405_v37 }
 0x173   : > { %v1415_v55 = vadd.f32 %v1414_v31, %v1378_v47  ;;  %1150 = vst [vmem:[%s2416_s5 + $0x248] sm:$0xff] %v773_v50  ;;  %v1241_v56 = vadd.f32 %v1240_v33, %v773_v50  ;;  %v1381_v57 = vmul.f32 %v773_v50, %v773_v50  ;;  %v777_v15 = vadd.f32 %v776_v32, %v2409_v59  ;;  %v633_v6 = vpop.f32.mrb[24].mxu0  ;;  %v782_v11 = vpop.f32.mrb[24].mxu1 }
 0x174   : > { %v1453_v4 = vadd.f32 %v1452_v40, %v1380_v52  ;;  %v1434_v14 = vadd.f32 %v1433_v41, %v1379_v54  ;;  %v630_v25 = vadd.f32 %v629_v2, %v2407_v49  ;;  %1154 = vst [vmem:[%s2416_s5 + $0x268] sm:$0xff] %v628_v58  ;;  %v1185_v48 = vadd.f32 %v1184_v46, %v628_v58  ;;  %v635_v12 = vpop.f32.mrb[25].mxu0  ;;  %v784_v23 = vpop.f32.mrb[25].mxu1 }
 0x175   : > { %v1472_v38 = vadd.f32 %v1471_v45, %v1381_v57  ;;  %v1385_v61 = vmul.f32 %v628_v58, %v628_v58  ;;  %v779_v62 = vadd.f32 %v778_v26, %v2411_v60  ;;  %1156 = vst [vmem:[%s2416_s5 + $0x278] sm:$0xff] %v777_v15  ;;  %v1223_v63 = vadd.f32 %v1222_v51, %v777_v15 }
 0x176   : > { %v1387_v0 = vmul.f32 %v777_v15, %v777_v15  ;;  %1155 = vst [vmem:[%s2416_s5 + $0x270] sm:$0xff] %v630_v25  ;;  %v1204_v1 = vadd.f32 %v1203_v53, %v630_v25  ;;  %v1386_v3 = vmul.f32 %v630_v25, %v630_v25  ;;  %v634_v10 = vadd.f32 %v633_v6, %v2405_v37 }
 0x177   : > { %v1416_v7 = vadd.f32 %v1415_v55, %v1385_v61  ;;  %1157 = vst [vmem:[%s2416_s5 + $0x280] sm:$0xff] %v779_v62  ;;  %v1242_v8 = vadd.f32 %v1241_v56, %v779_v62  ;;  %v1388_v9 = vmul.f32 %v779_v62, %v779_v62  ;;  %v783_v19 = vadd.f32 %v782_v11, %v2409_v59  ;;  %v639_v35 = vpop.f32.mrb[26].mxu0  ;;  %v788_v42 = vpop.f32.mrb[26].mxu1 }
 0x178   : > { %v1454_v17 = vadd.f32 %v1453_v4, %v1387_v0  ;;  %v1435_v18 = vadd.f32 %v1434_v14, %v1386_v3  ;;  %v636_v20 = vadd.f32 %v635_v12, %v2407_v49  ;;  %1161 = vst [vmem:[%s2416_s5 + $0x2a0] sm:$0xff] %v634_v10  ;;  %v1186_v27 = vadd.f32 %v1185_v48, %v634_v10  ;;  %v641_v43 = vpop.f32.mrb[27].mxu0  ;;  %v790_v50 = vpop.f32.mrb[27].mxu1 }
 0x179   : > { %v1473_v24 = vadd.f32 %v1472_v38, %v1388_v9  ;;  %v1392_v28 = vmul.f32 %v634_v10, %v634_v10  ;;  %v785_v29 = vadd.f32 %v784_v23, %v2411_v60  ;;  %1163 = vst [vmem:[%s2416_s5 + $0x2b0] sm:$0xff] %v783_v19  ;;  %v1224_v30 = vadd.f32 %v1223_v63, %v783_v19 }
 0x17a   : > { %v1394_v31 = vmul.f32 %v783_v19, %v783_v19  ;;  %1162 = vst [vmem:[%s2416_s5 + $0x2a8] sm:$0xff] %v636_v20  ;;  %v1205_v33 = vadd.f32 %v1204_v1, %v636_v20  ;;  %v1393_v34 = vmul.f32 %v636_v20, %v636_v20  ;;  %v640_v41 = vadd.f32 %v639_v35, %v2405_v37 }
 0x17b   : > { %v1417_v36 = vadd.f32 %v1416_v7, %v1392_v28  ;;  %1164 = vst [vmem:[%s2416_s5 + $0x2b8] sm:$0xff] %v785_v29  ;;  %v1243_v39 = vadd.f32 %v1242_v8, %v785_v29  ;;  %v1395_v40 = vmul.f32 %v785_v29, %v785_v29  ;;  %v789_v46 = vadd.f32 %v788_v42, %v2409_v59  ;;  %v2537_v57 = vpop.f32.mrb[28].mxu0  ;;  %v2542_v4 = vpop.f32.mrb[28].mxu1 }
 0x17c   : > { %v1455_v44 = vadd.f32 %v1454_v17, %v1394_v31  ;;  %v1436_v45 = vadd.f32 %v1435_v18, %v1393_v34  ;;  %v642_v47 = vadd.f32 %v641_v43, %v2407_v49  ;;  %1168 = vst [vmem:[%s2416_s5 + $0x2d8] sm:$0xff] %v640_v41  ;;  %v1187_v52 = vadd.f32 %v1186_v27, %v640_v41  ;;  %v2540_v2 = vpop.f32.mrb[29].mxu0  ;;  %v1010_v26 = vpop.f32.mrb[29].mxu1 }
 0x17d   : > { %v1474_v51 = vadd.f32 %v1473_v24, %v1395_v40  ;;  %v1399_v53 = vmul.f32 %v640_v41, %v640_v41  ;;  %v791_v54 = vadd.f32 %v790_v50, %v2411_v60  ;;  %1170 = vst [vmem:[%s2416_s5 + $0x2e8] sm:$0xff] %v789_v46  ;;  %v1225_v5 = vadd.f32 %v1224_v30, %v789_v46 }
 0x17e   : > { %v1401_v37 = vmul.f32 %v789_v46, %v789_v46  ;;  %1169 = vst [vmem:[%s2416_s5 + $0x2e0] sm:$0xff] %v642_v47  ;;  %v1206_v55 = vadd.f32 %v1205_v33, %v642_v47  ;;  %v1400_v56 = vmul.f32 %v642_v47, %v642_v47  ;;  %v1188_v58 = vrot.slane %v1187_v52, 4 }
 0x17f   : > { %v1418_v59 = vadd.f32 %v1417_v36, %v1399_v53  ;;  %1171 = vst [vmem:[%s2416_s5 + $0x2f0] sm:$0xff] %v791_v54  ;;  %v1244_v49 = vadd.f32 %v1243_v39, %v791_v54  ;;  %v1402_v32 = vmul.f32 %v791_v54, %v791_v54  ;;  %v1226_v14 = vrot.slane %v1225_v5, 4  ;;  %v865_v6 = vpop.f32.mrb[30].mxu0  ;;  %v2544_v11 = vpop.f32.mrb[30].mxu1 }
 0x180   : > { %v1456_v15 = vadd.f32 %v1455_v44, %v1401_v37  ;;  %v1207_v60 = vrot.slane %v1206_v55, 4  ;;  %v1437_v25 = vadd.f32 %v1436_v45, %v1400_v56  ;;  %v1189_v38 = vadd.f32 %v1188_v58, %v1187_v52  ;;  %v2546_v12 = vpop.f32.mrb[31].mxu0  ;;  %v1015_v23 = vpop.f32.mrb[31].mxu1 }
 0x181   : > { %v1419_v48 = vrot.slane %v1418_v59, 4  ;;  %v1245_v61 = vrot.slane %v1244_v49, 4  ;;  %v1475_v62 = vadd.f32 %v1474_v51, %v1402_v32  ;;  %v1227_v63 = vadd.f32 %v1226_v14, %v1225_v5 }
 0x182   : > { %v1457_v0 = vrot.slane %v1456_v15, 4  ;;  %v1208_v1 = vadd.f32 %v1207_v60, %v1206_v55  ;;  %v1438_v3 = vrot.slane %v1437_v25, 4  ;;  %v1190_v7 = vrot.slane %v1189_v38, 2 }
 0x183   : > { %v1420_v8 = vadd.f32 %v1419_v48, %v1418_v59  ;;  %v1246_v9 = vadd.f32 %v1245_v61, %v1244_v49  ;;  %v1476_v10 = vrot.slane %v1475_v62, 4  ;;  %v1228_v17 = vrot.slane %v1227_v63, 2  ;;  %v871_v35 = vpop.f32.mrb[32].mxu0  ;;  %v1018_v42 = vpop.f32.mrb[32].mxu1 }
 0x184   : > { %v1458_v18 = vadd.f32 %v1457_v0, %v1456_v15  ;;  %v1209_v19 = vrot.slane %v1208_v1, 2  ;;  %v1439_v20 = vadd.f32 %v1438_v3, %v1437_v25  ;;  %v1191_v24 = vadd.f32 %v1190_v7, %v1189_v38  ;;  %v873_v43 = vpop.f32.mrb[33].mxu0  ;;  %v1020_v50 = vpop.f32.mrb[33].mxu1 }
 0x185   : > { %v1421_v27 = vrot.slane %v1420_v8, 2  ;;  %v1247_v28 = vrot.slane %v1246_v9, 2  ;;  %v1477_v29 = vadd.f32 %v1476_v10, %v1475_v62  ;;  %v1229_v30 = vadd.f32 %v1228_v17, %v1227_v63 }
 0x186   : > { %v1459_v31 = vrot.slane %v1458_v18, 2  ;;  %v1210_v33 = vadd.f32 %v1209_v19, %v1208_v1  ;;  %v1440_v34 = vrot.slane %v1439_v20, 2  ;;  %v1192_v36 = vrot.slane %v1191_v24, 1 }
 0x187   : > { %v1422_v39 = vadd.f32 %v1421_v27, %v1420_v8  ;;  %v1248_v40 = vadd.f32 %v1247_v28, %v1246_v9  ;;  %v1478_v41 = vrot.slane %v1477_v29, 2  ;;  %v1230_v44 = vrot.slane %v1229_v30, 1  ;;  %v2549_v58 = vpop.f32.mrb[34].mxu0  ;;  %v2558_v15 = vpop.f32.mrb[34].mxu1 }
 0x188   : > { %v1460_v45 = vadd.f32 %v1459_v31, %v1458_v18  ;;  %v1211_v46 = vrot.slane %v1210_v33, 1  ;;  %v1441_v47 = vadd.f32 %v1440_v34, %v1439_v20  ;;  %v1193_v51 = vadd.f32 %v1192_v36, %v1191_v24  ;;  %v2560_v60 = vpop.f32.mrb[35].mxu0  ;;  %v1025_v61 = vpop.f32.mrb[35].mxu1 }
 0x189   : > { %v1423_v52 = vrot.slane %v1422_v39, 1  ;;  %v1249_v53 = vrot.slane %v1248_v40, 1  ;;  %v1479_v54 = vadd.f32 %v1478_v41, %v1477_v29  ;;  %v1231_v5 = vadd.f32 %v1230_v44, %v1229_v30 }
 0x18a   : > { %v1461_v37 = vrot.slane %v1460_v45, 1  ;;  %v1212_v55 = vadd.f32 %v1211_v46, %v1210_v33  ;;  %v1442_v56 = vrot.slane %v1441_v47, 1  ;;  %v860_v14 = vadd.f32 %v2537_v57, %v2425_v13 }
 0x18b   : > { %v1424_v59 = vadd.f32 %v1423_v52, %v1422_v39  ;;  %v1250_v49 = vadd.f32 %v1249_v53, %v1248_v40  ;;  %v1480_v32 = vrot.slane %v1479_v54, 1  ;;  %v862_v38 = vadd.f32 %v2540_v2, %v2427_v16  ;;  %v883_v8 = vpop.f32.mrb[36].mxu0  ;;  %v1028_v18 = vpop.f32.mrb[36].mxu1 }
 0x18c   : > { %v1462_v25 = vadd.f32 %v1461_v37, %v1460_v45  ;;  %v1443_v26 = vadd.f32 %v1442_v56, %v1441_v47  ;;  %v1009_v48 = vadd.f32 %v2542_v4, %v2433_v22  ;;  %1081 = vst [vmem:[%s2416_s5 + $0x20] sm:$0xff] %v860_v14  ;;  %v1312_v57 = vmul.f32 %v860_v14, %v860_v14  ;;  %v1030_v27 = vpop.f32.mrb[37].mxu1 }
 0x18d   : > { %v1540_v62 = vsel %vm1539_vm1, %v1193_v51, %v1424_v59  ;;  %v1481_v63 = vadd.f32 %v1480_v32, %v1479_v54  ;;  %v866_v0 = vadd.f32 %v865_v6, %v2425_v13  ;;  %1082 = vst [vmem:[%s2416_s5 + $0x28] sm:$0xff] %v862_v38  ;;  %v1313_v7 = vmul.f32 %v862_v38, %v862_v38  ;;  %v2576_v6 = vpop.f32.mrb[37].mxu0 }
 0x18e   : > { %v1542_v1 = vsel %vm1539_vm1, %v1231_v5, %v1462_v25  ;;  %v1541_v3 = vsel %vm1539_vm1, %v1212_v55, %v1443_v26  ;;  %1083 = vst [vmem:[%s2416_s5 + $0x30] sm:$0xff] %v1009_v48  ;;  %v1314_v2 = vmul.f32 %v1009_v48, %v1009_v48  ;;  %v1014_v20 = vadd.f32 %v2544_v11, %v2433_v22 }
 0x18f   : > { %v1554_v9 = vcombine.low %v1540_v62, %v1541_v3  ;;  %v1543_v4 = vsel %vm1539_vm1, %v1250_v49, %v1481_v63  ;;  %1088 = vst [vmem:[%s2416_s5 + $0x58] sm:$0xff] %v866_v0  ;;  %v1251_v10 = vadd.f32 %v866_v0, %v860_v14  ;;  %v1319_v17 = vmul.f32 %v866_v0, %v866_v0 }
 0x190   : > { %v1555_v19 = vcombine.low %v1542_v1, %v1543_v4  ;;  %v868_v23 = vadd.f32 %v2546_v12, %v2427_v16  ;;  %v872_v24 = vadd.f32 %v871_v35, %v2425_v13  ;;  %v1019_v30 = vadd.f32 %v1018_v42, %v2433_v22  ;;  %1090 = vst [vmem:[%s2416_s5 + $0x68] sm:$0xff] %v1014_v20  ;;  %v889_v12 = vpop.f32.mrb[38].mxu0  ;;  %v1033_v42 = vpop.f32.mrb[38].mxu1 }
 0x191   : > { %v1562_v28 = vrot.slane %v1554_v9, %v2431_v21  ;;  %v1482_v29 = vadd.f32 %v1319_v17, %v1312_v57  ;;  %v874_v31 = vadd.f32 %v873_v43, %v2427_v16  ;;  %v1289_v34 = vadd.f32 %v1014_v20, %v1009_v48  ;;  %v891_v43 = vpop.f32.mrb[39].mxu0  ;;  %v1035_v50 = vpop.f32.mrb[39].mxu1 }
 0x192   : > { %v1569_v33 = vrot.slane %v1555_v19, %v2431_v21  ;;  %v1321_v11 = vmul.f32 %v1014_v20, %v1014_v20  ;;  %1089 = vst [vmem:[%s2416_s5 + $0x60] sm:$0xff] %v868_v23  ;;  %v1270_v36 = vadd.f32 %v868_v23, %v862_v38  ;;  %1095 = vst [vmem:[%s2416_s5 + $0x90] sm:$0xff] %v872_v24 }
 0x193   : > { %v1320_v35 = vmul.f32 %v868_v23, %v868_v23  ;;  %v1252_v39 = vadd.f32 %v1251_v10, %v872_v24  ;;  %v1326_v40 = vmul.f32 %v872_v24, %v872_v24  ;;  %1097 = vst [vmem:[%s2416_s5 + $0xa0] sm:$0xff] %v1019_v30  ;;  %v1328_v41 = vmul.f32 %v1019_v30, %v1019_v30  ;;  %v895_v59 = vpop.f32.mrb[40].mxu0  ;;  %v1038_v25 = vpop.f32.mrb[40].mxu1 }
 0x194   : > { %1096 = vst [vmem:[%s2416_s5 + $0x98] sm:$0xff] %v874_v31  ;;  %v1570_v44 = vcombine.low %v1562_v28, %v1569_v33  ;;  %v1520_v45 = vadd.f32 %v1321_v11, %v1314_v2  ;;  %v1290_v46 = vadd.f32 %v1289_v34, %v1019_v30  ;;  %v1271_v47 = vadd.f32 %v1270_v36, %v874_v31  ;;  %v897_v26 = vpop.f32.mrb[41].mxu0 }
 0x195   : > { %v1501_v51 = vadd.f32 %v1320_v35, %v1313_v7  ;;  %v1483_v52 = vadd.f32 %v1482_v29, %v1326_v40  ;;  %v1327_v53 = vmul.f32 %v874_v31, %v874_v31  ;;  %v878_v54 = vadd.f32 %v2549_v58, %v2425_v13 }
 0x196   : > { %1589 = vst [vmem:[%s2593_s8] sm:$0xff] %v1570_v44  ;;  %v1521_v5 = vadd.f32 %v1520_v45, %v1328_v41  ;;  %v1024_v37 = vadd.f32 %v2558_v15, %v2433_v22  ;;  %v880_v55 = vadd.f32 %v2560_v60, %v2427_v16  ;;  %v884_v56 = vadd.f32 %v883_v8, %v2425_v13  ;;  %v1040_v60 = vpop.f32.mrb[41].mxu1 }
 0x197   : > { %v1502_v49 = vadd.f32 %v1501_v51, %v1327_v53  ;;  %1102 = vst [vmem:[%s2416_s5 + $0xc8] sm:$0xff] %v878_v54  ;;  %v1253_v32 = vadd.f32 %v1252_v39, %v878_v54  ;;  %v1333_v14 = vmul.f32 %v878_v54, %v878_v54  ;;  %v1029_v58 = vadd.f32 %v1028_v18, %v2433_v22  ;;  %v901_v8 = vpop.f32.mrb[42].mxu0  ;;  %v1043_v18 = vpop.f32.mrb[42].mxu1 }
 0x198   : > { %1104 = vst [vmem:[%s2416_s5 + $0xd8] sm:$0xff] %v1024_v37  ;;  %v1291_v38 = vadd.f32 %v1290_v46, %v1024_v37  ;;  %v1335_v48 = vmul.f32 %v1024_v37, %v1024_v37  ;;  %1103 = vst [vmem:[%s2416_s5 + $0xd0] sm:$0xff] %v880_v55  ;;  %v1272_v15 = vadd.f32 %v1271_v47, %v880_v55  ;;  %v903_v19 = vpop.f32.mrb[43].mxu0 }
 0x199   : > { %v1334_v61 = vmul.f32 %v880_v55, %v880_v55  ;;  %1109 = vst [vmem:[%s2416_s5 + $0x100] sm:$0xff] %v884_v56  ;;  %v1484_v62 = vadd.f32 %v1483_v52, %v1333_v14  ;;  %v1254_v63 = vadd.f32 %v1253_v32, %v884_v56  ;;  %v1340_v57 = vmul.f32 %v884_v56, %v884_v56 }
 0x19a   : > { %1111 = vst [vmem:[%s2416_s5 + $0x110] sm:$0xff] %v1029_v58  ;;  %v1342_v0 = vmul.f32 %v1029_v58, %v1029_v58  ;;  %v1522_v1 = vadd.f32 %v1521_v5, %v1335_v48  ;;  %v1292_v7 = vadd.f32 %v1291_v38, %v1029_v58  ;;  %v886_v2 = vadd.f32 %v2576_v6, %v2427_v16  ;;  %v1045_v6 = vpop.f32.mrb[43].mxu1 }
 0x19b   : > { %v1503_v3 = vadd.f32 %v1502_v49, %v1334_v61  ;;  %v1485_v9 = vadd.f32 %v1484_v62, %v1340_v57  ;;  %v890_v4 = vadd.f32 %v889_v12, %v2425_v13  ;;  %v1034_v10 = vadd.f32 %v1033_v42, %v2433_v22  ;;  %v907_v12 = vpop.f32.mrb[44].mxu0  ;;  %v1048_v42 = vpop.f32.mrb[44].mxu1 }
 0x19c   : > { %v892_v17 = vadd.f32 %v891_v43, %v2427_v16  ;;  %v1523_v20 = vadd.f32 %v1522_v1, %v1342_v0  ;;  %1110 = vst [vmem:[%s2416_s5 + $0x108] sm:$0xff] %v886_v2  ;;  %v1273_v23 = vadd.f32 %v1272_v15, %v886_v2  ;;  %v1341_v24 = vmul.f32 %v886_v2, %v886_v2  ;;  %v909_v43 = vpop.f32.mrb[45].mxu0  ;;  %v1050_v50 = vpop.f32.mrb[45].mxu1 }
 0x19d   : > { %v896_v27 = vadd.f32 %v895_v59, %v2425_v13  ;;  %1116 = vst [vmem:[%s2416_s5 + $0x138] sm:$0xff] %v890_v4  ;;  %v1255_v28 = vadd.f32 %v1254_v63, %v890_v4  ;;  %v1347_v29 = vmul.f32 %v890_v4, %v890_v4  ;;  %1118 = vst [vmem:[%s2416_s5 + $0x148] sm:$0xff] %v1034_v10 }
 0x19e   : > { %v1293_v30 = vadd.f32 %v1292_v7, %v1034_v10  ;;  %v1349_v31 = vmul.f32 %v1034_v10, %v1034_v10  ;;  %1117 = vst [vmem:[%s2416_s5 + $0x140] sm:$0xff] %v892_v17  ;;  %v1504_v33 = vadd.f32 %v1503_v3, %v1341_v24  ;;  %v1274_v34 = vadd.f32 %v1273_v23, %v892_v17 }
 0x19f   : > { %v1348_v11 = vmul.f32 %v892_v17, %v892_v17  ;;  %1123 = vst [vmem:[%s2416_s5 + $0x170] sm:$0xff] %v896_v27  ;;  %v1354_v36 = vmul.f32 %v896_v27, %v896_v27  ;;  %v1486_v35 = vadd.f32 %v1485_v9, %v1347_v29  ;;  %v1256_v40 = vadd.f32 %v1255_v28, %v896_v27  ;;  %v913_v59 = vpop.f32.mrb[46].mxu0 }
 0x1a0   : > { %v1524_v39 = vadd.f32 %v1523_v20, %v1349_v31  ;;  %v1039_v41 = vadd.f32 %v1038_v25, %v2433_v22  ;;  %v898_v45 = vadd.f32 %v897_v26, %v2427_v16  ;;  %v902_v46 = vadd.f32 %v901_v8, %v2425_v13  ;;  %v1053_v25 = vpop.f32.mrb[46].mxu1  ;;  %v915_v26 = vpop.f32.mrb[47].mxu0 }
 0x1a1   : > { %v1505_v44 = vadd.f32 %v1504_v33, %v1348_v11  ;;  %v1044_v47 = vadd.f32 %v1043_v18, %v2433_v22  ;;  %v1487_v51 = vadd.f32 %v1486_v35, %v1354_v36  ;;  %v904_v54 = vadd.f32 %v903_v19, %v2427_v16  ;;  %v1055_v60 = vpop.f32.mrb[47].mxu1 }
 0x1a2   : > { %1125 = vst [vmem:[%s2416_s5 + $0x180] sm:$0xff] %v1039_v41  ;;  %v1294_v52 = vadd.f32 %v1293_v30, %v1039_v41  ;;  %v1356_v53 = vmul.f32 %v1039_v41, %v1039_v41  ;;  %1124 = vst [vmem:[%s2416_s5 + $0x178] sm:$0xff] %v898_v45  ;;  %v1275_v5 = vadd.f32 %v1274_v34, %v898_v45 }
 0x1a3   : > { %v1355_v37 = vmul.f32 %v898_v45, %v898_v45  ;;  %1130 = vst [vmem:[%s2416_s5 + $0x1a8] sm:$0xff] %v902_v46  ;;  %v1257_v55 = vadd.f32 %v1256_v40, %v902_v46  ;;  %v1361_v56 = vmul.f32 %v902_v46, %v902_v46  ;;  %1132 = vst [vmem:[%s2416_s5 + $0x1b8] sm:$0xff] %v1044_v47  ;;  %v919_v8 = vpop.f32.mrb[48].mxu0  ;;  %v1058_v18 = vpop.f32.mrb[48].mxu1 }
 0x1a4   : > { %v1525_v49 = vadd.f32 %v1524_v39, %v1356_v53  ;;  %v1295_v32 = vadd.f32 %v1294_v52, %v1044_v47  ;;  %v1363_v14 = vmul.f32 %v1044_v47, %v1044_v47  ;;  %1131 = vst [vmem:[%s2416_s5 + $0x1b0] sm:$0xff] %v904_v54  ;;  %v1362_v58 = vmul.f32 %v904_v54, %v904_v54  ;;  %v921_v19 = vpop.f32.mrb[49].mxu0  ;;  %v1060_v6 = vpop.f32.mrb[49].mxu1 }
 0x1a5   : > { %v1506_v38 = vadd.f32 %v1505_v44, %v1355_v37  ;;  %v1488_v48 = vadd.f32 %v1487_v51, %v1361_v56  ;;  %v1276_v15 = vadd.f32 %v1275_v5, %v904_v54  ;;  %v908_v61 = vadd.f32 %v907_v12, %v2425_v13 }
 0x1a6   : > { %v1526_v62 = vadd.f32 %v1525_v49, %v1363_v14  ;;  %v1049_v63 = vadd.f32 %v1048_v42, %v2433_v22  ;;  %v910_v57 = vadd.f32 %v909_v43, %v2427_v16  ;;  %v914_v0 = vadd.f32 %v913_v59, %v2425_v13 }
 0x1a7   : > { %v1507_v1 = vadd.f32 %v1506_v38, %v1362_v58  ;;  %1137 = vst [vmem:[%s2416_s5 + $0x1e0] sm:$0xff] %v908_v61  ;;  %v1258_v3 = vadd.f32 %v1257_v55, %v908_v61  ;;  %v1368_v7 = vmul.f32 %v908_v61, %v908_v61  ;;  %v1054_v2 = vadd.f32 %v1053_v25, %v2433_v22  ;;  %v925_v12 = vpop.f32.mrb[50].mxu0  ;;  %v1063_v42 = vpop.f32.mrb[50].mxu1 }
 0x1a8   : > { %1139 = vst [vmem:[%s2416_s5 + $0x1f0] sm:$0xff] %v1049_v63  ;;  %v1296_v9 = vadd.f32 %v1295_v32, %v1049_v63  ;;  %v1370_v4 = vmul.f32 %v1049_v63, %v1049_v63  ;;  %1138 = vst [vmem:[%s2416_s5 + $0x1e8] sm:$0xff] %v910_v57  ;;  %v1277_v10 = vadd.f32 %v1276_v15, %v910_v57  ;;  %v927_v43 = vpop.f32.mrb[51].mxu0  ;;  %v1065_v50 = vpop.f32.mrb[51].mxu1 }
 0x1a9   : > { %v1369_v17 = vmul.f32 %v910_v57, %v910_v57  ;;  %1144 = vst [vmem:[%s2416_s5 + $0x218] sm:$0xff] %v914_v0  ;;  %v1489_v20 = vadd.f32 %v1488_v48, %v1368_v7  ;;  %v1259_v23 = vadd.f32 %v1258_v3, %v914_v0  ;;  %v1375_v24 = vmul.f32 %v914_v0, %v914_v0 }
 0x1aa   : > { %1146 = vst [vmem:[%s2416_s5 + $0x228] sm:$0xff] %v1054_v2  ;;  %v1377_v27 = vmul.f32 %v1054_v2, %v1054_v2  ;;  %v1527_v28 = vadd.f32 %v1526_v62, %v1370_v4  ;;  %v1297_v30 = vadd.f32 %v1296_v9, %v1054_v2  ;;  %v916_v31 = vadd.f32 %v915_v26, %v2427_v16 }
 0x1ab   : > { %v1508_v29 = vadd.f32 %v1507_v1, %v1369_v17  ;;  %v1490_v33 = vadd.f32 %v1489_v20, %v1375_v24  ;;  %v920_v34 = vadd.f32 %v919_v8, %v2425_v13  ;;  %v1059_v11 = vadd.f32 %v1058_v18, %v2433_v22  ;;  %v931_v59 = vpop.f32.mrb[52].mxu0  ;;  %v1068_v58 = vpop.f32.mrb[52].mxu1 }
 0x1ac   : > { %v922_v36 = vadd.f32 %v921_v19, %v2427_v16  ;;  %v1528_v35 = vadd.f32 %v1527_v28, %v1377_v27  ;;  %1145 = vst [vmem:[%s2416_s5 + $0x220] sm:$0xff] %v916_v31  ;;  %v1278_v39 = vadd.f32 %v1277_v10, %v916_v31  ;;  %v1376_v40 = vmul.f32 %v916_v31, %v916_v31  ;;  %v933_v25 = vpop.f32.mrb[53].mxu0  ;;  %v1070_v61 = vpop.f32.mrb[53].mxu1 }
 0x1ad   : > { %v926_v41 = vadd.f32 %v925_v12, %v2425_v13  ;;  %1151 = vst [vmem:[%s2416_s5 + $0x250] sm:$0xff] %v920_v34  ;;  %v1260_v44 = vadd.f32 %v1259_v23, %v920_v34  ;;  %v1382_v45 = vmul.f32 %v920_v34, %v920_v34  ;;  %1153 = vst [vmem:[%s2416_s5 + $0x260] sm:$0xff] %v1059_v11 }
 0x1ae   : > { %v1298_v46 = vadd.f32 %v1297_v30, %v1059_v11  ;;  %v1384_v47 = vmul.f32 %v1059_v11, %v1059_v11  ;;  %1152 = vst [vmem:[%s2416_s5 + $0x258] sm:$0xff] %v922_v36  ;;  %v1509_v51 = vadd.f32 %v1508_v29, %v1376_v40  ;;  %v1279_v52 = vadd.f32 %v1278_v39, %v922_v36 }
 0x1af   : > { %v1383_v53 = vmul.f32 %v922_v36, %v922_v36  ;;  %1158 = vst [vmem:[%s2416_s5 + $0x288] sm:$0xff] %v926_v41  ;;  %v1389_v54 = vmul.f32 %v926_v41, %v926_v41  ;;  %v1491_v5 = vadd.f32 %v1490_v33, %v1382_v45  ;;  %v1261_v55 = vadd.f32 %v1260_v44, %v926_v41  ;;  %v937_v2 = vpop.f32.mrb[54].mxu0  ;;  %v1073_v10 = vpop.f32.mrb[54].mxu1 }
 0x1b0   : > { %v1529_v37 = vadd.f32 %v1528_v35, %v1384_v47  ;;  %v1064_v56 = vadd.f32 %v1063_v42, %v2433_v22  ;;  %v928_v32 = vadd.f32 %v927_v43, %v2427_v16  ;;  %v932_v14 = vadd.f32 %v931_v59, %v2425_v13  ;;  %v939_v17 = vpop.f32.mrb[55].mxu0  ;;  %v1075_v24 = vpop.f32.mrb[55].mxu1 }
 0x1b1   : > { %v1510_v49 = vadd.f32 %v1509_v51, %v1383_v53  ;;  %v1492_v26 = vadd.f32 %v1491_v5, %v1389_v54  ;;  %v1069_v15 = vadd.f32 %v1068_v58, %v2433_v22  ;;  %v934_v7 = vadd.f32 %v933_v25, %v2427_v16 }
 0x1b2   : > { %1160 = vst [vmem:[%s2416_s5 + $0x298] sm:$0xff] %v1064_v56  ;;  %v1299_v38 = vadd.f32 %v1298_v46, %v1064_v56  ;;  %v1391_v48 = vmul.f32 %v1064_v56, %v1064_v56  ;;  %1159 = vst [vmem:[%s2416_s5 + $0x290] sm:$0xff] %v928_v32  ;;  %v1280_v60 = vadd.f32 %v1279_v52, %v928_v32 }
 0x1b3   : > { %v1390_v62 = vmul.f32 %v928_v32, %v928_v32  ;;  %1165 = vst [vmem:[%s2416_s5 + $0x2c0] sm:$0xff] %v932_v14  ;;  %v1262_v63 = vadd.f32 %v1261_v55, %v932_v14  ;;  %v1396_v57 = vmul.f32 %v932_v14, %v932_v14  ;;  %1167 = vst [vmem:[%s2416_s5 + $0x2d0] sm:$0xff] %v1069_v15 }
 0x1b4   : > { %v1530_v0 = vadd.f32 %v1529_v37, %v1391_v48  ;;  %v1300_v1 = vadd.f32 %v1299_v38, %v1069_v15  ;;  %v1398_v3 = vmul.f32 %v1069_v15, %v1069_v15  ;;  %v938_v4 = vadd.f32 %v937_v2, %v2425_v13  ;;  %1166 = vst [vmem:[%s2416_s5 + $0x2c8] sm:$0xff] %v934_v7 }
 0x1b5   : > { %v1511_v8 = vadd.f32 %v1510_v49, %v1390_v62  ;;  %v1493_v9 = vadd.f32 %v1492_v26, %v1396_v57  ;;  %v1281_v19 = vadd.f32 %v1280_v60, %v934_v7  ;;  %v1397_v20 = vmul.f32 %v934_v7, %v934_v7 }
 0x1b6   : > { %v1531_v18 = vadd.f32 %v1530_v0, %v1398_v3  ;;  %v1074_v23 = vadd.f32 %v1073_v10, %v2433_v22  ;;  %1172 = vst [vmem:[%s2416_s5 + $0x2f8] sm:$0xff] %v938_v4  ;;  %v1263_v27 = vadd.f32 %v1262_v63, %v938_v4  ;;  %v1403_v6 = vmul.f32 %v938_v4, %v938_v4 }
 0x1b7   : > { %v940_v28 = vadd.f32 %v939_v17, %v2427_v16  ;;  %v1512_v29 = vadd.f32 %v1511_v8, %v1397_v20 }
 0x1b8   : > { %1174 = vst [vmem:[%s2416_s5 + $0x308] sm:$0xff] %v1074_v23  ;;  %v1301_v30 = vadd.f32 %v1300_v1, %v1074_v23  ;;  %v1405_v31 = vmul.f32 %v1074_v23, %v1074_v23  ;;  %v1264_v13 = vrot.slane %v1263_v27, 4  ;;  %v1494_v33 = vadd.f32 %v1493_v9, %v1403_v6 }
 0x1b9   : > { %1173 = vst [vmem:[%s2416_s5 + $0x300] sm:$0xff] %v940_v28  ;;  %v1282_v34 = vadd.f32 %v1281_v19, %v940_v28  ;;  %v1404_v11 = vmul.f32 %v940_v28, %v940_v28 }
 0x1ba   : > { %v1302_v36 = vrot.slane %v1301_v30, 4  ;;  %v1532_v12 = vadd.f32 %v1531_v18, %v1405_v31  ;;  %v1265_v35 = vadd.f32 %v1264_v13, %v1263_v27  ;;  %v1495_v39 = vrot.slane %v1494_v33, 4 }
 0x1bb   : > { %v1283_v22 = vrot.slane %v1282_v34, 4  ;;  %v1513_v40 = vadd.f32 %v1512_v29, %v1404_v11 }
 0x1bc   : > { %v1303_v41 = vadd.f32 %v1302_v36, %v1301_v30  ;;  %v1533_v42 = vrot.slane %v1532_v12, 4  ;;  %v1266_v43 = vrot.slane %v1265_v35, 2  ;;  %v1496_v44 = vadd.f32 %v1495_v39, %v1494_v33 }
 0x1bd   : > { %v1284_v16 = vadd.f32 %v1283_v22, %v1282_v34  ;;  %v1514_v45 = vrot.slane %v1513_v40, 4 }
 0x1be   : > { %v1304_v46 = vrot.slane %v1303_v41, 2  ;;  %v1534_v47 = vadd.f32 %v1533_v42, %v1532_v12  ;;  %v1267_v50 = vadd.f32 %v1266_v43, %v1265_v35  ;;  %v1497_v51 = vrot.slane %v1496_v44, 2 }
 0x1bf   : > { %v1285_v52 = vrot.slane %v1284_v16, 2  ;;  %v1515_v53 = vadd.f32 %v1514_v45, %v1513_v40 }
 0x1c0   : > { %v1305_v54 = vadd.f32 %v1304_v46, %v1303_v41  ;;  %v1535_v5 = vrot.slane %v1534_v47, 2  ;;  %v1268_v37 = vrot.slane %v1267_v50, 1  ;;  %v1498_v55 = vadd.f32 %v1497_v51, %v1496_v44 }
 0x1c1   : > { %v1286_v56 = vadd.f32 %v1285_v52, %v1284_v16  ;;  %v1516_v59 = vrot.slane %v1515_v53, 2 }
 0x1c2   : > { %v1306_v49 = vrot.slane %v1305_v54, 1  ;;  %v1536_v32 = vadd.f32 %v1535_v5, %v1534_v47  ;;  %v1499_v14 = vrot.slane %v1498_v55, 1  ;;  %v1269_v38 = vadd.f32 %v1268_v37, %v1267_v50 }
 0x1c3   : > { %v1287_v58 = vrot.slane %v1286_v56, 1  ;;  %v1517_v25 = vadd.f32 %v1516_v59, %v1515_v53 }
 0x1c4   : > { %v1537_v26 = vrot.slane %v1536_v32, 1  ;;  %v1500_v48 = vadd.f32 %v1499_v14, %v1498_v55  ;;  %v1307_v61 = vadd.f32 %v1306_v49, %v1305_v54 }
 0x1c5   : > { %v1518_v15 = vrot.slane %v1517_v25, 1  ;;  %v1288_v63 = vadd.f32 %v1287_v58, %v1286_v56 }
 0x1c6   : > { %v1538_v60 = vadd.f32 %v1537_v26, %v1536_v32  ;;  %v1544_v62 = vsel %vm1539_vm1, %v1269_v38, %v1500_v48 }
 0x1c7   : > { %v1519_v57 = vadd.f32 %v1518_v15, %v1517_v25 }
 0x1c8   : > { %v1546_v0 = vsel %vm1539_vm1, %v1307_v61, %v1538_v60 }
 0x1c9   : > { %v1545_v1 = vsel %vm1539_vm1, %v1288_v63, %v1519_v57  ;;  %v1585_v7 = vrot.slane %v1546_v0, %v2431_v21 }
 0x1ca   : > { %v1571_v3 = vcombine.low %v1544_v62, %v1545_v1 }
 0x1cc   : > { %v1578_v2 = vrot.slane %v1571_v3, %v2431_v21 }
 0x1ce   : > { %v1586_v8 = vcombine.low %v1578_v2, %v1585_v7 }
 0x1d0   : > { %1590 = vst [vmem:[%s2593_s8 + $0x8] sm:$0x3f] %v1586_v8 }
 0x1d1 PF: > { %s17_s15 = sadd.s32 1, %s2031_s15  }
 0x1d2   : > { %p14_p10 = scmp.ge.s32.totalorder %s17_s15, 4  }
 0x1d4   :  { %16 = sbr.rel (!%p14_p10) target bundleno = 2 (0x2), region = 83 }
 0x1db   :  { %1631 = vsyncpa [#allocation3], 1 }
 0x1dc   :  { %1633 = vsyncpa [#allocation3 + $0x1], 1 }
 0x1dd   :  { %1634 = vsyncpa [#allocation5], 1 }

// kernel: cnn_forward.3
= control target key start
LH: loop header
LB: loop body
LE: loop exit
PB: predicated region body
PF: predicated region fallthrough
CT: control target
= control target key end

     0   :  { %v49_v0 = vlaneseq  ;;  %v11388_v5 = vmov 0.0|0.0   ;;  %s6816_s16 = smov 64   ;;  %s11382_s0 = inlined_call_operand.vmem [shape: f32[8,25088], index: 0, kind: input, shape index: {}]   ;;  %s11383_s1 = inlined_call_operand.vmem [shape: f32[2,1792], index: 1, kind: input, shape index: {}]   ;;  %s11384_s2 = inlined_call_operand.vmem [shape: f32[14,448,128], index: 2, kind: input, shape index: {}]   ;;  %s11385_s3 = inlined_call_operand.vmem [shape: f32[1,128], index: 3, kind: input, shape index: {}]   ;;  %s11386_s4 = inlined_call_operand.hbm [shape: f32[8,128], index: 4, kind: output, shape index: {}]  }
   0x1   :  { %v6846_v1 = vld [vmem:[%s11383_s1 + $0x10] ss:$2 sm:$0x3f]  ;;  %v6853_v3 = vld [vmem:[%s11383_s1 + $0x11] ss:$2 sm:$0x3f]  ;;  %5754 = vmatprep.subr.bf16.mxu1 %v11388_v5 }
   0x2   :  { %v6848_v2 = vshrl.u32 %v49_v0, 7  ;;  %v6858_v4 = vld [vmem:[%s11383_s1] ss:$2 sm:$0xff]  ;;  %v6868_v8 = vld [vmem:[%s11383_s1 + $0x1] ss:$2 sm:$0xff]  ;;  %v777_v29 = vld [vmem:[%s11382_s0 + $0x110] sm:$0xff] }
   0x3   :  { %v784_v7 = vld [vmem:[%s11382_s0 + $0x148] sm:$0xff]  ;;  %v783_v11 = vld [vmem:[%s11382_s0 + $0x140] sm:$0xff]  ;;  %v36_v30 = vld [vmem:[%s11382_s0 + $0x18] sm:$0xff] }
   0x4   :  { %v71_v6 = vsub.s32 5, %v6848_v2  ;;  %v67_v9 = vsub.s32 4, %v6848_v2  ;;  %v776_v10 = vld [vmem:[%s11382_s0 + $0x108] sm:$0xff]  ;;  %v75_v13 = vsub.s32 6, %v6848_v2  ;;  %v6882_v14 = vsub.s32 2, %v6848_v2  ;;  %v37_v20 = vld [vmem:[%s11382_s0 + $0x20] sm:$0xff] }
   0x5   :  { %v38_v12 = vld [vmem:[%s11382_s0 + $0x28] sm:$0xff]  ;;  %v63_v15 = vsub.s32 3, %v6848_v2  ;;  %v43_v39 = vld [vmem:[%s11382_s0 + $0x50] sm:$0xff]  ;;  %v45_v40 = vld [vmem:[%s11382_s0 + $0x60] sm:$0xff] }
   0x6   :  { %v6886_v16 = vrot.slane %v6846_v1, %v71_v6  ;;  %v6889_v17 = vrot.slane %v6853_v3, %v71_v6  ;;  %v6892_v18 = vrot.slane %v6858_v4, %v71_v6  ;;  %v6895_v19 = vrot.slane %v6846_v1, %v67_v9  ;;  %v44_v45 = vld [vmem:[%s11382_s0 + $0x58] sm:$0xff]  ;;  %v1080_v51 = vld [vmem:[%s11382_s0 + $0x1b0] sm:$0xff]  ;;  %v1074_v55 = vld [vmem:[%s11382_s0 + $0x180] sm:$0xff] }
   0x7   :  { %v6901_v21 = vrot.slane %v6868_v8, %v71_v6  ;;  %v6904_v22 = vrot.slane %v6853_v3, %v67_v9  ;;  %v6907_v23 = vrot.slane %v6858_v4, %v67_v9  ;;  %v6910_v24 = vrot.slane %v6868_v8, %v67_v9  ;;  %v1073_v50 = vld [vmem:[%s11382_s0 + $0x178] sm:$0xff] }
   0x8   :  { %11488 = vst [vmem:[#allocation5_spill] sm:$0xff] %v6886_v16  ;;  %11489 = vst [vmem:[#allocation6_spill] sm:$0xff] %v6889_v17  ;;  %v798_v25 = vmul.f32 %v784_v7, %v6886_v16  ;;  %v790_v26 = vmul.f32 %v776_v10, %v6892_v18  ;;  %v797_v27 = vmul.f32 %v783_v11, %v6895_v19  ;;  %v39_v7 = vld [vmem:[%s11382_s0 + $0x30] sm:$0xff]  ;;  %v479_v11 = vld [vmem:[%s11382_s0 + $0x98] sm:$0xff] }
   0x9   :  { %11490 = vst [vmem:[#allocation7_spill] sm:$0xff] %v6904_v22  ;;  %11491 = vst [vmem:[#allocation8_spill] sm:$0xff] %v6907_v23  ;;  %v124_v28 = vmul.f32 %v6892_v18, %v38_v12  ;;  %v123_v31 = vmul.f32 %v6907_v23, %v37_v20  ;;  %v6924_v32 = vrot.slane %v6858_v4, %v75_v13  ;;  %v478_v10 = vld [vmem:[%s11382_s0 + $0x90] sm:$0xff] }
   0xa   :  { %v6927_v33 = vrot.slane %v6868_v8, %v75_v13  ;;  %v6930_v34 = vrot.slane %v6858_v4, %v63_v15  ;;  %v812_v35 = vadd.f32 %v798_v25, %v6889_v17  ;;  %v804_v36 = vadd.f32 %v790_v26, %v6901_v21  ;;  %v1081_v25 = vld [vmem:[%s11382_s0 + $0x1b8] sm:$0xff] }
   0xb   :  { %11492 = vst [vmem:[#allocation9_spill] sm:$0xff] %v6924_v32  ;;  %v811_v37 = vadd.f32 %v797_v27, %v6904_v22  ;;  %v210_v38 = vadd.f32 %v6901_v21, %v124_v28  ;;  %v209_v41 = vadd.f32 %v6910_v24, %v123_v31  ;;  %v791_v42 = vmul.f32 %v777_v29, %v6924_v32  ;;  %v477_v29 = vld [vmem:[%s11382_s0 + $0x88] sm:$0xff] }
   0xc   :  { %11493 = vst [vmem:[#allocation10_spill] sm:$0xff] %v6927_v33  ;;  %11494 = vst [vmem:[#allocation11_spill] sm:$0xff] %v6930_v34  ;;  %v6946_v43 = vrot.slane %v6846_v1, %v6882_v14  ;;  %v122_v44 = vmul.f32 %v6930_v34, %v36_v30  ;;  %846 = vrot.lane.b32.xlu1 %v812_v35, %s6816_s16  ;;  %v6954_v47 = vrot.slane %v6868_v8, %v63_v15  ;;  %v484_v30 = vld [vmem:[%s11382_s0 + $0xc0] sm:$0xff] }
   0xd   :  { %v6581_v46 = vpack.i.bf16 %v811_v37, %v804_v36  ;;  %v6958_v48 = vrot.slane %v6853_v3, %v6882_v14  ;;  %v6961_v49 = vrot.slane %v6846_v1, %v63_v15  ;;  %v6586_v52 = vpack.i.bf16 %v210_v38, %v209_v41  ;;  %v46_v37 = vld [vmem:[%s11382_s0 + $0x68] sm:$0xff] }
   0xe   :  { %11495 = vst [vmem:[#allocation12_spill] sm:$0xff] %v6946_v43  ;;  %11496 = vst [vmem:[#allocation13_spill] sm:$0xff] %v6954_v47  ;;  %v129_v53 = vmul.f32 %v6946_v43, %v43_v39  ;;  %v131_v54 = vmul.f32 %v6895_v19, %v45_v40  ;;  %v805_v56 = vadd.f32 %v791_v42, %v6927_v33  ;;  %v485_v38 = vld [vmem:[%s11382_s0 + $0xc8] sm:$0xff]  ;;  %v486_v39 = vld [vmem:[%s11382_s0 + $0xd0] sm:$0xff] }
   0xf   :  { %11497 = vst [vmem:[#allocation14_spill] sm:$0xff] %v6958_v48  ;;  %11498 = vst [vmem:[#allocation15_spill] sm:$0xff] %v6961_v49  ;;  %6582 = vrot.lane.b32.xlu0 %v6581_v46, %s6816_s16  ;;  %v6977_v57 = vadd.f32 %v6954_v47, %v122_v44  ;;  %v130_v58 = vmul.f32 %v6961_v49, %v44_v45  ;;  %v6981_v59 = vrot.slane %v6853_v3, %v63_v15 }
  0x10   :  { %v6984_v60 = vadd.f32 %v6958_v48, %v129_v53  ;;  %v217_v61 = vadd.f32 %v6904_v22, %v131_v54  ;;  %v1087_v62 = vmul.f32 %v1073_v50, %v6892_v18  ;;  %v1094_v63 = vmul.f32 %v1080_v51, %v6895_v19  ;;  %6587 = vrot.lane.b32.xlu1 %v6586_v52, %s6816_s16  ;;  %v1370_v52 = vld [vmem:[%s11382_s0 + $0x1e8] sm:$0xff]  ;;  %v1377_v53 = vld [vmem:[%s11382_s0 + $0x220] sm:$0xff] }
  0x11   :  { %v216_v0 = vadd.f32 %v6981_v59, %v130_v58  ;;  %v1088_v6 = vmul.f32 %v1074_v55, %v6924_v32  ;;  %v125_v20 = vmul.f32 %v6924_v32, %v39_v7  ;;  %v492_v27 = vmul.f32 %v478_v10, %v6907_v23  ;;  %v4444_v58 = vld [vmem:[%s11384_s2 + $0x480] sm:$0xff] }
  0x12   :  { %v6596_v9 = vpack.i.bf16 %v6984_v60, %v6977_v57  ;;  %v1101_v13 = vadd.f32 %v1087_v62, %v6901_v21  ;;  %v1108_v15 = vadd.f32 %v1094_v63, %v6904_v22  ;;  %v493_v28 = vmul.f32 %v479_v11, %v6892_v18  ;;  %v1371_v62 = vld [vmem:[%s11382_s0 + $0x1f0] sm:$0xff]  ;;  %v480_v10 = vld [vmem:[%s11382_s0 + $0xa0] sm:$0xff] }
  0x13   :  { %823 = vrot.lane.b32.xlu0 %v805_v56, %s6816_s16  ;;  %v6591_v12 = vpack.i.bf16 %v217_v61, %v216_v0  ;;  %v1102_v26 = vadd.f32 %v1088_v6, %v6927_v33  ;;  %v1095_v35 = vmul.f32 %v1081_v25, %v6886_v16  ;;  %v211_v36 = vadd.f32 %v6927_v33, %v125_v20  ;;  %v4445_v61 = vld [vmem:[%s11384_s2 + $0x488] sm:$0xff]  ;;  %v4446_v11 = vld [vmem:[%s11384_s2 + $0x490] sm:$0xff]  ;;  %v290_v25 = vld [vmem:[%s11384_s2 + $0x80] sm:$0xff] }
  0x14   :  { %6597 = vrot.lane.b32.xlu1 %v6596_v9, %s6816_s16  ;;  %v6601_v31 = vpack.i.bf16 %v1108_v15, %v1101_v13  ;;  %v506_v40 = vadd.f32 %v492_v27, %v6910_v24  ;;  %v507_v41 = vadd.f32 %v493_v28, %v6901_v21  ;;  %v491_v42 = vmul.f32 %v477_v29, %v6930_v34  ;;  %v1667_v13 = vld [vmem:[%s11382_s0 + $0x258] sm:$0xff]  ;;  %v1674_v15 = vld [vmem:[%s11382_s0 + $0x290] sm:$0xff]  ;;  %v291_v28 = vld [vmem:[%s11384_s2 + $0x88] sm:$0xff] }
  0x15   :  { %v498_v44 = vmul.f32 %v484_v30, %v6946_v43  ;;  %v1109_v45 = vadd.f32 %v1095_v35, %v6889_v17  ;;  %v132_v46 = vmul.f32 %v6886_v16, %v46_v37  ;;  %v499_v50 = vmul.f32 %v485_v38, %v6961_v49  ;;  %v274_v29 = vld [vmem:[%s11384_s2] sm:$0xff]  ;;  %v275_v30 = vld [vmem:[%s11384_s2 + $0x8] sm:$0xff]  ;;  %v293_v37 = vld [vmem:[%s11384_s2 + $0x98] sm:$0xff] }
  0x16   :  { %v500_v51 = vmul.f32 %v486_v39, %v6895_v19  ;;  %v6606_v54 = vpack.i.bf16 %v507_v41, %v506_v40  ;;  %v7050_v55 = vadd.f32 %v491_v42, %v6954_v47  ;;  %v1384_v63 = vmul.f32 %v1370_v52, %v6892_v18  ;;  %v1378_v41 = vld [vmem:[%s11382_s0 + $0x228] sm:$0xff]  ;;  %v4448_v42 = vld [vmem:[%s11384_s2 + $0x4a0] sm:$0xff] }
  0x17   :  { %6592 = vrot.lane.b32.xlu0 %v6591_v12, %s6816_s16  ;;  %v7053_v56 = vadd.f32 %v498_v44, %v6958_v48  ;;  %v218_v0 = vadd.f32 %v6889_v17, %v132_v46  ;;  %v513_v6 = vadd.f32 %v499_v50, %v6981_v59  ;;  %v1391_v9 = vmul.f32 %v1377_v53, %v6895_v19  ;;  %v4447_v12 = vld [vmem:[%s11384_s2 + $0x498] sm:$0xff]  ;;  %v4449_v44 = vld [vmem:[%s11384_s2 + $0x4a8] sm:$0xff] }
  0x18   :  { %1120 = vrot.lane.b32.xlu1 %v1102_v26, %s6816_s16  ;;  %11499 = vst [vmem:[#allocation16_spill] sm:$0xff] %v7050_v55  ;;  %v514_v7 = vadd.f32 %v500_v51, %v6904_v22  ;;  %v5755_v20 = vpack.c.bf16 %v4445_v61, %v4444_v58  ;;  %v1385_v27 = vmul.f32 %v1371_v62, %v6924_v32  ;;  %v277_v58 = vld [vmem:[%s11384_s2 + $0x18] sm:$0xff] }
  0x19   :  { %11500 = vst [vmem:[#allocation17_spill] sm:$0xff] %v7053_v56  ;;  %v6616_v26 = vpack.i.bf16 %v7053_v56, %v7050_v55  ;;  %v5758_v35 = vpack.c.bf16 %v4447_v12, %v4446_v11  ;;  %v1405_v39 = vadd.f32 %v1391_v9, %v6904_v22  ;;  %v494_v40 = vmul.f32 %v480_v10, %v6924_v32  ;;  %v487_v62 = vld [vmem:[%s11382_s0 + $0xd8] sm:$0xff]  ;;  %v4450_v10 = vld [vmem:[%s11384_s2 + $0x4b0] sm:$0xff] }
  0x1a   :  { %5756 = vmatpush1.bf16.msra.mxu1 %v5755_v20  ;;  %v6611_v38 = vpack.i.bf16 %v514_v7, %v513_v6  ;;  %v1688_v46 = vmul.f32 %v1674_v15, %v6895_v19  ;;  %v5586_v50 = vpack.c.bf16 %v291_v28, %v290_v25  ;;  %v5588_v51 = vpack.c.bf16 %v275_v30, %v274_v29  ;;  %v295_v6 = vld [vmem:[%s11384_s2 + $0xa8] sm:$0xff]  ;;  %v1675_v9 = vld [vmem:[%s11382_s0 + $0x298] sm:$0xff]  ;;  %v1668_v25 = vld [vmem:[%s11382_s0 + $0x260] sm:$0xff] }
  0x1b   :  { %6602 = vrot.lane.b32.xlu0 %v6601_v31, %s6816_s16  ;;  %v1398_v31 = vadd.f32 %v1384_v63, %v6901_v21  ;;  %5757 = vmatprep.subr.bf16.mxu1 %v11388_v5  ;;  %v1399_v52 = vadd.f32 %v1385_v27, %v6927_v33  ;;  %v1392_v61 = vmul.f32 %v1378_v41, %v6886_v16  ;;  %v4451_v11 = vld [vmem:[%s11384_s2 + $0x4b8] sm:$0xff]  ;;  %v7153_v12 = vsub.s32 1, %v6848_v2  ;;  %v781_v27 = vld [vmem:[%s11382_s0 + $0x130] sm:$0xff]  ;;  %v775_v29 = vld [vmem:[%s11382_s0 + $0x100] sm:$0xff] }
  0x1c   :  { %229 = vrot.lane.b32.xlu1 %v211_v36, %s6816_s16  ;;  %v292_v36 = vld [vmem:[%s11384_s2 + $0x90] sm:$0xff]  ;;  %v5761_v63 = vpack.c.bf16 %v4449_v44, %v4448_v42  ;;  %5587 = vmatprep.subr.bf16.mxu0 %v5586_v50  ;;  %v7160_v20 = vadd.f32 %v1688_v46, %v6904_v22  ;;  %v782_v41 = vld [vmem:[%s11382_s0 + $0x138] sm:$0xff]  ;;  %v5764_v42 = vpack.c.bf16 %v4451_v11, %v4450_v10 }
  0x1d   :  { %v5590_v53 = vpack.c.bf16 %v293_v37, %v292_v36  ;;  %v6621_v7 = vpack.i.bf16 %v1405_v39, %v1398_v31  ;;  %5589 = vmatpush3.bf16.msra.mxu0 %v5588_v51  ;;  %v278_v31 = vld [vmem:[%s11384_s2 + $0x20] sm:$0xff]  ;;  %v7183_v36 = vrot.slane %v6868_v8, %v6882_v14  ;;  %v7187_v37 = vrot.slane %v6858_v4, %v6882_v14  ;;  %v296_v44 = vld [vmem:[%s11384_s2 + $0xb0] sm:$0xff]  ;;  %v297_v14 = vld [vmem:[%s11384_s2 + $0xb8] sm:$0xff] }
  0x1e   :  { %5759 = vmatpush1.bf16.msra.mxu1 %v5758_v35  ;;  %v279_v35 = vld [vmem:[%s11384_s2 + $0x28] sm:$0xff]  ;;  %v501_v39 = vmul.f32 %v487_v62, %v6886_v16  ;;  %v795_v50 = vmul.f32 %v781_v27, %v6946_v43  ;;  %v4452_v51 = vld [vmem:[%s11384_s2 + $0x4c0] sm:$0xff]  ;;  %v7222_v62 = vrot.slane %v6853_v3, %v7153_v12  ;;  %v281_v10 = vld [vmem:[%s11384_s2 + $0x38] sm:$0xff]  ;;  %v51_v27 = vsub.s32 0, %v6848_v2 }
  0x1f   :  { %1143 = vrot.lane.b32.xlu0 %v1109_v45, %s6816_s16  ;;  %v1681_v45 = vmul.f32 %v1667_v13, %v6892_v18  ;;  %5760 = vmatprep.subr.bf16.mxu1 %v11388_v5  ;;  %v508_v13 = vadd.f32 %v494_v40, %v6927_v33  ;;  %11501 = vst [vmem:[#allocation18_spill] sm:$0xff] %v7187_v37 }
  0x20   :  { %6607 = vrot.lane.b32.xlu1 %v6606_v54, %s6816_s16  ;;  %v276_v54 = vld [vmem:[%s11384_s2 + $0x10] sm:$0xff]  ;;  %5591 = vmatprep.subr.bf16.mxu0 %v5590_v53  ;;  %v1689_v40 = vmul.f32 %v1675_v9, %v6886_v16  ;;  %v789_v53 = vmul.f32 %v775_v29, %v6907_v23  ;;  %11503 = vst [vmem:[#allocation20_spill] sm:$0xff] %v7222_v62 }
  0x21   :  { %v7157_v15 = vadd.f32 %v1681_v45, %v6901_v21  ;;  %v5592_v28 = vpack.c.bf16 %v277_v58, %v276_v54  ;;  %v1682_v45 = vmul.f32 %v1668_v25, %v6924_v32  ;;  %v1965_v54 = vld [vmem:[%s11382_s0 + $0x2d0] sm:$0xff]  ;;  %v5596_v58 = vpack.c.bf16 %v279_v35, %v278_v31  ;;  %v298_v25 = vld [vmem:[%s11384_s2 + $0xc0] sm:$0xff]  ;;  %v4455_v35 = vld [vmem:[%s11384_s2 + $0x4d8] sm:$0xff] }
  0x22   :  { %5762 = vmatpush1.bf16.msra.mxu1 %v5761_v63  ;;  %v280_v9 = vld [vmem:[%s11384_s2 + $0x30] sm:$0xff]  ;;  %v515_v11 = vadd.f32 %v501_v39, %v6889_v17  ;;  %v7266_v39 = vadd.f32 %v795_v50, %v6958_v48 }
  0x23   :  { %253 = vrot.lane.b32.xlu0 %v218_v0, %s6816_s16  ;;  %v294_v0 = vld [vmem:[%s11384_s2 + $0xa0] sm:$0xff]  ;;  %5763 = vmatprep.subr.bf16.mxu1 %v11388_v5  ;;  %v6626_v63 = vpack.i.bf16 %v7160_v20, %v7157_v15  ;;  %v1079_v15 = vld [vmem:[%s11382_s0 + $0x1a8] sm:$0xff]  ;;  %v4454_v31 = vld [vmem:[%s11384_s2 + $0x4d0] sm:$0xff] }
  0x24   :  { %6617 = vrot.lane.b32.xlu1 %v6616_v26, %s6816_s16  ;;  %v774_v26 = vld [vmem:[%s11382_s0 + $0xf8] sm:$0xff]  ;;  %v5594_v30 = vpack.c.bf16 %v295_v6, %v294_v0  ;;  %5593 = vmatpush3.bf16.msra.mxu0 %v5592_v28  ;;  %v796_v0 = vmul.f32 %v782_v41, %v6961_v49  ;;  %v1072_v6 = vld [vmem:[%s11382_s0 + $0x170] sm:$0xff]  ;;  %v1696_v28 = vadd.f32 %v1682_v45, %v6927_v33 }
  0x25   :  { %v788_v46 = vmul.f32 %v774_v26, %v6930_v34  ;;  %v299_v26 = vld [vmem:[%s11384_s2 + $0xc8] sm:$0xff]  ;;  %v1086_v41 = vmul.f32 %v1072_v6, %v6907_v23  ;;  %v7299_v6 = vrot.slane %v6846_v1, %v51_v27 }
  0x26   :  { %5595 = vmatprep.subr.bf16.mxu0 %v5594_v30  ;;  %5765 = vmatpush1.bf16.msra.mxu1 %v5764_v42  ;;  %v1979_v30 = vmul.f32 %v1965_v54, %v6924_v32  ;;  %v5600_v42 = vpack.c.bf16 %v281_v10, %v280_v9  ;;  %v7280_v45 = vadd.f32 %v796_v0, %v6981_v59  ;;  %v79_v54 = vsub.s32 7, %v6848_v2  ;;  %v4457_v2 = vld [vmem:[%s11384_s2 + $0x4e8] sm:$0xff] }
  0x27   :  { %6612 = vrot.lane.b32.xlu0 %v6611_v38, %s6816_s16  ;;  %v1406_v38 = vadd.f32 %v1392_v61, %v6889_v17  ;;  %v7218_v61 = vrot.slane %v6846_v1, %v7153_v12  ;;  %v7252_v29 = vadd.f32 %v788_v46, %v6954_v47  ;;  %5766 = vmatprep.subr.bf16.mxu1 %v11388_v5 }
  0x28   :  { %1417 = vrot.lane.b32.xlu1 %v1399_v52, %s6816_s16  ;;  %v4453_v52 = vld [vmem:[%s11384_s2 + $0x4c8] sm:$0xff]  ;;  %5597 = vmatpush3.bf16.msra.mxu0 %v5596_v58  ;;  %v1093_v46 = vmul.f32 %v1079_v15, %v6961_v49  ;;  %v5602_v50 = vpack.c.bf16 %v299_v26, %v298_v25  ;;  %v5770_v58 = vpack.c.bf16 %v4455_v35, %v4454_v31  ;;  %v1369_v15 = vld [vmem:[%s11382_s0 + $0x1e0] sm:$0xff]  ;;  %v285_v31 = vld [vmem:[%s11384_s2 + $0x58] sm:$0xff] }
  0x29   :  { %11502 = vst [vmem:[#allocation19_spill] sm:$0xff] %v7218_v61  ;;  %v5767_v20 = vpack.c.bf16 %v4453_v52, %v4452_v51  ;;  %v283_v51 = vld [vmem:[%s11384_s2 + $0x48] sm:$0xff]  ;;  %v300_v52 = vld [vmem:[%s11384_s2 + $0xd0] sm:$0xff]  ;;  %v7296_v0 = vrot.slane %v6858_v4, %v7153_v12  ;;  %11505 = vst [vmem:[#allocation22_spill] sm:$0xff] %v7299_v6  ;;  %v7312_v10 = vrot.slane %v6868_v8, %v7153_v12 }
  0x2a   :  { %v7315_v1 = vrot.slane %v6853_v3, %v51_v27  ;;  %v7323_v26 = vrot.slane %v6858_v4, %v51_v27  ;;  %v1376_v3 = vld [vmem:[%s11382_s0 + $0x218] sm:$0xff]  ;;  %v284_v12 = vld [vmem:[%s11384_s2 + $0x50] sm:$0xff]  ;;  %v7336_v35 = vrot.slane %v6858_v4, %v79_v54  ;;  %v303_v4 = vld [vmem:[%s11384_s2 + $0xe8] sm:$0xff] }
  0x2b   :  { %6622 = vrot.lane.b32.xlu0 %v6621_v7, %s6816_s16  ;;  %v5598_v7 = vpack.c.bf16 %v297_v14, %v296_v44  ;;  %v282_v44 = vld [vmem:[%s11384_s2 + $0x40] sm:$0xff]  ;;  %5768 = vmatpush1.bf16.msra.mxu1 %v5767_v20  ;;  %11504 = vst [vmem:[#allocation21_spill] sm:$0xff] %v7296_v0  ;;  %11506 = vst [vmem:[#allocation23_spill] sm:$0xff] %v7312_v10 }
  0x2c   :  { %526 = vrot.lane.b32.xlu1 %v508_v13, %s6816_s16  ;;  %v1703_v13 = vadd.f32 %v1689_v40, %v6889_v17  ;;  %v7269_v40 = vadd.f32 %v789_v53, %v6910_v24  ;;  %v1971_v14 = vld [vmem:[%s11382_s0 + $0x300] sm:$0xff]  ;;  %v301_v53 = vld [vmem:[%s11384_s2 + $0xd8] sm:$0xff]  ;;  %5769 = vmatprep.subr.bf16.mxu1 %v11388_v5  ;;  %11507 = vst [vmem:[#allocation24_spill] sm:$0xff] %v7315_v1  ;;  %11508 = vst [vmem:[#allocation25_spill] sm:$0xff] %v7323_v26 }
  0x2d   :  { %5599 = vmatprep.subr.bf16.mxu0 %v5598_v7  ;;  %v4456_v7 = vld [vmem:[%s11384_s2 + $0x4e0] sm:$0xff]  ;;  %v1985_v9 = vmul.f32 %v1971_v14, %v6895_v19  ;;  %v5604_v20 = vpack.c.bf16 %v283_v51, %v282_v44  ;;  %v5606_v25 = vpack.c.bf16 %v301_v53, %v300_v52  ;;  %11509 = vst [vmem:[#allocation26_spill] sm:$0xff] %v7336_v35  ;;  %v4458_v44 = vld [vmem:[%s11384_s2 + $0x4f0] sm:$0xff]  ;;  %v1071_v52 = vld [vmem:[%s11382_s0 + $0x168] sm:$0xff] }
  0x2e   :  { %5601 = vmatpush3.bf16.msra.mxu0 %v5600_v42  ;;  %v5773_v42 = vpack.c.bf16 %v4457_v2, %v4456_v7  ;;  %v302_v14 = vld [vmem:[%s11384_s2 + $0xe0] sm:$0xff]  ;;  %v1107_v53 = vadd.f32 %v1093_v46, %v6981_v59  ;;  %v1390_v7 = vmul.f32 %v1376_v3, %v6961_v49  ;;  %v4461_v3 = vld [vmem:[%s11384_s2 + $0x508] sm:$0xff] }
  0x2f   :  { %1440 = vrot.lane.b32.xlu0 %v1406_v38, %s6816_s16  ;;  %v1964_v38 = vld [vmem:[%s11382_s0 + $0x2c8] sm:$0xff]  ;;  %5603 = vmatprep.subr.bf16.mxu0 %v5602_v50  ;;  %v1999_v51 = vadd.f32 %v1985_v9, %v6904_v22  ;;  %v5610_v2 = vpack.c.bf16 %v303_v4, %v302_v14  ;;  %v1085_v9 = vmul.f32 %v1071_v52, %v6930_v34  ;;  %v1368_v14 = vld [vmem:[%s11382_s0 + $0x1d8] sm:$0xff]  ;;  %v1375_v4 = vld [vmem:[%s11382_s0 + $0x210] sm:$0xff] }
  0x30   :  { %6627 = vrot.lane.b32.xlu1 %v6626_v63, %s6816_s16  ;;  %v1978_v63 = vmul.f32 %v1964_v38, %v6892_v18  ;;  %v7339_v38 = vrot.slane %v6868_v8, %v51_v27  ;;  %5771 = vmatpush1.bf16.msra.mxu1 %v5770_v58  ;;  %v4459_v27 = vld [vmem:[%s11384_s2 + $0x4f8] sm:$0xff]  ;;  %v1078_v58 = vld [vmem:[%s11382_s0 + $0x1a0] sm:$0xff] }
  0x31   :  { %5772 = vmatprep.subr.bf16.mxu1 %v11388_v5  ;;  %v5776_v46 = vpack.c.bf16 %v4459_v27, %v4458_v44  ;;  %v1404_v27 = vadd.f32 %v1390_v7, %v6981_v59  ;;  %v289_v52 = vld [vmem:[%s11384_s2 + $0x78] sm:$0xff]  ;;  %v1389_v7 = vmul.f32 %v1375_v4, %v6946_v43 }
  0x32   :  { %11510 = vst [vmem:[#allocation27_spill] sm:$0xff] %v7339_v38  ;;  %v1992_v50 = vadd.f32 %v1978_v63, %v6901_v21  ;;  %5605 = vmatpush3.bf16.msra.mxu0 %v5604_v20  ;;  %v1383_v63 = vmul.f32 %v1369_v15, %v6907_v23  ;;  %v305_v15 = vld [vmem:[%s11384_s2 + $0xf8] sm:$0xff] }
  0x33   :  { %549 = vrot.lane.b32.xlu0 %v515_v11, %s6816_s16  ;;  %v6636_v11 = vpack.i.bf16 %v7266_v39, %v7252_v29  ;;  %5607 = vmatprep.subr.bf16.mxu0 %v5606_v25  ;;  %v4460_v25 = vld [vmem:[%s11384_s2 + $0x500] sm:$0xff] }
  0x34   :  { %1737 = vrot.lane.b32.xlu1 %v1703_v13, %s6816_s16  ;;  %v7342_v13 = vrot.slane %v6868_v8, %v79_v54  ;;  %v6631_v8 = vpack.i.bf16 %v7280_v45, %v7269_v40  ;;  %v1993_v40 = vadd.f32 %v1979_v30, %v6927_v33  ;;  %v1100_v45 = vadd.f32 %v1086_v41, %v6910_v24  ;;  %v286_v30 = vld [vmem:[%s11384_s2 + $0x60] sm:$0xff]  ;;  %v287_v41 = vld [vmem:[%s11384_s2 + $0x68] sm:$0xff] }
  0x35   :  { %v5608_v54 = vpack.c.bf16 %v285_v31, %v284_v12  ;;  %5774 = vmatpush1.bf16.msra.mxu1 %v5773_v42  ;;  %v6641_v12 = vpack.i.bf16 %v1999_v51, %v1992_v50  ;;  %v1092_v31 = vmul.f32 %v1078_v58, %v6946_v43  ;;  %v5612_v44 = vpack.c.bf16 %v287_v41, %v286_v30  ;;  %v288_v51 = vld [vmem:[%s11384_s2 + $0x70] sm:$0xff] }
  0x36   :  { %11511 = vst [vmem:[#allocation28_spill] sm:$0xff] %v7342_v13  ;;  %5775 = vmatprep.subr.bf16.mxu1 %v11388_v5  ;;  %v6646_v42 = vpack.i.bf16 %v1107_v53, %v1100_v45  ;;  %v7416_v45 = vadd.f32 %v1085_v9, %v6954_v47  ;;  %v4462_v53 = vld [vmem:[%s11384_s2 + $0x510] sm:$0xff]  ;;  %v4465_v9 = vld [vmem:[%s11384_s2 + $0x528] sm:$0xff] }
  0x37   :  { %1714 = vrot.lane.b32.xlu0 %v1696_v28, %s6816_s16  ;;  %v1972_v28 = vld [vmem:[%s11382_s0 + $0x308] sm:$0xff]  ;;  %5609 = vmatpush3.bf16.msra.mxu0 %v5608_v54  ;;  %v4463_v54 = vld [vmem:[%s11384_s2 + $0x518] sm:$0xff]  ;;  %v7428_v58 = vadd.f32 %v1092_v31, %v6958_v48 }
  0x38   :  { %6637 = vrot.lane.b32.xlu1 %v6636_v11, %s6816_s16  ;;  %v304_v11 = vld [vmem:[%s11384_s2 + $0xf0] sm:$0xff]  ;;  %v1986_v20 = vmul.f32 %v1972_v28, %v6886_v16  ;;  %5611 = vmatprep.subr.bf16.mxu0 %v5610_v2  ;;  %v5779_v28 = vpack.c.bf16 %v4461_v3, %v4460_v25  ;;  %v5616_v2 = vpack.c.bf16 %v289_v52, %v288_v51  ;;  %v2262_v25 = vld [vmem:[%s11382_s0 + $0x340] sm:$0xff] }
  0x39   :  { %v5614_v50 = vpack.c.bf16 %v305_v15, %v304_v11  ;;  %5777 = vmatpush1.bf16.msra.mxu1 %v5776_v46  ;;  %v5782_v41 = vpack.c.bf16 %v4463_v54, %v4462_v53  ;;  %v4464_v46 = vld [vmem:[%s11384_s2 + $0x520] sm:$0xff]  ;;  %v6651_v11 = vpack.i.bf16 %v7428_v58, %v7416_v45  ;;  %v1666_v3 = vld [vmem:[%s11382_s0 + $0x250] sm:$0xff] }
  0x3a   :  { %5778 = vmatprep.subr.bf16.mxu1 %v11388_v5 }
  0x3b   :  { %6632 = vrot.lane.b32.xlu0 %v6631_v8, %s6816_s16  ;;  %v1397_v8 = vadd.f32 %v1383_v63, %v6910_v24  ;;  %v1382_v63 = vmul.f32 %v1368_v14, %v6930_v34  ;;  %5613 = vmatpush3.bf16.msra.mxu0 %v5612_v44 }
  0x3c   :  { %2011 = vrot.lane.b32.xlu1 %v1993_v40, %s6816_s16  ;;  %v2000_v40 = vadd.f32 %v1986_v20, %v6889_v17  ;;  %5615 = vmatprep.subr.bf16.mxu0 %v5614_v50  ;;  %v7447_v20 = vadd.f32 %v1389_v7, %v6958_v48 }
  0x3d   :  { %v6656_v30 = vpack.i.bf16 %v1404_v27, %v1397_v8  ;;  %5780 = vmatpush1.bf16.msra.mxu1 %v5779_v28  ;;  %v7444_v15 = vadd.f32 %v1382_v63, %v6954_v47 }
  0x3e   :  { %5781 = vmatprep.subr.bf16.mxu1 %v11388_v5 }
  0x3f   :  { %6642 = vrot.lane.b32.xlu0 %v6641_v12, %s6816_s16  ;;  %5617 = vmatpush3.bf16.msra.mxu0 %v5616_v2  ;;  %v1673_v12 = vld [vmem:[%s11382_s0 + $0x288] sm:$0xff] }
  0x40   :  { %6647 = vrot.lane.b32.xlu1 %v6646_v42, %s6816_s16 }
  0x43   :  { %2034 = vrot.lane.b32.xlu0 %v2000_v40, %s6816_s16 }
  0x44   :  { %9 = vsyncpa [#allocation3], 0  ;;  %6657 = vrot.lane.b32.xlu1 %v6656_v30, %s6816_s16  ;;  %5618 = vmatprep.subr.bf16.mxu0 %v11388_v5  ;;  %v5785_v31 = vpack.c.bf16 %v4465_v9, %v4464_v46  ;;  %v2276_v42 = vmul.f32 %v2262_v25, %v6924_v32  ;;  %v1680_v44 = vmul.f32 %v1666_v3, %v6907_v23  ;;  %v2261_v14 = vld [vmem:[%s11382_s0 + $0x338] sm:$0xff]  ;;  %v2268_v4 = vld [vmem:[%s11382_s0 + $0x370] sm:$0xff]  ;;  %vm231_vm0 = vcmask 523264  }
  0x45   :  { %5783 = vmatpush1.bf16.msra.mxu1 %v5782_v41  ;;  %v4466_v8 = vld [vmem:[%s11384_s2 + $0x530] sm:$0xff]  ;;  %v4467_v27 = vld [vmem:[%s11384_s2 + $0x538] sm:$0xff]  ;;  %v6661_v50 = vpack.i.bf16 %v7447_v20, %v7444_v15  ;;  %v1687_v51 = vmul.f32 %v1673_v12, %v6961_v49  ;;  %v1672_v52 = vld [vmem:[%s11382_s0 + $0x280] sm:$0xff]  ;;  %v2275_v40 = vmul.f32 %v2261_v14, %v6892_v18  ;;  %v2282_v53 = vmul.f32 %v2268_v4, %v6895_v19 }
  0x46   :  { %5784 = vmatprep.subr.bf16.mxu1 %v11388_v5  ;;  %v1665_v28 = vld [vmem:[%s11382_s0 + $0x248] sm:$0xff]  ;;  %v2269_v54 = vld [vmem:[%s11382_s0 + $0x378] sm:$0xff]  ;;  %v5788_v63 = vpack.c.bf16 %v4467_v27, %v4466_v8  ;;  %v2290_v7 = vadd.f32 %v2276_v42, %v6927_v33  ;;  %v1694_v2 = vadd.f32 %v1680_v44, %v6910_v24  ;;  %v1686_v9 = vmul.f32 %v1672_v52, %v6946_v43  ;;  %v2559_v14 = vld [vmem:[%s11382_s0 + $0x3b0] sm:$0xff] }
  0x47   :  { %6652 = vrot.lane.b32.xlu0 %v6651_v11, %s6816_s16  ;;  %v1701_v30 = vadd.f32 %v1687_v51, %v6981_v59  ;;  %v2289_v41 = vadd.f32 %v2275_v40, %v6901_v21  ;;  %v2296_v46 = vadd.f32 %v2282_v53, %v6904_v22  ;;  %v1679_v11 = vmul.f32 %v1665_v28, %v6930_v34  ;;  %v1963_v4 = vld [vmem:[%s11382_s0 + $0x2c0] sm:$0xff]  ;;  %v1970_v8 = vld [vmem:[%s11382_s0 + $0x2f8] sm:$0xff]  ;;  %v315_v55 = vld [vmem:[%s11384_s2 + $0x148] sm:$0xff] }
  0x48   :  { %v2283_v25 = vmul.f32 %v2269_v54, %v6886_v16  ;;  %v1977_v51 = vmul.f32 %v1963_v4, %v6907_v23  ;;  %v1984_v52 = vmul.f32 %v1970_v8, %v6961_v49  ;;  %v33_v4 = vld [vmem:[%s11382_s0] sm:$0xff] }
  0x49   :  { %5786 = vmatpush1.bf16.msra.mxu1 %v5785_v31  ;;  %v6666_v3 = vpack.i.bf16 %v2296_v46, %v2289_v41  ;;  %v6671_v12 = vpack.i.bf16 %v1701_v30, %v1694_v2  ;;  %v7503_v31 = vadd.f32 %v1686_v9, %v6958_v48  ;;  %v7506_v42 = vadd.f32 %v1679_v11, %v6954_v47  ;;  %v773_v41 = vld [vmem:[%s11382_s0 + $0xf0] sm:$0xff]  ;;  %v780_v46 = vld [vmem:[%s11382_s0 + $0x128] sm:$0xff] }
  0x4a   :  { %5787 = vmatprep.subr.bf16.mxu1 %v11388_v5  ;;  %v2297_v44 = vadd.f32 %v2283_v25, %v6889_v17  ;;  %v1991_v40 = vadd.f32 %v1977_v51, %v6910_v24  ;;  %v1998_v53 = vadd.f32 %v1984_v52, %v6981_v59  ;;  %v787_v25 = vmul.f32 %v773_v41, %v7187_v37  ;;  %v41_v51 = vld [vmem:[%s11382_s0 + $0x40] sm:$0xff]  ;;  %v40_v52 = vld [vmem:[%s11382_s0 + $0x38] sm:$0xff] }
  0x4b   :  { %6662 = vrot.lane.b32.xlu0 %v6661_v50, %s6816_s16  ;;  %11512 = vst [vmem:[#allocation29_spill] sm:$0xff] %v7503_v31  ;;  %11513 = vst [vmem:[#allocation30_spill] sm:$0xff] %v7506_v42  ;;  %6667 = vrot.lane.b32.xlu1 %v6666_v3, %s6816_s16  ;;  %v6676_v27 = vpack.i.bf16 %v7503_v31, %v7506_v42  ;;  %v2573_v50 = vmul.f32 %v2559_v14, %v6924_v32  ;;  %v34_v14 = vld [vmem:[%s11382_s0 + $0x8] sm:$0xff] }
  0x4c   :  { %v6686_v54 = vpack.i.bf16 %v1998_v53, %v1991_v40 }
  0x4d   :  { %5789 = vmatpush1.bf16.msra.mxu1 %v5788_v63  ;;  %v2587_v28 = vadd.f32 %v2573_v50, %v6927_v33  ;;  %v2260_v63 = vld [vmem:[%s11382_s0 + $0x330] sm:$0xff]  ;;  %v801_v50 = vadd.f32 %v787_v25, %v7183_v36 }
  0x4e   :  { %5822 = vmatprep.subr.bf16.mxu1 %v11388_v5  ;;  %v2274_v2 = vmul.f32 %v2260_v63, %v6907_v23  ;;  %v119_v63 = vmul.f32 %v7323_v26, %v33_v4 }
  0x4f   :  { %2308 = vrot.lane.b32.xlu0 %v2290_v7, %s6816_s16  ;;  %2331 = vrot.lane.b32.xlu1 %v2297_v44, %s6816_s16  ;;  %v2267_v7 = vld [vmem:[%s11382_s0 + $0x368] sm:$0xff]  ;;  %v794_v44 = vmul.f32 %v780_v46, %v7218_v61 }
  0x50   :  { %v2281_v30 = vmul.f32 %v2267_v7, %v6961_v49  ;;  %v2288_v9 = vadd.f32 %v2274_v2, %v6910_v24 }
  0x51   :  { %v808_v53 = vadd.f32 %v794_v44, %v7222_v62 }
  0x52   :  { %v2295_v11 = vadd.f32 %v2281_v30, %v6981_v59 }
  0x53   :  { %6672 = vrot.lane.b32.xlu0 %v6671_v12, %s6816_s16  ;;  %6677 = vrot.lane.b32.xlu1 %v6676_v27, %s6816_s16 }
  0x54   :  { %v6696_v3 = vpack.i.bf16 %v2295_v11, %v2288_v9  ;;  %v126_v9 = vmul.f32 %v7336_v35, %v40_v52  ;;  %v205_v52 = vadd.f32 %v7339_v38, %v119_v63  ;;  %v7814_v35 = vld [vmem:[%s11384_s2 + $0x168] sm:$0xff] }
  0x57   :  { %2605 = vrot.lane.b32.xlu1 %v2587_v28, %s6816_s16 }
  0x5b   :  { %6687 = vrot.lane.b32.xlu1 %v6686_v54, %s6816_s16  ;;  %v120_v54 = vmul.f32 %v7296_v0, %v34_v14 }
  0x5f   :  { %6697 = vrot.lane.b32.xlu1 %v6696_v3, %s6816_s16  ;;  %v4501_v3 = vld [vmem:[%s11384_s2 + $0x640] sm:$0xff] }
  0x7e   :  { %v847_v12 = vpop.permute.xlu1 %846 }
  0x7f   :  { %v858_v28 = vmax.f32 %v7266_v39, %v847_v12  ;;  %v127_v39 = vmul.f32 %v7299_v6, %v41_v51  ;;  %v206_v51 = vadd.f32 %v7312_v10, %v120_v54 }
  0x81   :  { %v7557_v8 = vpop.permute.xlu0 %6582  ;;  %v213_v56 = vadd.f32 %v7315_v1, %v127_v39  ;;  %v4504_v39 = vld [vmem:[%s11384_s2 + $0x658] sm:$0xff] }
  0x82   :  { %v11387_v27 = vunpack.i.h.bf16 %v7557_v8  ;;  %v7568_v40 = vpop.permute.xlu1 %6587  ;;  %v11390_v2 = vunpack.i.l.bf16 %v7557_v8 }
  0x83   :  { %v11394_v30 = vunpack.i.h.bf16 %v7568_v40  ;;  %v6589_v41 = vunpack.i.l.bf16 %v7568_v40 }
  0x84   :  { %v850_v7 = vsel %vm231_vm0, %v11387_v27, %v847_v12  ;;  %v4502_v12 = vld [vmem:[%s11384_s2 + $0x648] sm:$0xff] }
  0x85   :  { %v824_v46 = vpop.permute.xlu0 %823  ;;  %v857_v4 = vmax.f32 %v808_v53, %v850_v7  ;;  %v5823_v31 = vpack.c.bf16 %v4502_v12, %v4501_v3 }
  0x86   :  { %v827_v11 = vsel %vm231_vm0, %v11390_v2, %v824_v46  ;;  %v835_v25 = vmax.f32 %v7252_v29, %v824_v46  ;;  %v6598_v14 = vpop.permute.xlu1 %6597  ;;  %v233_v29 = vsel %vm231_vm0, %v6589_v41, %v11394_v30 }
  0x87   :  { %v834_v44 = vmax.f32 %v801_v50, %v827_v11  ;;  %v6600_v27 = vunpack.i.h.bf16 %v6598_v14  ;;  %v6599_v5 = vunpack.i.l.bf16 %v6598_v14  ;;  %v212_v50 = vadd.f32 %v7342_v13, %v126_v9  ;;  %v306_v14 = vld [vmem:[%s11384_s2 + $0x100] sm:$0xff]  ;;  %v35_v13 = vld [vmem:[%s11382_s0 + $0x10] sm:$0xff] }
  0x88   :  { %v862_v2 = vmax.f32 %v835_v25, %v858_v28  ;;  %v4503_v25 = vld [vmem:[%s11384_s2 + $0x650] sm:$0xff]  ;;  %v240_v3 = vmax.f32 %v206_v51, %v233_v29  ;;  %v11514_v51 = vmov 0.0|0.0  }
  0x89   :  { %v7596_v46 = vpop.permute.xlu0 %6592  ;;  %v861_v42 = vmax.f32 %v834_v44, %v857_v4  ;;  %v232_v53 = vsel %vm231_vm0, %v6599_v5, %v6589_v41  ;;  %v5826_v44 = vpack.c.bf16 %v4504_v39, %v4503_v25 }
  0x8a   :  { %v11395_v54 = vunpack.i.h.bf16 %v7596_v46  ;;  %v6594_v63 = vunpack.i.l.bf16 %v7596_v46  ;;  %v866_v7 = vmax.f32 %v862_v2, 0.0  ;;  %v7603_v28 = vpop.permute.xlu1 %1120  ;;  %v239_v9 = vmax.f32 %v205_v52, %v232_v53 }
  0x8b   :  { %v865_v11 = vmax.f32 %v861_v42, 0.0 }
  0x8c   :  { %v255_v5 = vsel %vm231_vm0, %v6600_v27, %v6594_v63  ;;  %4468 = vmatprep.mubr.msk.f32.mxu1 %vm231_vm0, %v866_v7  ;;  %v256_v2 = vsel %vm231_vm0, %v6594_v63, %v11395_v54  ;;  %v307_v27 = vld [vmem:[%s11384_s2 + $0x108] sm:$0xff] }
  0x8d   :  { %v7616_v41 = vpop.permute.xlu0 %6602  ;;  %1062 = vmatmul.mubr.f32.vlgmr.msra.gmra.mrb[0].mxu1 %v865_v11  ;;  %v263_v42 = vmax.f32 %v213_v56, %v256_v2  ;;  %v262_v12 = vmax.f32 %v212_v50, %v255_v5  ;;  %v4505_v56 = vld [vmem:[%s11384_s2 + $0x660] sm:$0xff]  ;;  %v1132_v50 = vmax.f32 %v7416_v45, %v7603_v28  ;;  %v5619_v11 = vpack.c.bf16 %v307_v27, %v306_v14  ;;  %v4507_v45 = vld [vmem:[%s11384_s2 + $0x670] sm:$0xff] }
  0x8e   :  { %5824 = vmatpush1.bf16.msra.mxu1 %v5823_v31  ;;  %v7624_v4 = vpop.permute.xlu1 %229  ;;  %v4506_v31 = vld [vmem:[%s11384_s2 + $0x668] sm:$0xff]  ;;  %v310_v14 = vld [vmem:[%s11384_s2 + $0x120] sm:$0xff] }
  0x8f   :  { %5825 = vmatprep.subr.bf16.mxu1 %v11514_v51  ;;  %v267_v52 = vmax.f32 %v240_v3, %v263_v42  ;;  %v266_v29 = vmax.f32 %v239_v9, %v262_v12  ;;  %v5829_v39 = vpack.c.bf16 %v4506_v31, %v4505_v56  ;;  %v308_v3 = vld [vmem:[%s11384_s2 + $0x110] sm:$0xff]  ;;  %v309_v9 = vld [vmem:[%s11384_s2 + $0x118] sm:$0xff]  ;;  %v242_v2 = vmax.f32 %v6977_v57, %v7624_v4  ;;  %v311_v57 = vld [vmem:[%s11384_s2 + $0x128] sm:$0xff] }
  0x90   :  { %v2558_v56 = vld [vmem:[%s11382_s0 + $0x3a8] sm:$0xff]  ;;  %v2565_v31 = vld [vmem:[%s11382_s0 + $0x3e0] sm:$0xff] }
  0x91   :  { %v7635_v53 = vpop.permute.xlu0 %1143  ;;  %v271_v63 = vmax.f32 %v267_v52, 0.0  ;;  %v270_v7 = vmax.f32 %v266_v29, 0.0 }
  0x92   :  { %v1155_v25 = vmax.f32 %v7428_v58, %v7635_v53  ;;  %5827 = vmatpush1.bf16.msra.mxu1 %v5826_v44  ;;  %v7645_v5 = vpop.permute.xlu1 %6607  ;;  %v4508_v58 = vld [vmem:[%s11384_s2 + $0x678] sm:$0xff]  ;;  %v5622_v44 = vpack.c.bf16 %v309_v9, %v308_v3  ;;  %v5625_v3 = vpack.c.bf16 %v311_v57, %v310_v14  ;;  %v2572_v9 = vmul.f32 %v2558_v56, %v6892_v18 }
  0x93   :  { %397 = vmatprep.mubr.f32.mxu0 %v271_v63  ;;  %5828 = vmatprep.subr.bf16.mxu1 %v11514_v51  ;;  %v5832_v29 = vpack.c.bf16 %v4508_v58, %v4507_v45  ;;  %v4510_v63 = vld [vmem:[%s11384_s2 + $0x688] sm:$0xff]  ;;  %v2579_v45 = vmul.f32 %v2565_v31, %v6895_v19  ;;  %v313_v14 = vld [vmem:[%s11384_s2 + $0x138] sm:$0xff] }
  0x94   :  { %v1159_v42 = vmax.f32 %v1132_v50, %v1155_v25  ;;  %398 = vmatmul.mubr.f32.vlgmr.msra.gmra.mrb[0].mxu0 %v270_v7  ;;  %v1969_v25 = vld [vmem:[%s11382_s0 + $0x2f0] sm:$0xff]  ;;  %v2586_v31 = vadd.f32 %v2572_v9, %v6901_v21 }
  0x95   :  { %5620 = vmatpush1.bf16.msra.mxu0 %v5619_v11  ;;  %v7656_v12 = vpop.permute.xlu0 %253  ;;  %v1962_v11 = vld [vmem:[%s11382_s0 + $0x2b8] sm:$0xff]  ;;  %v1983_v56 = vmul.f32 %v1969_v25, %v6946_v43 }
  0x96   :  { %v1163_v27 = vmax.f32 %v1159_v42, 0.0  ;;  %v265_v52 = vmax.f32 %v6984_v60, %v7656_v12  ;;  %5830 = vmatpush1.bf16.msra.mxu1 %v5829_v39  ;;  %5621 = vmatprep.subr.bf16.mxu0 %v11514_v51  ;;  %v7673_v50 = vpop.permute.xlu1 %6617  ;;  %v4509_v60 = vld [vmem:[%s11384_s2 + $0x680] sm:$0xff]  ;;  %v1976_v57 = vmul.f32 %v1962_v11, %v6930_v34 }
  0x97   :  { %11515 = vst [vmem:[#allocation31_spill] sm:$0xff] %v7673_v50  ;;  %5831 = vmatprep.subr.bf16.mxu1 %v11514_v51  ;;  %v476_v42 = vld [vmem:[%s11382_s0 + $0x80] sm:$0xff] }
  0x98   :  { %v269_v7 = vmax.f32 %v242_v2, %v265_v52  ;;  %4525 = vmatprep.mubr.msk.f32.mxu1 %vm231_vm0, %v1163_v27  ;;  %v5835_v2 = vpack.c.bf16 %v4510_v63, %v4509_v60  ;;  %v4511_v52 = vld [vmem:[%s11384_s2 + $0x690] sm:$0xff]  ;;  %v2593_v60 = vadd.f32 %v2579_v45, %v6904_v22  ;;  %v2566_v63 = vld [vmem:[%s11382_s0 + $0x3e8] sm:$0xff]  ;;  %v490_v11 = vmul.f32 %v476_v42, %v7187_v37  ;;  %v314_v45 = vld [vmem:[%s11384_s2 + $0x140] sm:$0xff] }
  0x99   :  { %5623 = vmatpush1.bf16.msra.mxu0 %v5622_v44  ;;  %v7689_v39 = vpop.permute.xlu0 %6612  ;;  %v312_v44 = vld [vmem:[%s11384_s2 + $0x130] sm:$0xff]  ;;  %v5631_v38 = vpack.c.bf16 %v315_v55, %v314_v45  ;;  %v317_v55 = vld [vmem:[%s11384_s2 + $0x158] sm:$0xff] }
  0x9a   :  { %v273_v58 = vmax.f32 %v269_v7, 0.0  ;;  %5833 = vmatpush1.bf16.msra.mxu1 %v5832_v29  ;;  %5624 = vmatprep.subr.bf16.mxu0 %v11514_v51  ;;  %v7703_v27 = vpop.permute.xlu1 %1417  ;;  %v4512_v29 = vld [vmem:[%s11384_s2 + $0x698] sm:$0xff]  ;;  %v5628_v25 = vpack.c.bf16 %v313_v14, %v312_v44  ;;  %v6681_v54 = vpack.i.bf16 %v2593_v60, %v2586_v31  ;;  %v4513_v14 = vld [vmem:[%s11384_s2 + $0x6a0] sm:$0xff]  ;;  %v7754_v31 = vadd.f32 %v1983_v56, %v6958_v48 }
  0x9b   :  { %5834 = vmatprep.subr.bf16.mxu1 %v11514_v51  ;;  %v483_v7 = vld [vmem:[%s11382_s0 + $0xb8] sm:$0xff]  ;;  %v5838_v9 = vpack.c.bf16 %v4512_v29, %v4511_v52  ;;  %v4514_v52 = vld [vmem:[%s11384_s2 + $0x6a8] sm:$0xff]  ;;  %v7751_v29 = vadd.f32 %v1976_v57, %v6954_v47  ;;  %v1070_v60 = vld [vmem:[%s11382_s0 + $0x160] sm:$0xff]  ;;  %v504_v56 = vadd.f32 %v490_v11, %v7183_v36 }
  0x9c   :  { %4354 = vmatprep.mubr.msk.f32.mxu0 %vm231_vm0, %v273_v58  ;;  %v2580_v58 = vmul.f32 %v2566_v63, %v6886_v16  ;;  %v497_v44 = vmul.f32 %v483_v7, %v7218_v61  ;;  %6682 = vrot.lane.b32.xlu0 %v6681_v54, %s6816_s16  ;;  %v42_v57 = vld [vmem:[%s11382_s0 + $0x48] sm:$0xff]  ;;  %v5841_v16 = vpack.c.bf16 %v4514_v52, %v4513_v14  ;;  %v316_v11 = vld [vmem:[%s11384_s2 + $0x150] sm:$0xff]  ;;  %v4516_v14 = vld [vmem:[%s11384_s2 + $0x6b8] sm:$0xff] }
  0x9d   :  { %5626 = vmatpush1.bf16.msra.mxu0 %v5625_v3  ;;  %v7723_v30 = vpop.permute.xlu0 %6622  ;;  %v2259_v3 = vld [vmem:[%s11382_s0 + $0x328] sm:$0xff]  ;;  %v1084_v45 = vmul.f32 %v1070_v60, %v7187_v37  ;;  %v6691_v52 = vpack.i.bf16 %v7754_v31, %v7751_v29  ;;  %v7802_v60 = vmul.f32 %v7187_v37, %v35_v13  ;;  %v5634_v13 = vpack.c.bf16 %v317_v55, %v316_v11  ;;  %v7831_v37 = vld [vmem:[%s11384_s2 + $0x170] sm:$0xff] }
  0x9e   :  { %5836 = vmatpush1.bf16.msra.mxu1 %v5835_v2  ;;  %5627 = vmatprep.subr.bf16.mxu0 %v11514_v51  ;;  %v1077_v2 = vld [vmem:[%s11382_s0 + $0x198] sm:$0xff]  ;;  %v7740_v42 = vpop.permute.xlu1 %526  ;;  %v2594_v7 = vadd.f32 %v2580_v58, %v6889_v17  ;;  %v2273_v50 = vmul.f32 %v2259_v3, %v6930_v34  ;;  %v11517_v58 = vunpack.i.h.bf16 %v7645_v5  ;;  %v11519_v55 = vunpack.i.h.bf16 %v7689_v39 }
  0x9f   :  { %11516 = vst [vmem:[#allocation32_spill] sm:$0xff] %v7740_v42  ;;  %5837 = vmatprep.subr.bf16.mxu1 %v11514_v51  ;;  %v1091_v63 = vmul.f32 %v1077_v2, %v7218_v61  ;;  %v4515_v2 = vld [vmem:[%s11384_s2 + $0x6b0] sm:$0xff]  ;;  %v11530_v34 = vunpack.i.l.bf16 %v7557_v8 }
  0xa0   :  { %v530_v17 = vsel %vm231_vm0, %v11517_v58, %v7740_v42  ;;  %2628 = vrot.lane.b32.xlu0 %v2594_v7, %s6816_s16  ;;  %v128_v58 = vmul.f32 %v7218_v61, %v42_v57  ;;  %v7809_v42 = vld [vmem:[%s11384_s2 + $0x160] sm:$0xff]  ;;  %v5844_v22 = vpack.c.bf16 %v4516_v14, %v4515_v2 }
  0xa1   :  { %5629 = vmatpush1.bf16.msra.mxu0 %v5628_v25  ;;  %v7769_v54 = vpop.permute.xlu0 %1440  ;;  %v2266_v25 = vld [vmem:[%s11382_s0 + $0x360] sm:$0xff]  ;;  %v537_v7 = vmax.f32 %v504_v56, %v530_v17  ;;  %v7834_v17 = vadd.f32 %v2273_v50, %v6954_v47  ;;  %v7841_v11 = vadd.f32 %v1091_v63, %v7222_v62  ;;  %v7851_v50 = vld [vmem:[%s11384_s2 + $0x178] sm:$0xff]  ;;  %v7893_v47 = vld [vmem:[%s11384_s2 + $0x188] sm:$0xff] }
  0xa2   :  { %5839 = vmatpush1.bf16.msra.mxu1 %v5838_v9  ;;  %5630 = vmatprep.subr.bf16.mxu0 %v11514_v51  ;;  %v7788_v3 = vpop.permute.xlu1 %6627  ;;  %v511_v9 = vadd.f32 %v497_v44, %v7222_v62  ;;  %v7821_v57 = vld [vmem:[%s11384_s2 + $0x6c0] sm:$0xff]  ;;  %v7826_v44 = vld [vmem:[%s11384_s2 + $0x6c8] sm:$0xff]  ;;  %v2280_v56 = vmul.f32 %v2266_v25, %v6946_v43  ;;  %v7856_v25 = vld [vmem:[%s11384_s2 + $0x6d0] sm:$0xff] }
  0xa3   :  { %5840 = vmatprep.subr.bf16.mxu1 %v11514_v51  ;;  %v7861_v63 = vld [vmem:[%s11384_s2 + $0x6d8] sm:$0xff]  ;;  %v7872_v14 = vld [vmem:[%s11384_s2 + $0x180] sm:$0xff] }
  0xa4   :  { %6692 = vrot.lane.b32.xlu0 %v6691_v52, %s6816_s16  ;;  %v7879_v43 = vadd.f32 %v2280_v56, %v6958_v48  ;;  %v7898_v52 = vld [vmem:[%s11384_s2 + $0x6e0] sm:$0xff]  ;;  %v7903_v56 = vld [vmem:[%s11384_s2 + $0x6e8] sm:$0xff]  ;;  %v7919_v48 = vld [vmem:[%s11384_s2 + $0x198] sm:$0xff] }
  0xa5   :  { %5632 = vmatpush1.bf16.msra.mxu0 %v5631_v38  ;;  %v7816_v26 = vpop.permute.xlu0 %549  ;;  %v772_v38 = vld [vmem:[%s11382_s0 + $0xe8] sm:$0xff] }
  0xa6   :  { %11518 = vst [vmem:[#allocation33_spill] sm:$0xff] %v7816_v26  ;;  %v553_v61 = vsel %vm231_vm0, %v11519_v55, %v7816_v26  ;;  %5842 = vmatpush1.bf16.msra.mxu1 %v5841_v16  ;;  %5633 = vmatprep.subr.bf16.mxu0 %v11514_v51  ;;  %v7864_v16 = vadd.f32 %v1084_v45, %v7183_v36  ;;  %v7866_v2 = vpop.permute.xlu1 %1737  ;;  %v779_v26 = vld [vmem:[%s11382_s0 + $0x120] sm:$0xff] }
  0xa7   :  { %v560_v55 = vmax.f32 %v511_v9, %v553_v61  ;;  %11520 = vst [vmem:[#allocation34_spill] sm:$0xff] %v7866_v2  ;;  %5843 = vmatprep.subr.bf16.mxu1 %v11514_v51  ;;  %v2856_v61 = vld [vmem:[%s11382_s0 + $0x420] sm:$0xff]  ;;  %v7886_v9 = vadd.f32 %v7222_v62, %v128_v58  ;;  %v5637_v2 = vpack.c.bf16 %v7814_v35, %v7809_v42  ;;  %v7914_v62 = vld [vmem:[%s11384_s2 + $0x190] sm:$0xff] }
  0xa8   :  { %v786_v58 = vmul.f32 %v772_v38, %v7296_v0  ;;  %v6701_v38 = vpack.i.bf16 %v7879_v43, %v7834_v17  ;;  %v2870_v45 = vmul.f32 %v2856_v61, %v6924_v32  ;;  %v2564_v61 = vld [vmem:[%s11382_s0 + $0x3d8] sm:$0xff] }
  0xa9   :  { %v7907_v35 = vmax.f32 %v537_v7, %v560_v55  ;;  %5635 = vmatpush1.bf16.msra.mxu0 %v5634_v13  ;;  %v7909_v42 = vpop.permute.xlu0 %1714  ;;  %v1069_v7 = vld [vmem:[%s11382_s0 + $0x158] sm:$0xff]  ;;  %v5847_v13 = vpack.c.bf16 %v7826_v44, %v7821_v57  ;;  %v5640_v55 = vpack.c.bf16 %v7851_v50, %v7831_v37  ;;  %v5643_v37 = vpack.c.bf16 %v7893_v47, %v7872_v14  ;;  %v1076_v44 = vld [vmem:[%s11382_s0 + $0x190] sm:$0xff] }
  0xaa   :  { %11522 = vst [vmem:[#allocation36_spill] sm:$0xff] %v7909_v42  ;;  %5845 = vmatpush1.bf16.msra.mxu1 %v5844_v22  ;;  %5636 = vmatprep.subr.bf16.mxu0 %v11514_v51  ;;  %v2557_v42 = vld [vmem:[%s11382_s0 + $0x3a0] sm:$0xff]  ;;  %v7939_v32 = vpop.permute.xlu1 %6637  ;;  %v5850_v22 = vpack.c.bf16 %v7861_v63, %v7856_v25  ;;  %v475_v25 = vld [vmem:[%s11382_s0 + $0x78] sm:$0xff]  ;;  %v800_v47 = vadd.f32 %v786_v58, %v7312_v10  ;;  %v11524_v14 = vunpack.i.l.bf16 %v7616_v41 }
  0xab   :  { %11521 = vst [vmem:[#allocation35_spill] sm:$0xff] %v7907_v35  ;;  %v793_v35 = vmul.f32 %v779_v26, %v7299_v6  ;;  %11523 = vst [vmem:[#allocation37_spill] sm:$0xff] %v7939_v32  ;;  %5846 = vmatprep.subr.bf16.mxu1 %v11514_v51  ;;  %6702 = vrot.lane.b32.xlu0 %v6701_v38, %s6816_s16  ;;  %v2884_v26 = vadd.f32 %v2870_v45, %v6927_v33  ;;  %v11525_v38 = vunpack.i.h.bf16 %v7616_v41 }
  0xac   :  { %v1083_v63 = vmul.f32 %v1069_v7, %v7296_v0  ;;  %v1124_v45 = vsel %vm231_vm0, %v11524_v14, %v7603_v28  ;;  %v2571_v32 = vmul.f32 %v2557_v42, %v6907_v23  ;;  %v2578_v33 = vmul.f32 %v2564_v61, %v6961_v49  ;;  %v7978_v28 = vld [vmem:[%s11384_s2 + $0x6f0] sm:$0xff] }
  0xad   :  { %v1147_v57 = vsel %vm231_vm0, %v11525_v38, %v7635_v53  ;;  %5638 = vmatpush1.bf16.msra.mxu0 %v5637_v2  ;;  %v7968_v50 = vpop.permute.xlu0 %6632  ;;  %v7983_v53 = vld [vmem:[%s11384_s2 + $0x6f8] sm:$0xff]  ;;  %v482_v2 = vld [vmem:[%s11382_s0 + $0xb0] sm:$0xff]  ;;  %v807_v42 = vadd.f32 %v793_v35, %v7315_v1  ;;  %v489_v14 = vmul.f32 %v475_v25, %v7296_v0  ;;  %v1131_v58 = vmax.f32 %v7864_v16, %v1124_v45 }
  0xae   :  { %11526 = vst [vmem:[#allocation38_spill] sm:$0xff] %v7968_v50  ;;  %5848 = vmatpush1.bf16.msra.mxu1 %v5847_v13  ;;  %5639 = vmatprep.subr.bf16.mxu0 %v11514_v51  ;;  %v1090_v13 = vmul.f32 %v1076_v44, %v7299_v6  ;;  %v7990_v61 = vpop.permute.xlu1 %2011  ;;  %v2585_v38 = vadd.f32 %v2571_v32, %v6910_v24  ;;  %v11528_v35 = vunpack.i.h.bf16 %v7557_v8  ;;  %v11529_v44 = vunpack.i.h.bf16 %v7968_v50 }
  0xaf   :  { %11527 = vst [vmem:[#allocation39_spill] sm:$0xff] %v7990_v61  ;;  %5849 = vmatprep.subr.bf16.mxu1 %v11514_v51  ;;  %2902 = vrot.lane.b32.xlu0 %v2884_v26, %s6816_s16  ;;  %v2592_v7 = vadd.f32 %v2578_v33, %v6981_v59  ;;  %v1154_v49 = vmax.f32 %v7841_v11, %v1147_v57  ;;  %v11531_v25 = vunpack.i.l.bf16 %v7968_v50  ;;  %v11450_v32 = vunpack.i.l.bf16 %v7645_v5 }
  0xb0   :  { %v849_v23 = vsel %vm231_vm0, %v11529_v44, %v11528_v35  ;;  %v5856_v33 = vpack.c.bf16 %v7983_v53, %v7978_v28  ;;  %v496_v11 = vmul.f32 %v482_v2, %v7299_v6  ;;  %v11449_v45 = vunpack.i.l.bf16 %v7689_v39 }
  0xb1   :  { %v826_v26 = vsel %vm231_vm0, %v11531_v25, %v11530_v34  ;;  %5641 = vmatpush1.bf16.msra.mxu0 %v5640_v55  ;;  %v8013_v16 = vpop.permute.xlu0 %6642  ;;  %v856_v8 = vmax.f32 %v807_v42, %v849_v23  ;;  %v6711_v35 = vpack.i.bf16 %v2592_v7, %v2585_v38  ;;  %v1097_v34 = vadd.f32 %v1083_v63, %v7312_v10 }
  0xb2   :  { %11532 = vst [vmem:[#allocation40_spill] sm:$0xff] %v8013_v16  ;;  %v833_v57 = vmax.f32 %v800_v47, %v826_v26  ;;  %5851 = vmatpush1.bf16.msra.mxu1 %v5850_v22  ;;  %5642 = vmatprep.subr.bf16.mxu0 %v11514_v51  ;;  %v1429_v55 = vmax.f32 %v7444_v15, %v7703_v27  ;;  %v8022_v53 = vpop.permute.xlu1 %6647  ;;  %v11534_v15 = vunpack.i.h.bf16 %v7645_v5  ;;  %v11535_v42 = vunpack.i.h.bf16 %v7596_v46 }
  0xb3   :  { %v1452_v28 = vmax.f32 %v7447_v20, %v7769_v54  ;;  %11533 = vst [vmem:[#allocation41_spill] sm:$0xff] %v8022_v53  ;;  %5852 = vmatprep.subr.bf16.mxu1 %v11514_v51  ;;  %v8026_v47 = vadd.f32 %v489_v14, %v7312_v10  ;;  %v1104_v22 = vadd.f32 %v1090_v13, %v7315_v1  ;;  %v11442_v23 = vunpack.i.h.bf16 %v8022_v53  ;;  %v327_v14 = vld [vmem:[%s11384_s2 + $0x1a8] sm:$0xff] }
  0xb4   :  { %v1158_v2 = vmax.f32 %v1131_v58, %v1154_v49  ;;  %v11443_v63 = vunpack.i.l.bf16 %v8022_v53  ;;  %v8031_v7 = vmax.f32 %v833_v57, %v856_v8  ;;  %6712 = vrot.lane.b32.xlu0 %v6711_v35, %s6816_s16  ;;  %v529_v20 = vsel %vm231_vm0, %v11450_v32, %v11534_v15  ;;  %v326_v58 = vld [vmem:[%s11384_s2 + $0x1a0] sm:$0xff] }
  0xb5   :  { %v257_v13 = vsel %vm231_vm0, %v11535_v42, %v7656_v12  ;;  %v2023_v49 = vmax.f32 %v7751_v29, %v7990_v61  ;;  %5644 = vmatpush1.bf16.msra.mxu0 %v5643_v37  ;;  %v510_v38 = vadd.f32 %v496_v11, %v7315_v1  ;;  %v8052_v44 = vpop.permute.xlu0 %2034  ;;  %v11537_v46 = vunpack.i.h.bf16 %v7689_v39  ;;  %v4558_v8 = vld [vmem:[%s11384_s2 + $0x800] sm:$0xff] }
  0xb6   :  { %11536 = vst [vmem:[#allocation42_spill] sm:$0xff] %v8052_v44  ;;  %v11538_v29 = vunpack.i.h.bf16 %v7616_v41  ;;  %v11539_v25 = vunpack.i.l.bf16 %v7616_v41  ;;  %v11540_v11 = vpack.c.bf16 %v7903_v56, %v7898_v52  ;;  %5645 = vmatprep.subr.bf16.mxu0 %v11514_v51  ;;  %v1456_v57 = vmax.f32 %v1429_v55, %v1452_v28  ;;  %v4559_v41 = vld [vmem:[%s11384_s2 + $0x808] sm:$0xff]  ;;  %v11577_v53 = vld [vmem:[#allocation16_spill] sm:$0xff] }
  0xb7   :  { %v552_v12 = vsel %vm231_vm0, %v11449_v45, %v11537_v46  ;;  %v2046_v35 = vmax.f32 %v7754_v31, %v8052_v44  ;;  %v207_v52 = vadd.f32 %v7183_v36, %v7802_v60  ;;  %v11541_v56 = vunpack.i.h.bf16 %v7568_v40  ;;  %v329_v31 = vld [vmem:[%s11384_s2 + $0x1b8] sm:$0xff]  ;;  %v4381_v45 = vld [vmem:[%s11384_s2 + $0x290] sm:$0xff]  ;;  %v11578_v44 = vld [vmem:[#allocation33_spill] sm:$0xff] }
  0xb8   :  { %v1146_v37 = vsel %vm231_vm0, %v11442_v23, %v11538_v29  ;;  %v1123_v26 = vsel %vm231_vm0, %v11443_v63, %v11539_v25  ;;  %5854 = vmatpush1.bf16.msra.mxu1 %v11540_v11  ;;  %v1162_v28 = vmax.f32 %v1158_v2, 0.0  ;;  %v5649_v46 = vpack.c.bf16 %v327_v14, %v326_v58  ;;  %v328_v29 = vld [vmem:[%s11384_s2 + $0x1b0] sm:$0xff]  ;;  %v1366_v58 = vld [vmem:[%s11382_s0 + $0x1c8] sm:$0xff]  ;;  %v1373_v14 = vld [vmem:[%s11382_s0 + $0x200] sm:$0xff] }
  0xb9   :  { %5855 = vmatprep.subr.bf16.mxu1 %v11514_v51  ;;  %v1130_v15 = vmax.f32 %v1097_v34, %v1123_v26  ;;  %v1153_v42 = vmax.f32 %v1104_v22, %v1146_v37  ;;  %v234_v55 = vsel %vm231_vm0, %v11541_v56, %v7624_v4  ;;  %v11542_v34 = vpack.c.bf16 %v7919_v48, %v7914_v62  ;;  %v8100_v4 = vpop.permute.xlu0 %6652 }
  0xba   :  { %v536_v60 = vmax.f32 %v8026_v47, %v529_v20  ;;  %v559_v22 = vmax.f32 %v510_v38, %v552_v12  ;;  %v8098_v40 = vmax.f32 %v2023_v49, %v2046_v35  ;;  %11543 = vst [vmem:[#allocation43_spill] sm:$0xff] %v8100_v4  ;;  %v264_v48 = vmax.f32 %v7886_v9, %v257_v13  ;;  %v4560_v47 = vld [vmem:[%s11384_s2 + $0x810] sm:$0xff]  ;;  %v8115_v20 = vpop.permute.xlu1 %6657  ;;  %v4561_v12 = vld [vmem:[%s11384_s2 + $0x818] sm:$0xff]  ;;  %v4371_v9 = vld [vmem:[%s11384_s2 + $0x240] sm:$0xff] }
  0xbb   :  { %5647 = vmatpush1.bf16.msra.mxu0 %v11542_v34  ;;  %v8102_v2 = vmax.f32 %v1130_v15, %v1153_v42  ;;  %v5891_v62 = vpack.c.bf16 %v4559_v41, %v4558_v8  ;;  %11545 = vst [vmem:[#allocation45_spill] sm:$0xff] %v8115_v20  ;;  %v1460_v49 = vmax.f32 %v1456_v57, 0.0  ;;  %v5652_v38 = vpack.c.bf16 %v329_v31, %v328_v29  ;;  %v4355_v57 = vld [vmem:[%s11384_s2 + $0x1c0] sm:$0xff]  ;;  %v4356_v8 = vld [vmem:[%s11384_s2 + $0x1c8] sm:$0xff]  ;;  %v1670_v29 = vld [vmem:[%s11382_s0 + $0x270] sm:$0xff] }
  0xbc   :  { %5857 = vmatpush1.bf16.msra.mxu1 %v5856_v33  ;;  %5648 = vmatprep.subr.bf16.mxu0 %v11514_v51  ;;  %v4372_v33 = vld [vmem:[%s11384_s2 + $0x248] sm:$0xff]  ;;  %v241_v13 = vmax.f32 %v207_v52, %v234_v55  ;;  %v11447_v37 = vunpack.i.h.bf16 %v7723_v30  ;;  %v1380_v25 = vmul.f32 %v1366_v58, %v7296_v0  ;;  %v1387_v26 = vmul.f32 %v1373_v14, %v7299_v6  ;;  %v1663_v52 = vld [vmem:[%s11382_s0 + $0x238] sm:$0xff]  ;;  %v4373_v34 = vld [vmem:[%s11384_s2 + $0x250] sm:$0xff] }
  0xbd   :  { %11544 = vst [vmem:[#allocation44_spill] sm:$0xff] %v8102_v2  ;;  %5890 = vmatprep.subr.bf16.mxu1 %v11514_v51  ;;  %v11448_v11 = vunpack.i.l.bf16 %v7723_v30  ;;  %v11439_v41 = vunpack.i.h.bf16 %v8115_v20  ;;  %v11440_v35 = vunpack.i.l.bf16 %v8115_v20  ;;  %v563_v15 = vmax.f32 %v536_v60, %v559_v22  ;;  %v8139_v42 = vpop.permute.xlu0 %6662  ;;  %v4563_v31 = vld [vmem:[%s11384_s2 + $0x828] sm:$0xff]  ;;  %v4374_v60 = vld [vmem:[%s11384_s2 + $0x258] sm:$0xff]  ;;  %v4357_v58 = vld [vmem:[%s11384_s2 + $0x1d0] sm:$0xff] }
  0xbe   :  { %11546 = vst [vmem:[#allocation46_spill] sm:$0xff] %v8139_v42  ;;  %v268_v56 = vmax.f32 %v241_v13, %v264_v48  ;;  %v5894_v55 = vpack.c.bf16 %v4561_v12, %v4560_v47  ;;  %v5656_v22 = vpack.c.bf16 %v4356_v8, %v4355_v57  ;;  %v4358_v14 = vld [vmem:[%s11384_s2 + $0x1d8] sm:$0xff]  ;;  %v1394_v48 = vadd.f32 %v1380_v25, %v7312_v10  ;;  %v4564_v57 = vld [vmem:[%s11384_s2 + $0x830] sm:$0xff]  ;;  %v8187_v8 = vpop.permute.xlu1 %6667  ;;  %v1374_v20 = vld [vmem:[%s11382_s0 + $0x208] sm:$0xff] }
  0xbf   :  { %5650 = vmatpush1.bf16.msra.mxu0 %v5649_v46  ;;  %1359 = vmatmul.mubr.f32.vlgmr.msra.gmra.mrb[0].mxu1 %v1162_v28  ;;  %v5654_v28 = vpack.c.bf16 %v4372_v33, %v4371_v9  ;;  %v4562_v46 = vld [vmem:[%s11384_s2 + $0x820] sm:$0xff]  ;;  %v1677_v47 = vmul.f32 %v1663_v52, %v7296_v0  ;;  %v1420_v12 = vsel %vm231_vm0, %v11440_v35, %v11448_v11  ;;  %v567_v9 = vmax.f32 %v563_v15, 0.0  ;;  %v4565_v15 = vld [vmem:[%s11384_s2 + $0x838] sm:$0xff]  ;;  %v4571_v11 = vld [vmem:[%s11384_s2 + $0x868] sm:$0xff] }
  0xc0   :  { %5892 = vmatpush1.bf16.msra.mxu1 %v5891_v62  ;;  %5651 = vmatprep.subr.bf16.mxu0 %v11514_v51  ;;  %v1401_v62 = vadd.f32 %v1387_v26, %v7315_v1  ;;  %v1684_v13 = vmul.f32 %v1670_v29, %v7299_v6  ;;  %v272_v25 = vmax.f32 %v268_v56, 0.0  ;;  %v5658_v26 = vpack.c.bf16 %v4374_v60, %v4373_v34  ;;  %v4375_v56 = vld [vmem:[%s11384_s2 + $0x260] sm:$0xff]  ;;  %v2854_v2 = vld [vmem:[%s11382_s0 + $0x410] sm:$0xff] }
  0xc1   :  { %5893 = vmatprep.subr.bf16.mxu1 %v11514_v51  ;;  %4582 = vmatprep.mubr.msk.f32.mxu1 %vm231_vm0, %v1460_v49  ;;  %v1443_v49 = vsel %vm231_vm0, %v11439_v41, %v11447_v37  ;;  %v8181_v33 = vpop.permute.xlu0 %2308  ;;  %11548 = vst [vmem:[#allocation48_spill] sm:$0xff] %v8187_v8  ;;  %v5660_v52 = vpack.c.bf16 %v4358_v14, %v4357_v58 }
  0xc2   :  { %11547 = vst [vmem:[#allocation47_spill] sm:$0xff] %v8181_v33  ;;  %v1427_v29 = vmax.f32 %v1394_v48, %v1420_v12  ;;  %v2320_v34 = vmax.f32 %v7834_v17, %v8181_v33  ;;  %v1691_v58 = vadd.f32 %v1677_v47, %v7312_v10  ;;  %v1698_v14 = vadd.f32 %v1684_v13, %v7315_v1  ;;  %v4359_v48 = vld [vmem:[%s11384_s2 + $0x1e0] sm:$0xff]  ;;  %v4567_v12 = vld [vmem:[%s11384_s2 + $0x848] sm:$0xff]  ;;  %v4378_v13 = vld [vmem:[%s11384_s2 + $0x278] sm:$0xff] }
  0xc3   :  { %5653 = vmatpush1.bf16.msra.mxu0 %v5652_v38  ;;  %v5897_v38 = vpack.c.bf16 %v4563_v31, %v4562_v46  ;;  %v11445_v46 = vunpack.i.l.bf16 %v7788_v3  ;;  %v1450_v31 = vmax.f32 %v1401_v62, %v1443_v49  ;;  %v5900_v41 = vpack.c.bf16 %v4565_v15, %v4564_v57  ;;  %v4566_v17 = vld [vmem:[%s11384_s2 + $0x840] sm:$0xff]  ;;  %v8218_v49 = vpop.permute.xlu1 %2331  ;;  %v4362_v57 = vld [vmem:[%s11384_s2 + $0x1f8] sm:$0xff] }
  0xc4   :  { %5895 = vmatpush1.bf16.msra.mxu1 %v5894_v55  ;;  %5655 = vmatprep.subr.bf16.mxu0 %v5654_v28  ;;  %v4376_v55 = vld [vmem:[%s11384_s2 + $0x268] sm:$0xff]  ;;  %v11446_v28 = vunpack.i.h.bf16 %v7788_v3  ;;  %11550 = vst [vmem:[#allocation50_spill] sm:$0xff] %v8218_v49  ;;  %v11566_v33 = vld [vmem:[#allocation28_spill] sm:$0xff] }
  0xc5   :  { %5896 = vmatprep.subr.bf16.mxu1 %v11514_v51  ;;  %v8203_v60 = vpop.permute.xlu0 %6672  ;;  %v5662_v35 = vpack.c.bf16 %v4376_v55, %v4375_v56  ;;  %v4568_v55 = vld [vmem:[%s11384_s2 + $0x850] sm:$0xff] }
  0xc6   :  { %468 = vmatmul.mubr.f32.vlgmr.msra.gmra.mrb[2].mxu0 %v272_v25  ;;  %11549 = vst [vmem:[#allocation49_spill] sm:$0xff] %v8203_v60  ;;  %v11444_v62 = vunpack.i.h.bf16 %v8203_v60  ;;  %v11441_v47 = vunpack.i.l.bf16 %v8203_v60  ;;  %v2343_v25 = vmax.f32 %v7879_v43, %v8218_v49  ;;  %v11558_v60 = vld [vmem:[#allocation26_spill] sm:$0xff] }
  0xc7   :  { %5657 = vmatpush3.bf16.msra.mxu0 %v5656_v22  ;;  %694 = vmatprep.mubr.f32.mxu0 %v567_v9  ;;  %v4360_v22 = vld [vmem:[%s11384_s2 + $0x1e8] sm:$0xff]  ;;  %v4377_v9 = vld [vmem:[%s11384_s2 + $0x270] sm:$0xff] }
  0xc8   :  { %5898 = vmatpush1.bf16.msra.mxu1 %v5897_v38  ;;  %5659 = vmatprep.subr.bf16.mxu0 %v5658_v26  ;;  %v8232_v38 = vmax.f32 %v1427_v29, %v1450_v31  ;;  %v4361_v26 = vld [vmem:[%s11384_s2 + $0x1f0] sm:$0xff]  ;;  %v1717_v15 = vsel %vm231_vm0, %v11441_v47, %v11445_v46  ;;  %v1740_v43 = vsel %vm231_vm0, %v11444_v62, %v11446_v28  ;;  %v4569_v29 = vld [vmem:[%s11384_s2 + $0x858] sm:$0xff] }
  0xc9   :  { %5899 = vmatprep.subr.bf16.mxu1 %v11514_v51  ;;  %v5664_v56 = vpack.c.bf16 %v4360_v22, %v4359_v48  ;;  %v8256_v31 = vmax.f32 %v2320_v34, %v2343_v25  ;;  %v2855_v47 = vld [vmem:[%s11382_s0 + $0x418] sm:$0xff]  ;;  %v1724_v23 = vmax.f32 %v1691_v58, %v1717_v15  ;;  %v1747_v63 = vmax.f32 %v1698_v14, %v1740_v43  ;;  %v481_v48 = vld [vmem:[%s11382_s0 + $0xa8] sm:$0xff]  ;;  %v4379_v34 = vld [vmem:[%s11384_s2 + $0x280] sm:$0xff]  ;;  %v8273_v14 = vpop.permute.xlu1 %6677 }
  0xca   :  { %11551 = vst [vmem:[#allocation51_spill] sm:$0xff] %v8232_v38  ;;  %v5903_v22 = vpack.c.bf16 %v4567_v12, %v4566_v17  ;;  %v5666_v62 = vpack.c.bf16 %v4378_v13, %v4377_v9  ;;  %v4380_v58 = vld [vmem:[%s11384_s2 + $0x288] sm:$0xff]  ;;  %11553 = vst [vmem:[#allocation53_spill] sm:$0xff] %v8273_v14  ;;  %v2862_v25 = vld [vmem:[%s11382_s0 + $0x450] sm:$0xff]  ;;  %v2869_v15 = vmul.f32 %v2855_v47, %v6892_v18 }
  0xcb   :  { %5661 = vmatpush3.bf16.msra.mxu0 %v5660_v52  ;;  %11552 = vst [vmem:[#allocation52_spill] sm:$0xff] %v8256_v31  ;;  %v474_v52 = vld [vmem:[%s11382_s0 + $0x70] sm:$0xff]  ;;  %v1960_v17 = vld [vmem:[%s11382_s0 + $0x2a8] sm:$0xff]  ;;  %v8297_v47 = vld [vmem:[%s11384_s2 + $0x860] sm:$0xff]  ;;  %v2876_v9 = vmul.f32 %v2862_v25, %v6895_v19  ;;  %v5668_v46 = vpack.c.bf16 %v4362_v57, %v4361_v26  ;;  %v5906_v28 = vpack.c.bf16 %v4569_v29, %v4568_v55 }
  0xcc   :  { %5901 = vmatpush1.bf16.msra.mxu1 %v5900_v41  ;;  %5663 = vmatprep.subr.bf16.mxu0 %v5662_v35  ;;  %v8283_v41 = vld [vmem:[%s11384_s2 + $0x200] sm:$0xff]  ;;  %v2556_v35 = vld [vmem:[%s11382_s0 + $0x398] sm:$0xff]  ;;  %v4364_v12 = vld [vmem:[%s11384_s2 + $0x208] sm:$0xff]  ;;  %v2883_v13 = vadd.f32 %v2869_v15, %v6901_v21  ;;  %v5670_v37 = vpack.c.bf16 %v4380_v58, %v4379_v34  ;;  %v8313_v15 = vmax.f32 %v1724_v23, %v1747_v63 }
  0xcd   :  { %5902 = vmatprep.subr.bf16.mxu1 %v11514_v51  ;;  %v1967_v43 = vld [vmem:[%s11382_s0 + $0x2e0] sm:$0xff]  ;;  %v4382_v25 = vld [vmem:[%s11384_s2 + $0x298] sm:$0xff]  ;;  %v8316_v57 = vpop.permute.xlu1 %2605  ;;  %v1974_v34 = vmul.f32 %v1960_v17, %v7296_v0  ;;  %v11557_v58 = vld [vmem:[#allocation25_spill] sm:$0xff]  ;;  %v495_v14 = vmul.f32 %v481_v48, %v11558_v60  ;;  %v5672_v49 = vpack.c.bf16 %v4364_v12, %v8283_v41 }
  0xce   :  { %11554 = vst [vmem:[#allocation54_spill] sm:$0xff] %v8313_v15  ;;  %v11556_v55 = vld [vmem:[#allocation7_spill] sm:$0xff]  ;;  %v488_v32 = vmul.f32 %v474_v52, %v11557_v58  ;;  %v1981_v63 = vmul.f32 %v1967_v43, %v7299_v6  ;;  %v4365_v41 = vld [vmem:[%s11384_s2 + $0x210] sm:$0xff] }
  0xcf   :  { %5665 = vmatpush3.bf16.msra.mxu0 %v5664_v56  ;;  %v11555_v56 = vld [vmem:[#allocation11_spill] sm:$0xff]  ;;  %v2890_v29 = vadd.f32 %v2876_v9, %v11556_v55  ;;  %v11559_v9 = vld [vmem:[#allocation5_spill] sm:$0xff]  ;;  %v509_v8 = vadd.f32 %v495_v14, %v11566_v33  ;;  %v11567_v38 = vld [vmem:[#allocation14_spill] sm:$0xff] }
  0xd0   :  { %5904 = vmatpush1.bf16.msra.mxu1 %v5903_v22  ;;  %5667 = vmatprep.subr.bf16.mxu0 %v5666_v62  ;;  %v2570_v26 = vmul.f32 %v2556_v35, %v11555_v56  ;;  %v2863_v23 = vld [vmem:[%s11382_s0 + $0x458] sm:$0xff]  ;;  %v5909_v62 = vpack.c.bf16 %v4571_v11, %v8297_v47  ;;  %v5674_v22 = vpack.c.bf16 %v4382_v25, %v4381_v45  ;;  %v2563_v11 = vld [vmem:[%s11382_s0 + $0x3d0] sm:$0xff]  ;;  %v11563_v25 = vld [vmem:[#allocation12_spill] sm:$0xff] }
  0xd1   :  { %5905 = vmatprep.subr.bf16.mxu1 %v11514_v51  ;;  %v6706_v35 = vpack.i.bf16 %v2890_v29, %v2883_v13  ;;  %v2877_v17 = vmul.f32 %v2863_v23, %v11559_v9  ;;  %v11560_v0 = vld [vmem:[#allocation31_spill] sm:$0xff]  ;;  %v8349_v13 = vpop.permute.xlu1 %6687  ;;  %v2577_v29 = vmul.f32 %v2563_v11, %v11563_v25  ;;  %v1988_v23 = vadd.f32 %v1974_v34, %v7312_v10  ;;  %v11564_v34 = vld [vmem:[#allocation6_spill] sm:$0xff]  ;;  %v4367_v14 = vld [vmem:[%s11384_s2 + $0x220] sm:$0xff] }
  0xd2   :  { %v6620_v52 = vunpack.i.h.bf16 %v11560_v0  ;;  %v6619_v48 = vunpack.i.l.bf16 %v11560_v0  ;;  %v4366_v12 = vld [vmem:[%s11384_s2 + $0x218] sm:$0xff]  ;;  %v4572_v0 = vld [vmem:[%s11384_s2 + $0x870] sm:$0xff]  ;;  %11562 = vst [vmem:[#allocation11_spill] sm:$0xff] %v8349_v13  ;;  %v11466_v45 = vunpack.i.h.bf16 %v8349_v13  ;;  %v1995_v10 = vadd.f32 %v1981_v63, %v7315_v1 }
  0xd3   :  { %5669 = vmatpush3.bf16.msra.mxu0 %v5668_v46  ;;  %v11561_v46 = vld [vmem:[#allocation13_spill] sm:$0xff]  ;;  %6707 = vrot.lane.b32.xlu1 %v6706_v35, %s6816_s16  ;;  %v2891_v43 = vadd.f32 %v2877_v17, %v11564_v34  ;;  %v11565_v6 = vld [vmem:[#allocation27_spill] sm:$0xff]  ;;  %v5676_v42 = vpack.c.bf16 %v4366_v12, %v4365_v41  ;;  %v8374_v31 = vadd.f32 %v2577_v29, %v11567_v38  ;;  %v11568_v11 = vunpack.i.l.bf16 %v7645_v5 }
  0xd4   :  { %5907 = vmatpush1.bf16.msra.mxu1 %v5906_v28  ;;  %5671 = vmatprep.subr.bf16.mxu0 %v5670_v37  ;;  %v8347_v47 = vadd.f32 %v2570_v26, %v11561_v46  ;;  %v4573_v28 = vld [vmem:[%s11384_s2 + $0x878] sm:$0xff]  ;;  %v4383_v37 = vld [vmem:[%s11384_s2 + $0x2a0] sm:$0xff]  ;;  %v4384_v26 = vld [vmem:[%s11384_s2 + $0x2a8] sm:$0xff]  ;;  %v502_v15 = vadd.f32 %v488_v32, %v11565_v6  ;;  %v11569_v17 = vunpack.i.l.bf16 %v7689_v39  ;;  %v11570_v41 = vunpack.i.h.bf16 %v8013_v16 }
  0xd5   :  { %5908 = vmatprep.subr.bf16.mxu1 %v11514_v51  ;;  %v528_v35 = vsel %vm231_vm0, %v6619_v48, %v11568_v11  ;;  %v1367_v32 = vld [vmem:[%s11382_s0 + $0x1d0] sm:$0xff]  ;;  %v11571_v48 = vunpack.i.l.bf16 %v8013_v16  ;;  %v11572_v39 = vunpack.i.l.bf16 %v8349_v13  ;;  %v5912_v12 = vpack.c.bf16 %v4573_v28, %v4572_v0  ;;  %v4368_v29 = vld [vmem:[%s11384_s2 + $0x228] sm:$0xff]  ;;  %v4574_v11 = vld [vmem:[%s11384_s2 + $0x880] sm:$0xff] }
  0xd6   :  { %v551_v63 = vsel %vm231_vm0, %v6620_v52, %v11569_v17  ;;  %v2037_v5 = vsel %vm231_vm0, %v11466_v45, %v11570_v41  ;;  %v4575_v17 = vld [vmem:[%s11384_s2 + $0x888] sm:$0xff]  ;;  %v11573_v45 = vld [vmem:[#allocation19_spill] sm:$0xff]  ;;  %v6716_v0 = vpack.i.bf16 %v8374_v31, %v8347_v47  ;;  %v535_v28 = vmax.f32 %v502_v15, %v528_v35  ;;  %v11576_v13 = vld [vmem:[#allocation32_spill] sm:$0xff] }
  0xd7   :  { %5673 = vmatpush3.bf16.msra.mxu0 %v5672_v49  ;;  %v2014_v52 = vsel %vm231_vm0, %v11572_v39, %v11571_v48  ;;  %v5678_v49 = vpack.c.bf16 %v4384_v26, %v4383_v37  ;;  %v1388_v1 = vmul.f32 %v1374_v20, %v11573_v45  ;;  %2925 = vrot.lane.b32.xlu1 %v2891_v43, %s6816_s16  ;;  %v11574_v26 = vld [vmem:[#allocation18_spill] sm:$0xff]  ;;  %v11575_v39 = vld [vmem:[#allocation9_spill] sm:$0xff]  ;;  %v4577_v35 = vld [vmem:[%s11384_s2 + $0x898] sm:$0xff] }
  0xd8   :  { %5910 = vmatpush1.bf16.msra.mxu1 %v5909_v62  ;;  %5675 = vmatprep.subr.bf16.mxu0 %v5674_v22  ;;  %v2021_v41 = vmax.f32 %v1988_v23, %v2014_v52  ;;  %v4385_v62 = vld [vmem:[%s11384_s2 + $0x2b0] sm:$0xff]  ;;  %v4386_v22 = vld [vmem:[%s11384_s2 + $0x2b8] sm:$0xff]  ;;  %v2044_v20 = vmax.f32 %v1995_v10, %v2037_v5  ;;  %v558_v37 = vmax.f32 %v509_v8, %v551_v63  ;;  %v11579_v16 = vld [vmem:[#allocation17_spill] sm:$0xff] }
  0xd9   :  { %5911 = vmatprep.subr.bf16.mxu1 %v11514_v51  ;;  %v3153_v23 = vld [vmem:[%s11382_s0 + $0x490] sm:$0xff]  ;;  %v1381_v48 = vmul.f32 %v1367_v32, %v11574_v26  ;;  %v538_v4 = vmax.f32 %v11577_v53, %v11576_v13  ;;  %v561_v43 = vmax.f32 %v11579_v16, %v11578_v44  ;;  %v5680_v61 = vpack.c.bf16 %v4368_v29, %v4367_v14  ;;  %v4370_v16 = vld [vmem:[%s11384_s2 + $0x238] sm:$0xff]  ;;  %v2861_v53 = vld [vmem:[%s11382_s0 + $0x448] sm:$0xff] }
  0xda   :  { %v3167_v52 = vmul.f32 %v3153_v23, %v11575_v39  ;;  %v8430_v50 = vmax.f32 %v2021_v41, %v2044_v20  ;;  %v5915_v10 = vpack.c.bf16 %v4575_v17, %v4574_v11  ;;  %v5682_v8 = vpack.c.bf16 %v4386_v22, %v4385_v62  ;;  %v4369_v15 = vld [vmem:[%s11384_s2 + $0x230] sm:$0xff]  ;;  %v11580_v44 = vld [vmem:[#allocation8_spill] sm:$0xff]  ;;  %v11582_v14 = vld [vmem:[#allocation15_spill] sm:$0xff] }
  0xdb   :  { %5677 = vmatpush3.bf16.msra.mxu0 %v5676_v42  ;;  %v2868_v42 = vmul.f32 %v2854_v2, %v11580_v44  ;;  %v4576_v13 = vld [vmem:[%s11384_s2 + $0x890] sm:$0xff]  ;;  %6717 = vrot.lane.b32.xlu1 %v6716_v0, %s6816_s16  ;;  %v2875_v5 = vmul.f32 %v2861_v53, %v11582_v14  ;;  %v562_v29 = vmax.f32 %v535_v28, %v558_v37  ;;  %v11584_v22 = vunpack.i.l.bf16 %v7723_v30  ;;  %v11587_v53 = vld [vmem:[#allocation29_spill] sm:$0xff] }
  0xdc   :  { %5913 = vmatpush1.bf16.msra.mxu1 %v5912_v12  ;;  %5679 = vmatprep.subr.bf16.mxu0 %v5678_v49  ;;  %v11581_v63 = vld [vmem:[#allocation10_spill] sm:$0xff]  ;;  %v11583_v12 = vld [vmem:[#allocation20_spill] sm:$0xff]  ;;  %v1395_v11 = vadd.f32 %v1381_v48, %v7183_v36  ;;  %v565_v17 = vmax.f32 %v538_v4, %v561_v43  ;;  %v5684_v41 = vpack.c.bf16 %v4370_v16, %v4369_v15  ;;  %v11585_v23 = vunpack.i.h.bf16 %v7723_v30  ;;  %v4388_v4 = vld [vmem:[%s11384_s2 + $0x2c8] sm:$0xff] }
  0xdd   :  { %5914 = vmatprep.subr.bf16.mxu1 %v11514_v51  ;;  %v3181_v32 = vadd.f32 %v3167_v52, %v11581_v63  ;;  %v1402_v49 = vadd.f32 %v1388_v1, %v11583_v12  ;;  %v2882_v2 = vadd.f32 %v2868_v42, %v6910_v24  ;;  %v2889_v62 = vadd.f32 %v2875_v5, %v6981_v59  ;;  %v4579_v30 = vld [vmem:[%s11384_s2 + $0x8a8] sm:$0xff]  ;;  %v4390_v15 = vld [vmem:[%s11384_s2 + $0x2d8] sm:$0xff]  ;;  %v11586_v16 = vld [vmem:[#allocation34_spill] sm:$0xff] }
  0xde   :  { %v1421_v0 = vsel %vm231_vm0, %v11584_v22, %v7703_v27  ;;  %v1444_v1 = vsel %vm231_vm0, %v11585_v23, %v7769_v54  ;;  %v5918_v20 = vpack.c.bf16 %v4577_v35, %v4576_v13  ;;  %v4578_v27 = vld [vmem:[%s11384_s2 + $0x8a0] sm:$0xff]  ;;  %v566_v28 = vmax.f32 %v562_v29, 0.0  ;;  %v11589_v35 = vld [vmem:[#allocation30_spill] sm:$0xff] }
  0xdf   :  { %5681 = vmatpush3.bf16.msra.mxu0 %v5680_v61  ;;  %v4387_v61 = vld [vmem:[%s11384_s2 + $0x2c0] sm:$0xff]  ;;  %3199 = vrot.lane.b32.xlu1 %v3181_v32, %s6816_s16  ;;  %v6726_v54 = vpack.i.bf16 %v2889_v62, %v2882_v2  ;;  %v1428_v37 = vmax.f32 %v1395_v11, %v1421_v0  ;;  %v1451_v48 = vmax.f32 %v1402_v49, %v1444_v1  ;;  %v569_v52 = vmax.f32 %v565_v17, 0.0  ;;  %v4580_v5 = vld [vmem:[%s11384_s2 + $0x8b0] sm:$0xff]  ;;  %v4581_v49 = vld [vmem:[%s11384_s2 + $0x8b8] sm:$0xff] }
  0xe0   :  { %5916 = vmatpush1.bf16.msra.mxu1 %v5915_v10  ;;  %5683 = vmatprep.subr.bf16.mxu0 %v5682_v8  ;;  %v5687_v43 = vpack.c.bf16 %v4388_v4, %v4387_v61  ;;  %v5921_v10 = vpack.c.bf16 %v4579_v30, %v4578_v27  ;;  %v4389_v8 = vld [vmem:[%s11384_s2 + $0x2d0] sm:$0xff]  ;;  %v1749_v42 = vmax.f32 %v11587_v53, %v11586_v16  ;;  %v11588_v13 = vld [vmem:[#allocation36_spill] sm:$0xff]  ;;  %v4616_v0 = vld [vmem:[%s11384_s2 + $0x9c8] sm:$0xff] }
  0xe1   :  { %5917 = vmatprep.subr.bf16.mxu1 %v11514_v51  ;;  %v1726_v32 = vmax.f32 %v11589_v35, %v11588_v13  ;;  %v1455_v29 = vmax.f32 %v1428_v37, %v1451_v48  ;;  %v5690_v2 = vpack.c.bf16 %v4390_v15, %v4389_v8  ;;  %v5924_v11 = vpack.c.bf16 %v4581_v49, %v4580_v5  ;;  %v4391_v17 = vld [vmem:[%s11384_s2 + $0x2e0] sm:$0xff]  ;;  %v4393_v61 = vld [vmem:[%s11384_s2 + $0x2f0] sm:$0xff]  ;;  %v4394_v4 = vld [vmem:[%s11384_s2 + $0x2f8] sm:$0xff] }
  0xe2   :  { %v4615_v22 = vld [vmem:[%s11384_s2 + $0x9c0] sm:$0xff]  ;;  %v4617_v30 = vld [vmem:[%s11384_s2 + $0x9d0] sm:$0xff] }
  0xe3   :  { %5685 = vmatpush3.bf16.msra.mxu0 %v5684_v41  ;;  %6727 = vrot.lane.b32.xlu1 %v6726_v54, %s6816_s16  ;;  %v4392_v41 = vld [vmem:[%s11384_s2 + $0x2e8] sm:$0xff]  ;;  %v1753_v62 = vmax.f32 %v1726_v32, %v1749_v42  ;;  %v1459_v23 = vmax.f32 %v1455_v29, 0.0  ;;  %v4618_v54 = vld [vmem:[%s11384_s2 + $0x9d8] sm:$0xff]  ;;  %v4395_v48 = vld [vmem:[%s11384_s2 + $0x300] sm:$0xff] }
  0xe4   :  { %5919 = vmatpush1.bf16.msra.mxu1 %v5918_v20  ;;  %5686 = vmatprep.subr.bf16.mxu0 %v11514_v51  ;;  %v5693_v1 = vpack.c.bf16 %v4392_v41, %v4391_v17  ;;  %v5959_v20 = vpack.c.bf16 %v4616_v0, %v4615_v22  ;;  %v5962_v37 = vpack.c.bf16 %v4618_v54, %v4617_v30  ;;  %v4397_v53 = vld [vmem:[%s11384_s2 + $0x310] sm:$0xff]  ;;  %v4398_v42 = vld [vmem:[%s11384_s2 + $0x318] sm:$0xff]  ;;  %v4399_v29 = vld [vmem:[%s11384_s2 + $0x320] sm:$0xff] }
  0xe5   :  { %5920 = vmatprep.subr.bf16.mxu1 %v11514_v51  ;;  %v1757_v27 = vmax.f32 %v1753_v62, 0.0  ;;  %v4621_v35 = vld [vmem:[%s11384_s2 + $0x9f0] sm:$0xff]  ;;  %v4622_v32 = vld [vmem:[%s11384_s2 + $0x9f8] sm:$0xff]  ;;  %v5702_v5 = vpack.c.bf16 %v4398_v42, %v4397_v53  ;;  %v4624_v17 = vld [vmem:[%s11384_s2 + $0xa08] sm:$0xff] }
  0xe6   :  { %695 = vmatmul.mubr.f32.vlgmr.msra.gmra.mrb[4].mxu0 %v566_v28  ;;  %v5696_v28 = vpack.c.bf16 %v4394_v4, %v4393_v61  ;;  %v5968_v49 = vpack.c.bf16 %v4622_v32, %v4621_v35  ;;  %v4401_v22 = vld [vmem:[%s11384_s2 + $0x330] sm:$0xff]  ;;  %v4402_v0 = vld [vmem:[%s11384_s2 + $0x338] sm:$0xff]  ;;  %v4403_v4 = vld [vmem:[%s11384_s2 + $0x340] sm:$0xff] }
  0xe7   :  { %5688 = vmatpush1.bf16.msra.mxu0 %v5687_v43  ;;  %4411 = vmatprep.mubr.msk.f32.mxu0 %vm231_vm0, %v569_v52  ;;  %v4396_v52 = vld [vmem:[%s11384_s2 + $0x308] sm:$0xff]  ;;  %v4619_v43 = vld [vmem:[%s11384_s2 + $0x9e0] sm:$0xff] }
  0xe8   :  { %5922 = vmatpush1.bf16.msra.mxu1 %v5921_v10  ;;  %5689 = vmatprep.subr.bf16.mxu0 %v11514_v51  ;;  %v4620_v10 = vld [vmem:[%s11384_s2 + $0x9e8] sm:$0xff]  ;;  %v5699_v8 = vpack.c.bf16 %v4396_v52, %v4395_v48  ;;  %v4627_v30 = vld [vmem:[%s11384_s2 + $0xa20] sm:$0xff]  ;;  %v4405_v48 = vld [vmem:[%s11384_s2 + $0x350] sm:$0xff] }
  0xe9   :  { %5923 = vmatprep.subr.bf16.mxu1 %v11514_v51  ;;  %v5965_v15 = vpack.c.bf16 %v4620_v10, %v4619_v43  ;;  %v4628_v54 = vld [vmem:[%s11384_s2 + $0xa28] sm:$0xff]  ;;  %v4406_v52 = vld [vmem:[%s11384_s2 + $0x358] sm:$0xff]  ;;  %v4629_v43 = vld [vmem:[%s11384_s2 + $0xa30] sm:$0xff] }
  0xea   :  { %v4630_v10 = vld [vmem:[%s11384_s2 + $0xa38] sm:$0xff]  ;;  %v5714_v53 = vpack.c.bf16 %v4406_v52, %v4405_v48  ;;  %v4407_v35 = vld [vmem:[%s11384_s2 + $0x360] sm:$0xff]  ;;  %v4408_v32 = vld [vmem:[%s11384_s2 + $0x368] sm:$0xff] }
  0xeb   :  { %5691 = vmatpush1.bf16.msra.mxu0 %v5690_v2  ;;  %v4400_v2 = vld [vmem:[%s11384_s2 + $0x328] sm:$0xff]  ;;  %v5980_v42 = vpack.c.bf16 %v4630_v10, %v4629_v43 }
  0xec   :  { %5925 = vmatpush1.bf16.msra.mxu1 %v5924_v11  ;;  %5692 = vmatprep.subr.bf16.mxu0 %v11514_v51  ;;  %v4623_v11 = vld [vmem:[%s11384_s2 + $0xa00] sm:$0xff]  ;;  %v5705_v41 = vpack.c.bf16 %v4400_v2, %v4399_v29  ;;  %v3152_v29 = vld [vmem:[%s11382_s0 + $0x488] sm:$0xff] }
  0xed   :  { %5958 = vmatprep.subr.bf16.mxu1 %v11514_v51  ;;  %v5971_v62 = vpack.c.bf16 %v4624_v17, %v4623_v11  ;;  %v4409_v17 = vld [vmem:[%s11384_s2 + $0x370] sm:$0xff] }
  0xef   :  { %5694 = vmatpush1.bf16.msra.mxu0 %v5693_v1  ;;  %1656 = vmatmul.mubr.f32.vlgmr.msra.gmra.mrb[0].mxu1 %v1459_v23  ;;  %v4625_v23 = vld [vmem:[%s11384_s2 + $0xa10] sm:$0xff]  ;;  %v4626_v1 = vld [vmem:[%s11384_s2 + $0xa18] sm:$0xff] }
  0xf0   :  { %5960 = vmatpush1.bf16.msra.mxu1 %v5959_v20  ;;  %5695 = vmatprep.subr.bf16.mxu0 %v11514_v51  ;;  %v5708_v20 = vpack.c.bf16 %v4402_v0, %v4401_v22  ;;  %v5974_v61 = vpack.c.bf16 %v4626_v1, %v4625_v23  ;;  %v3166_v22 = vmul.f32 %v3152_v29, %v6892_v18  ;;  %v4633_v23 = vld [vmem:[%s11384_s2 + $0xa50] sm:$0xff]  ;;  %v4634_v1 = vld [vmem:[%s11384_s2 + $0xa58] sm:$0xff] }
  0xf1   :  { %5961 = vmatprep.subr.bf16.mxu1 %v11514_v51  ;;  %4639 = vmatprep.mubr.msk.f32.mxu1 %vm231_vm0, %v1757_v27  ;;  %v4404_v27 = vld [vmem:[%s11384_s2 + $0x348] sm:$0xff]  ;;  %v5717_v0 = vpack.c.bf16 %v4408_v32, %v4407_v35 }
  0xf3   :  { %5697 = vmatpush1.bf16.msra.mxu0 %v5696_v28  ;;  %v5711_v28 = vpack.c.bf16 %v4404_v27, %v4403_v4  ;;  %v4428_v27 = vld [vmem:[%s11384_s2 + $0x400] sm:$0xff] }
  0xf4   :  { %5963 = vmatpush1.bf16.msra.mxu1 %v5962_v37  ;;  %5698 = vmatprep.subr.bf16.mxu0 %v11514_v51  ;;  %v5977_v37 = vpack.c.bf16 %v4628_v54, %v4627_v30  ;;  %v4429_v30 = vld [vmem:[%s11384_s2 + $0x408] sm:$0xff]  ;;  %v3180_v54 = vadd.f32 %v3166_v22, %v6901_v21  ;;  %v4431_v22 = vld [vmem:[%s11384_s2 + $0x418] sm:$0xff] }
  0xf5   :  { %5964 = vmatprep.subr.bf16.mxu1 %v11514_v51 }
  0xf7   :  { %5700 = vmatpush1.bf16.msra.mxu0 %v5699_v8  ;;  %v1671_v8 = vld [vmem:[%s11382_s0 + $0x278] sm:$0xff] }
  0xf8   :  { %5966 = vmatpush1.bf16.msra.mxu1 %v5965_v15  ;;  %5701 = vmatprep.subr.bf16.mxu0 %v11514_v51  ;;  %v1664_v15 = vld [vmem:[%s11382_s0 + $0x240] sm:$0xff]  ;;  %v1685_v2 = vmul.f32 %v1671_v8, %v11573_v45 }
  0xf9   :  { %5967 = vmatprep.subr.bf16.mxu1 %v11514_v51  ;;  %v1678_v11 = vmul.f32 %v1664_v15, %v11574_v26 }
  0xfa   :  { %v1699_v43 = vadd.f32 %v1685_v2, %v11583_v12  ;;  %v11591_v2 = vunpack.i.l.bf16 %v7788_v3 }
  0xfb   :  { %5703 = vmatpush1.bf16.msra.mxu0 %v5702_v5  ;;  %v4631_v5 = vld [vmem:[%s11384_s2 + $0xa40] sm:$0xff]  ;;  %v1692_v10 = vadd.f32 %v1678_v11, %v7183_v36 }
  0xfc   :  { %5969 = vmatpush1.bf16.msra.mxu1 %v5968_v49  ;;  %5704 = vmatprep.subr.bf16.mxu0 %v11514_v51  ;;  %v4632_v49 = vld [vmem:[%s11384_s2 + $0xa48] sm:$0xff]  ;;  %v1718_v11 = vsel %vm231_vm0, %v11591_v2, %v11588_v13  ;;  %v4430_v13 = vld [vmem:[%s11384_s2 + $0x410] sm:$0xff] }
  0xfd   :  { %5970 = vmatprep.subr.bf16.mxu1 %v11514_v51  ;;  %v5983_v4 = vpack.c.bf16 %v4632_v49, %v4631_v5  ;;  %v3160_v5 = vld [vmem:[%s11382_s0 + $0x4c8] sm:$0xff]  ;;  %v11590_v49 = vunpack.i.h.bf16 %v7788_v3 }
  0xfe   :  { %v4636_v3 = vld [vmem:[%s11384_s2 + $0xa68] sm:$0xff] }
  0xff   :  { %5706 = vmatpush1.bf16.msra.mxu0 %v5705_v41  ;;  %v4410_v41 = vld [vmem:[%s11384_s2 + $0x378] sm:$0xff]  ;;  %v1741_v29 = vsel %vm231_vm0, %v11590_v49, %v11586_v16  ;;  %v4635_v16 = vld [vmem:[%s11384_s2 + $0xa60] sm:$0xff] }
 0x100   :  { %5972 = vmatpush1.bf16.msra.mxu1 %v5971_v62  ;;  %5707 = vmatprep.subr.bf16.mxu0 %v11514_v51  ;;  %v3159_v62 = vld [vmem:[%s11382_s0 + $0x4c0] sm:$0xff]  ;;  %v5720_v8 = vpack.c.bf16 %v4410_v41, %v4409_v17  ;;  %v4413_v41 = vld [vmem:[%s11384_s2 + $0x388] sm:$0xff] }
 0x101   :  { %5973 = vmatprep.subr.bf16.mxu1 %v11514_v51  ;;  %v4412_v17 = vld [vmem:[%s11384_s2 + $0x380] sm:$0xff] }
 0x103   :  { %5709 = vmatpush1.bf16.msra.mxu0 %v5708_v20  ;;  %v3173_v20 = vmul.f32 %v3159_v62, %v6895_v19  ;;  %v3174_v62 = vmul.f32 %v3160_v5, %v11559_v9 }
 0x104   :  { %5975 = vmatpush1.bf16.msra.mxu1 %v5974_v61  ;;  %5710 = vmatprep.subr.bf16.mxu0 %v11514_v51  ;;  %v3151_v61 = vld [vmem:[%s11382_s0 + $0x480] sm:$0xff] }
 0x105   :  { %5976 = vmatprep.subr.bf16.mxu1 %v11514_v51  ;;  %v3187_v48 = vadd.f32 %v3173_v20, %v11556_v55  ;;  %v1725_v20 = vmax.f32 %v1692_v10, %v1718_v11  ;;  %v864_v10 = vmax.f32 %v8031_v7, 0.0  ;;  %v2617_v7 = vmax.f32 %v8347_v47, %v8316_v57  ;;  %v4416_v47 = vld [vmem:[%s11384_s2 + $0x3a0] sm:$0xff] }
 0x107   :  { %5712 = vmatpush1.bf16.msra.mxu0 %v5711_v28  ;;  %v3158_v28 = vld [vmem:[%s11382_s0 + $0x4b8] sm:$0xff]  ;;  %v6721_v35 = vpack.i.bf16 %v3187_v48, %v3180_v54  ;;  %v5726_v48 = vpack.c.bf16 %v4431_v22, %v4430_v13 }
 0x108   :  { %5978 = vmatpush1.bf16.msra.mxu1 %v5977_v37  ;;  %5713 = vmatprep.subr.bf16.mxu0 %v11514_v51  ;;  %v3165_v37 = vmul.f32 %v3151_v61, %v11580_v44  ;;  %v3172_v52 = vmul.f32 %v3158_v28, %v11582_v14  ;;  %v5724_v61 = vpack.c.bf16 %v4413_v41, %v4412_v17  ;;  %v11592_v54 = vld [vmem:[#allocation35_spill] sm:$0xff]  ;;  %v4417_v17 = vld [vmem:[%s11384_s2 + $0x3a8] sm:$0xff]  ;;  %v4672_v41 = vld [vmem:[%s11384_s2 + $0xb80] sm:$0xff] }
 0x109   :  { %5979 = vmatprep.subr.bf16.mxu1 %v11514_v51  ;;  %6722 = vrot.lane.b32.xlu0 %v6721_v35, %s6816_s16  ;;  %v568_v28 = vmax.f32 %v11592_v54, 0.0  ;;  %v2860_v35 = vld [vmem:[%s11382_s0 + $0x440] sm:$0xff]  ;;  %v4435_v13 = vld [vmem:[%s11384_s2 + $0x438] sm:$0xff]  ;;  %v4674_v54 = vld [vmem:[%s11384_s2 + $0xb90] sm:$0xff] }
 0x10a   :  { %v3179_v15 = vadd.f32 %v3165_v37, %v6910_v24  ;;  %v3186_v32 = vadd.f32 %v3172_v52, %v6981_v59  ;;  %v5989_v37 = vpack.c.bf16 %v4636_v3, %v4635_v16  ;;  %v4637_v52 = vld [vmem:[%s11384_s2 + $0xa70] sm:$0xff] }
 0x10b   :  { %5715 = vmatpush1.bf16.msra.mxu0 %v5714_v53  ;;  %v5986_v53 = vpack.c.bf16 %v4634_v1, %v4633_v23  ;;  %v3188_v23 = vadd.f32 %v3174_v62, %v11564_v34  ;;  %v1748_v1 = vmax.f32 %v1699_v43, %v1741_v29  ;;  %v4638_v43 = vld [vmem:[%s11384_s2 + $0xa78] sm:$0xff]  ;;  %v2874_v29 = vmul.f32 %v2860_v35, %v11563_v25  ;;  %v4673_v62 = vld [vmem:[%s11384_s2 + $0xb88] sm:$0xff]  ;;  %v4434_v3 = vld [vmem:[%s11384_s2 + $0x430] sm:$0xff] }
 0x10c   :  { %5981 = vmatpush1.bf16.msra.mxu1 %v5980_v42  ;;  %5716 = vmatprep.subr.bf16.mxu0 %v11514_v51  ;;  %v5722_v42 = vpack.c.bf16 %v4429_v30, %v4428_v27  ;;  %v4415_v27 = vld [vmem:[%s11384_s2 + $0x398] sm:$0xff]  ;;  %v5992_v2 = vpack.c.bf16 %v4638_v43, %v4637_v52  ;;  %v4436_v52 = vld [vmem:[%s11384_s2 + $0x440] sm:$0xff]  ;;  %v4437_v43 = vld [vmem:[%s11384_s2 + $0x448] sm:$0xff] }
 0x10d   :  { %5982 = vmatprep.subr.bf16.mxu1 %v11514_v51  ;;  %3222 = vrot.lane.b32.xlu0 %v3188_v23, %s6816_s16  ;;  %v4676_v35 = vld [vmem:[%s11384_s2 + $0xba0] sm:$0xff] }
 0x10e   :  { %v8715_v30 = vpop.permute.xlu0 %6682 }
 0x10f   :  { %5718 = vmatpush1.bf16.msra.mxu0 %v5717_v0  ;;  %v6736_v0 = vpack.i.bf16 %v3186_v32, %v3179_v15  ;;  %v4433_v15 = vld [vmem:[%s11384_s2 + $0x428] sm:$0xff]  ;;  %v1752_v32 = vmax.f32 %v1725_v20, %v1748_v1  ;;  %v5732_v1 = vpack.c.bf16 %v4417_v17, %v4416_v47  ;;  %v6027_v20 = vpack.c.bf16 %v4673_v62, %v4672_v41 }
 0x110   :  { %5984 = vmatpush1.bf16.msra.mxu1 %v5983_v4  ;;  %5719 = vmatprep.subr.bf16.mxu0 %v11514_v51  ;;  %v4414_v4 = vld [vmem:[%s11384_s2 + $0x390] sm:$0xff]  ;;  %v11593_v47 = vld [vmem:[#allocation37_spill] sm:$0xff] }
 0x111   :  { %5985 = vmatprep.subr.bf16.mxu1 %v11514_v51  ;;  %6737 = vrot.lane.b32.xlu1 %v6736_v0, %s6816_s16  ;;  %v1756_v23 = vmax.f32 %v1752_v32, 0.0  ;;  %v4677_v32 = vld [vmem:[%s11384_s2 + $0xba8] sm:$0xff]  ;;  %v6640_v17 = vunpack.i.h.bf16 %v11593_v47  ;;  %v6639_v41 = vunpack.i.l.bf16 %v11593_v47 }
 0x112   :  { %v8742_v5 = vpop.permute.xlu0 %2628  ;;  %v6033_v62 = vpack.c.bf16 %v4677_v32, %v4676_v35  ;;  %v4442_v35 = vld [vmem:[%s11384_s2 + $0x470] sm:$0xff]  ;;  %v4443_v32 = vld [vmem:[%s11384_s2 + $0x478] sm:$0xff] }
 0x113   :  { %5721 = vmatpush1.bf16.msra.mxu0 %v5720_v8  ;;  %v4432_v8 = vld [vmem:[%s11384_s2 + $0x420] sm:$0xff]  ;;  %v2640_v16 = vmax.f32 %v8374_v31, %v8742_v5  ;;  %v8773_v31 = vadd.f32 %v2874_v29, %v11567_v38  ;;  %v4439_v29 = vld [vmem:[%s11384_s2 + $0x458] sm:$0xff]  ;;  %v5750_v47 = vpack.c.bf16 %v4443_v32, %v4442_v35 }
 0x114   :  { %5987 = vmatpush1.bf16.msra.mxu1 %v5986_v53  ;;  %5723 = vmatprep.subr.bf16.mxu0 %v5722_v42  ;;  %v2853_v53 = vld [vmem:[%s11382_s0 + $0x408] sm:$0xff]  ;;  %v5728_v42 = vpack.c.bf16 %v4415_v27, %v4414_v4  ;;  %v5730_v11 = vpack.c.bf16 %v4433_v15, %v4432_v8  ;;  %v4418_v4 = vld [vmem:[%s11384_s2 + $0x3b0] sm:$0xff]  ;;  %v4419_v27 = vld [vmem:[%s11384_s2 + $0x3b8] sm:$0xff] }
 0x115   :  { %5988 = vmatprep.subr.bf16.mxu1 %v11514_v51  ;;  %v2867_v49 = vmul.f32 %v2853_v53, %v11555_v56  ;;  %v8770_v0 = vmax.f32 %v2617_v7, %v2640_v16  ;;  %v5736_v8 = vpack.c.bf16 %v4419_v27, %v4418_v4  ;;  %v5738_v53 = vpack.c.bf16 %v4437_v43, %v4436_v52  ;;  %v4421_v7 = vld [vmem:[%s11384_s2 + $0x3c8] sm:$0xff]  ;;  %v11597_v32 = vld [vmem:[#allocation44_spill] sm:$0xff] }
 0x116   :  { %765 = vmatmul.mubr.f32.vlgmr.msra.gmra.mrb[2].mxu0 %v568_v28  ;;  %v4441_v4 = vld [vmem:[%s11384_s2 + $0x468] sm:$0xff] }
 0x117   :  { %5725 = vmatpush3.bf16.msra.mxu0 %v5724_v61  ;;  %991 = vmatprep.mubr.f32.mxu0 %v864_v10  ;;  %v8768_v22 = vadd.f32 %v2867_v49, %v11561_v46  ;;  %v5734_v61 = vpack.c.bf16 %v4435_v13, %v4434_v3  ;;  %v778_v10 = vld [vmem:[%s11382_s0 + $0x118] sm:$0xff]  ;;  %v4438_v49 = vld [vmem:[%s11384_s2 + $0x450] sm:$0xff] }
 0x118   :  { %5990 = vmatpush1.bf16.msra.mxu1 %v5989_v37  ;;  %5727 = vmatprep.subr.bf16.mxu0 %v5726_v48  ;;  %v2054_v37 = vmax.f32 %v8098_v40, 0.0  ;;  %v4675_v48 = vld [vmem:[%s11384_s2 + $0xb98] sm:$0xff]  ;;  %v771_v40 = vld [vmem:[%s11382_s0 + $0xe0] sm:$0xff]  ;;  %v5742_v3 = vpack.c.bf16 %v4439_v29, %v4438_v49  ;;  %v4422_v13 = vld [vmem:[%s11384_s2 + $0x3d0] sm:$0xff] }
 0x119   :  { %5991 = vmatprep.subr.bf16.mxu1 %v11514_v51  ;;  %v6731_v28 = vpack.i.bf16 %v8773_v31, %v8768_v22  ;;  %v6030_v15 = vpack.c.bf16 %v4675_v48, %v4674_v54 }
 0x11b   :  { %5729 = vmatpush3.bf16.msra.mxu0 %v5728_v42  ;;  %6732 = vrot.lane.b32.xlu0 %v6731_v28, %s6816_s16  ;;  %v4420_v42 = vld [vmem:[%s11384_s2 + $0x3c0] sm:$0xff]  ;;  %v11594_v28 = vld [vmem:[#allocation38_spill] sm:$0xff] }
 0x11c   :  { %5993 = vmatpush1.bf16.msra.mxu1 %v5992_v2  ;;  %5731 = vmatprep.subr.bf16.mxu0 %v5730_v11  ;;  %v792_v2 = vmul.f32 %v778_v10, %v11558_v60  ;;  %v785_v11 = vmul.f32 %v771_v40, %v11557_v58  ;;  %v5740_v16 = vpack.c.bf16 %v4421_v7, %v4420_v42  ;;  %v11596_v52 = vunpack.i.h.bf16 %v11594_v28  ;;  %v4680_v42 = vld [vmem:[%s11384_s2 + $0xbc0] sm:$0xff]  ;;  %v4681_v7 = vld [vmem:[%s11384_s2 + $0xbc8] sm:$0xff] }
 0x11d   :  { %6026 = vmatprep.subr.bf16.mxu1 %v11514_v51 }
 0x11e   :  { %v806_v27 = vadd.f32 %v792_v2, %v11566_v33  ;;  %v799_v54 = vadd.f32 %v785_v11, %v11565_v6  ;;  %v848_v43 = vsel %vm231_vm0, %v6640_v17, %v11596_v52  ;;  %v6039_v11 = vpack.c.bf16 %v4681_v7, %v4680_v42  ;;  %v4426_v17 = vld [vmem:[%s11384_s2 + $0x3f0] sm:$0xff] }
 0x11f   :  { %5733 = vmatpush3.bf16.msra.mxu0 %v5732_v1  ;;  %1953 = vmatmul.mubr.f32.vlgmr.msra.gmra.mrb[0].mxu1 %v1756_v23  ;;  %v4423_v23 = vld [vmem:[%s11384_s2 + $0x3d8] sm:$0xff]  ;;  %v4678_v1 = vld [vmem:[%s11384_s2 + $0xbb0] sm:$0xff] }
 0x120   :  { %6028 = vmatpush1.bf16.msra.mxu1 %v6027_v20  ;;  %5735 = vmatprep.subr.bf16.mxu0 %v5734_v61  ;;  %v4679_v20 = vld [vmem:[%s11384_s2 + $0xbb8] sm:$0xff]  ;;  %v4440_v61 = vld [vmem:[%s11384_s2 + $0x460] sm:$0xff]  ;;  %v5744_v40 = vpack.c.bf16 %v4423_v23, %v4422_v13  ;;  %v855_v29 = vmax.f32 %v806_v27, %v848_v43  ;;  %v4486_v13 = vld [vmem:[%s11384_s2 + $0x5c8] sm:$0xff] }
 0x121   :  { %6029 = vmatprep.subr.bf16.mxu1 %v11514_v51  ;;  %4696 = vmatprep.mubr.msk.f32.mxu1 %vm231_vm0, %v2054_v37  ;;  %v11595_v37 = vunpack.i.l.bf16 %v11594_v28  ;;  %v6036_v10 = vpack.c.bf16 %v4679_v20, %v4678_v1  ;;  %v4470_v27 = vld [vmem:[%s11384_s2 + $0x548] sm:$0xff]  ;;  %v4686_v42 = vld [vmem:[%s11384_s2 + $0xbf0] sm:$0xff] }
 0x122   :  { %v4685_v28 = vld [vmem:[%s11384_s2 + $0xbe8] sm:$0xff]  ;;  %v3157_v7 = vld [vmem:[%s11382_s0 + $0x4b0] sm:$0xff] }
 0x123   :  { %5737 = vmatpush3.bf16.msra.mxu0 %v5736_v8  ;;  %v825_v48 = vsel %vm231_vm0, %v6639_v41, %v11595_v37  ;;  %v5746_v8 = vpack.c.bf16 %v4441_v4, %v4440_v61  ;;  %v4427_v41 = vld [vmem:[%s11384_s2 + $0x3f8] sm:$0xff]  ;;  %v4469_v4 = vld [vmem:[%s11384_s2 + $0x540] sm:$0xff]  ;;  %v4487_v37 = vld [vmem:[%s11384_s2 + $0x5d0] sm:$0xff] }
 0x124   :  { %6031 = vmatpush1.bf16.msra.mxu1 %v6030_v15  ;;  %5739 = vmatprep.subr.bf16.mxu0 %v5738_v53  ;;  %v4424_v15 = vld [vmem:[%s11384_s2 + $0x3e0] sm:$0xff]  ;;  %v4425_v53 = vld [vmem:[%s11384_s2 + $0x3e8] sm:$0xff]  ;;  %v832_v49 = vmax.f32 %v799_v54, %v825_v48  ;;  %v5752_v1 = vpack.c.bf16 %v4427_v41, %v4426_v17  ;;  %v4488_v48 = vld [vmem:[%s11384_s2 + $0x5d8] sm:$0xff]  ;;  %v5792_v43 = vpack.c.bf16 %v4470_v27, %v4469_v4 }
 0x125   :  { %6032 = vmatprep.subr.bf16.mxu1 %v11514_v51  ;;  %v5748_v2 = vpack.c.bf16 %v4425_v53, %v4424_v15  ;;  %v4684_v54 = vld [vmem:[%s11384_s2 + $0xbe0] sm:$0xff]  ;;  %v5794_v15 = vpack.c.bf16 %v4488_v48, %v4487_v37  ;;  %v4472_v53 = vld [vmem:[%s11384_s2 + $0x558] sm:$0xff]  ;;  %v1968_v17 = vld [vmem:[%s11382_s0 + $0x2e8] sm:$0xff] }
 0x126   :  { %v859_v23 = vmax.f32 %v832_v49, %v855_v29  ;;  %v1161_v49 = vmax.f32 %v11597_v32, 0.0  ;;  %v4687_v29 = vld [vmem:[%s11384_s2 + $0xbf8] sm:$0xff]  ;;  %v4689_v4 = vld [vmem:[%s11384_s2 + $0xc08] sm:$0xff]  ;;  %v1982_v27 = vmul.f32 %v1968_v17, %v11573_v45  ;;  %v3450_v48 = vld [vmem:[%s11382_s0 + $0x500] sm:$0xff] }
 0x127   :  { %5741 = vmatpush3.bf16.msra.mxu0 %v5740_v16  ;;  %v4682_v16 = vld [vmem:[%s11384_s2 + $0xbd0] sm:$0xff] }
 0x128   :  { %6034 = vmatpush1.bf16.msra.mxu1 %v6033_v62  ;;  %5743 = vmatprep.subr.bf16.mxu0 %v5742_v3  ;;  %v4683_v62 = vld [vmem:[%s11384_s2 + $0xbd8] sm:$0xff]  ;;  %v4485_v3 = vld [vmem:[%s11384_s2 + $0x5c0] sm:$0xff]  ;;  %v863_v52 = vmax.f32 %v859_v23, 0.0  ;;  %v1996_v17 = vadd.f32 %v1982_v27, %v11583_v12 }
 0x129   :  { %6035 = vmatprep.subr.bf16.mxu1 %v11514_v51  ;;  %v6042_v20 = vpack.c.bf16 %v4683_v62, %v4682_v16  ;;  %v5790_v61 = vpack.c.bf16 %v4486_v13, %v4485_v3  ;;  %v1961_v16 = vld [vmem:[%s11382_s0 + $0x2b0] sm:$0xff]  ;;  %v4473_v3 = vld [vmem:[%s11384_s2 + $0x560] sm:$0xff]  ;;  %v4474_v13 = vld [vmem:[%s11384_s2 + $0x568] sm:$0xff] }
 0x12a   :  { %v11601_v27 = vld [vmem:[#allocation40_spill] sm:$0xff] }
 0x12b   :  { %5745 = vmatpush3.bf16.msra.mxu0 %v5744_v40  ;;  %v4471_v40 = vld [vmem:[%s11384_s2 + $0x550] sm:$0xff] }
 0x12c   :  { %6037 = vmatpush1.bf16.msra.mxu1 %v6036_v10  ;;  %5747 = vmatprep.subr.bf16.mxu0 %v5746_v8  ;;  %v3150_v10 = vld [vmem:[%s11382_s0 + $0x478] sm:$0xff]  ;;  %v6045_v8 = vpack.c.bf16 %v4685_v28, %v4684_v54  ;;  %v5796_v62 = vpack.c.bf16 %v4472_v53, %v4471_v40  ;;  %v4491_v54 = vld [vmem:[%s11384_s2 + $0x5f0] sm:$0xff]  ;;  %v3464_v40 = vmul.f32 %v3450_v48, %v11575_v39 }
 0x12d   :  { %6038 = vmatprep.subr.bf16.mxu1 %v11514_v51  ;;  %v3164_v35 = vmul.f32 %v3150_v10, %v11555_v56  ;;  %v4492_v28 = vld [vmem:[%s11384_s2 + $0x5f8] sm:$0xff]  ;;  %v4475_v53 = vld [vmem:[%s11384_s2 + $0x570] sm:$0xff] }
 0x12e   :  { %v3449_v10 = vld [vmem:[%s11382_s0 + $0x4f8] sm:$0xff]  ;;  %v5802_v32 = vpack.c.bf16 %v4492_v28, %v4491_v54  ;;  %v11602_v54 = vunpack.i.l.bf16 %v11601_v27  ;;  %v11603_v48 = vld [vmem:[#allocation42_spill] sm:$0xff] }
 0x12f   :  { %5749 = vmatpush3.bf16.msra.mxu0 %v5748_v2  ;;  %v4489_v2 = vld [vmem:[%s11384_s2 + $0x5e0] sm:$0xff]  ;;  %v8944_v41 = vadd.f32 %v3164_v35, %v11561_v46  ;;  %v3448_v35 = vld [vmem:[%s11382_s0 + $0x4f0] sm:$0xff] }
 0x130   :  { %6040 = vmatpush1.bf16.msra.mxu1 %v6039_v11  ;;  %5751 = vmatprep.subr.bf16.mxu0 %v5750_v47  ;;  %v4490_v11 = vld [vmem:[%s11384_s2 + $0x5e8] sm:$0xff]  ;;  %v3171_v47 = vmul.f32 %v3157_v7, %v11563_v25 }
 0x131   :  { %6041 = vmatprep.subr.bf16.mxu1 %v11514_v51  ;;  %11598 = vst [vmem:[#allocation7_spill] sm:$0xff] %v8944_v41 }
 0x132   :  { %v8956_v23 = vadd.f32 %v3171_v47, %v11567_v38  ;;  %v3462_v47 = vmul.f32 %v3448_v35, %v11580_v44 }
 0x133   :  { %5753 = vmatpush3.bf16.msra.mxu0 %v5752_v1  ;;  %v6048_v1 = vpack.c.bf16 %v4687_v29, %v4686_v42  ;;  %v3463_v42 = vmul.f32 %v3449_v10, %v6892_v18  ;;  %v4690_v29 = vld [vmem:[%s11384_s2 + $0xc10] sm:$0xff] }
 0x134   :  { %6043 = vmatpush1.bf16.msra.mxu1 %v6042_v20  ;;  %5791 = vmatprep.subr.bf16.mxu0 %v5790_v61  ;;  %11599 = vst [vmem:[#allocation25_spill] sm:$0xff] %v8956_v23  ;;  %v5798_v20 = vpack.c.bf16 %v4490_v11, %v4489_v2  ;;  %v4688_v61 = vld [vmem:[%s11384_s2 + $0xc00] sm:$0xff]  ;;  %v6741_v37 = vpack.i.bf16 %v8956_v23, %v8944_v41  ;;  %v3455_v11 = vld [vmem:[%s11382_s0 + $0x528] sm:$0xff]  ;;  %v9068_v23 = vpop.permute.xlu1 %6697 }
 0x135   :  { %6044 = vmatprep.subr.bf16.mxu1 %v11514_v51  ;;  %v3478_v2 = vadd.f32 %v3464_v40, %v11581_v63  ;;  %v11604_v40 = vunpack.i.h.bf16 %v11601_v27 }
 0x136   :  { %992 = vmatmul.mubr.f32.vlgmr.msra.gmra.mrb[6].mxu0 %v863_v52  ;;  %v1975_v52 = vmul.f32 %v1961_v16, %v11574_v26  ;;  %6742 = vrot.lane.b32.xlu0 %v6741_v37, %s6816_s16  ;;  %v4691_v16 = vld [vmem:[%s11384_s2 + $0xc18] sm:$0xff] }
 0x137   :  { %5793 = vmatpush3.bf16.msra.mxu0 %v5792_v43  ;;  %1288 = vmatprep.mubr.f32.mxu0 %v1161_v49  ;;  %v5800_v43 = vpack.c.bf16 %v4474_v13, %v4473_v3  ;;  %v4476_v49 = vld [vmem:[%s11384_s2 + $0x578] sm:$0xff]  ;;  %v4494_v3 = vld [vmem:[%s11384_s2 + $0x608] sm:$0xff]  ;;  %v9016_v13 = vpop.permute.xlu0 %6692  ;;  %v2038_v10 = vsel %vm231_vm0, %v11604_v40, %v11603_v48 }
 0x138   :  { %6046 = vmatpush1.bf16.msra.mxu1 %v6045_v8  ;;  %5795 = vmatprep.subr.bf16.mxu0 %v5794_v15  ;;  %v3456_v8 = vld [vmem:[%s11382_s0 + $0x530] sm:$0xff]  ;;  %v6051_v15 = vpack.c.bf16 %v4689_v4, %v4688_v61  ;;  %v3469_v61 = vmul.f32 %v3455_v11, %v11582_v14  ;;  %v11600_v4 = vld [vmem:[#allocation39_spill] sm:$0xff]  ;;  %v1989_v37 = vadd.f32 %v1975_v52, %v7183_v36 }
 0x139   :  { %6047 = vmatprep.subr.bf16.mxu1 %v11514_v51  ;;  %v3470_v7 = vmul.f32 %v3456_v8, %v6895_v19  ;;  %v2015_v28 = vsel %vm231_vm0, %v11602_v54, %v11600_v4  ;;  %v3476_v8 = vadd.f32 %v3462_v47, %v6910_v24  ;;  %v5804_v35 = vpack.c.bf16 %v4476_v49, %v4475_v53  ;;  %v3457_v4 = vld [vmem:[%s11382_s0 + $0x538] sm:$0xff]  ;;  %v4477_v54 = vld [vmem:[%s11384_s2 + $0x580] sm:$0xff] }
 0x13a   :  { %3496 = vrot.lane.b32.xlu0 %v3478_v2, %s6816_s16  ;;  %v3483_v11 = vadd.f32 %v3469_v61, %v6981_v59  ;;  %v6054_v47 = vpack.c.bf16 %v4691_v16, %v4690_v29  ;;  %v4692_v53 = vld [vmem:[%s11384_s2 + $0xc20] sm:$0xff]  ;;  %v3471_v49 = vmul.f32 %v3457_v4, %v11559_v9  ;;  %v4496_v29 = vld [vmem:[%s11384_s2 + $0x618] sm:$0xff]  ;;  %v2022_v16 = vmax.f32 %v1989_v37, %v2015_v28 }
 0x13b   :  { %5797 = vmatpush3.bf16.msra.mxu0 %v5796_v62  ;;  %v4493_v62 = vld [vmem:[%s11384_s2 + $0x600] sm:$0xff]  ;;  %v11605_v61 = vld [vmem:[#allocation43_spill] sm:$0xff]  ;;  %v9070_v41 = vpop.permute.xlu0 %6702 }
 0x13c   :  { %6049 = vmatpush1.bf16.msra.mxu1 %v6048_v1  ;;  %5799 = vmatprep.subr.bf16.mxu0 %v5798_v20  ;;  %v3477_v1 = vadd.f32 %v3463_v42, %v6901_v21  ;;  %v3484_v20 = vadd.f32 %v3470_v7, %v11556_v55  ;;  %v1068_v42 = vld [vmem:[%s11382_s0 + $0x150] sm:$0xff]  ;;  %v1075_v7 = vld [vmem:[%s11382_s0 + $0x188] sm:$0xff]  ;;  %v5806_v27 = vpack.c.bf16 %v4494_v3, %v4493_v62  ;;  %v6655_v48 = vunpack.i.h.bf16 %v11605_v61 }
 0x13d   :  { %6050 = vmatprep.subr.bf16.mxu1 %v11514_v51  ;;  %v6751_v2 = vpack.i.bf16 %v3483_v11, %v3476_v8  ;;  %v1089_v62 = vmul.f32 %v1075_v7, %v11558_v60  ;;  %v1082_v3 = vmul.f32 %v1068_v42, %v11557_v58  ;;  %v6654_v40 = vunpack.i.l.bf16 %v11605_v61  ;;  %11606 = vst [vmem:[#allocation26_spill] sm:$0xff] %v9070_v41  ;;  %v4694_v8 = vld [vmem:[%s11384_s2 + $0xc30] sm:$0xff]  ;;  %v4695_v42 = vld [vmem:[%s11384_s2 + $0xc38] sm:$0xff]  ;;  %v4497_v7 = vld [vmem:[%s11384_s2 + $0x620] sm:$0xff] }
 0x13e   :  { %v6746_v52 = vpack.i.bf16 %v3484_v20, %v3477_v1  ;;  %v3485_v1 = vadd.f32 %v3471_v49, %v11564_v34  ;;  %v2045_v20 = vmax.f32 %v1996_v17, %v2038_v10  ;;  %v4479_v17 = vld [vmem:[%s11384_s2 + $0x590] sm:$0xff]  ;;  %v4480_v10 = vld [vmem:[%s11384_s2 + $0x598] sm:$0xff] }
 0x13f   :  { %5801 = vmatpush3.bf16.msra.mxu0 %v5800_v43  ;;  %v4478_v43 = vld [vmem:[%s11384_s2 + $0x588] sm:$0xff]  ;;  %6752 = vrot.lane.b32.xlu0 %v6751_v2, %s6816_s16  ;;  %v1096_v11 = vadd.f32 %v1082_v3, %v11565_v6  ;;  %v4729_v3 = vld [vmem:[%s11384_s2 + $0xd40] sm:$0xff]  ;;  %v4500_v61 = vld [vmem:[%s11384_s2 + $0x638] sm:$0xff] }
 0x140   :  { %6052 = vmatpush1.bf16.msra.mxu1 %v6051_v15  ;;  %5803 = vmatprep.subr.bf16.mxu0 %v5802_v32  ;;  %v4693_v15 = vld [vmem:[%s11384_s2 + $0xc28] sm:$0xff]  ;;  %v4495_v32 = vld [vmem:[%s11384_s2 + $0x610] sm:$0xff]  ;;  %v5808_v4 = vpack.c.bf16 %v4478_v43, %v4477_v54 }
 0x141   :  { %6053 = vmatprep.subr.bf16.mxu1 %v11514_v51  ;;  %6747 = vrot.lane.b32.xlu1 %v6746_v52, %s6816_s16  ;;  %v6057_v28 = vpack.c.bf16 %v4693_v15, %v4692_v53  ;;  %v5810_v37 = vpack.c.bf16 %v4496_v29, %v4495_v32  ;;  %v1103_v52 = vadd.f32 %v1089_v62, %v11566_v33  ;;  %v4482_v62 = vld [vmem:[%s11384_s2 + $0x5a8] sm:$0xff] }
 0x142   :  { %v5812_v15 = vpack.c.bf16 %v4480_v10, %v4479_v17  ;;  %v6060_v29 = vpack.c.bf16 %v4695_v42, %v4694_v8 }
 0x143   :  { %5805 = vmatpush3.bf16.msra.mxu0 %v5804_v35  ;;  %v4498_v35 = vld [vmem:[%s11384_s2 + $0x628] sm:$0xff] }
 0x144   :  { %6055 = vmatpush1.bf16.msra.mxu1 %v6054_v47  ;;  %5807 = vmatprep.subr.bf16.mxu0 %v5806_v27  ;;  %v2049_v47 = vmax.f32 %v2022_v16, %v2045_v20  ;;  %v11607_v27 = vld [vmem:[#allocation41_spill] sm:$0xff]  ;;  %v5814_v2 = vpack.c.bf16 %v4498_v35, %v4497_v7  ;;  %v4481_v16 = vld [vmem:[%s11384_s2 + $0x5a0] sm:$0xff]  ;;  %v4499_v20 = vld [vmem:[%s11384_s2 + $0x630] sm:$0xff] }
 0x145   :  { %6056 = vmatprep.subr.bf16.mxu1 %v11514_v51  ;;  %3519 = vrot.lane.b32.xlu1 %v3485_v1, %s6816_s16  ;;  %v11608_v54 = vunpack.i.l.bf16 %v11607_v27  ;;  %v11609_v53 = vunpack.i.h.bf16 %v11607_v27  ;;  %v9101_v32 = vpop.permute.xlu1 %6707  ;;  %v4730_v1 = vld [vmem:[%s11384_s2 + $0xd48] sm:$0xff]  ;;  %v5816_v17 = vpack.c.bf16 %v4482_v62, %v4481_v16  ;;  %v5818_v42 = vpack.c.bf16 %v4500_v61, %v4499_v20  ;;  %v4483_v7 = vld [vmem:[%s11384_s2 + $0x5b0] sm:$0xff]  ;;  %v4484_v35 = vld [vmem:[%s11384_s2 + $0x5b8] sm:$0xff] }
 0x146   :  { %11610 = vst [vmem:[#allocation5_spill] sm:$0xff] %v9101_v32  ;;  %v6095_v8 = vpack.c.bf16 %v4730_v1, %v4729_v3  ;;  %v4732_v27 = vld [vmem:[%s11384_s2 + $0xd58] sm:$0xff]  ;;  %v4527_v16 = vld [vmem:[%s11384_s2 + $0x708] sm:$0xff]  ;;  %v4733_v62 = vld [vmem:[%s11384_s2 + $0xd60] sm:$0xff] }
 0x147   :  { %v1122_v43 = vsel %vm231_vm0, %v6654_v40, %v11608_v54  ;;  %v1145_v49 = vsel %vm231_vm0, %v6655_v48, %v11609_v53  ;;  %5809 = vmatpush3.bf16.msra.mxu0 %v5808_v4  ;;  %v9122_v48 = vpop.permute.xlu0 %2902  ;;  %v4542_v54 = vld [vmem:[%s11384_s2 + $0x780] sm:$0xff]  ;;  %v4734_v3 = vld [vmem:[%s11384_s2 + $0xd68] sm:$0xff]  ;;  %v4544_v1 = vld [vmem:[%s11384_s2 + $0x790] sm:$0xff] }
 0x148   :  { %6058 = vmatpush1.bf16.msra.mxu1 %v6057_v28  ;;  %5811 = vmatprep.subr.bf16.mxu0 %v5810_v37  ;;  %11611 = vst [vmem:[#allocation31_spill] sm:$0xff] %v9122_v48  ;;  %v1129_v40 = vmax.f32 %v1096_v11, %v1122_v43  ;;  %v1152_v4 = vmax.f32 %v1103_v52, %v1145_v49  ;;  %v2053_v37 = vmax.f32 %v2049_v47, 0.0  ;;  %v11613_v11 = vld [vmem:[#allocation52_spill] sm:$0xff]  ;;  %v4543_v43 = vld [vmem:[%s11384_s2 + $0x788] sm:$0xff]  ;;  %v4545_v20 = vld [vmem:[%s11384_s2 + $0x798] sm:$0xff] }
 0x149   :  { %6059 = vmatprep.subr.bf16.mxu1 %v11514_v51  ;;  %v2914_v28 = vmax.f32 %v8768_v22, %v9122_v48  ;;  %v9126_v10 = vpop.permute.xlu1 %2925  ;;  %v4731_v22 = vld [vmem:[%s11384_s2 + $0xd50] sm:$0xff]  ;;  %v2351_v47 = vmax.f32 %v11613_v11, 0.0  ;;  %v4736_v11 = vld [vmem:[%s11384_s2 + $0xd78] sm:$0xff] }
 0x14a   :  { %11612 = vst [vmem:[#allocation13_spill] sm:$0xff] %v9126_v10  ;;  %v2937_v52 = vmax.f32 %v8773_v31, %v9126_v10  ;;  %v1156_v53 = vmax.f32 %v1129_v40, %v1152_v4  ;;  %v5820_v31 = vpack.c.bf16 %v4484_v35, %v4483_v7  ;;  %v4528_v4 = vld [vmem:[%s11384_s2 + $0x710] sm:$0xff]  ;;  %v3454_v7 = vld [vmem:[%s11382_s0 + $0x520] sm:$0xff] }
 0x14b   :  { %5813 = vmatpush3.bf16.msra.mxu0 %v5812_v15  ;;  %v6098_v15 = vpack.c.bf16 %v4732_v27, %v4731_v22  ;;  %v11614_v22 = vld [vmem:[#allocation51_spill] sm:$0xff]  ;;  %v4547_v27 = vld [vmem:[%s11384_s2 + $0x7a8] sm:$0xff]  ;;  %v11625_v48 = vld [vmem:[#allocation50_spill] sm:$0xff] }
 0x14c   :  { %6061 = vmatpush1.bf16.msra.mxu1 %v6060_v29  ;;  %5815 = vmatprep.subr.bf16.mxu0 %v5814_v2  ;;  %v9150_v49 = vmax.f32 %v2914_v28, %v2937_v52  ;;  %v5858_v29 = vpack.c.bf16 %v4543_v43, %v4542_v54  ;;  %v4526_v2 = vld [vmem:[%s11384_s2 + $0x700] sm:$0xff]  ;;  %v1160_v61 = vmax.f32 %v1156_v53, 0.0  ;;  %v3447_v28 = vld [vmem:[%s11382_s0 + $0x4e8] sm:$0xff]  ;;  %v1458_v52 = vmax.f32 %v11614_v22, 0.0 }
 0x14d   :  { %6094 = vmatprep.subr.bf16.mxu1 %v11514_v51  ;;  %v5860_v40 = vpack.c.bf16 %v4527_v16, %v4526_v2  ;;  %v3461_v35 = vmul.f32 %v3447_v28, %v11555_v56  ;;  %v3468_v54 = vmul.f32 %v3454_v7, %v11563_v25  ;;  %v4530_v2 = vld [vmem:[%s11384_s2 + $0x720] sm:$0xff]  ;;  %v4531_v16 = vld [vmem:[%s11384_s2 + $0x728] sm:$0xff] }
 0x14e   :  { %v4550_v7 = vld [vmem:[%s11384_s2 + $0x7c0] sm:$0xff] }
 0x14f   :  { %5817 = vmatpush3.bf16.msra.mxu0 %v5816_v17  ;;  %2250 = vmatmul.mubr.f32.vlgmr.msra.gmra.mrb[0].mxu1 %v2053_v37  ;;  %v6101_v37 = vpack.c.bf16 %v4734_v3, %v4733_v62  ;;  %v5862_v17 = vpack.c.bf16 %v4545_v20, %v4544_v1  ;;  %v9201_v43 = vadd.f32 %v3461_v35, %v11561_v46  ;;  %v4737_v62 = vld [vmem:[%s11384_s2 + $0xd80] sm:$0xff]  ;;  %v4738_v3 = vld [vmem:[%s11384_s2 + $0xd88] sm:$0xff]  ;;  %v4548_v1 = vld [vmem:[%s11384_s2 + $0x7b0] sm:$0xff] }
 0x150   :  { %6096 = vmatpush1.bf16.msra.mxu1 %v6095_v8  ;;  %5819 = vmatprep.subr.bf16.mxu0 %v5818_v42  ;;  %v4529_v8 = vld [vmem:[%s11384_s2 + $0x718] sm:$0xff]  ;;  %v4735_v42 = vld [vmem:[%s11384_s2 + $0xd70] sm:$0xff]  ;;  %v4551_v35 = vld [vmem:[%s11384_s2 + $0x7c8] sm:$0xff] }
 0x151   :  { %6097 = vmatprep.subr.bf16.mxu1 %v11514_v51  ;;  %4753 = vmatprep.mubr.msk.f32.mxu1 %vm231_vm0, %v2351_v47  ;;  %v4546_v47 = vld [vmem:[%s11384_s2 + $0x7a0] sm:$0xff]  ;;  %11615 = vst [vmem:[#allocation12_spill] sm:$0xff] %v9201_v43  ;;  %v5864_v53 = vpack.c.bf16 %v4529_v8, %v4528_v4  ;;  %v4549_v20 = vld [vmem:[%s11384_s2 + $0x7b8] sm:$0xff]  ;;  %v6107_v4 = vpack.c.bf16 %v4738_v3, %v4737_v62  ;;  %v4739_v8 = vld [vmem:[%s11384_s2 + $0xd90] sm:$0xff] }
 0x152   :  { %v5870_v28 = vpack.c.bf16 %v4549_v20, %v4548_v1  ;;  %v1365_v22 = vld [vmem:[%s11382_s0 + $0x1c0] sm:$0xff]  ;;  %v4552_v62 = vld [vmem:[%s11384_s2 + $0x7d0] sm:$0xff]  ;;  %v4553_v3 = vld [vmem:[%s11384_s2 + $0x7d8] sm:$0xff] }
 0x153   :  { %5821 = vmatpush3.bf16.msra.mxu0 %v5820_v31  ;;  %v9204_v31 = vadd.f32 %v3468_v54, %v11567_v38  ;;  %v4534_v54 = vld [vmem:[%s11384_s2 + $0x740] sm:$0xff]  ;;  %v11617_v1 = vld [vmem:[#allocation46_spill] sm:$0xff] }
 0x154   :  { %6099 = vmatpush1.bf16.msra.mxu1 %v6098_v15  ;;  %5859 = vmatprep.subr.bf16.mxu0 %v5858_v29  ;;  %v6104_v15 = vpack.c.bf16 %v4736_v11, %v4735_v42  ;;  %v5866_v29 = vpack.c.bf16 %v4547_v27, %v4546_v47  ;;  %v4740_v42 = vld [vmem:[%s11384_s2 + $0xd98] sm:$0xff]  ;;  %v5874_v27 = vpack.c.bf16 %v4551_v35, %v4550_v7  ;;  %v6665_v20 = vunpack.i.h.bf16 %v11617_v1 }
 0x155   :  { %6100 = vmatprep.subr.bf16.mxu1 %v11514_v51  ;;  %11616 = vst [vmem:[#allocation6_spill] sm:$0xff] %v9204_v31  ;;  %v6110_v47 = vpack.c.bf16 %v4740_v42, %v4739_v8  ;;  %v4743_v8 = vld [vmem:[%s11384_s2 + $0xdb0] sm:$0xff]  ;;  %v4744_v35 = vld [vmem:[%s11384_s2 + $0xdb8] sm:$0xff] }
 0x156   :  { %1289 = vmatmul.mubr.f32.vlgmr.msra.gmra.mrb[8].mxu0 %v1160_v61  ;;  %v6756_v61 = vpack.i.bf16 %v9204_v31, %v9201_v43  ;;  %v11623_v31 = vld [vmem:[#allocation47_spill] sm:$0xff] }
 0x157   :  { %5861 = vmatpush3.bf16.msra.mxu0 %v5860_v40  ;;  %1585 = vmatprep.mubr.f32.mxu0 %v1458_v52  ;;  %v5868_v40 = vpack.c.bf16 %v4531_v16, %v4530_v2  ;;  %v1372_v52 = vld [vmem:[%s11382_s0 + $0x1f8] sm:$0xff]  ;;  %v1379_v2 = vmul.f32 %v1365_v22, %v11557_v58  ;;  %v4742_v16 = vld [vmem:[%s11384_s2 + $0xda8] sm:$0xff]  ;;  %v4554_v22 = vld [vmem:[%s11384_s2 + $0x7e0] sm:$0xff] }
 0x158   :  { %6102 = vmatpush1.bf16.msra.mxu1 %v6101_v37  ;;  %5863 = vmatprep.subr.bf16.mxu0 %v5862_v17  ;;  %v4532_v37 = vld [vmem:[%s11384_s2 + $0x730] sm:$0xff]  ;;  %v4533_v17 = vld [vmem:[%s11384_s2 + $0x738] sm:$0xff] }
 0x159   :  { %6103 = vmatprep.subr.bf16.mxu1 %v11514_v51  ;;  %6757 = vrot.lane.b32.xlu1 %v6756_v61, %s6816_s16  ;;  %v5872_v11 = vpack.c.bf16 %v4533_v17, %v4532_v37  ;;  %v6664_v61 = vunpack.i.l.bf16 %v11617_v1  ;;  %v4536_v37 = vld [vmem:[%s11384_s2 + $0x750] sm:$0xff]  ;;  %v4537_v17 = vld [vmem:[%s11384_s2 + $0x758] sm:$0xff]  ;;  %v1393_v7 = vadd.f32 %v1379_v2, %v11565_v6 }
 0x15a   :  { %v5880_v2 = vpack.c.bf16 %v4537_v17, %v4536_v37 }
 0x15b   :  { %5865 = vmatpush3.bf16.msra.mxu0 %v5864_v53  ;;  %v4535_v53 = vld [vmem:[%s11384_s2 + $0x748] sm:$0xff] }
 0x15c   :  { %6105 = vmatpush1.bf16.msra.mxu1 %v6104_v15  ;;  %5867 = vmatprep.subr.bf16.mxu0 %v5866_v29  ;;  %v4741_v15 = vld [vmem:[%s11384_s2 + $0xda0] sm:$0xff]  ;;  %v1386_v29 = vmul.f32 %v1372_v52, %v11558_v60  ;;  %v4555_v52 = vld [vmem:[%s11384_s2 + $0x7e8] sm:$0xff] }
 0x15d   :  { %6106 = vmatprep.subr.bf16.mxu1 %v11514_v51  ;;  %v5882_v1 = vpack.c.bf16 %v4555_v52, %v4554_v22 }
 0x15e   :  { %v1400_v42 = vadd.f32 %v1386_v29, %v11566_v33  ;;  %v2265_v29 = vld [vmem:[%s11382_s0 + $0x358] sm:$0xff] }
 0x15f   :  { %5869 = vmatpush3.bf16.msra.mxu0 %v5868_v40  ;;  %v5876_v40 = vpack.c.bf16 %v4535_v53, %v4534_v54  ;;  %v2279_v17 = vmul.f32 %v2265_v29, %v11573_v45 }
 0x160   :  { %6108 = vmatpush1.bf16.msra.mxu1 %v6107_v4  ;;  %5871 = vmatprep.subr.bf16.mxu0 %v5870_v28  ;;  %v6113_v4 = vpack.c.bf16 %v4742_v16, %v4741_v15  ;;  %v5878_v28 = vpack.c.bf16 %v4553_v3, %v4552_v62  ;;  %v2258_v15 = vld [vmem:[%s11382_s0 + $0x320] sm:$0xff]  ;;  %v4539_v62 = vld [vmem:[%s11384_s2 + $0x768] sm:$0xff]  ;;  %v6116_v3 = vpack.c.bf16 %v4744_v35, %v4743_v8  ;;  %v3747_v8 = vld [vmem:[%s11382_s0 + $0x570] sm:$0xff] }
 0x161   :  { %6109 = vmatprep.subr.bf16.mxu1 %v11514_v51  ;;  %v4538_v16 = vld [vmem:[%s11384_s2 + $0x760] sm:$0xff] }
 0x162   :  { %v5884_v52 = vpack.c.bf16 %v4539_v62, %v4538_v16  ;;  %v4541_v16 = vld [vmem:[%s11384_s2 + $0x778] sm:$0xff]  ;;  %v3745_v35 = vld [vmem:[%s11382_s0 + $0x560] sm:$0xff] }
 0x163   :  { %5873 = vmatpush3.bf16.msra.mxu0 %v5872_v11  ;;  %v11618_v11 = vld [vmem:[#allocation45_spill] sm:$0xff] }
 0x164   :  { %6111 = vmatpush1.bf16.msra.mxu1 %v6110_v47  ;;  %5875 = vmatprep.subr.bf16.mxu0 %v5874_v27  ;;  %v11619_v47 = vunpack.i.l.bf16 %v11618_v11  ;;  %v11620_v54 = vunpack.i.h.bf16 %v11618_v11  ;;  %v2272_v11 = vmul.f32 %v2258_v15, %v11574_v26 }
 0x165   :  { %6112 = vmatprep.subr.bf16.mxu1 %v11514_v51 }
 0x166   :  { %v1419_v27 = vsel %vm231_vm0, %v6664_v61, %v11619_v47  ;;  %v1442_v53 = vsel %vm231_vm0, %v6665_v20, %v11620_v54  ;;  %v4745_v20 = vld [vmem:[%s11384_s2 + $0xdc0] sm:$0xff]  ;;  %v4746_v61 = vld [vmem:[%s11384_s2 + $0xdc8] sm:$0xff] }
 0x167   :  { %5877 = vmatpush3.bf16.msra.mxu0 %v5876_v40  ;;  %v1426_v40 = vmax.f32 %v1393_v7, %v1419_v27  ;;  %v1449_v37 = vmax.f32 %v1400_v42, %v1442_v53  ;;  %v5128_v47 = vpop.f32.mrb[0].mxu0  ;;  %v11621_v42 = vld [vmem:[#allocation48_spill] sm:$0xff]  ;;  %v3761_v27 = vmul.f32 %v3747_v8, %v11575_v39  ;;  %v3746_v54 = vld [vmem:[%s11382_s0 + $0x568] sm:$0xff]  ;;  %v6119_v29 = vpack.c.bf16 %v4746_v61, %v4745_v20  ;;  %v4540_v7 = vld [vmem:[%s11384_s2 + $0x770] sm:$0xff] }
 0x168   :  { %6114 = vmatpush1.bf16.msra.mxu1 %v6113_v4  ;;  %5879 = vmatprep.subr.bf16.mxu0 %v5878_v28  ;;  %v4556_v4 = vld [vmem:[%s11384_s2 + $0x7f0] sm:$0xff]  ;;  %v4557_v28 = vld [vmem:[%s11384_s2 + $0x7f8] sm:$0xff]  ;;  %v5129_v22 = vpop.f32.mrb[1].mxu0  ;;  %v3753_v53 = vld [vmem:[%s11382_s0 + $0x5a0] sm:$0xff]  ;;  %v3760_v62 = vmul.f32 %v3746_v54, %v6892_v18  ;;  %v3759_v54 = vmul.f32 %v3745_v35, %v11580_v44  ;;  %v11624_v35 = vunpack.i.l.bf16 %v11621_v42  ;;  %v11626_v32 = vunpack.i.h.bf16 %v11621_v42 }
 0x169   :  { %6115 = vmatprep.subr.bf16.mxu1 %v11514_v51  ;;  %v9342_v15 = vadd.f32 %v5129_v22, %v5128_v47  ;;  %v3767_v8 = vmul.f32 %v3753_v53, %v6895_v19  ;;  %v4747_v20 = vld [vmem:[%s11384_s2 + $0xdd0] sm:$0xff]  ;;  %v4748_v61 = vld [vmem:[%s11384_s2 + $0xdd8] sm:$0xff]  ;;  %v3775_v47 = vadd.f32 %v3761_v27, %v11581_v63 }
 0x16a   :  { %v3752_v22 = vld [vmem:[%s11382_s0 + $0x598] sm:$0xff]  ;;  %v3774_v27 = vadd.f32 %v3760_v62, %v6901_v21  ;;  %v3773_v10 = vadd.f32 %v3759_v54, %v6910_v24  ;;  %v2335_v41 = vsel %vm231_vm0, %v11626_v32, %v11625_v48  ;;  %v5888_v62 = vpack.c.bf16 %v4541_v16, %v4540_v7  ;;  %v4749_v32 = vld [vmem:[%s11384_s2 + $0xde0] sm:$0xff] }
 0x16b   :  { %11622 = vst [vmem:[#allocation27_spill] sm:$0xff] %v9342_v15  ;;  %5881 = vmatpush3.bf16.msra.mxu0 %v5880_v2  ;;  %v5886_v2 = vpack.c.bf16 %v4557_v28, %v4556_v4  ;;  %v4599_v4 = vld [vmem:[%s11384_s2 + $0x940] sm:$0xff]  ;;  %v4600_v28 = vld [vmem:[%s11384_s2 + $0x948] sm:$0xff]  ;;  %v3781_v53 = vadd.f32 %v3767_v8, %v11556_v55  ;;  %3793 = vrot.lane.b32.xlu1 %v3775_v47, %s6816_s16  ;;  %v4602_v16 = vld [vmem:[%s11384_s2 + $0x958] sm:$0xff] }
 0x16c   :  { %6117 = vmatpush1.bf16.msra.mxu1 %v6116_v3  ;;  %5883 = vmatprep.subr.bf16.mxu0 %v5882_v1  ;;  %v2293_v3 = vadd.f32 %v2279_v17, %v11583_v12  ;;  %v2286_v1 = vadd.f32 %v2272_v11, %v7183_v36  ;;  %v2312_v17 = vsel %vm231_vm0, %v11624_v35, %v11623_v31  ;;  %v3754_v31 = vld [vmem:[%s11382_s0 + $0x5a8] sm:$0xff] }
 0x16d   :  { %6118 = vmatprep.subr.bf16.mxu1 %v11514_v51  ;;  %v1453_v11 = vmax.f32 %v1426_v40, %v1449_v37  ;;  %v3766_v43 = vmul.f32 %v3752_v22, %v11582_v14  ;;  %v6122_v8 = vpack.c.bf16 %v4748_v61, %v4747_v20  ;;  %v6761_v15 = vpack.i.bf16 %v3781_v53, %v3774_v27  ;;  %v4583_v37 = vld [vmem:[%s11384_s2 + $0x8c0] sm:$0xff]  ;;  %v4584_v47 = vld [vmem:[%s11384_s2 + $0x8c8] sm:$0xff]  ;;  %v11627_v53 = vld [vmem:[#allocation54_spill] sm:$0xff] }
 0x16e   :  { %v5926_v40 = vpack.c.bf16 %v4600_v28, %v4599_v4  ;;  %v3768_v7 = vmul.f32 %v3754_v31, %v11559_v9  ;;  %v2319_v61 = vmax.f32 %v2286_v1, %v2312_v17  ;;  %v2342_v22 = vmax.f32 %v2293_v3, %v2335_v41  ;;  %v4585_v4 = vld [vmem:[%s11384_s2 + $0x8d0] sm:$0xff]  ;;  %v3744_v28 = vld [vmem:[%s11382_s0 + $0x558] sm:$0xff] }
 0x16f   :  { %5885 = vmatpush3.bf16.msra.mxu0 %v5884_v52  ;;  %v3780_v48 = vadd.f32 %v3766_v43, %v6981_v59  ;;  %v4750_v52 = vld [vmem:[%s11384_s2 + $0xde8] sm:$0xff]  ;;  %6762 = vrot.lane.b32.xlu0 %v6761_v15, %s6816_s16  ;;  %v5928_v54 = vpack.c.bf16 %v4584_v47, %v4583_v37  ;;  %v4751_v41 = vld [vmem:[%s11384_s2 + $0xdf0] sm:$0xff]  ;;  %v3758_v1 = vmul.f32 %v3744_v28, %v11555_v56  ;;  %v1755_v35 = vmax.f32 %v11627_v53, 0.0  ;;  %v4752_v17 = vld [vmem:[%s11384_s2 + $0xdf8] sm:$0xff] }
 0x170   :  { %6120 = vmatpush1.bf16.msra.mxu1 %v6119_v29  ;;  %5887 = vmatprep.subr.bf16.mxu0 %v5886_v2  ;;  %v4601_v29 = vld [vmem:[%s11384_s2 + $0x950] sm:$0xff]  ;;  %v1457_v2 = vmax.f32 %v1453_v11, 0.0  ;;  %v3782_v20 = vadd.f32 %v3768_v7, %v11564_v34  ;;  %v6125_v27 = vpack.c.bf16 %v4750_v52, %v4749_v32  ;;  %v4603_v11 = vld [vmem:[%s11384_s2 + $0x960] sm:$0xff]  ;;  %v6128_v32 = vpack.c.bf16 %v4752_v17, %v4751_v41  ;;  %v4588_v52 = vld [vmem:[%s11384_s2 + $0x8e8] sm:$0xff] }
 0x171   :  { %6121 = vmatprep.subr.bf16.mxu1 %v11514_v51  ;;  %v6766_v43 = vpack.i.bf16 %v3780_v48, %v3773_v10  ;;  %v5930_v15 = vpack.c.bf16 %v4602_v16, %v4601_v29  ;;  %v4586_v10 = vld [vmem:[%s11384_s2 + $0x8d8] sm:$0xff]  ;;  %v3751_v3 = vld [vmem:[%s11382_s0 + $0x590] sm:$0xff]  ;;  %v9445_v31 = vadd.f32 %v3758_v1, %v11561_v46  ;;  %v4587_v7 = vld [vmem:[%s11384_s2 + $0x8e0] sm:$0xff]  ;;  %v2648_v1 = vmax.f32 %v8770_v0, 0.0 }
 0x172   :  { %v5932_v37 = vpack.c.bf16 %v4586_v10, %v4585_v4  ;;  %v4786_v29 = vld [vmem:[%s11384_s2 + $0xf00] sm:$0xff]  ;;  %v4787_v16 = vld [vmem:[%s11384_s2 + $0xf08] sm:$0xff]  ;;  %v4589_v28 = vld [vmem:[%s11384_s2 + $0x8f0] sm:$0xff] }
 0x173   :  { %5889 = vmatpush3.bf16.msra.mxu0 %v5888_v62  ;;  %v4604_v62 = vld [vmem:[%s11384_s2 + $0x968] sm:$0xff]  ;;  %6767 = vrot.lane.b32.xlu1 %v6766_v43, %s6816_s16  ;;  %v4606_v43 = vld [vmem:[%s11384_s2 + $0x978] sm:$0xff]  ;;  %v4607_v41 = vld [vmem:[%s11384_s2 + $0x980] sm:$0xff] }
 0x174   :  { %6123 = vmatpush1.bf16.msra.mxu1 %v6122_v8  ;;  %5927 = vmatprep.subr.bf16.mxu0 %v5926_v40  ;;  %v3765_v8 = vmul.f32 %v3751_v3, %v11563_v25  ;;  %v2346_v40 = vmax.f32 %v2319_v61, %v2342_v22  ;;  %v5934_v48 = vpack.c.bf16 %v4604_v62, %v4603_v11  ;;  %v4789_v10 = vld [vmem:[%s11384_s2 + $0xf18] sm:$0xff]  ;;  %v4608_v3 = vld [vmem:[%s11384_s2 + $0x988] sm:$0xff]  ;;  %v1662_v53 = vld [vmem:[%s11382_s0 + $0x230] sm:$0xff] }
 0x175   :  { %6124 = vmatprep.subr.bf16.mxu1 %v11514_v51  ;;  %3816 = vrot.lane.b32.xlu0 %v3782_v20, %s6816_s16  ;;  %v5936_v22 = vpack.c.bf16 %v4588_v52, %v4587_v7  ;;  %v5942_v62 = vpack.c.bf16 %v4608_v3, %v4607_v41  ;;  %v4592_v0 = vld [vmem:[%s11384_s2 + $0x908] sm:$0xff]  ;;  %v1676_v52 = vmul.f32 %v1662_v53, %v11557_v58 }
 0x176   :  { %1586 = vmatmul.mubr.f32.vlgmr.msra.gmra.mrb[10].mxu0 %v1457_v2  ;;  %v9448_v47 = vadd.f32 %v3765_v8, %v11567_v38  ;;  %v4605_v2 = vld [vmem:[%s11384_s2 + $0x970] sm:$0xff]  ;;  %v2350_v61 = vmax.f32 %v2346_v40, 0.0  ;;  %v4591_v8 = vld [vmem:[%s11384_s2 + $0x900] sm:$0xff]  ;;  %v11629_v3 = vld [vmem:[#allocation49_spill] sm:$0xff] }
 0x177   :  { %5929 = vmatpush3.bf16.msra.mxu0 %v5928_v54  ;;  %1882 = vmatprep.mubr.f32.mxu0 %v1755_v35  ;;  %v6163_v54 = vpack.c.bf16 %v4787_v16, %v4786_v29  ;;  %v5938_v4 = vpack.c.bf16 %v4606_v43, %v4605_v2  ;;  %v1669_v35 = vld [vmem:[%s11382_s0 + $0x268] sm:$0xff]  ;;  %v4790_v40 = vld [vmem:[%s11384_s2 + $0xf20] sm:$0xff]  ;;  %v5944_v43 = vpack.c.bf16 %v4592_v0, %v4591_v8 }
 0x178   :  { %6126 = vmatpush1.bf16.msra.mxu1 %v6125_v27  ;;  %5931 = vmatprep.subr.bf16.mxu0 %v5930_v15  ;;  %v6771_v20 = vpack.i.bf16 %v9448_v47, %v9445_v31  ;;  %v4590_v27 = vld [vmem:[%s11384_s2 + $0x8f8] sm:$0xff]  ;;  %v4788_v15 = vld [vmem:[%s11384_s2 + $0xf10] sm:$0xff]  ;;  %v1683_v7 = vmul.f32 %v1669_v35, %v11558_v60  ;;  %v11628_v29 = vld [vmem:[#allocation53_spill] sm:$0xff]  ;;  %v1690_v41 = vadd.f32 %v1676_v52, %v11565_v6  ;;  %v11631_v35 = vunpack.i.l.bf16 %v11629_v3 }
 0x179   :  { %6127 = vmatprep.subr.bf16.mxu1 %v11514_v51  ;;  %v5940_v17 = vpack.c.bf16 %v4590_v27, %v4589_v28  ;;  %v6166_v11 = vpack.c.bf16 %v4789_v10, %v4788_v15  ;;  %v6680_v16 = vunpack.i.h.bf16 %v11628_v29  ;;  %v6679_v2 = vunpack.i.l.bf16 %v11628_v29  ;;  %v4793_v28 = vld [vmem:[%s11384_s2 + $0xf38] sm:$0xff]  ;;  %v4611_v27 = vld [vmem:[%s11384_s2 + $0x9a0] sm:$0xff]  ;;  %v4612_v15 = vld [vmem:[%s11384_s2 + $0x9a8] sm:$0xff] }
 0x17a   :  { %6772 = vrot.lane.b32.xlu0 %v6771_v20, %s6816_s16  ;;  %v1697_v10 = vadd.f32 %v1683_v7, %v11566_v33  ;;  %v5950_v8 = vpack.c.bf16 %v4612_v15, %v4611_v27  ;;  %v4595_v0 = vld [vmem:[%s11384_s2 + $0x920] sm:$0xff]  ;;  %v4614_v7 = vld [vmem:[%s11384_s2 + $0x9b8] sm:$0xff]  ;;  %v4042_v27 = vld [vmem:[%s11382_s0 + $0x5d0] sm:$0xff] }
 0x17b   :  { %5933 = vmatpush3.bf16.msra.mxu0 %v5932_v37  ;;  %v4791_v37 = vld [vmem:[%s11384_s2 + $0xf28] sm:$0xff] }
 0x17c   :  { %6129 = vmatpush1.bf16.msra.mxu1 %v6128_v32  ;;  %5935 = vmatprep.subr.bf16.mxu0 %v5934_v48  ;;  %v4609_v32 = vld [vmem:[%s11384_s2 + $0x990] sm:$0xff]  ;;  %v4610_v48 = vld [vmem:[%s11384_s2 + $0x998] sm:$0xff]  ;;  %v6169_v20 = vpack.c.bf16 %v4791_v37, %v4790_v40  ;;  %v4596_v40 = vld [vmem:[%s11384_s2 + $0x928] sm:$0xff] }
 0x17d   :  { %6162 = vmatprep.subr.bf16.mxu1 %v11514_v51  ;;  %v4794_v37 = vld [vmem:[%s11384_s2 + $0xf40] sm:$0xff] }
 0x17f   :  { %5937 = vmatpush3.bf16.msra.mxu0 %v5936_v22  ;;  %2547 = vmatmul.mubr.f32.vlgmr.msra.gmra.mrb[0].mxu1 %v2350_v61  ;;  %v5946_v61 = vpack.c.bf16 %v4610_v48, %v4609_v32  ;;  %v4593_v22 = vld [vmem:[%s11384_s2 + $0x910] sm:$0xff]  ;;  %v4795_v32 = vld [vmem:[%s11384_s2 + $0xf48] sm:$0xff] }
 0x180   :  { %6164 = vmatpush1.bf16.msra.mxu1 %v6163_v54  ;;  %5939 = vmatprep.subr.bf16.mxu0 %v5938_v4  ;;  %v4594_v54 = vld [vmem:[%s11384_s2 + $0x918] sm:$0xff]  ;;  %v4792_v4 = vld [vmem:[%s11384_s2 + $0xf30] sm:$0xff] }
 0x181   :  { %6165 = vmatprep.subr.bf16.mxu1 %v11514_v51  ;;  %4810 = vmatprep.mubr.msk.f32.mxu1 %vm231_vm0, %v2648_v1  ;;  %v11630_v1 = vunpack.i.h.bf16 %v11629_v3  ;;  %v4613_v48 = vld [vmem:[%s11384_s2 + $0x9b0] sm:$0xff] }
 0x183   :  { %5941 = vmatpush3.bf16.msra.mxu0 %v5940_v17  ;;  %v1739_v53 = vsel %vm231_vm0, %v6680_v16, %v11630_v1  ;;  %v1716_v17 = vsel %vm231_vm0, %v6679_v2, %v11631_v35  ;;  %v5952_v16 = vpack.c.bf16 %v4596_v40, %v4595_v0  ;;  %v4597_v2 = vld [vmem:[%s11384_s2 + $0x930] sm:$0xff]  ;;  %v4640_v1 = vld [vmem:[%s11384_s2 + $0xa80] sm:$0xff]  ;;  %v4659_v0 = vld [vmem:[%s11384_s2 + $0xb18] sm:$0xff] }
 0x184   :  { %6167 = vmatpush1.bf16.msra.mxu1 %v6166_v11  ;;  %5943 = vmatprep.subr.bf16.mxu0 %v5942_v62  ;;  %v5948_v11 = vpack.c.bf16 %v4594_v54, %v4593_v22  ;;  %v6172_v62 = vpack.c.bf16 %v4793_v28, %v4792_v4  ;;  %v1746_v52 = vmax.f32 %v1697_v10, %v1739_v53  ;;  %v4796_v22 = vld [vmem:[%s11384_s2 + $0xf50] sm:$0xff]  ;;  %v4797_v54 = vld [vmem:[%s11384_s2 + $0xf58] sm:$0xff]  ;;  %v4656_v4 = vld [vmem:[%s11384_s2 + $0xb00] sm:$0xff] }
 0x185   :  { %6168 = vmatprep.subr.bf16.mxu1 %v11514_v51  ;;  %v1723_v29 = vmax.f32 %v1690_v41, %v1716_v17  ;;  %v4657_v28 = vld [vmem:[%s11384_s2 + $0xb08] sm:$0xff]  ;;  %v4043_v10 = vld [vmem:[%s11382_s0 + $0x5d8] sm:$0xff]  ;;  %v4056_v41 = vmul.f32 %v4042_v27, %v11580_v44  ;;  %v6178_v35 = vpack.c.bf16 %v4797_v54, %v4796_v22  ;;  %v4798_v44 = vld [vmem:[%s11384_s2 + $0xf60] sm:$0xff]  ;;  %v2052_v22 = vmax.f32 %v8430_v50, 0.0 }
 0x186   :  { %v4057_v53 = vmul.f32 %v4043_v10, %v6892_v18  ;;  %v5994_v17 = vpack.c.bf16 %v4657_v28, %v4656_v4  ;;  %v4658_v18 = vld [vmem:[%s11384_s2 + $0xb10] sm:$0xff]  ;;  %v4660_v54 = vld [vmem:[%s11384_s2 + $0xb20] sm:$0xff]  ;;  %v4661_v4 = vld [vmem:[%s11384_s2 + $0xb28] sm:$0xff] }
 0x187   :  { %5945 = vmatpush3.bf16.msra.mxu0 %v5944_v43  ;;  %v6175_v43 = vpack.c.bf16 %v4795_v32, %v4794_v37  ;;  %v1750_v15 = vmax.f32 %v1723_v29, %v1746_v52  ;;  %v4049_v37 = vld [vmem:[%s11382_s0 + $0x608] sm:$0xff]  ;;  %v4642_v52 = vld [vmem:[%s11384_s2 + $0xa90] sm:$0xff] }
 0x188   :  { %6170 = vmatpush1.bf16.msra.mxu1 %v6169_v20  ;;  %5947 = vmatprep.subr.bf16.mxu0 %v5946_v61  ;;  %v5954_v20 = vpack.c.bf16 %v4614_v7, %v4613_v48  ;;  %v4598_v61 = vld [vmem:[%s11384_s2 + $0x938] sm:$0xff]  ;;  %v4071_v40 = vadd.f32 %v4057_v53, %v6901_v21  ;;  %v4063_v48 = vmul.f32 %v4049_v37, %v11582_v14  ;;  %v2555_v50 = vld [vmem:[%s11382_s0 + $0x390] sm:$0xff]  ;;  %v4044_v53 = vld [vmem:[%s11382_s0 + $0x5e0] sm:$0xff]  ;;  %v6684_v37 = vunpack.i.l.bf16 %v8715_v30 }
 0x189   :  { %6171 = vmatprep.subr.bf16.mxu1 %v11514_v51  ;;  %v5956_v3 = vpack.c.bf16 %v4598_v61, %v4597_v2  ;;  %v1754_v32 = vmax.f32 %v1750_v15, 0.0  ;;  %v4048_v2 = vld [vmem:[%s11382_s0 + $0x600] sm:$0xff]  ;;  %v4801_v61 = vld [vmem:[%s11384_s2 + $0xf78] sm:$0xff] }
 0x18a   :  { %v4077_v28 = vadd.f32 %v4063_v48, %v6981_v59  ;;  %v4062_v10 = vmul.f32 %v4048_v2, %v11563_v25  ;;  %v4644_v59 = vld [vmem:[%s11384_s2 + $0xaa0] sm:$0xff]  ;;  %v4645_v25 = vld [vmem:[%s11384_s2 + $0xaa8] sm:$0xff] }
 0x18b   :  { %5949 = vmatpush3.bf16.msra.mxu0 %v5948_v11  ;;  %v4641_v11 = vld [vmem:[%s11384_s2 + $0xa88] sm:$0xff] }
 0x18c   :  { %6173 = vmatpush1.bf16.msra.mxu1 %v6172_v62  ;;  %5951 = vmatprep.subr.bf16.mxu0 %v5950_v8  ;;  %v4799_v62 = vld [vmem:[%s11384_s2 + $0xf68] sm:$0xff]  ;;  %v4070_v8 = vadd.f32 %v4056_v41, %v6910_v24  ;;  %v4050_v24 = vld [vmem:[%s11382_s0 + $0x610] sm:$0xff]  ;;  %v5996_v7 = vpack.c.bf16 %v4641_v11, %v4640_v1  ;;  %v9677_v11 = vadd.f32 %v4062_v10, %v11567_v38  ;;  %v4667_v10 = vld [vmem:[%s11384_s2 + $0xb58] sm:$0xff] }
 0x18d   :  { %6174 = vmatprep.subr.bf16.mxu1 %v11514_v51  ;;  %v4064_v21 = vmul.f32 %v4050_v24, %v6895_v19  ;;  %v6181_v14 = vpack.c.bf16 %v4799_v62, %v4798_v44  ;;  %v4800_v19 = vld [vmem:[%s11384_s2 + $0xf70] sm:$0xff]  ;;  %v2562_v41 = vld [vmem:[%s11382_s0 + $0x3c8] sm:$0xff]  ;;  %v4051_v44 = vld [vmem:[%s11382_s0 + $0x618] sm:$0xff]  ;;  %v4058_v38 = vmul.f32 %v4044_v53, %v11575_v39  ;;  %v6004_v24 = vpack.c.bf16 %v4645_v25, %v4644_v59 }
 0x18e   :  { %v6776_v29 = vpack.i.bf16 %v4071_v40, %v4070_v8  ;;  %v6184_v1 = vpack.c.bf16 %v4801_v61, %v4800_v19  ;;  %v4803_v62 = vld [vmem:[%s11384_s2 + $0xf88] sm:$0xff]  ;;  %v4662_v8 = vld [vmem:[%s11384_s2 + $0xb30] sm:$0xff]  ;;  %v1959_v61 = vld [vmem:[%s11382_s0 + $0x2a0] sm:$0xff]  ;;  %v6694_v25 = vunpack.i.l.bf16 %v9016_v13 }
 0x18f   :  { %5953 = vmatpush3.bf16.msra.mxu0 %v5952_v16  ;;  %v4041_v16 = vld [vmem:[%s11382_s0 + $0x5c8] sm:$0xff]  ;;  %v4078_v27 = vadd.f32 %v4064_v21, %v11556_v55  ;;  %v4072_v48 = vadd.f32 %v4058_v38, %v11581_v63  ;;  %v4804_v21 = vld [vmem:[%s11384_s2 + $0xf90] sm:$0xff]  ;;  %v4805_v63 = vld [vmem:[%s11384_s2 + $0xf98] sm:$0xff] }
 0x190   :  { %6176 = vmatpush1.bf16.msra.mxu1 %v6175_v43  ;;  %5955 = vmatprep.subr.bf16.mxu0 %v5954_v20  ;;  %v5998_v43 = vpack.c.bf16 %v4659_v0, %v4658_v18  ;;  %v4643_v20 = vld [vmem:[%s11384_s2 + $0xa98] sm:$0xff]  ;;  %v4055_v15 = vmul.f32 %v4041_v16, %v11555_v56  ;;  %v6002_v56 = vpack.c.bf16 %v4661_v4, %v4660_v54  ;;  %v4664_v16 = vld [vmem:[%s11384_s2 + $0xb40] sm:$0xff]  ;;  %v4665_v2 = vld [vmem:[%s11384_s2 + $0xb48] sm:$0xff] }
 0x191   :  { %6177 = vmatprep.subr.bf16.mxu1 %v11514_v51  ;;  %6777 = vrot.lane.b32.xlu1 %v6776_v29, %s6816_s16  ;;  %v6781_v55 = vpack.i.bf16 %v4078_v27, %v4077_v28  ;;  %v4065_v18 = vmul.f32 %v4051_v44, %v11559_v9  ;;  %v2569_v0 = vmul.f32 %v2555_v50, %v11574_v26  ;;  %v4646_v9 = vld [vmem:[%s11384_s2 + $0xab0] sm:$0xff]  ;;  %v4647_v29 = vld [vmem:[%s11384_s2 + $0xab8] sm:$0xff]  ;;  %v4648_v28 = vld [vmem:[%s11384_s2 + $0xac0] sm:$0xff] }
 0x192   :  { %v6010_v4 = vpack.c.bf16 %v4665_v2, %v4664_v16  ;;  %v4649_v27 = vld [vmem:[%s11384_s2 + $0xac8] sm:$0xff]  ;;  %v4806_v50 = vld [vmem:[%s11384_s2 + $0xfa0] sm:$0xff]  ;;  %v2257_v59 = vld [vmem:[%s11382_s0 + $0x318] sm:$0xff] }
 0x193   :  { %5957 = vmatpush3.bf16.msra.mxu0 %v5956_v3  ;;  %v6000_v3 = vpack.c.bf16 %v4643_v20, %v4642_v52  ;;  %6782 = vrot.lane.b32.xlu0 %v6781_v55, %s6816_s16  ;;  %v2609_v20 = vsel %vm231_vm0, %v6684_v37, %v8316_v57  ;;  %v6190_v57 = vpack.c.bf16 %v4805_v63, %v4804_v21  ;;  %v2264_v55 = vld [vmem:[%s11382_s0 + $0x350] sm:$0xff]  ;;  %v11634_v63 = vld [vmem:[#allocation11_spill] sm:$0xff] }
 0x194   :  { %6179 = vmatpush1.bf16.msra.mxu1 %v6178_v35  ;;  %5995 = vmatprep.subr.bf16.mxu0 %v5994_v17  ;;  %v4802_v35 = vld [vmem:[%s11384_s2 + $0xf80] sm:$0xff]  ;;  %v9674_v17 = vadd.f32 %v4055_v15, %v11561_v46  ;;  %v4663_v46 = vld [vmem:[%s11384_s2 + $0xb38] sm:$0xff]  ;;  %v4666_v15 = vld [vmem:[%s11384_s2 + $0xb50] sm:$0xff]  ;;  %v11635_v16 = vunpack.i.l.bf16 %v11634_v63 }
 0x195   :  { %6180 = vmatprep.subr.bf16.mxu1 %v11514_v51  ;;  %v6187_v39 = vpack.c.bf16 %v4803_v62, %v4802_v35  ;;  %v6006_v52 = vpack.c.bf16 %v4663_v46, %v4662_v8  ;;  %v6012_v35 = vpack.c.bf16 %v4649_v27, %v4648_v28  ;;  %v6014_v62 = vpack.c.bf16 %v4667_v10, %v4666_v15  ;;  %v4650_v8 = vld [vmem:[%s11384_s2 + $0xad0] sm:$0xff]  ;;  %v4651_v46 = vld [vmem:[%s11384_s2 + $0xad8] sm:$0xff] }
 0x196   :  { %1883 = vmatmul.mubr.f32.vlgmr.msra.gmra.mrb[12].mxu0 %v1754_v32  ;;  %v6786_v40 = vpack.i.bf16 %v9677_v11, %v9674_v17  ;;  %v2576_v32 = vmul.f32 %v2562_v41, %v11573_v45  ;;  %v4808_v38 = vld [vmem:[%s11384_s2 + $0xfb0] sm:$0xff]  ;;  %v2013_v2 = vsel %vm231_vm0, %v6694_v25, %v11635_v16  ;;  %v4671_v28 = vld [vmem:[%s11384_s2 + $0xb78] sm:$0xff]  ;;  %v11639_v10 = vunpack.i.l.bf16 %v11621_v42 }
 0x197   :  { %5997 = vmatpush3.bf16.msra.mxu0 %v5996_v7  ;;  %2179 = vmatprep.mubr.f32.mxu0 %v2052_v22  ;;  %v6685_v7 = vunpack.i.h.bf16 %v8715_v30  ;;  %v1966_v22 = vld [vmem:[%s11382_s0 + $0x2d8] sm:$0xff]  ;;  %v4711_v30 = vld [vmem:[%s11384_s2 + $0xcb0] sm:$0xff] }
 0x198   :  { %6182 = vmatpush1.bf16.msra.mxu1 %v6181_v14  ;;  %5999 = vmatprep.subr.bf16.mxu0 %v5998_v43  ;;  %v4079_v14 = vadd.f32 %v4065_v18, %v11564_v34  ;;  %v2583_v43 = vadd.f32 %v2569_v0, %v7183_v36  ;;  %v2590_v19 = vadd.f32 %v2576_v32, %v11583_v12  ;;  %v4668_v18 = vld [vmem:[%s11384_s2 + $0xb60] sm:$0xff]  ;;  %v4669_v0 = vld [vmem:[%s11384_s2 + $0xb68] sm:$0xff]  ;;  %v11637_v27 = vld [vmem:[#allocation23_spill] sm:$0xff] }
 0x199   :  { %6183 = vmatprep.subr.bf16.mxu1 %v11514_v51  ;;  %6787 = vrot.lane.b32.xlu1 %v6786_v40, %s6816_s16  ;;  %v6008_v34 = vpack.c.bf16 %v4647_v29, %v4646_v9  ;;  %v2632_v54 = vsel %vm231_vm0, %v6685_v7, %v8742_v5  ;;  %v4807_v5 = vld [vmem:[%s11384_s2 + $0xfa8] sm:$0xff] }
 0x19a   :  { %4090 = vrot.lane.b32.xlu0 %v4072_v48, %s6816_s16  ;;  %v2616_v41 = vmax.f32 %v2583_v43, %v2609_v20  ;;  %v2639_v53 = vmax.f32 %v2590_v19, %v2632_v54  ;;  %v6193_v44 = vpack.c.bf16 %v4807_v5, %v4806_v50  ;;  %v11632_v40 = vld [vmem:[#allocation21_spill] sm:$0xff]  ;;  %v6016_v20 = vpack.c.bf16 %v4651_v46, %v4650_v8  ;;  %v4843_v54 = vld [vmem:[%s11384_s2 + $0x10c0] sm:$0xff]  ;;  %v4846_v8 = vld [vmem:[%s11384_s2 + $0x10d8] sm:$0xff] }
 0x19b   :  { %6001 = vmatpush3.bf16.msra.mxu0 %v6000_v3  ;;  %v1980_v3 = vmul.f32 %v1966_v22, %v11558_v60  ;;  %v2271_v32 = vmul.f32 %v2257_v59, %v11632_v40  ;;  %v4652_v22 = vld [vmem:[%s11384_s2 + $0xae0] sm:$0xff] }
 0x19c   :  { %6185 = vmatpush1.bf16.msra.mxu1 %v6184_v1  ;;  %6003 = vmatprep.subr.bf16.mxu0 %v6002_v56  ;;  %v1973_v1 = vmul.f32 %v1959_v61, %v11557_v58  ;;  %v6695_v56 = vunpack.i.h.bf16 %v9016_v13  ;;  %v4809_v13 = vld [vmem:[%s11384_s2 + $0xfb8] sm:$0xff]  ;;  %v2643_v21 = vmax.f32 %v2616_v41, %v2639_v53  ;;  %v6018_v61 = vpack.c.bf16 %v4669_v0, %v4668_v18  ;;  %v11638_v5 = vld [vmem:[#allocation24_spill] sm:$0xff] }
 0x19d   :  { %6186 = vmatprep.subr.bf16.mxu1 %v11514_v51  ;;  %4113 = vrot.lane.b32.xlu1 %v4079_v14, %s6816_s16  ;;  %v1994_v9 = vadd.f32 %v1980_v3, %v11566_v33  ;;  %v11636_v14 = vunpack.i.h.bf16 %v11634_v63  ;;  %v6196_v19 = vpack.c.bf16 %v4809_v13, %v4808_v38  ;;  %v2285_v50 = vadd.f32 %v2271_v32, %v11637_v27  ;;  %v4713_v46 = vld [vmem:[%s11384_s2 + $0xcc0] sm:$0xff]  ;;  %v4714_v38 = vld [vmem:[%s11384_s2 + $0xcc8] sm:$0xff] }
 0x19e   :  { %v1987_v29 = vadd.f32 %v1973_v1, %v11565_v6  ;;  %v11640_v3 = vunpack.i.h.bf16 %v11621_v42  ;;  %v2647_v53 = vmax.f32 %v2643_v21, 0.0  ;;  %v4655_v42 = vld [vmem:[%s11384_s2 + $0xaf8] sm:$0xff]  ;;  %v2945_v0 = vmax.f32 %v9150_v49, 0.0  ;;  %v4697_v21 = vld [vmem:[%s11384_s2 + $0xc40] sm:$0xff]  ;;  %v4698_v63 = vld [vmem:[%s11384_s2 + $0xc48] sm:$0xff] }
 0x19f   :  { %6005 = vmatpush3.bf16.msra.mxu0 %v6004_v24  ;;  %v11633_v24 = vld [vmem:[#allocation22_spill] sm:$0xff]  ;;  %v2036_v43 = vsel %vm231_vm0, %v6695_v56, %v11636_v14  ;;  %v4847_v49 = vld [vmem:[%s11384_s2 + $0x10e0] sm:$0xff] }
 0x1a0   :  { %6188 = vmatpush1.bf16.msra.mxu1 %v6187_v39  ;;  %6007 = vmatprep.subr.bf16.mxu0 %v6006_v52  ;;  %v2278_v48 = vmul.f32 %v2264_v55, %v11633_v24  ;;  %v6700_v39 = vunpack.i.h.bf16 %v9068_v23  ;;  %v6699_v52 = vunpack.i.l.bf16 %v9068_v23  ;;  %v2020_v59 = vmax.f32 %v1987_v29, %v2013_v2  ;;  %v4848_v2 = vld [vmem:[%s11384_s2 + $0x10e8] sm:$0xff]  ;;  %v4715_v14 = vld [vmem:[%s11384_s2 + $0xcd0] sm:$0xff]  ;;  %v4709_v23 = vld [vmem:[%s11384_s2 + $0xca0] sm:$0xff] }
 0x1a1   :  { %6189 = vmatprep.subr.bf16.mxu1 %v11514_v51  ;;  %v2043_v55 = vmax.f32 %v1994_v9, %v2036_v43  ;;  %v6062_v29 = vpack.c.bf16 %v4714_v38, %v4713_v46  ;;  %v4716_v43 = vld [vmem:[%s11384_s2 + $0xcd8] sm:$0xff] }
 0x1a2   :  { %v2292_v15 = vadd.f32 %v2278_v48, %v11638_v5  ;;  %v2311_v41 = vsel %vm231_vm0, %v6699_v52, %v11639_v10  ;;  %v2334_v1 = vsel %vm231_vm0, %v6700_v39, %v11640_v3  ;;  %v4353_v10 = vld [vmem:[%s11385_s3] ss:$0 sm:$0xff] }
 0x1a3   :  { %6009 = vmatpush3.bf16.msra.mxu0 %v6008_v34  ;;  %v4653_v34 = vld [vmem:[%s11384_s2 + $0xae8] sm:$0xff]  ;;  %v2318_v13 = vmax.f32 %v2285_v50, %v2311_v41  ;;  %v2047_v32 = vmax.f32 %v2020_v59, %v2043_v55  ;;  %v4717_v50 = vld [vmem:[%s11384_s2 + $0xce0] sm:$0xff] }
 0x1a4   :  { %6191 = vmatpush1.bf16.msra.mxu1 %v6190_v57  ;;  %6011 = vmatprep.subr.bf16.mxu0 %v6010_v4  ;;  %v4844_v57 = vld [vmem:[%s11384_s2 + $0x10c8] sm:$0xff]  ;;  %v4670_v4 = vld [vmem:[%s11384_s2 + $0xb70] sm:$0xff]  ;;  %v6020_v56 = vpack.c.bf16 %v4653_v34, %v4652_v22  ;;  %v2341_v18 = vmax.f32 %v2292_v15, %v2334_v1  ;;  %v6066_v22 = vpack.c.bf16 %v4716_v43, %v4715_v14  ;;  %v4701_v59 = vld [vmem:[%s11384_s2 + $0xc60] sm:$0xff] }
 0x1a5   :  { %6192 = vmatprep.subr.bf16.mxu1 %v11514_v51  ;;  %v6231_v25 = vpack.c.bf16 %v4844_v57, %v4843_v54  ;;  %v4699_v34 = vld [vmem:[%s11384_s2 + $0xc50] sm:$0xff]  ;;  %v4700_v54 = vld [vmem:[%s11384_s2 + $0xc58] sm:$0xff]  ;;  %v4718_v15 = vld [vmem:[%s11384_s2 + $0xce8] sm:$0xff] }
 0x1a6   :  { %v2345_v16 = vmax.f32 %v2318_v13, %v2341_v18  ;;  %v4849_v57 = vld [vmem:[%s11384_s2 + $0x10f0] sm:$0xff]  ;;  %v6068_v41 = vpack.c.bf16 %v4700_v54, %v4699_v34  ;;  %v6070_v1 = vpack.c.bf16 %v4718_v15, %v4717_v50  ;;  %v4702_v55 = vld [vmem:[%s11384_s2 + $0xc68] sm:$0xff]  ;;  %v4724_v54 = vld [vmem:[%s11384_s2 + $0xd18] sm:$0xff] }
 0x1a7   :  { %6013 = vmatpush3.bf16.msra.mxu0 %v6012_v35  ;;  %v6022_v35 = vpack.c.bf16 %v4671_v28, %v4670_v4  ;;  %v4850_v28 = vld [vmem:[%s11384_s2 + $0x10f8] sm:$0xff]  ;;  %v6072_v38 = vpack.c.bf16 %v4702_v55, %v4701_v59  ;;  %v4723_v34 = vld [vmem:[%s11384_s2 + $0xd10] sm:$0xff]  ;;  %v2561_v50 = vld [vmem:[%s11382_s0 + $0x3c0] sm:$0xff] }
 0x1a8   :  { %6194 = vmatpush1.bf16.msra.mxu1 %v6193_v44  ;;  %6015 = vmatprep.subr.bf16.mxu0 %v6014_v62  ;;  %v4654_v44 = vld [vmem:[%s11384_s2 + $0xaf0] sm:$0xff]  ;;  %v2349_v4 = vmax.f32 %v2345_v16, 0.0  ;;  %v6240_v3 = vpack.c.bf16 %v4850_v28, %v4849_v57  ;;  %v2263_v16 = vld [vmem:[%s11382_s0 + $0x348] sm:$0xff]  ;;  %v6082_v55 = vpack.c.bf16 %v4724_v54, %v4723_v34 }
 0x1a9   :  { %6195 = vmatprep.subr.bf16.mxu1 %v11514_v51  ;;  %v4845_v62 = vld [vmem:[%s11384_s2 + $0x10d0] sm:$0xff]  ;;  %v6024_v48 = vpack.c.bf16 %v4655_v42, %v4654_v44  ;;  %v4720_v44 = vld [vmem:[%s11384_s2 + $0xcf8] sm:$0xff]  ;;  %v2277_v57 = vmul.f32 %v2263_v16, %v11558_v60  ;;  %v2554_v28 = vld [vmem:[%s11382_s0 + $0x388] sm:$0xff] }
 0x1aa   :  { %v6234_v9 = vpack.c.bf16 %v4846_v8, %v4845_v62  ;;  %v11641_v62 = vld [vmem:[#allocation27_spill] sm:$0xff]  ;;  %v11642_v15 = vld [vmem:[#allocation26_spill] sm:$0xff]  ;;  %v4860_v16 = vld [vmem:[%s11384_s2 + $0x1148] sm:$0xff] }
 0x1ab   :  { %6017 = vmatpush3.bf16.msra.mxu0 %v6016_v20  ;;  %v2051_v20 = vmax.f32 %v2047_v32, 0.0  ;;  %v6538_v8 = vadd.f32 %v11641_v62, %v4353_v10  ;;  %v4704_v32 = vld [vmem:[%s11384_s2 + $0xc78] sm:$0xff]  ;;  %v6705_v10 = vunpack.i.h.bf16 %v11642_v15  ;;  %v2568_v62 = vmul.f32 %v2554_v28, %v11632_v40  ;;  %v11643_v54 = vld [vmem:[#allocation5_spill] sm:$0xff] }
 0x1ac   :  { %6197 = vmatpush1.bf16.msra.mxu1 %v6196_v19  ;;  %6019 = vmatprep.subr.bf16.mxu0 %v6018_v61  ;;  %v6064_v19 = vpack.c.bf16 %v4698_v63, %v4697_v21  ;;  %v6237_v61 = vpack.c.bf16 %v4848_v2, %v4847_v49  ;;  %v4722_v21 = vld [vmem:[%s11384_s2 + $0xd08] sm:$0xff]  ;;  %v2256_v49 = vld [vmem:[%s11382_s0 + $0x310] sm:$0xff] }
 0x1ad   :  { %6230 = vmatprep.subr.bf16.mxu1 %v11514_v51 }
 0x1af   :  { %6021 = vmatpush3.bf16.msra.mxu0 %v6020_v56  ;;  %2844 = vmatmul.mubr.f32.vlgmr.msra.gmra.mrb[0].mxu1 %v2647_v53  ;;  %v4851_v53 = vld [vmem:[%s11384_s2 + $0x1100] sm:$0xff] }
 0x1b0   :  { %6232 = vmatpush1.bf16.msra.mxu1 %v6231_v25  ;;  %6023 = vmatprep.subr.bf16.mxu0 %v6022_v35  ;;  %v4852_v25 = vld [vmem:[%s11384_s2 + $0x1108] sm:$0xff]  ;;  %v4719_v35 = vld [vmem:[%s11384_s2 + $0xcf0] sm:$0xff] }
 0x1b1   :  { %6233 = vmatprep.subr.bf16.mxu1 %v11514_v51  ;;  %4867 = vmatprep.mubr.msk.f32.mxu1 %vm231_vm0, %v2945_v0  ;;  %v6243_v13 = vpack.c.bf16 %v4852_v25, %v4851_v53  ;;  %v6074_v18 = vpack.c.bf16 %v4720_v44, %v4719_v35  ;;  %v4703_v0 = vld [vmem:[%s11384_s2 + $0xc70] sm:$0xff]  ;;  %v4858_v35 = vld [vmem:[%s11384_s2 + $0x1138] sm:$0xff]  ;;  %v4725_v44 = vld [vmem:[%s11384_s2 + $0xd20] sm:$0xff] }
 0x1b2   :  { %v6076_v2 = vpack.c.bf16 %v4704_v32, %v4703_v0  ;;  %v4707_v53 = vld [vmem:[%s11384_s2 + $0xc90] sm:$0xff]  ;;  %v2333_v32 = vsel %vm231_vm0, %v6705_v10, %v6700_v39  ;;  %v4710_v39 = vld [vmem:[%s11384_s2 + $0xca8] sm:$0xff] }
 0x1b3   :  { %6025 = vmatpush3.bf16.msra.mxu0 %v6024_v48  ;;  %v4853_v48 = vld [vmem:[%s11384_s2 + $0x1110] sm:$0xff] }
 0x1b4   :  { %6235 = vmatpush1.bf16.msra.mxu1 %v6234_v9  ;;  %6063 = vmatprep.subr.bf16.mxu0 %v6062_v29  ;;  %v4854_v9 = vld [vmem:[%s11384_s2 + $0x1118] sm:$0xff]  ;;  %v4721_v29 = vld [vmem:[%s11384_s2 + $0xd00] sm:$0xff]  ;;  %v4857_v25 = vld [vmem:[%s11384_s2 + $0x1130] sm:$0xff] }
 0x1b5   :  { %6236 = vmatprep.subr.bf16.mxu1 %v11514_v51  ;;  %v6246_v14 = vpack.c.bf16 %v4854_v9, %v4853_v48  ;;  %v6078_v43 = vpack.c.bf16 %v4722_v21, %v4721_v29  ;;  %v2852_v48 = vld [vmem:[%s11382_s0 + $0x400] sm:$0xff]  ;;  %v2859_v9 = vld [vmem:[%s11382_s0 + $0x438] sm:$0xff]  ;;  %v6252_v21 = vpack.c.bf16 %v4858_v35, %v4857_v25  ;;  %v10065_v35 = vpop.permute.xlu1 %6717 }
 0x1b6   :  { %2180 = vmatmul.mubr.f32.vlgmr.msra.gmra.mrb[14].mxu0 %v2051_v20  ;;  %v4705_v20 = vld [vmem:[%s11384_s2 + $0xc80] sm:$0xff]  ;;  %v2866_v28 = vmul.f32 %v2852_v48, %v11574_v26 }
 0x1b7   :  { %6065 = vmatpush3.bf16.msra.mxu0 %v6064_v19  ;;  %2476 = vmatprep.mubr.f32.mxu0 %v2349_v4  ;;  %v4706_v19 = vld [vmem:[%s11384_s2 + $0xc88] sm:$0xff]  ;;  %v2270_v4 = vmul.f32 %v2256_v49, %v11557_v58 }
 0x1b8   :  { %6238 = vmatpush1.bf16.msra.mxu1 %v6237_v61  ;;  %6067 = vmatprep.subr.bf16.mxu0 %v6066_v22  ;;  %v4855_v61 = vld [vmem:[%s11384_s2 + $0x1120] sm:$0xff]  ;;  %v4856_v22 = vld [vmem:[%s11384_s2 + $0x1128] sm:$0xff] }
 0x1b9   :  { %v5163_v56 = vpop.f32.mrb[4].mxu0  ;;  %6239 = vmatprep.subr.bf16.mxu1 %v11514_v51  ;;  %v6249_v59 = vpack.c.bf16 %v4856_v22, %v4855_v61 }
 0x1ba   :  { %v5164_v42 = vpop.f32.mrb[5].mxu0 }
 0x1bb   :  { %v5165_v46 = vadd.f32 %v5164_v42, %v5163_v56  ;;  %6069 = vmatpush3.bf16.msra.mxu0 %v6068_v41  ;;  %v6704_v41 = vunpack.i.l.bf16 %v11642_v15  ;;  %v4708_v56 = vld [vmem:[%s11384_s2 + $0xc98] sm:$0xff]  ;;  %v4726_v42 = vld [vmem:[%s11384_s2 + $0xd28] sm:$0xff]  ;;  %v6710_v15 = vunpack.i.h.bf16 %v11643_v54 }
 0x1bc   :  { %6241 = vmatpush1.bf16.msra.mxu1 %v6240_v3  ;;  %6071 = vmatprep.subr.bf16.mxu0 %v6070_v1  ;;  %v9970_v3 = vpop.permute.xlu0 %6712  ;;  %v6080_v1 = vpack.c.bf16 %v4706_v19, %v4705_v20  ;;  %v6084_v29 = vpack.c.bf16 %v4708_v56, %v4707_v53  ;;  %v6086_v49 = vpack.c.bf16 %v4726_v42, %v4725_v44  ;;  %v4771_v53 = vld [vmem:[%s11384_s2 + $0xe88] sm:$0xff]  ;;  %v11644_v42 = vld [vmem:[#allocation31_spill] sm:$0xff] }
 0x1bd   :  { %6242 = vmatprep.subr.bf16.mxu1 %v11514_v51  ;;  %v9933_v63 = vadd.f32 %v6538_v8, %v5165_v46  ;;  %v2575_v8 = vmul.f32 %v2561_v50, %v11633_v24  ;;  %v2291_v46 = vadd.f32 %v2277_v57, %v11566_v33  ;;  %v2310_v0 = vsel %vm231_vm0, %v6704_v41, %v6699_v52  ;;  %v4859_v52 = vld [vmem:[%s11384_s2 + $0x1140] sm:$0xff]  ;;  %v4861_v41 = vld [vmem:[%s11384_s2 + $0x1150] sm:$0xff] }
 0x1be   :  { %v6709_v57 = vunpack.i.l.bf16 %v11643_v54  ;;  %v6088_v50 = vpack.c.bf16 %v4710_v39, %v4709_v23  ;;  %v6255_v10 = vpack.c.bf16 %v4860_v16, %v4859_v52  ;;  %v4864_v39 = vld [vmem:[%s11384_s2 + $0x1168] sm:$0xff]  ;;  %v4772_v52 = vld [vmem:[%s11384_s2 + $0xe90] sm:$0xff]  ;;  %v4773_v16 = vld [vmem:[%s11384_s2 + $0xe98] sm:$0xff] }
 0x1bf   :  { %6073 = vmatpush3.bf16.msra.mxu0 %v6072_v38  ;;  %v2284_v38 = vadd.f32 %v2270_v4, %v11565_v6  ;;  %v2589_v20 = vadd.f32 %v2575_v8, %v11638_v5  ;;  %v2340_v61 = vmax.f32 %v2291_v46, %v2333_v32  ;;  %v2873_v4 = vmul.f32 %v2859_v9, %v11573_v45  ;;  %v4769_v54 = vld [vmem:[%s11384_s2 + $0xe78] sm:$0xff] }
 0x1c0   :  { %6244 = vmatpush1.bf16.msra.mxu1 %v6243_v13  ;;  %6075 = vmatprep.subr.bf16.mxu0 %v6074_v18  ;;  %v6715_v13 = vunpack.i.h.bf16 %v9970_v3  ;;  %v6714_v18 = vunpack.i.l.bf16 %v9970_v3  ;;  %v2880_v46 = vadd.f32 %v2866_v28, %v7183_v36  ;;  %v4757_v28 = vld [vmem:[%s11384_s2 + $0xe18] sm:$0xff]  ;;  %v4908_v3 = vld [vmem:[%s11384_s2 + $0x12c0] sm:$0xff] }
 0x1c1   :  { %6245 = vmatprep.subr.bf16.mxu1 %v11514_v51  ;;  %v2317_v19 = vmax.f32 %v2284_v38, %v2310_v0  ;;  %v2887_v8 = vadd.f32 %v2873_v4, %v11583_v12  ;;  %v11645_v0 = vld [vmem:[#allocation13_spill] sm:$0xff]  ;;  %v4756_v4 = vld [vmem:[%s11384_s2 + $0xe10] sm:$0xff] }
 0x1c2   :  { %v2608_v22 = vsel %vm231_vm0, %v6714_v18, %v6684_v37  ;;  %v2631_v34 = vsel %vm231_vm0, %v6715_v13, %v6685_v7  ;;  %v4712_v7 = vld [vmem:[%s11384_s2 + $0xcb8] sm:$0xff]  ;;  %v2929_v32 = vsel %vm231_vm0, %v6710_v15, %v11645_v0  ;;  %v4776_v0 = vld [vmem:[%s11384_s2 + $0xeb0] sm:$0xff] }
 0x1c3   :  { %6077 = vmatpush3.bf16.msra.mxu0 %v6076_v2  ;;  %v4727_v2 = vld [vmem:[%s11384_s2 + $0xd30] sm:$0xff]  ;;  %v2638_v25 = vmax.f32 %v2589_v20, %v2631_v34  ;;  %v2344_v44 = vmax.f32 %v2317_v19, %v2340_v61  ;;  %v6092_v38 = vpack.c.bf16 %v4712_v7, %v4711_v30  ;;  %v2936_v20 = vmax.f32 %v2887_v8, %v2929_v32  ;;  %v10098_v61 = vpop.permute.xlu1 %3199  ;;  %v4866_v7 = vld [vmem:[%s11384_s2 + $0x1178] sm:$0xff]  ;;  %v4759_v8 = vld [vmem:[%s11384_s2 + $0xe28] sm:$0xff] }
 0x1c4   :  { %6247 = vmatpush1.bf16.msra.mxu1 %v6246_v14  ;;  %6079 = vmatprep.subr.bf16.mxu0 %v6078_v43  ;;  %v4728_v14 = vld [vmem:[%s11384_s2 + $0xd38] sm:$0xff]  ;;  %v2582_v43 = vadd.f32 %v2568_v62, %v11637_v27  ;;  %v2906_v62 = vsel %vm231_vm0, %v6709_v57, %v11644_v42  ;;  %v6134_v34 = vpack.c.bf16 %v4773_v16, %v4772_v52  ;;  %v4902_v52 = vld [vmem:[%s11384_s2 + $0x1290] sm:$0xff] }
 0x1c5   :  { %6248 = vmatprep.subr.bf16.mxu1 %v11514_v51  ;;  %v6090_v37 = vpack.c.bf16 %v4728_v14, %v4727_v2  ;;  %v2348_v2 = vmax.f32 %v2344_v44, 0.0  ;;  %v4777_v32 = vld [vmem:[%s11384_s2 + $0xeb8] sm:$0xff] }
 0x1c6   :  { %v2615_v56 = vmax.f32 %v2582_v43, %v2608_v22  ;;  %v2913_v43 = vmax.f32 %v2880_v46, %v2906_v62  ;;  %v4758_v62 = vld [vmem:[%s11384_s2 + $0xe20] sm:$0xff]  ;;  %v4903_v16 = vld [vmem:[%s11384_s2 + $0x1298] sm:$0xff] }
 0x1c7   :  { %6081 = vmatpush3.bf16.msra.mxu0 %v6080_v1  ;;  %v10053_v1 = vpop.permute.xlu0 %6722  ;;  %v4900_v46 = vld [vmem:[%s11384_s2 + $0x1280] sm:$0xff] }
 0x1c8   :  { %6250 = vmatpush1.bf16.msra.mxu1 %v6249_v59  ;;  %6083 = vmatprep.subr.bf16.mxu0 %v6082_v55  ;;  %v4862_v59 = vld [vmem:[%s11384_s2 + $0x1158] sm:$0xff]  ;;  %v4770_v55 = vld [vmem:[%s11384_s2 + $0xe80] sm:$0xff]  ;;  %v2642_v23 = vmax.f32 %v2615_v56, %v2638_v25  ;;  %v2940_v56 = vmax.f32 %v2913_v43, %v2936_v20  ;;  %v6136_v25 = vpack.c.bf16 %v4757_v28, %v4756_v4  ;;  %v4779_v43 = vld [vmem:[%s11384_s2 + $0xec8] sm:$0xff] }
 0x1c9   :  { %6251 = vmatprep.subr.bf16.mxu1 %v11514_v51  ;;  %v6258_v48 = vpack.c.bf16 %v4862_v59, %v4861_v41  ;;  %v6130_v9 = vpack.c.bf16 %v4771_v53, %v4770_v55  ;;  %v4774_v41 = vld [vmem:[%s11384_s2 + $0xea0] sm:$0xff]  ;;  %v4775_v59 = vld [vmem:[%s11384_s2 + $0xea8] sm:$0xff]  ;;  %v6302_v4 = vpack.c.bf16 %v4903_v16, %v4902_v52 }
 0x1ca   :  { %v2646_v30 = vmax.f32 %v2642_v23, 0.0  ;;  %v11647_v55 = vld [vmem:[#allocation25_spill] sm:$0xff]  ;;  %v6138_v42 = vpack.c.bf16 %v4775_v59, %v4774_v41  ;;  %v4760_v23 = vld [vmem:[%s11384_s2 + $0xe30] sm:$0xff]  ;;  %v4781_v59 = vld [vmem:[%s11384_s2 + $0xed8] sm:$0xff] }
 0x1cb   :  { %6085 = vmatpush3.bf16.msra.mxu0 %v6084_v29  ;;  %v4754_v29 = vld [vmem:[%s11384_s2 + $0xe00] sm:$0xff]  ;;  %v10096_v14 = vpop.permute.xlu0 %3222  ;;  %v4780_v41 = vld [vmem:[%s11384_s2 + $0xed0] sm:$0xff] }
 0x1cc   :  { %6253 = vmatpush1.bf16.msra.mxu1 %v6252_v21  ;;  %6087 = vmatprep.subr.bf16.mxu0 %v6086_v49  ;;  %v4755_v21 = vld [vmem:[%s11384_s2 + $0xe08] sm:$0xff]  ;;  %v4863_v49 = vld [vmem:[%s11384_s2 + $0x1160] sm:$0xff]  ;;  %v3234_v53 = vmax.f32 %v11647_v55, %v10096_v14  ;;  %v6720_v55 = vunpack.i.h.bf16 %v10065_v35 }
 0x1cd   :  { %6254 = vmatprep.subr.bf16.mxu1 %v11514_v51  ;;  %v6132_v19 = vpack.c.bf16 %v4755_v21, %v4754_v29  ;;  %v6261_v22 = vpack.c.bf16 %v4864_v39, %v4863_v49  ;;  %v6140_v29 = vpack.c.bf16 %v4759_v8, %v4758_v62  ;;  %v6142_v49 = vpack.c.bf16 %v4777_v32, %v4776_v0  ;;  %v4761_v39 = vld [vmem:[%s11384_s2 + $0xe38] sm:$0xff] }
 0x1ce   :  { %v4765_v0 = vld [vmem:[%s11384_s2 + $0xe58] sm:$0xff] }
 0x1cf   :  { %6089 = vmatpush3.bf16.msra.mxu0 %v6088_v50  ;;  %v4865_v50 = vld [vmem:[%s11384_s2 + $0x1170] sm:$0xff] }
 0x1d0   :  { %6256 = vmatpush1.bf16.msra.mxu1 %v6255_v10  ;;  %6091 = vmatprep.subr.bf16.mxu0 %v6090_v37  ;;  %v11646_v10 = vld [vmem:[#allocation7_spill] sm:$0xff]  ;;  %v6264_v44 = vpack.c.bf16 %v4866_v7, %v4865_v50  ;;  %v4762_v50 = vld [vmem:[%s11384_s2 + $0xe40] sm:$0xff]  ;;  %v4905_v7 = vld [vmem:[%s11384_s2 + $0x12a8] sm:$0xff] }
 0x1d1   :  { %6257 = vmatprep.subr.bf16.mxu1 %v11514_v51  ;;  %v3211_v37 = vmax.f32 %v11646_v10, %v10098_v61  ;;  %v4763_v10 = vld [vmem:[%s11384_s2 + $0xe48] sm:$0xff] }
 0x1d2   :  { %v6148_v62 = vpack.c.bf16 %v4763_v10, %v4762_v50  ;;  %v4785_v50 = vld [vmem:[%s11384_s2 + $0xef8] sm:$0xff] }
 0x1d3   :  { %6093 = vmatpush3.bf16.msra.mxu0 %v6092_v38  ;;  %v4901_v38 = vld [vmem:[%s11384_s2 + $0x1288] sm:$0xff] }
 0x1d4   :  { %6259 = vmatpush1.bf16.msra.mxu1 %v6258_v48  ;;  %6131 = vmatprep.subr.bf16.mxu0 %v6130_v9  ;;  %v3238_v48 = vmax.f32 %v3211_v37, %v3234_v53  ;;  %v2944_v9 = vmax.f32 %v2940_v56, 0.0  ;;  %v6299_v21 = vpack.c.bf16 %v4901_v38, %v4900_v46  ;;  %v4904_v37 = vld [vmem:[%s11384_s2 + $0x12a0] sm:$0xff]  ;;  %v2851_v56 = vld [vmem:[%s11382_s0 + $0x3f8] sm:$0xff]  ;;  %v6150_v46 = vpack.c.bf16 %v4781_v59, %v4780_v41  ;;  %v4764_v38 = vld [vmem:[%s11384_s2 + $0xe50] sm:$0xff] }
 0x1d5   :  { %6260 = vmatprep.subr.bf16.mxu1 %v11514_v51  ;;  %v6305_v8 = vpack.c.bf16 %v4905_v7, %v4904_v37 }
 0x1d6   :  { %2477 = vmatmul.mubr.f32.vlgmr.msra.gmra.mrb[16].mxu0 %v2348_v2  ;;  %v4778_v2 = vld [vmem:[%s11384_s2 + $0xec0] sm:$0xff]  ;;  %v3242_v20 = vmax.f32 %v3238_v48, 0.0  ;;  %v4907_v48 = vld [vmem:[%s11384_s2 + $0x12b8] sm:$0xff] }
 0x1d7   :  { %6133 = vmatpush3.bf16.msra.mxu0 %v6132_v19  ;;  %2773 = vmatprep.mubr.f32.mxu0 %v2646_v30  ;;  %v2560_v19 = vld [vmem:[%s11382_s0 + $0x3b8] sm:$0xff]  ;;  %v6146_v28 = vpack.c.bf16 %v4779_v43, %v4778_v2  ;;  %v6152_v43 = vpack.c.bf16 %v4765_v0, %v4764_v38 }
 0x1d8   :  { %6262 = vmatpush1.bf16.msra.mxu1 %v6261_v22  ;;  %6135 = vmatprep.subr.bf16.mxu0 %v6134_v34  ;;  %v2553_v22 = vld [vmem:[%s11382_s0 + $0x380] sm:$0xff]  ;;  %v6144_v34 = vpack.c.bf16 %v4761_v39, %v4760_v23  ;;  %v2574_v30 = vmul.f32 %v2560_v19, %v11558_v60  ;;  %v2630_v23 = vsel %vm231_vm0, %v6720_v55, %v6715_v13 }
 0x1d9   :  { %6263 = vmatprep.subr.bf16.mxu1 %v11514_v51  ;;  %v2567_v53 = vmul.f32 %v2553_v22, %v11557_v58  ;;  %v4766_v13 = vld [vmem:[%s11384_s2 + $0xe60] sm:$0xff]  ;;  %v4767_v22 = vld [vmem:[%s11384_s2 + $0xe68] sm:$0xff] }
 0x1da   :  { %v2588_v32 = vadd.f32 %v2574_v30, %v11566_v33 }
 0x1db   :  { %6137 = vmatpush3.bf16.msra.mxu0 %v6136_v25  ;;  %v2858_v25 = vld [vmem:[%s11382_s0 + $0x430] sm:$0xff]  ;;  %v2581_v39 = vadd.f32 %v2567_v53, %v11565_v6  ;;  %v6156_v53 = vpack.c.bf16 %v4767_v22, %v4766_v13  ;;  %v4814_v22 = vld [vmem:[%s11384_s2 + $0xfd8] sm:$0xff] }
 0x1dc   :  { %6265 = vmatpush1.bf16.msra.mxu1 %v6264_v44  ;;  %6139 = vmatprep.subr.bf16.mxu0 %v6138_v42  ;;  %v6719_v44 = vunpack.i.l.bf16 %v10065_v35  ;;  %v10197_v42 = vpop.permute.xlu1 %6727  ;;  %v4906_v35 = vld [vmem:[%s11384_s2 + $0x12b0] sm:$0xff] }
 0x1dd   :  { %6298 = vmatprep.subr.bf16.mxu1 %v11514_v51  ;;  %v6730_v52 = vunpack.i.h.bf16 %v10197_v42  ;;  %v6729_v16 = vunpack.i.l.bf16 %v10197_v42  ;;  %v4813_v13 = vld [vmem:[%s11384_s2 + $0xfd0] sm:$0xff]  ;;  %v4958_v42 = vld [vmem:[%s11384_s2 + $0x1448] sm:$0xff] }
 0x1de   :  { %v2607_v2 = vsel %vm231_vm0, %v6719_v44, %v6714_v18  ;;  %v4827_v44 = vld [vmem:[%s11384_s2 + $0x1040] sm:$0xff] }
 0x1df   :  { %6141 = vmatpush3.bf16.msra.mxu0 %v6140_v29  ;;  %3141 = vmatmul.mubr.f32.vlgmr.msra.gmra.mrb[0].mxu1 %v2944_v9  ;;  %v4782_v9 = vld [vmem:[%s11384_s2 + $0xee0] sm:$0xff]  ;;  %v4783_v29 = vld [vmem:[%s11384_s2 + $0xee8] sm:$0xff]  ;;  %v2614_v30 = vmax.f32 %v2581_v39, %v2607_v2  ;;  %v2905_v7 = vsel %vm231_vm0, %v6729_v16, %v6709_v57  ;;  %v2928_v41 = vsel %vm231_vm0, %v6730_v52, %v6710_v15  ;;  %v4768_v57 = vld [vmem:[%s11384_s2 + $0xe70] sm:$0xff] }
 0x1e0   :  { %6300 = vmatpush1.bf16.msra.mxu1 %v6299_v21  ;;  %6143 = vmatprep.subr.bf16.mxu0 %v6142_v49  ;;  %v2865_v21 = vmul.f32 %v2851_v56, %v11632_v40  ;;  %v2872_v49 = vmul.f32 %v2858_v25, %v11633_v24  ;;  %v6154_v19 = vpack.c.bf16 %v4783_v29, %v4782_v9  ;;  %v4911_v15 = vld [vmem:[%s11384_s2 + $0x12d8] sm:$0xff]  ;;  %v4812_v9 = vld [vmem:[%s11384_s2 + $0xfc8] sm:$0xff]  ;;  %v4912_v29 = vld [vmem:[%s11384_s2 + $0x12e0] sm:$0xff] }
 0x1e1   :  { %6301 = vmatprep.subr.bf16.mxu1 %v11514_v51  ;;  %4924 = vmatprep.mubr.msk.f32.mxu1 %vm231_vm0, %v3242_v20  ;;  %v6308_v20 = vpack.c.bf16 %v4907_v48, %v4906_v35  ;;  %v6160_v0 = vpack.c.bf16 %v4769_v54, %v4768_v57  ;;  %v4811_v48 = vld [vmem:[%s11384_s2 + $0xfc0] sm:$0xff]  ;;  %v4830_v39 = vld [vmem:[%s11384_s2 + $0x1058] sm:$0xff]  ;;  %v4833_v57 = vld [vmem:[%s11384_s2 + $0x1070] sm:$0xff] }
 0x1e2   :  { %v2879_v10 = vadd.f32 %v2865_v21, %v11637_v27  ;;  %v2886_v37 = vadd.f32 %v2872_v49, %v11638_v5  ;;  %v4913_v49 = vld [vmem:[%s11384_s2 + $0x12e8] sm:$0xff]  ;;  %v4834_v54 = vld [vmem:[%s11384_s2 + $0x1078] sm:$0xff] }
 0x1e3   :  { %6145 = vmatpush3.bf16.msra.mxu0 %v6144_v34  ;;  %v2637_v34 = vmax.f32 %v2588_v32, %v2630_v23  ;;  %v4829_v23 = vld [vmem:[%s11384_s2 + $0x1050] sm:$0xff] }
 0x1e4   :  { %6303 = vmatpush1.bf16.msra.mxu1 %v6302_v4  ;;  %6147 = vmatprep.subr.bf16.mxu0 %v6146_v28  ;;  %v4909_v4 = vld [vmem:[%s11384_s2 + $0x12c8] sm:$0xff]  ;;  %v4784_v28 = vld [vmem:[%s11384_s2 + $0xef0] sm:$0xff] }
 0x1e5   :  { %6304 = vmatprep.subr.bf16.mxu1 %v11514_v51  ;;  %v6311_v56 = vpack.c.bf16 %v4909_v4, %v4908_v3  ;;  %v6158_v25 = vpack.c.bf16 %v4785_v50, %v4784_v28  ;;  %v2641_v38 = vmax.f32 %v2614_v30, %v2637_v34  ;;  %v4914_v3 = vld [vmem:[%s11384_s2 + $0x12f0] sm:$0xff]  ;;  %v4831_v4 = vld [vmem:[%s11384_s2 + $0x1060] sm:$0xff]  ;;  %v4832_v28 = vld [vmem:[%s11384_s2 + $0x1068] sm:$0xff]  ;;  %v6204_v50 = vpack.c.bf16 %v4814_v22, %v4813_v13 }
 0x1e6   :  { %v4820_v13 = vld [vmem:[%s11384_s2 + $0x1008] sm:$0xff]  ;;  %v2850_v22 = vld [vmem:[%s11382_s0 + $0x3f0] sm:$0xff] }
 0x1e7   :  { %6149 = vmatpush3.bf16.msra.mxu0 %v6148_v62  ;;  %v4828_v62 = vld [vmem:[%s11384_s2 + $0x1048] sm:$0xff]  ;;  %v2645_v2 = vmax.f32 %v2641_v38, 0.0  ;;  %v6725_v38 = vunpack.i.h.bf16 %v10053_v1 }
 0x1e8   :  { %6306 = vmatpush1.bf16.msra.mxu1 %v6305_v8  ;;  %6151 = vmatprep.subr.bf16.mxu0 %v6150_v46  ;;  %v2912_v8 = vmax.f32 %v2879_v10, %v2905_v7  ;;  %v2935_v46 = vmax.f32 %v2886_v37, %v2928_v41  ;;  %v6198_v32 = vpack.c.bf16 %v4828_v62, %v4827_v44  ;;  %v4815_v10 = vld [vmem:[%s11384_s2 + $0xfe0] sm:$0xff]  ;;  %v4816_v37 = vld [vmem:[%s11384_s2 + $0xfe8] sm:$0xff]  ;;  %v4817_v44 = vld [vmem:[%s11384_s2 + $0xff0] sm:$0xff] }
 0x1e9   :  { %v766_v18 = vpop.f32.mrb[2].mxu0  ;;  %6307 = vmatprep.subr.bf16.mxu1 %v11514_v51  ;;  %v6206_v7 = vpack.c.bf16 %v4832_v28, %v4831_v4  ;;  %v4916_v41 = vld [vmem:[%s11384_s2 + $0x1300] sm:$0xff] }
 0x1ea   :  { %v10262_v59 = vadd.f32 %v9933_v63, %v766_v18  ;;  %v768_v55 = vpop.f32.mrb[3].mxu0  ;;  %v4910_v63 = vld [vmem:[%s11384_s2 + $0x12d0] sm:$0xff]  ;;  %v2939_v21 = vmax.f32 %v2912_v8, %v2935_v46  ;;  %v4915_v18 = vld [vmem:[%s11384_s2 + $0x12f8] sm:$0xff]  ;;  %v4920_v28 = vld [vmem:[%s11384_s2 + $0x1320] sm:$0xff] }
 0x1eb   :  { %6153 = vmatpush3.bf16.msra.mxu0 %v6152_v43  ;;  %v6314_v35 = vpack.c.bf16 %v4911_v15, %v4910_v63  ;;  %v6200_v43 = vpack.c.bf16 %v4812_v9, %v4811_v48  ;;  %v6320_v30 = vpack.c.bf16 %v4915_v18, %v4914_v3  ;;  %v10330_v55 = vpop.permute.xlu1 %6737  ;;  %v10348_v63 = vpop.permute.xlu0 %6732  ;;  %v6208_v15 = vpack.c.bf16 %v4816_v37, %v4815_v10  ;;  %v4918_v48 = vld [vmem:[%s11384_s2 + $0x1310] sm:$0xff]  ;;  %v4919_v9 = vld [vmem:[%s11384_s2 + $0x1318] sm:$0xff]  ;;  %v2857_v3 = vld [vmem:[%s11382_s0 + $0x428] sm:$0xff] }
 0x1ec   :  { %6309 = vmatpush1.bf16.msra.mxu1 %v6308_v20  ;;  %6155 = vmatprep.subr.bf16.mxu0 %v6154_v19  ;;  %v6317_v20 = vpack.c.bf16 %v4913_v49, %v4912_v29  ;;  %v6202_v19 = vpack.c.bf16 %v4830_v39, %v4829_v23  ;;  %v2943_v34 = vmax.f32 %v2939_v21, 0.0  ;;  %v4835_v21 = vld [vmem:[%s11384_s2 + $0x1080] sm:$0xff]  ;;  %v4836_v49 = vld [vmem:[%s11384_s2 + $0x1088] sm:$0xff]  ;;  %v3226_v18 = vsel %vm231_vm0, %v6725_v38, %v10096_v14  ;;  %v4838_v10 = vld [vmem:[%s11384_s2 + $0x1098] sm:$0xff] }
 0x1ed   :  { %6310 = vmatprep.subr.bf16.mxu1 %v11514_v51  ;;  %v4819_v23 = vld [vmem:[%s11384_s2 + $0x1000] sm:$0xff]  ;;  %v6214_v4 = vpack.c.bf16 %v4836_v49, %v4835_v21  ;;  %v2871_v37 = vmul.f32 %v2857_v3, %v11558_v60 }
 0x1ee   :  { %v6216_v14 = vpack.c.bf16 %v4820_v13, %v4819_v23  ;;  %v11648_v49 = vld [vmem:[#allocation12_spill] sm:$0xff] }
 0x1ef   :  { %6157 = vmatpush3.bf16.msra.mxu0 %v6156_v53  ;;  %v3149_v53 = vld [vmem:[%s11382_s0 + $0x470] sm:$0xff]  ;;  %v10366_v29 = vpop.permute.xlu1 %6747  ;;  %v10378_v39 = vpop.permute.xlu0 %6742  ;;  %v2885_v13 = vadd.f32 %v2871_v37, %v11566_v33  ;;  %v4842_v37 = vld [vmem:[%s11384_s2 + $0x10b8] sm:$0xff] }
 0x1f0   :  { %6312 = vmatpush1.bf16.msra.mxu1 %v6311_v56  ;;  %6159 = vmatprep.subr.bf16.mxu0 %v6158_v25  ;;  %v3156_v56 = vld [vmem:[%s11382_s0 + $0x4a8] sm:$0xff]  ;;  %v3163_v8 = vmul.f32 %v3149_v53, %v11574_v26 }
 0x1f1   :  { %6313 = vmatprep.subr.bf16.mxu1 %v11514_v51  ;;  %v4917_v25 = vld [vmem:[%s11384_s2 + $0x1308] sm:$0xff]  ;;  %v3170_v62 = vmul.f32 %v3156_v56, %v11573_v45 }
 0x1f2   :  { %v6323_v46 = vpack.c.bf16 %v4917_v25, %v4916_v41  ;;  %v3155_v41 = vld [vmem:[%s11382_s0 + $0x4a0] sm:$0xff] }
 0x1f3   :  { %6161 = vmatpush3.bf16.msra.mxu0 %v6160_v0  ;;  %v6724_v0 = vunpack.i.l.bf16 %v10053_v1  ;;  %v10420_v53 = vpop.permute.xlu1 %3519  ;;  %v3169_v21 = vmul.f32 %v3155_v41, %v11633_v24  ;;  %v4826_v1 = vld [vmem:[%s11384_s2 + $0x1038] sm:$0xff] }
 0x1f4   :  { %6315 = vmatpush1.bf16.msra.mxu1 %v6314_v35  ;;  %6199 = vmatprep.subr.bf16.mxu0 %v6198_v32  ;;  %v6210_v35 = vpack.c.bf16 %v4834_v54, %v4833_v57  ;;  %v4818_v32 = vld [vmem:[%s11384_s2 + $0xff8] sm:$0xff]  ;;  %v6735_v57 = vunpack.i.h.bf16 %v10348_v63  ;;  %v6734_v54 = vunpack.i.l.bf16 %v10348_v63 }
 0x1f5   :  { %6316 = vmatprep.subr.bf16.mxu1 %v11514_v51  ;;  %v4923_v63 = vld [vmem:[%s11384_s2 + $0x1338] sm:$0xff] }
 0x1f6   :  { %2774 = vmatmul.mubr.f32.vlgmr.msra.gmra.mrb[18].mxu0 %v2645_v2  ;;  %v6212_v2 = vpack.c.bf16 %v4818_v32, %v4817_v44  ;;  %v4839_v32 = vld [vmem:[%s11384_s2 + $0x10a0] sm:$0xff] }
 0x1f7   :  { %6201 = vmatpush3.bf16.msra.mxu0 %v6200_v43  ;;  %3070 = vmatprep.mubr.f32.mxu0 %v2943_v34  ;;  %v6326_v43 = vpack.c.bf16 %v4919_v9, %v4918_v48  ;;  %v3203_v34 = vsel %vm231_vm0, %v6724_v0, %v10098_v61  ;;  %v4837_v61 = vld [vmem:[%s11384_s2 + $0x1090] sm:$0xff]  ;;  %v4840_v48 = vld [vmem:[%s11384_s2 + $0x10a8] sm:$0xff] }
 0x1f8   :  { %6318 = vmatpush1.bf16.msra.mxu1 %v6317_v20  ;;  %6203 = vmatprep.subr.bf16.mxu0 %v6202_v19  ;;  %v3184_v20 = vadd.f32 %v3170_v62, %v11583_v12  ;;  %v3177_v19 = vadd.f32 %v3163_v8, %v7183_v36  ;;  %v6218_v44 = vpack.c.bf16 %v4838_v10, %v4837_v61  ;;  %v4821_v62 = vld [vmem:[%s11384_s2 + $0x1010] sm:$0xff]  ;;  %v4822_v8 = vld [vmem:[%s11384_s2 + $0x1018] sm:$0xff]  ;;  %v4823_v61 = vld [vmem:[%s11384_s2 + $0x1020] sm:$0xff] }
 0x1f9   :  { %6319 = vmatprep.subr.bf16.mxu1 %v11514_v51  ;;  %v4824_v10 = vld [vmem:[%s11384_s2 + $0x1028] sm:$0xff] }
 0x1fa   :  { %v3210_v56 = vmax.f32 %v3177_v19, %v3203_v34  ;;  %v3233_v25 = vmax.f32 %v3184_v20, %v3226_v18  ;;  %v6740_v20 = vunpack.i.h.bf16 %v10330_v55  ;;  %v6739_v19 = vunpack.i.l.bf16 %v10330_v55 }
 0x1fb   :  { %6205 = vmatpush3.bf16.msra.mxu0 %v6204_v50  ;;  %v4921_v50 = vld [vmem:[%s11384_s2 + $0x1328] sm:$0xff]  ;;  %v6220_v34 = vpack.c.bf16 %v4822_v8, %v4821_v62  ;;  %v2904_v18 = vsel %vm231_vm0, %v6734_v54, %v6729_v16  ;;  %v4957_v16 = vld [vmem:[%s11384_s2 + $0x1440] sm:$0xff]  ;;  %v6224_v8 = vpack.c.bf16 %v4824_v10, %v4823_v61  ;;  %v4887_v61 = vld [vmem:[%s11384_s2 + $0x1218] sm:$0xff] }
 0x1fc   :  { %6321 = vmatpush1.bf16.msra.mxu1 %v6320_v30  ;;  %6207 = vmatprep.subr.bf16.mxu0 %v6206_v7  ;;  %v2864_v30 = vmul.f32 %v2850_v22, %v11557_v58  ;;  %v3148_v7 = vld [vmem:[%s11382_s0 + $0x468] sm:$0xff]  ;;  %v3237_v3 = vmax.f32 %v3210_v56, %v3233_v25  ;;  %v3225_v56 = vsel %vm231_vm0, %v6740_v20, %v6725_v38  ;;  %v4825_v38 = vld [vmem:[%s11384_s2 + $0x1030] sm:$0xff] }
 0x1fd   :  { %6322 = vmatprep.subr.bf16.mxu1 %v11514_v51  ;;  %v3162_v9 = vmul.f32 %v3148_v7, %v11632_v40  ;;  %v3183_v7 = vadd.f32 %v3169_v21, %v11638_v5  ;;  %v3202_v25 = vsel %vm231_vm0, %v6739_v19, %v6724_v0  ;;  %v4959_v0 = vld [vmem:[%s11384_s2 + $0x1450] sm:$0xff]  ;;  %v4885_v21 = vld [vmem:[%s11384_s2 + $0x1208] sm:$0xff] }
 0x1fe   :  { %v2878_v22 = vadd.f32 %v2864_v30, %v11565_v6 }
 0x1ff   :  { %6209 = vmatpush3.bf16.msra.mxu0 %v6208_v15  ;;  %v6329_v15 = vpack.c.bf16 %v4921_v50, %v4920_v28  ;;  %v6222_v50 = vpack.c.bf16 %v4840_v48, %v4839_v32  ;;  %v3176_v30 = vadd.f32 %v3162_v9, %v11637_v27  ;;  %v4960_v48 = vld [vmem:[%s11384_s2 + $0x1458] sm:$0xff]  ;;  %v4884_v9 = vld [vmem:[%s11384_s2 + $0x1200] sm:$0xff] }
 0x200   :  { %6324 = vmatpush1.bf16.msra.mxu1 %v6323_v46  ;;  %6211 = vmatprep.subr.bf16.mxu0 %v6210_v35  ;;  %v4922_v46 = vld [vmem:[%s11384_s2 + $0x1330] sm:$0xff]  ;;  %v10433_v35 = vpop.permute.xlu0 %3496  ;;  %v2911_v54 = vmax.f32 %v2878_v22, %v2904_v18  ;;  %v6266_v22 = vpack.c.bf16 %v4885_v21, %v4884_v9  ;;  %v4961_v18 = vld [vmem:[%s11384_s2 + $0x1460] sm:$0xff] }
 0x201   :  { %6325 = vmatprep.subr.bf16.mxu1 %v11514_v51  ;;  %v3508_v23 = vmax.f32 %v11648_v49, %v10433_v35  ;;  %v6332_v28 = vpack.c.bf16 %v4923_v63, %v4922_v46  ;;  %v6367_v46 = vpack.c.bf16 %v4958_v42, %v4957_v16  ;;  %v3209_v49 = vmax.f32 %v3176_v30, %v3202_v25  ;;  %v4963_v30 = vld [vmem:[%s11384_s2 + $0x1470] sm:$0xff]  ;;  %v4889_v25 = vld [vmem:[%s11384_s2 + $0x1228] sm:$0xff] }
 0x203   :  { %6213 = vmatpush3.bf16.msra.mxu0 %v6212_v2  ;;  %v11649_v2 = vld [vmem:[#allocation6_spill] sm:$0xff] }
 0x204   :  { %6327 = vmatpush1.bf16.msra.mxu1 %v6326_v43  ;;  %6215 = vmatprep.subr.bf16.mxu0 %v6214_v4  ;;  %v3531_v43 = vmax.f32 %v11649_v2, %v10420_v53  ;;  %v2927_v4 = vsel %vm231_vm0, %v6735_v57, %v6730_v52  ;;  %v4841_v52 = vld [vmem:[%s11384_s2 + $0x10b0] sm:$0xff] }
 0x205   :  { %6328 = vmatprep.subr.bf16.mxu1 %v11514_v51  ;;  %v6226_v63 = vpack.c.bf16 %v4842_v37, %v4841_v52  ;;  %v4870_v52 = vld [vmem:[%s11384_s2 + $0x1190] sm:$0xff]  ;;  %v4871_v37 = vld [vmem:[%s11384_s2 + $0x1198] sm:$0xff] }
 0x206   :  { %v3535_v41 = vmax.f32 %v3508_v23, %v3531_v43  ;;  %v3232_v23 = vmax.f32 %v3183_v7, %v3225_v56  ;;  %v4888_v56 = vld [vmem:[%s11384_s2 + $0x1220] sm:$0xff] }
 0x207   :  { %6217 = vmatpush3.bf16.msra.mxu0 %v6216_v14 }
 0x208   :  { %6330 = vmatpush1.bf16.msra.mxu1 %v6329_v15  ;;  %6219 = vmatprep.subr.bf16.mxu0 %v6218_v44  ;;  %v2934_v15 = vmax.f32 %v2885_v13, %v2927_v4  ;;  %v3241_v44 = vmax.f32 %v3237_v3, 0.0  ;;  %v3539_v2 = vmax.f32 %v3535_v41, 0.0  ;;  %v6370_v13 = vpack.c.bf16 %v4960_v48, %v4959_v0  ;;  %v4868_v3 = vld [vmem:[%s11384_s2 + $0x1180] sm:$0xff]  ;;  %v4964_v41 = vld [vmem:[%s11384_s2 + $0x1478] sm:$0xff]  ;;  %v4874_v0 = vld [vmem:[%s11384_s2 + $0x11b0] sm:$0xff] }
 0x209   :  { %v5198_v14 = vpop.f32.mrb[6].mxu0  ;;  %6331 = vmatprep.subr.bf16.mxu1 %v11514_v51  ;;  %v3236_v4 = vmax.f32 %v3209_v49, %v3232_v23  ;;  %v4875_v48 = vld [vmem:[%s11384_s2 + $0x11b8] sm:$0xff]  ;;  %v4967_v49 = vld [vmem:[%s11384_s2 + $0x1490] sm:$0xff] }
 0x20a   :  { %v5199_v57 = vpop.f32.mrb[7].mxu0  ;;  %v2938_v43 = vmax.f32 %v2911_v54, %v2934_v15  ;;  %v6376_v54 = vpack.c.bf16 %v4964_v41, %v4963_v30  ;;  %v6274_v15 = vpack.c.bf16 %v4889_v25, %v4888_v56  ;;  %v4968_v23 = vld [vmem:[%s11384_s2 + $0x1498] sm:$0xff] }
 0x20b   :  { %v5200_v62 = vadd.f32 %v5199_v57, %v5198_v14  ;;  %6221 = vmatpush3.bf16.msra.mxu0 %v6220_v34  ;;  %v4869_v34 = vld [vmem:[%s11384_s2 + $0x1188] sm:$0xff]  ;;  %v3240_v7 = vmax.f32 %v3236_v4, 0.0  ;;  %v6272_v57 = vpack.c.bf16 %v4871_v37, %v4870_v52  ;;  %v4895_v4 = vld [vmem:[%s11384_s2 + $0x1258] sm:$0xff]  ;;  %v10622_v52 = vpop.permute.xlu0 %6752 }
 0x20c   :  { %6333 = vmatpush1.bf16.msra.mxu1 %v6332_v28  ;;  %6223 = vmatprep.subr.bf16.mxu0 %v6222_v50  ;;  %v4962_v28 = vld [vmem:[%s11384_s2 + $0x1468] sm:$0xff]  ;;  %v4886_v50 = vld [vmem:[%s11384_s2 + $0x1210] sm:$0xff]  ;;  %v2942_v10 = vmax.f32 %v2938_v43, 0.0  ;;  %v6268_v16 = vpack.c.bf16 %v4869_v34, %v4868_v3  ;;  %v4879_v25 = vld [vmem:[%s11384_s2 + $0x11d8] sm:$0xff] }
 0x20d   :  { %v10502_v32 = vadd.f32 %v10262_v59, %v5200_v62  ;;  %6366 = vmatprep.subr.bf16.mxu1 %v11514_v51  ;;  %v6228_v59 = vpack.c.bf16 %v4826_v1, %v4825_v38  ;;  %v6373_v14 = vpack.c.bf16 %v4962_v28, %v4961_v18  ;;  %v6270_v42 = vpack.c.bf16 %v4887_v61, %v4886_v50  ;;  %v4873_v62 = vld [vmem:[%s11384_s2 + $0x11a8] sm:$0xff]  ;;  %v4891_v38 = vld [vmem:[%s11384_s2 + $0x1238] sm:$0xff]  ;;  %v4894_v34 = vld [vmem:[%s11384_s2 + $0x1250] sm:$0xff] }
 0x20e   :  { %v4893_v43 = vld [vmem:[%s11384_s2 + $0x1248] sm:$0xff]  ;;  %v6280_v18 = vpack.c.bf16 %v4875_v48, %v4874_v0  ;;  %v3147_v28 = vld [vmem:[%s11382_s0 + $0x460] sm:$0xff]  ;;  %v3154_v50 = vld [vmem:[%s11382_s0 + $0x498] sm:$0xff]  ;;  %v6382_v61 = vpack.c.bf16 %v4968_v23, %v4967_v49  ;;  %v6286_v30 = vpack.c.bf16 %v4895_v4, %v4894_v34 }
 0x20f   :  { %6225 = vmatpush3.bf16.msra.mxu0 %v6224_v8  ;;  %3438 = vmatmul.mubr.f32.vlgmr.msra.gmra.mrb[0].mxu1 %v3241_v44  ;;  %v4872_v44 = vld [vmem:[%s11384_s2 + $0x11a0] sm:$0xff]  ;;  %v4970_v3 = vld [vmem:[%s11384_s2 + $0x14a8] sm:$0xff]  ;;  %v3168_v41 = vmul.f32 %v3154_v50, %v11558_v60  ;;  %v3161_v56 = vmul.f32 %v3147_v28, %v11557_v58  ;;  %v4898_v50 = vld [vmem:[%s11384_s2 + $0x1270] sm:$0xff] }
 0x210   :  { %6368 = vmatpush1.bf16.msra.mxu1 %v6367_v46  ;;  %6227 = vmatprep.subr.bf16.mxu0 %v6226_v63  ;;  %v4965_v8 = vld [vmem:[%s11384_s2 + $0x1480] sm:$0xff]  ;;  %v4966_v46 = vld [vmem:[%s11384_s2 + $0x1488] sm:$0xff]  ;;  %v4890_v63 = vld [vmem:[%s11384_s2 + $0x1230] sm:$0xff]  ;;  %v6276_v1 = vpack.c.bf16 %v4873_v62, %v4872_v44 }
 0x211   :  { %6369 = vmatprep.subr.bf16.mxu1 %v11514_v51  ;;  %4981 = vmatprep.mubr.msk.f32.mxu1 %vm231_vm0, %v3539_v2  ;;  %v6379_v9 = vpack.c.bf16 %v4966_v46, %v4965_v8  ;;  %v6278_v21 = vpack.c.bf16 %v4891_v38, %v4890_v63  ;;  %v4892_v2 = vld [vmem:[%s11384_s2 + $0x1240] sm:$0xff]  ;;  %v4972_v44 = vld [vmem:[%s11384_s2 + $0x14b8] sm:$0xff]  ;;  %v6750_v46 = vunpack.i.h.bf16 %v10366_v29  ;;  %v6749_v63 = vunpack.i.l.bf16 %v10366_v29  ;;  %v4897_v0 = vld [vmem:[%s11384_s2 + $0x1268] sm:$0xff] }
 0x212   :  { %v6754_v38 = vunpack.i.l.bf16 %v10622_v52  ;;  %v4974_v28 = vld [vmem:[%s11384_s2 + $0x14c8] sm:$0xff] }
 0x213   :  { %6229 = vmatpush3.bf16.msra.mxu0 %v6228_v59  ;;  %v4876_v59 = vld [vmem:[%s11384_s2 + $0x11c0] sm:$0xff]  ;;  %v4978_v29 = vld [vmem:[%s11384_s2 + $0x14e8] sm:$0xff] }
 0x214   :  { %6371 = vmatpush1.bf16.msra.mxu1 %v6370_v13  ;;  %6267 = vmatprep.subr.bf16.mxu0 %v6266_v22  ;;  %v4877_v13 = vld [vmem:[%s11384_s2 + $0x11c8] sm:$0xff]  ;;  %v4969_v22 = vld [vmem:[%s11384_s2 + $0x14a0] sm:$0xff] }
 0x215   :  { %6372 = vmatprep.subr.bf16.mxu1 %v11514_v51  ;;  %v6385_v37 = vpack.c.bf16 %v4970_v3, %v4969_v22  ;;  %v3499_v3 = vsel %vm231_vm0, %v6754_v38, %v6749_v63 }
 0x216   :  { %3071 = vmatmul.mubr.f32.vlgmr.msra.gmra.mrb[20].mxu0 %v2942_v10  ;;  %v6282_v10 = vpack.c.bf16 %v4893_v43, %v4892_v2  ;;  %v4880_v43 = vld [vmem:[%s11384_s2 + $0x11e0] sm:$0xff] }
 0x217   :  { %6269 = vmatpush3.bf16.msra.mxu0 %v6268_v16  ;;  %3367 = vmatprep.mubr.f32.mxu0 %v3240_v7  ;;  %v3445_v16 = vld [vmem:[%s11382_s0 + $0x4d8] sm:$0xff]  ;;  %v4878_v7 = vld [vmem:[%s11384_s2 + $0x11d0] sm:$0xff] }
 0x218   :  { %6374 = vmatpush1.bf16.msra.mxu1 %v6373_v14  ;;  %6271 = vmatprep.subr.bf16.mxu0 %v6270_v42  ;;  %v3452_v14 = vld [vmem:[%s11382_s0 + $0x510] sm:$0xff]  ;;  %v6284_v42 = vpack.c.bf16 %v4877_v13, %v4876_v59  ;;  %v3459_v62 = vmul.f32 %v3445_v16, %v11632_v40  ;;  %v6288_v48 = vpack.c.bf16 %v4879_v25, %v4878_v7  ;;  %v4881_v59 = vld [vmem:[%s11384_s2 + $0x11e8] sm:$0xff]  ;;  %v3453_v13 = vld [vmem:[%s11382_s0 + $0x518] sm:$0xff] }
 0x219   :  { %6375 = vmatprep.subr.bf16.mxu1 %v11514_v51  ;;  %v3466_v8 = vmul.f32 %v3452_v14, %v11633_v24  ;;  %v4882_v7 = vld [vmem:[%s11384_s2 + $0x11f0] sm:$0xff] }
 0x21a   :  { %v3473_v22 = vadd.f32 %v3459_v62, %v11637_v27  ;;  %v4976_v62 = vld [vmem:[%s11384_s2 + $0x14d8] sm:$0xff] }
 0x21b   :  { %6273 = vmatpush3.bf16.msra.mxu0 %v6272_v57  ;;  %v6745_v57 = vunpack.i.h.bf16 %v10378_v39 }
 0x21c   :  { %6377 = vmatpush1.bf16.msra.mxu1 %v6376_v54  ;;  %6275 = vmatprep.subr.bf16.mxu0 %v6274_v15  ;;  %v6744_v54 = vunpack.i.l.bf16 %v10378_v39  ;;  %v4971_v15 = vld [vmem:[%s11384_s2 + $0x14b0] sm:$0xff]  ;;  %v6755_v39 = vunpack.i.h.bf16 %v10622_v52  ;;  %v3506_v25 = vmax.f32 %v3473_v22, %v3499_v3  ;;  %v4925_v22 = vld [vmem:[%s11384_s2 + $0x1340] sm:$0xff] }
 0x21d   :  { %6378 = vmatprep.subr.bf16.mxu1 %v11514_v51  ;;  %v6388_v49 = vpack.c.bf16 %v4972_v44, %v4971_v15  ;;  %v3224_v2 = vsel %vm231_vm0, %v6745_v57, %v6740_v20  ;;  %v4973_v20 = vld [vmem:[%s11384_s2 + $0x14c0] sm:$0xff]  ;;  %v4975_v44 = vld [vmem:[%s11384_s2 + $0x14d0] sm:$0xff] }
 0x21e   :  { %v3201_v23 = vsel %vm231_vm0, %v6744_v54, %v6739_v19  ;;  %v3480_v19 = vadd.f32 %v3466_v8, %v11638_v5  ;;  %v3522_v34 = vsel %vm231_vm0, %v6755_v39, %v6750_v46  ;;  %v6391_v54 = vpack.c.bf16 %v4974_v28, %v4973_v20  ;;  %v10710_v8 = vpop.permute.xlu0 %6762  ;;  %v5022_v52 = vld [vmem:[%s11384_s2 + $0x1640] sm:$0xff] }
 0x21f   :  { %6277 = vmatpush3.bf16.msra.mxu0 %v6276_v1  ;;  %v4896_v1 = vld [vmem:[%s11384_s2 + $0x1260] sm:$0xff] }
 0x220   :  { %6380 = vmatpush1.bf16.msra.mxu1 %v6379_v9  ;;  %6279 = vmatprep.subr.bf16.mxu0 %v6278_v21  ;;  %v3182_v9 = vadd.f32 %v3168_v41, %v11566_v33  ;;  %v3175_v21 = vadd.f32 %v3161_v56, %v11565_v6  ;;  %v6290_v55 = vpack.c.bf16 %v4897_v0, %v4896_v1  ;;  %v4883_v41 = vld [vmem:[%s11384_s2 + $0x11f8] sm:$0xff]  ;;  %v4941_v0 = vld [vmem:[%s11384_s2 + $0x13c0] sm:$0xff] }
 0x221   :  { %6381 = vmatprep.subr.bf16.mxu1 %v11514_v51  ;;  %v3529_v57 = vmax.f32 %v3480_v19, %v3522_v34  ;;  %v4926_v19 = vld [vmem:[%s11384_s2 + $0x1348] sm:$0xff] }
 0x222   :  { %v3208_v16 = vmax.f32 %v3175_v21, %v3201_v23  ;;  %v3231_v14 = vmax.f32 %v3182_v9, %v3224_v2  ;;  %v6296_v9 = vpack.c.bf16 %v4883_v41, %v4882_v7  ;;  %v10751_v20 = vpop.permute.xlu0 %3816 }
 0x223   :  { %6281 = vmatpush3.bf16.msra.mxu0 %v6280_v18  ;;  %v3446_v18 = vld [vmem:[%s11382_s0 + $0x4e0] sm:$0xff]  ;;  %v3828_v41 = vmax.f32 %v9448_v47, %v10751_v20 }
 0x224   :  { %6383 = vmatpush1.bf16.msra.mxu1 %v6382_v61  ;;  %6283 = vmatprep.subr.bf16.mxu0 %v6282_v10  ;;  %v4899_v61 = vld [vmem:[%s11384_s2 + $0x1278] sm:$0xff]  ;;  %v3460_v56 = vmul.f32 %v3446_v18, %v11574_v26  ;;  %v3235_v21 = vmax.f32 %v3208_v16, %v3231_v14  ;;  %v6336_v18 = vpack.c.bf16 %v4926_v19, %v4925_v22  ;;  %v4979_v16 = vld [vmem:[%s11384_s2 + $0x14f0] sm:$0xff]  ;;  %v5014_v47 = vld [vmem:[%s11384_s2 + $0x1600] sm:$0xff] }
 0x225   :  { %6384 = vmatprep.subr.bf16.mxu1 %v11514_v51  ;;  %v6294_v15 = vpack.c.bf16 %v4899_v61, %v4898_v50  ;;  %v4927_v61 = vld [vmem:[%s11384_s2 + $0x1350] sm:$0xff]  ;;  %v4950_v22 = vld [vmem:[%s11384_s2 + $0x1408] sm:$0xff]  ;;  %v4933_v19 = vld [vmem:[%s11384_s2 + $0x1380] sm:$0xff] }
 0x226   :  { %v3474_v2 = vadd.f32 %v3460_v56, %v7183_v36 }
 0x227   :  { %6285 = vmatpush3.bf16.msra.mxu0 %v6284_v42  ;;  %v6292_v42 = vpack.c.bf16 %v4881_v59, %v4880_v43  ;;  %v3500_v43 = vsel %vm231_vm0, %v6749_v63, %v10433_v35  ;;  %v3523_v59 = vsel %vm231_vm0, %v6750_v46, %v10420_v53  ;;  %v10739_v35 = vpop.permute.xlu1 %6757  ;;  %v4943_v53 = vld [vmem:[%s11384_s2 + $0x13d0] sm:$0xff]  ;;  %v4944_v46 = vld [vmem:[%s11384_s2 + $0x13d8] sm:$0xff]  ;;  %v3239_v63 = vmax.f32 %v3235_v21, 0.0 }
 0x228   :  { %6386 = vmatpush1.bf16.msra.mxu1 %v6385_v37  ;;  %6287 = vmatprep.subr.bf16.mxu0 %v6286_v30  ;;  %v3467_v37 = vmul.f32 %v3453_v13, %v11573_v45  ;;  %v3507_v3 = vmax.f32 %v3474_v2, %v3500_v43  ;;  %v6338_v50 = vpack.c.bf16 %v4944_v46, %v4943_v53  ;;  %v5016_v43 = vld [vmem:[%s11384_s2 + $0x1610] sm:$0xff]  ;;  %v5018_v53 = vld [vmem:[%s11384_s2 + $0x1620] sm:$0xff]  ;;  %v5019_v46 = vld [vmem:[%s11384_s2 + $0x1628] sm:$0xff] }
 0x229   :  { %v5233_v4 = vpop.f32.mrb[8].mxu0  ;;  %6387 = vmatprep.subr.bf16.mxu1 %v11514_v51 }
 0x22a   :  { %v5234_v10 = vpop.f32.mrb[9].mxu0  ;;  %v3481_v23 = vadd.f32 %v3467_v37, %v11583_v12  ;;  %v4945_v37 = vld [vmem:[%s11384_s2 + $0x13e0] sm:$0xff] }
 0x22b   :  { %v5235_v30 = vadd.f32 %v5234_v10, %v5233_v4  ;;  %6289 = vmatpush3.bf16.msra.mxu0 %v6288_v48  ;;  %v4942_v48 = vld [vmem:[%s11384_s2 + $0x13c8] sm:$0xff]  ;;  %v4928_v10 = vld [vmem:[%s11384_s2 + $0x1358] sm:$0xff]  ;;  %v10762_v14 = vpop.permute.xlu1 %3793 }
 0x22c   :  { %6389 = vmatpush1.bf16.msra.mxu1 %v6388_v49  ;;  %6291 = vmatprep.subr.bf16.mxu0 %v6290_v55  ;;  %v6394_v49 = vpack.c.bf16 %v4976_v62, %v4975_v44  ;;  %v6334_v13 = vpack.c.bf16 %v4942_v48, %v4941_v0  ;;  %v4977_v55 = vld [vmem:[%s11384_s2 + $0x14e0] sm:$0xff]  ;;  %v3530_v34 = vmax.f32 %v3481_v23, %v3523_v59  ;;  %v5015_v44 = vld [vmem:[%s11384_s2 + $0x1608] sm:$0xff]  ;;  %v4947_v62 = vld [vmem:[%s11384_s2 + $0x13f0] sm:$0xff] }
 0x22d   :  { %v10713_v1 = vadd.f32 %v10502_v32, %v5235_v30  ;;  %6390 = vmatprep.subr.bf16.mxu1 %v11514_v51  ;;  %v3533_v32 = vmax.f32 %v3506_v25, %v3529_v57  ;;  %v6397_v28 = vpack.c.bf16 %v4978_v29, %v4977_v55  ;;  %v4946_v30 = vld [vmem:[%s11384_s2 + $0x13e8] sm:$0xff]  ;;  %v3805_v7 = vmax.f32 %v9445_v31, %v10762_v14  ;;  %v4948_v0 = vld [vmem:[%s11384_s2 + $0x13f8] sm:$0xff] }
 0x22e   :  { %v3534_v56 = vmax.f32 %v3507_v3, %v3530_v34  ;;  %v6340_v25 = vpack.c.bf16 %v4928_v10, %v4927_v61  ;;  %v4930_v31 = vld [vmem:[%s11384_s2 + $0x1368] sm:$0xff]  ;;  %v4932_v23 = vld [vmem:[%s11384_s2 + $0x1378] sm:$0xff]  ;;  %v6435_v2 = vpack.c.bf16 %v5015_v44, %v5014_v47  ;;  %v3749_v10 = vld [vmem:[%s11382_s0 + $0x580] sm:$0xff] }
 0x22f   :  { %6293 = vmatpush3.bf16.msra.mxu0 %v6292_v42  ;;  %v3537_v4 = vmax.f32 %v3533_v32, 0.0  ;;  %v4980_v42 = vld [vmem:[%s11384_s2 + $0x14f8] sm:$0xff]  ;;  %v3832_v48 = vmax.f32 %v3805_v7, %v3828_v41  ;;  %v6346_v32 = vpack.c.bf16 %v4948_v0, %v4947_v62  ;;  %v4934_v55 = vld [vmem:[%s11384_s2 + $0x1388] sm:$0xff]  ;;  %v4935_v7 = vld [vmem:[%s11384_s2 + $0x1390] sm:$0xff]  ;;  %v3763_v44 = vmul.f32 %v3749_v10, %v11633_v24 }
 0x230   :  { %6392 = vmatpush1.bf16.msra.mxu1 %v6391_v54  ;;  %6295 = vmatprep.subr.bf16.mxu0 %v6294_v15  ;;  %v6400_v57 = vpack.c.bf16 %v4980_v42, %v4979_v16  ;;  %v6342_v54 = vpack.c.bf16 %v4946_v30, %v4945_v37  ;;  %v4929_v15 = vld [vmem:[%s11384_s2 + $0x1360] sm:$0xff]  ;;  %v5017_v59 = vld [vmem:[%s11384_s2 + $0x1618] sm:$0xff]  ;;  %v3742_v61 = vld [vmem:[%s11382_s0 + $0x548] sm:$0xff]  ;;  %v6352_v16 = vpack.c.bf16 %v4934_v55, %v4933_v19  ;;  %v10847_v42 = vpop.permute.xlu1 %6767  ;;  %v6765_v62 = vunpack.i.h.bf16 %v10710_v8 }
 0x231   :  { %6393 = vmatprep.subr.bf16.mxu1 %v11514_v51  ;;  %v6344_v21 = vpack.c.bf16 %v4930_v31, %v4929_v15  ;;  %v3836_v29 = vmax.f32 %v3832_v48, 0.0  ;;  %v4952_v34 = vld [vmem:[%s11384_s2 + $0x1418] sm:$0xff]  ;;  %v6441_v37 = vpack.c.bf16 %v5019_v46, %v5018_v53  ;;  %v5020_v15 = vld [vmem:[%s11384_s2 + $0x1630] sm:$0xff]  ;;  %v3756_v47 = vmul.f32 %v3742_v61, %v11632_v40  ;;  %v4937_v55 = vld [vmem:[%s11384_s2 + $0x13a0] sm:$0xff] }
 0x232   :  { %v5021_v31 = vld [vmem:[%s11384_s2 + $0x1638] sm:$0xff]  ;;  %v6764_v0 = vunpack.i.l.bf16 %v10710_v8  ;;  %v6769_v48 = vunpack.i.l.bf16 %v10847_v42  ;;  %v5023_v46 = vld [vmem:[%s11384_s2 + $0x1648] sm:$0xff] }
 0x233   :  { %6297 = vmatpush3.bf16.msra.mxu0 %v6296_v9  ;;  %v3538_v9 = vmax.f32 %v3534_v56, 0.0  ;;  %v4039_v8 = vld [vmem:[%s11382_s0 + $0x5b8] sm:$0xff] }
 0x234   :  { %6395 = vmatpush1.bf16.msra.mxu1 %v6394_v49  ;;  %6335 = vmatprep.subr.bf16.mxu0 %v6334_v13  ;;  %v4931_v49 = vld [vmem:[%s11384_s2 + $0x1370] sm:$0xff]  ;;  %v4949_v13 = vld [vmem:[%s11384_s2 + $0x1400] sm:$0xff] }
 0x235   :  { %6396 = vmatprep.subr.bf16.mxu1 %v11514_v51  ;;  %v6348_v3 = vpack.c.bf16 %v4932_v23, %v4931_v49 }
 0x236   :  { %3368 = vmatmul.mubr.f32.vlgmr.msra.gmra.mrb[22].mxu0 %v3239_v63  ;;  %v4951_v63 = vld [vmem:[%s11384_s2 + $0x1410] sm:$0xff] }
 0x237   :  { %6337 = vmatpush3.bf16.msra.mxu0 %v6336_v18  ;;  %3664 = vmatprep.mubr.f32.mxu0 %v3537_v4  ;;  %v3444_v18 = vld [vmem:[%s11382_s0 + $0x4d0] sm:$0xff]  ;;  %v3451_v4 = vld [vmem:[%s11382_s0 + $0x508] sm:$0xff]  ;;  %v6354_v30 = vpack.c.bf16 %v4952_v34, %v4951_v63 }
 0x238   :  { %6398 = vmatpush1.bf16.msra.mxu1 %v6397_v28  ;;  %6339 = vmatprep.subr.bf16.mxu0 %v6338_v50  ;;  %v6438_v28 = vpack.c.bf16 %v5017_v59, %v5016_v43  ;;  %v6350_v50 = vpack.c.bf16 %v4950_v22, %v4949_v13  ;;  %v3465_v41 = vmul.f32 %v3451_v4, %v11558_v60  ;;  %v4955_v63 = vld [vmem:[%s11384_s2 + $0x1430] sm:$0xff] }
 0x239   :  { %6399 = vmatprep.subr.bf16.mxu1 %v11514_v51  ;;  %v3458_v56 = vmul.f32 %v3444_v18, %v11557_v58  ;;  %v3770_v13 = vadd.f32 %v3756_v47, %v11637_v27  ;;  %v3777_v22 = vadd.f32 %v3763_v44, %v11638_v5 }
 0x23a   :  { %v3479_v23 = vadd.f32 %v3465_v41, %v11566_v33  ;;  %v5024_v41 = vld [vmem:[%s11384_s2 + $0x1650] sm:$0xff] }
 0x23b   :  { %6341 = vmatpush3.bf16.msra.mxu0 %v6340_v25  ;;  %v4936_v25 = vld [vmem:[%s11384_s2 + $0x1398] sm:$0xff] }
 0x23c   :  { %6401 = vmatpush1.bf16.msra.mxu1 %v6400_v57  ;;  %6343 = vmatprep.subr.bf16.mxu0 %v6342_v54  ;;  %v6760_v57 = vunpack.i.h.bf16 %v10739_v35  ;;  %v6759_v54 = vunpack.i.l.bf16 %v10739_v35  ;;  %v6770_v35 = vunpack.i.h.bf16 %v10847_v42  ;;  %v6356_v49 = vpack.c.bf16 %v4936_v25, %v4935_v7  ;;  %v4940_v7 = vld [vmem:[%s11384_s2 + $0x13b8] sm:$0xff]  ;;  %v5071_v42 = vld [vmem:[%s11384_s2 + $0x17c0] sm:$0xff] }
 0x23d   :  { %6434 = vmatprep.subr.bf16.mxu1 %v11514_v51  ;;  %v5025_v25 = vld [vmem:[%s11384_s2 + $0x1658] sm:$0xff] }
 0x23e   :  { %v3521_v43 = vsel %vm231_vm0, %v6760_v57, %v6755_v39  ;;  %v3498_v59 = vsel %vm231_vm0, %v6759_v54, %v6754_v38  ;;  %v3819_v39 = vsel %vm231_vm0, %v6770_v35, %v6765_v62  ;;  %v3796_v38 = vsel %vm231_vm0, %v6769_v48, %v6764_v0  ;;  %v4998_v57 = vld [vmem:[%s11384_s2 + $0x1580] sm:$0xff]  ;;  %v4999_v54 = vld [vmem:[%s11384_s2 + $0x1588] sm:$0xff] }
 0x23f   :  { %6345 = vmatpush3.bf16.msra.mxu0 %v6344_v21  ;;  %3735 = vmatmul.mubr.f32.vlgmr.msra.gmra.mrb[0].mxu1 %v3538_v9  ;;  %v4953_v9 = vld [vmem:[%s11384_s2 + $0x1420] sm:$0xff]  ;;  %v4954_v21 = vld [vmem:[%s11384_s2 + $0x1428] sm:$0xff]  ;;  %v3528_v18 = vmax.f32 %v3479_v23, %v3521_v43  ;;  %v3803_v61 = vmax.f32 %v3770_v13, %v3796_v38  ;;  %v3826_v10 = vmax.f32 %v3777_v22, %v3819_v39  ;;  %v5029_v39 = vld [vmem:[%s11384_s2 + $0x1678] sm:$0xff] }
 0x240   :  { %6436 = vmatpush1.bf16.msra.mxu1 %v6435_v2  ;;  %6347 = vmatprep.subr.bf16.mxu0 %v6346_v32  ;;  %v3472_v2 = vadd.f32 %v3458_v56, %v11565_v6  ;;  %v6444_v32 = vpack.c.bf16 %v5021_v31, %v5020_v15  ;;  %v6358_v19 = vpack.c.bf16 %v4954_v21, %v4953_v9  ;;  %v4982_v9 = vld [vmem:[%s11384_s2 + $0x1500] sm:$0xff]  ;;  %v4983_v21 = vld [vmem:[%s11384_s2 + $0x1508] sm:$0xff] }
 0x241   :  { %6437 = vmatprep.subr.bf16.mxu1 %v11514_v51  ;;  %5038 = vmatprep.mubr.msk.f32.mxu1 %vm231_vm0, %v3836_v29  ;;  %v4938_v29 = vld [vmem:[%s11384_s2 + $0x13a8] sm:$0xff]  ;;  %v3830_v47 = vmax.f32 %v3803_v61, %v3826_v10  ;;  %v6402_v44 = vpack.c.bf16 %v4999_v54, %v4998_v57  ;;  %v5002_v38 = vld [vmem:[%s11384_s2 + $0x15a0] sm:$0xff]  ;;  %v10993_v61 = vpop.permute.xlu1 %6777  ;;  %v4988_v57 = vld [vmem:[%s11384_s2 + $0x1530] sm:$0xff] }
 0x242   :  { %v3505_v4 = vmax.f32 %v3472_v2, %v3498_v59  ;;  %v5027_v23 = vld [vmem:[%s11384_s2 + $0x1668] sm:$0xff]  ;;  %v5000_v2 = vld [vmem:[%s11384_s2 + $0x1590] sm:$0xff]  ;;  %v6404_v59 = vpack.c.bf16 %v4983_v21, %v4982_v9  ;;  %v4989_v54 = vld [vmem:[%s11384_s2 + $0x1538] sm:$0xff] }
 0x243   :  { %6349 = vmatpush3.bf16.msra.mxu0 %v6348_v3  ;;  %v4956_v3 = vld [vmem:[%s11384_s2 + $0x1438] sm:$0xff]  ;;  %v3834_v13 = vmax.f32 %v3830_v47, 0.0  ;;  %v5031_v10 = vld [vmem:[%s11384_s2 + $0x1688] sm:$0xff]  ;;  %v5032_v47 = vld [vmem:[%s11384_s2 + $0x1690] sm:$0xff] }
 0x244   :  { %6439 = vmatpush1.bf16.msra.mxu1 %v6438_v28  ;;  %6351 = vmatprep.subr.bf16.mxu0 %v6350_v50  ;;  %v6360_v50 = vpack.c.bf16 %v4938_v29, %v4937_v55  ;;  %v3532_v15 = vmax.f32 %v3505_v4, %v3528_v18  ;;  %v4984_v55 = vld [vmem:[%s11384_s2 + $0x1510] sm:$0xff]  ;;  %v4985_v29 = vld [vmem:[%s11384_s2 + $0x1518] sm:$0xff]  ;;  %v4986_v4 = vld [vmem:[%s11384_s2 + $0x1520] sm:$0xff] }
 0x245   :  { %6440 = vmatprep.subr.bf16.mxu1 %v11514_v51  ;;  %v5007_v21 = vld [vmem:[%s11384_s2 + $0x15c8] sm:$0xff] }
 0x246   :  { %v3536_v43 = vmax.f32 %v3532_v15, 0.0 }
 0x247   :  { %6353 = vmatpush3.bf16.msra.mxu0 %v6352_v16  ;;  %v6447_v16 = vpack.c.bf16 %v5023_v46, %v5022_v52  ;;  %v5028_v52 = vld [vmem:[%s11384_s2 + $0x1670] sm:$0xff] }
 0x248   :  { %6442 = vmatpush1.bf16.msra.mxu1 %v6441_v37  ;;  %6355 = vmatprep.subr.bf16.mxu0 %v6354_v30  ;;  %v6362_v37 = vpack.c.bf16 %v4956_v3, %v4955_v63  ;;  %v4939_v30 = vld [vmem:[%s11384_s2 + $0x13b0] sm:$0xff]  ;;  %v6408_v63 = vpack.c.bf16 %v4985_v29, %v4984_v55  ;;  %v3750_v3 = vld [vmem:[%s11382_s0 + $0x588] sm:$0xff]  ;;  %v5009_v55 = vld [vmem:[%s11384_s2 + $0x15d8] sm:$0xff] }
 0x249   :  { %v5268_v53 = vpop.f32.mrb[10].mxu0  ;;  %6443 = vmatprep.subr.bf16.mxu1 %v11514_v51  ;;  %v6364_v31 = vpack.c.bf16 %v4940_v7, %v4939_v30  ;;  %v3743_v46 = vld [vmem:[%s11382_s0 + $0x550] sm:$0xff]  ;;  %v3764_v7 = vmul.f32 %v3750_v3, %v11573_v45  ;;  %v3741_v29 = vld [vmem:[%s11382_s0 + $0x540] sm:$0xff] }
 0x24a   :  { %v5269_v34 = vpop.f32.mrb[11].mxu0  ;;  %v3757_v30 = vmul.f32 %v3743_v46, %v11574_v26 }
 0x24b   :  { %v5270_v28 = vadd.f32 %v5269_v34, %v5268_v53  ;;  %6357 = vmatpush3.bf16.msra.mxu0 %v6356_v49  ;;  %v5026_v49 = vld [vmem:[%s11384_s2 + $0x1660] sm:$0xff]  ;;  %v5003_v53 = vld [vmem:[%s11384_s2 + $0x15a8] sm:$0xff]  ;;  %v6456_v34 = vpack.c.bf16 %v5029_v39, %v5028_v52  ;;  %v3748_v52 = vld [vmem:[%s11382_s0 + $0x578] sm:$0xff] }
 0x24c   :  { %6445 = vmatpush1.bf16.msra.mxu1 %v6444_v32  ;;  %6359 = vmatprep.subr.bf16.mxu0 %v6358_v19  ;;  %v5001_v32 = vld [vmem:[%s11384_s2 + $0x1598] sm:$0xff]  ;;  %v6453_v22 = vpack.c.bf16 %v5027_v23, %v5026_v49  ;;  %v6410_v18 = vpack.c.bf16 %v5003_v53, %v5002_v38  ;;  %v3771_v9 = vadd.f32 %v3757_v30, %v7183_v36  ;;  %v4990_v49 = vld [vmem:[%s11384_s2 + $0x1540] sm:$0xff]  ;;  %v4991_v23 = vld [vmem:[%s11384_s2 + $0x1548] sm:$0xff] }
 0x24d   :  { %v10928_v56 = vadd.f32 %v10713_v1, %v5270_v28  ;;  %6446 = vmatprep.subr.bf16.mxu1 %v11514_v51  ;;  %v6450_v1 = vpack.c.bf16 %v5025_v25, %v5024_v41  ;;  %v6406_v19 = vpack.c.bf16 %v5001_v32, %v5000_v2  ;;  %v4987_v28 = vld [vmem:[%s11384_s2 + $0x1528] sm:$0xff]  ;;  %v11007_v41 = vpop.permute.xlu0 %6772  ;;  %v3797_v2 = vsel %vm231_vm0, %v6764_v0, %v10762_v14 }
 0x24e   :  { %v6412_v25 = vpack.c.bf16 %v4987_v28, %v4986_v4  ;;  %v3778_v32 = vadd.f32 %v3764_v7, %v11583_v12  ;;  %v6416_v14 = vpack.c.bf16 %v4989_v54, %v4988_v57  ;;  %v3820_v0 = vsel %vm231_vm0, %v6765_v62, %v10751_v20  ;;  %v4046_v20 = vld [vmem:[%s11382_s0 + $0x5f0] sm:$0xff] }
 0x24f   :  { %6361 = vmatpush3.bf16.msra.mxu0 %v6360_v50  ;;  %v5030_v50 = vld [vmem:[%s11384_s2 + $0x1680] sm:$0xff]  ;;  %v3804_v62 = vmax.f32 %v3771_v9, %v3797_v2  ;;  %v6420_v53 = vpack.c.bf16 %v4991_v23, %v4990_v49  ;;  %v3762_v4 = vmul.f32 %v3748_v52, %v11558_v60  ;;  %v3755_v28 = vmul.f32 %v3741_v29, %v11557_v58 }
 0x250   :  { %6448 = vmatpush1.bf16.msra.mxu1 %v6447_v16  ;;  %6363 = vmatprep.subr.bf16.mxu0 %v6362_v37  ;;  %v5004_v16 = vld [vmem:[%s11384_s2 + $0x15b0] sm:$0xff]  ;;  %v5005_v37 = vld [vmem:[%s11384_s2 + $0x15b8] sm:$0xff]  ;;  %v6459_v15 = vpack.c.bf16 %v5031_v10, %v5030_v50  ;;  %v6775_v50 = vunpack.i.h.bf16 %v11007_v41  ;;  %v6774_v10 = vunpack.i.l.bf16 %v11007_v41  ;;  %v4053_v30 = vmul.f32 %v4039_v8, %v11632_v40  ;;  %v5010_v40 = vld [vmem:[%s11384_s2 + $0x15e0] sm:$0xff] }
 0x251   :  { %6449 = vmatprep.subr.bf16.mxu1 %v11514_v51  ;;  %v4060_v7 = vmul.f32 %v4046_v20, %v11633_v24  ;;  %v6779_v57 = vunpack.i.l.bf16 %v10993_v61  ;;  %v5011_v24 = vld [vmem:[%s11384_s2 + $0x15e8] sm:$0xff]  ;;  %v3769_v49 = vadd.f32 %v3755_v28, %v11565_v6  ;;  %v5074_v28 = vld [vmem:[%s11384_s2 + $0x17d8] sm:$0xff] }
 0x252   :  { %v3795_v2 = vsel %vm231_vm0, %v6774_v10, %v6769_v48  ;;  %v5072_v48 = vld [vmem:[%s11384_s2 + $0x17c8] sm:$0xff] }
 0x253   :  { %6365 = vmatpush3.bf16.msra.mxu0 %v6364_v31  ;;  %v6414_v31 = vpack.c.bf16 %v5005_v37, %v5004_v16  ;;  %v5036_v16 = vld [vmem:[%s11384_s2 + $0x16b0] sm:$0xff]  ;;  %v5037_v37 = vld [vmem:[%s11384_s2 + $0x16b8] sm:$0xff]  ;;  %v3802_v52 = vmax.f32 %v3769_v49, %v3795_v2  ;;  %v5056_v10 = vld [vmem:[%s11384_s2 + $0x1748] sm:$0xff] }
 0x254   :  { %6451 = vmatpush1.bf16.msra.mxu1 %v6450_v1  ;;  %6403 = vmatprep.subr.bf16.mxu0 %v6402_v44  ;;  %v5033_v1 = vld [vmem:[%s11384_s2 + $0x1698] sm:$0xff]  ;;  %v5006_v44 = vld [vmem:[%s11384_s2 + $0x15c0] sm:$0xff]  ;;  %v6468_v23 = vpack.c.bf16 %v5037_v37, %v5036_v16 }
 0x255   :  { %6452 = vmatprep.subr.bf16.mxu1 %v11514_v51  ;;  %v6462_v39 = vpack.c.bf16 %v5033_v1, %v5032_v47  ;;  %v6418_v38 = vpack.c.bf16 %v5007_v21, %v5006_v44  ;;  %v3776_v21 = vadd.f32 %v3762_v4, %v11566_v33 }
 0x256   :  { %3665 = vmatmul.mubr.f32.vlgmr.msra.gmra.mrb[24].mxu0 %v3536_v43  ;;  %v5034_v43 = vld [vmem:[%s11384_s2 + $0x16a0] sm:$0xff] }
 0x257   :  { %6405 = vmatpush3.bf16.msra.mxu0 %v6404_v59  ;;  %3961 = vmatprep.mubr.f32.mxu0 %v3834_v13  ;;  %v5035_v59 = vld [vmem:[%s11384_s2 + $0x16a8] sm:$0xff]  ;;  %v5008_v13 = vld [vmem:[%s11384_s2 + $0x15d0] sm:$0xff] }
 0x258   :  { %6454 = vmatpush1.bf16.msra.mxu1 %v6453_v22  ;;  %6407 = vmatprep.subr.bf16.mxu0 %v6406_v19  ;;  %v11049_v22 = vpop.permute.xlu0 %6782  ;;  %v11051_v19 = vpop.permute.xlu1 %6787  ;;  %v6465_v46 = vpack.c.bf16 %v5035_v59, %v5034_v43  ;;  %v6422_v3 = vpack.c.bf16 %v5009_v55, %v5008_v13  ;;  %v4067_v43 = vadd.f32 %v4053_v30, %v11637_v27 }
 0x259   :  { %6455 = vmatprep.subr.bf16.mxu1 %v11514_v51  ;;  %v6785_v41 = vunpack.i.h.bf16 %v11049_v22  ;;  %v6784_v54 = vunpack.i.l.bf16 %v11049_v22  ;;  %v4074_v59 = vadd.f32 %v4060_v7, %v11638_v5  ;;  %v6426_v13 = vpack.c.bf16 %v5011_v24, %v5010_v40  ;;  %v5039_v40 = vld [vmem:[%s11384_s2 + $0x16c0] sm:$0xff]  ;;  %v5040_v24 = vld [vmem:[%s11384_s2 + $0x16c8] sm:$0xff] }
 0x25b   :  { %6409 = vmatpush3.bf16.msra.mxu0 %v6408_v63  ;;  %v3827_v63 = vmax.f32 %v3778_v32, %v3820_v0  ;;  %v3818_v32 = vsel %vm231_vm0, %v6775_v50, %v6770_v35  ;;  %v4116_v27 = vsel %vm231_vm0, %v6784_v54, %v6785_v41  ;;  %v5013_v0 = vld [vmem:[%s11384_s2 + $0x15f8] sm:$0xff]  ;;  %v5055_v50 = vld [vmem:[%s11384_s2 + $0x1740] sm:$0xff] }
 0x25c   :  { %6457 = vmatpush1.bf16.msra.mxu1 %v6456_v34  ;;  %6411 = vmatprep.subr.bf16.mxu0 %v6410_v18  ;;  %v4992_v34 = vld [vmem:[%s11384_s2 + $0x1550] sm:$0xff]  ;;  %v4993_v18 = vld [vmem:[%s11384_s2 + $0x1558] sm:$0xff] }
 0x25d   :  { %6458 = vmatprep.subr.bf16.mxu1 %v11514_v51  ;;  %v6424_v47 = vpack.c.bf16 %v4993_v18, %v4992_v34  ;;  %v3831_v9 = vmax.f32 %v3804_v62, %v3827_v63  ;;  %v4997_v34 = vld [vmem:[%s11384_s2 + $0x1578] sm:$0xff]  ;;  %v5073_v18 = vld [vmem:[%s11384_s2 + $0x17d0] sm:$0xff] }
 0x25e   :  { %v6506_v7 = vpack.c.bf16 %v5074_v28, %v5073_v18  ;;  %v4038_v28 = vld [vmem:[%s11382_s0 + $0x5b0] sm:$0xff] }
 0x25f   :  { %6413 = vmatpush3.bf16.msra.mxu0 %v6412_v25  ;;  %v6780_v25 = vunpack.i.h.bf16 %v10993_v61  ;;  %v3835_v8 = vmax.f32 %v3831_v9, 0.0  ;;  %v5057_v9 = vld [vmem:[%s11384_s2 + $0x1750] sm:$0xff]  ;;  %v5094_v61 = vld [vmem:[%s11384_s2 + $0x1878] sm:$0xff] }
 0x260   :  { %6460 = vmatpush1.bf16.msra.mxu1 %v6459_v15  ;;  %6415 = vmatprep.subr.bf16.mxu0 %v6414_v31  ;;  %v11095_v15 = vpop.permute.xlu0 %4090  ;;  %v11097_v31 = vpop.permute.xlu1 %4113 }
 0x261   :  { %6461 = vmatprep.subr.bf16.mxu1 %v11514_v51  ;;  %v4102_v1 = vmax.f32 %v9674_v17, %v11095_v15  ;;  %v4125_v44 = vmax.f32 %v9677_v11, %v11097_v31  ;;  %v4994_v17 = vld [vmem:[%s11384_s2 + $0x1560] sm:$0xff]  ;;  %v4995_v11 = vld [vmem:[%s11384_s2 + $0x1568] sm:$0xff]  ;;  %v4093_v35 = vsel %vm231_vm0, %v6779_v57, %v6780_v25 }
 0x262   :  { %v4100_v62 = vmax.f32 %v4067_v43, %v4093_v35  ;;  %v5042_v43 = vld [vmem:[%s11384_s2 + $0x16d8] sm:$0xff]  ;;  %v5060_v35 = vld [vmem:[%s11384_s2 + $0x1768] sm:$0xff] }
 0x263   :  { %6417 = vmatpush3.bf16.msra.mxu0 %v6416_v14  ;;  %v5012_v14 = vld [vmem:[%s11384_s2 + $0x15f0] sm:$0xff]  ;;  %v4129_v55 = vmax.f32 %v4102_v1, %v4125_v44  ;;  %v5075_v1 = vld [vmem:[%s11384_s2 + $0x17e0] sm:$0xff]  ;;  %v5076_v44 = vld [vmem:[%s11384_s2 + $0x17e8] sm:$0xff] }
 0x264   :  { %6463 = vmatpush1.bf16.msra.mxu1 %v6462_v39  ;;  %6419 = vmatprep.subr.bf16.mxu0 %v6418_v38  ;;  %v3825_v39 = vmax.f32 %v3776_v21, %v3818_v32  ;;  %v6428_v38 = vpack.c.bf16 %v4995_v11, %v4994_v17  ;;  %v6430_v63 = vpack.c.bf16 %v5013_v0, %v5012_v14  ;;  %v5058_v21 = vld [vmem:[%s11384_s2 + $0x1758] sm:$0xff]  ;;  %v5041_v11 = vld [vmem:[%s11384_s2 + $0x16d0] sm:$0xff]  ;;  %v5043_v14 = vld [vmem:[%s11384_s2 + $0x16e0] sm:$0xff] }
 0x265   :  { %6464 = vmatprep.subr.bf16.mxu1 %v11514_v51  ;;  %v4133_v16 = vmax.f32 %v4129_v55, 0.0  ;;  %v6509_v32 = vpack.c.bf16 %v5076_v44, %v5075_v1  ;;  %v6474_v17 = vpack.c.bf16 %v5058_v21, %v5057_v9  ;;  %v5044_v0 = vld [vmem:[%s11384_s2 + $0x16e8] sm:$0xff]  ;;  %v5079_v55 = vld [vmem:[%s11384_s2 + $0x1800] sm:$0xff]  ;;  %v4052_v1 = vmul.f32 %v4038_v28, %v11557_v58  ;;  %v5085_v58 = vld [vmem:[%s11384_s2 + $0x1830] sm:$0xff] }
 0x266   :  { %v3829_v37 = vmax.f32 %v3802_v52, %v3825_v39  ;;  %v5061_v52 = vld [vmem:[%s11384_s2 + $0x1770] sm:$0xff]  ;;  %v5062_v39 = vld [vmem:[%s11384_s2 + $0x1778] sm:$0xff]  ;;  %v6790_v9 = vunpack.i.h.bf16 %v11051_v19  ;;  %v6789_v21 = vunpack.i.l.bf16 %v11051_v19 }
 0x267   :  { %6421 = vmatpush3.bf16.msra.mxu0 %v6420_v53  ;;  %v4123_v53 = vmax.f32 %v4074_v59, %v4116_v27  ;;  %v5077_v59 = vld [vmem:[%s11384_s2 + $0x17f0] sm:$0xff]  ;;  %v6476_v27 = vpack.c.bf16 %v5042_v43, %v5041_v11  ;;  %v5086_v19 = vld [vmem:[%s11384_s2 + $0x1838] sm:$0xff]  ;;  %v4066_v43 = vadd.f32 %v4052_v1, %v11565_v6  ;;  %v5052_v6 = vld [vmem:[%s11384_s2 + $0x1728] sm:$0xff] }
 0x268   :  { %6466 = vmatpush1.bf16.msra.mxu1 %v6465_v46  ;;  %6423 = vmatprep.subr.bf16.mxu0 %v6422_v3  ;;  %v6503_v46 = vpack.c.bf16 %v5072_v48, %v5071_v42  ;;  %v4996_v3 = vld [vmem:[%s11384_s2 + $0x1570] sm:$0xff]  ;;  %v3833_v49 = vmax.f32 %v3829_v37, 0.0  ;;  %v5059_v42 = vld [vmem:[%s11384_s2 + $0x1760] sm:$0xff]  ;;  %v5090_v28 = vld [vmem:[%s11384_s2 + $0x1858] sm:$0xff] }
 0x269   :  { %v5303_v5 = vpop.f32.mrb[12].mxu0  ;;  %6467 = vmatprep.subr.bf16.mxu1 %v11514_v51  ;;  %v4127_v30 = vmax.f32 %v4100_v62, %v4123_v53  ;;  %v6478_v48 = vpack.c.bf16 %v5060_v35, %v5059_v42  ;;  %v5045_v62 = vld [vmem:[%s11384_s2 + $0x16f0] sm:$0xff]  ;;  %v5046_v53 = vld [vmem:[%s11384_s2 + $0x16f8] sm:$0xff]  ;;  %v5047_v37 = vld [vmem:[%s11384_s2 + $0x1700] sm:$0xff]  ;;  %v6524_v35 = vpack.c.bf16 %v5086_v19, %v5085_v58 }
 0x26a   :  { %v5304_v29 = vpop.f32.mrb[13].mxu0  ;;  %v6484_v18 = vpack.c.bf16 %v5046_v53, %v5045_v62  ;;  %v5053_v53 = vld [vmem:[%s11384_s2 + $0x1730] sm:$0xff] }
 0x26b   :  { %v5305_v20 = vadd.f32 %v5304_v29, %v5303_v5  ;;  %6425 = vmatpush3.bf16.msra.mxu0 %v6424_v47  ;;  %v6470_v47 = vpack.c.bf16 %v5056_v10, %v5055_v50  ;;  %v4131_v2 = vmax.f32 %v4127_v30, 0.0  ;;  %v5080_v29 = vld [vmem:[%s11384_s2 + $0x1808] sm:$0xff]  ;;  %v5083_v30 = vld [vmem:[%s11384_s2 + $0x1820] sm:$0xff] }
 0x26c   :  { %6469 = vmatpush1.bf16.msra.mxu1 %v6468_v23  ;;  %6427 = vmatprep.subr.bf16.mxu0 %v6426_v13  ;;  %v6472_v23 = vpack.c.bf16 %v5040_v24, %v5039_v40  ;;  %v5078_v13 = vld [vmem:[%s11384_s2 + $0x17f8] sm:$0xff]  ;;  %v4045_v50 = vld [vmem:[%s11382_s0 + $0x5e8] sm:$0xff] }
 0x26d   :  { %v11159_v4 = vadd.f32 %v10928_v56, %v5305_v20  ;;  %6502 = vmatprep.subr.bf16.mxu1 %v11514_v51  ;;  %v6432_v56 = vpack.c.bf16 %v4997_v34, %v4996_v3  ;;  %v6512_v5 = vpack.c.bf16 %v5078_v13, %v5077_v59  ;;  %v6482_v20 = vpack.c.bf16 %v5062_v39, %v5061_v52  ;;  %v5063_v3 = vld [vmem:[%s11384_s2 + $0x1780] sm:$0xff]  ;;  %v5064_v34 = vld [vmem:[%s11384_s2 + $0x1788] sm:$0xff]  ;;  %v5066_v40 = vld [vmem:[%s11384_s2 + $0x1798] sm:$0xff] }
 0x26e   :  { %v4059_v24 = vmul.f32 %v4045_v50, %v11558_v60  ;;  %v5050_v60 = vld [vmem:[%s11384_s2 + $0x1718] sm:$0xff]  ;;  %v4115_v59 = vsel %vm231_vm0, %v6790_v9, %v6784_v54  ;;  %v4092_v13 = vsel %vm231_vm0, %v6789_v21, %v6779_v57  ;;  %v5087_v54 = vld [vmem:[%s11384_s2 + $0x1840] sm:$0xff]  ;;  %v5088_v57 = vld [vmem:[%s11384_s2 + $0x1848] sm:$0xff] }
 0x26f   :  { %6429 = vmatpush3.bf16.msra.mxu0 %v6428_v38  ;;  %4032 = vmatmul.mubr.f32.vlgmr.msra.gmra.mrb[0].mxu1 %v3835_v8  ;;  %v6480_v38 = vpack.c.bf16 %v5044_v0, %v5043_v14  ;;  %v6515_v8 = vpack.c.bf16 %v5080_v29, %v5079_v55  ;;  %v5070_v14 = vld [vmem:[%s11384_s2 + $0x17b8] sm:$0xff]  ;;  %v4099_v55 = vmax.f32 %v4066_v43, %v4092_v13  ;;  %v4040_v52 = vld [vmem:[%s11382_s0 + $0x5c0] sm:$0xff] }
 0x270   :  { %6504 = vmatpush1.bf16.msra.mxu1 %v6503_v46  ;;  %6431 = vmatprep.subr.bf16.mxu0 %v6430_v63  ;;  %v5081_v46 = vld [vmem:[%s11384_s2 + $0x1810] sm:$0xff]  ;;  %v5082_v63 = vld [vmem:[%s11384_s2 + $0x1818] sm:$0xff]  ;;  %v4073_v11 = vadd.f32 %v4059_v24, %v11566_v33  ;;  %v5051_v33 = vld [vmem:[%s11384_s2 + $0x1720] sm:$0xff] }
 0x271   :  { %6505 = vmatprep.subr.bf16.mxu1 %v11514_v51  ;;  %5095 = vmatprep.mubr.msk.f32.mxu1 %vm231_vm0, %v4133_v16  ;;  %v6518_v10 = vpack.c.bf16 %v5082_v63, %v5081_v46  ;;  %v6486_v16 = vpack.c.bf16 %v5064_v34, %v5063_v3  ;;  %v4047_v39 = vld [vmem:[%s11382_s0 + $0x5f8] sm:$0xff]  ;;  %v4054_v3 = vmul.f32 %v4040_v52, %v11574_v26 }
 0x272   :  { %v4122_v0 = vmax.f32 %v4073_v11, %v4115_v59  ;;  %v5054_v46 = vld [vmem:[%s11384_s2 + $0x1738] sm:$0xff]  ;;  %v4061_v34 = vmul.f32 %v4047_v39, %v11573_v45 }
 0x273   :  { %6433 = vmatpush3.bf16.msra.mxu0 %v6432_v56  ;;  %v5048_v56 = vld [vmem:[%s11384_s2 + $0x1708] sm:$0xff]  ;;  %v4068_v26 = vadd.f32 %v4054_v3, %v7183_v36  ;;  %v4117_v36 = vsel %vm231_vm0, %v6785_v41, %v11097_v31 }
 0x274   :  { %6507 = vmatpush1.bf16.msra.mxu1 %v6506_v7  ;;  %6471 = vmatprep.subr.bf16.mxu0 %v6470_v47  ;;  %v5084_v7 = vld [vmem:[%s11384_s2 + $0x1828] sm:$0xff]  ;;  %v5065_v47 = vld [vmem:[%s11384_s2 + $0x1790] sm:$0xff]  ;;  %v6488_v44 = vpack.c.bf16 %v5048_v56, %v5047_v37  ;;  %v4126_v50 = vmax.f32 %v4099_v55, %v4122_v0  ;;  %v4075_v45 = vadd.f32 %v4061_v34, %v11583_v12 }
 0x275   :  { %6508 = vmatprep.subr.bf16.mxu1 %v11514_v51  ;;  %v5092_v37 = vld [vmem:[%s11384_s2 + $0x1868] sm:$0xff]  ;;  %v4094_v56 = vsel %vm231_vm0, %v6780_v25, %v11095_v15 }
 0x276   :  { %3962 = vmatmul.mubr.f32.vlgmr.msra.gmra.mrb[26].mxu0 %v3833_v49  ;;  %v6521_v49 = vpack.c.bf16 %v5084_v7, %v5083_v30  ;;  %v4130_v12 = vmax.f32 %v4126_v50, 0.0  ;;  %v4101_v7 = vmax.f32 %v4068_v26, %v4094_v56 }
 0x277   :  { %6473 = vmatpush3.bf16.msra.mxu0 %v6472_v23  ;;  %4258 = vmatprep.mubr.f32.mxu0 %v4131_v2  ;;  %v6490_v23 = vpack.c.bf16 %v5066_v40, %v5065_v47  ;;  %v5049_v2 = vld [vmem:[%s11384_s2 + $0x1710] sm:$0xff]  ;;  %v4124_v47 = vmax.f32 %v4075_v45, %v4117_v36 }
 0x278   :  { %6510 = vmatpush1.bf16.msra.mxu1 %v6509_v32  ;;  %6475 = vmatprep.subr.bf16.mxu0 %v6474_v17  ;;  %v5067_v32 = vld [vmem:[%s11384_s2 + $0x17a0] sm:$0xff]  ;;  %v5068_v17 = vld [vmem:[%s11384_s2 + $0x17a8] sm:$0xff]  ;;  %v6492_v42 = vpack.c.bf16 %v5050_v60, %v5049_v2  ;;  %v5093_v40 = vld [vmem:[%s11384_s2 + $0x1870] sm:$0xff] }
 0x279   :  { %6511 = vmatprep.subr.bf16.mxu1 %v11514_v51  ;;  %v6536_v22 = vpack.c.bf16 %v5094_v61, %v5093_v40  ;;  %v4128_v25 = vmax.f32 %v4101_v7, %v4124_v47 }
 0x27b   :  { %6477 = vmatpush3.bf16.msra.mxu0 %v6476_v27  ;;  %v6494_v27 = vpack.c.bf16 %v5068_v17, %v5067_v32  ;;  %v4132_v41 = vmax.f32 %v4128_v25, 0.0 }
 0x27c   :  { %6513 = vmatpush1.bf16.msra.mxu1 %v6512_v5  ;;  %6479 = vmatprep.subr.bf16.mxu0 %v6478_v48  ;;  %v5069_v48 = vld [vmem:[%s11384_s2 + $0x17b0] sm:$0xff] }
 0x27d   :  { %6514 = vmatprep.subr.bf16.mxu1 %v11514_v51  ;;  %v6498_v62 = vpack.c.bf16 %v5070_v14, %v5069_v48 }
 0x27f   :  { %6481 = vmatpush3.bf16.msra.mxu0 %v6480_v38 }
 0x280   :  { %6516 = vmatpush1.bf16.msra.mxu1 %v6515_v8  ;;  %6483 = vmatprep.subr.bf16.mxu0 %v6482_v20  ;;  %v6496_v8 = vpack.c.bf16 %v5052_v6, %v5051_v33  ;;  %v6527_v20 = vpack.c.bf16 %v5088_v57, %v5087_v54 }
 0x281   :  { %6517 = vmatprep.subr.bf16.mxu1 %v11514_v51 }
 0x283   :  { %6485 = vmatpush3.bf16.msra.mxu0 %v6484_v18  ;;  %v5089_v18 = vld [vmem:[%s11384_s2 + $0x1850] sm:$0xff] }
 0x284   :  { %6519 = vmatpush1.bf16.msra.mxu1 %v6518_v10  ;;  %6487 = vmatprep.subr.bf16.mxu0 %v6486_v16  ;;  %v6500_v10 = vpack.c.bf16 %v5054_v46, %v5053_v53  ;;  %v5091_v16 = vld [vmem:[%s11384_s2 + $0x1860] sm:$0xff]  ;;  %s6817_s2 = smov [#allocation2]  }
 0x285   :  { %6520 = vmatprep.subr.bf16.mxu1 %v11514_v51  ;;  %v6533_v30 = vpack.c.bf16 %v5092_v37, %v5091_v16  ;;  %s4342_s1 = sshll.u32 %s6817_s2, 4  ;;  %s4343_s1 = int_to_ptr.vmem [resolvable:$true] %s4342_s1 }
 0x286   :  { %s6791_s5 = scalar_lea.vmem %s4343_s1, 128  ;;  %p6796_p1 = scmp.lt.s32.totalorder %s4343_s1, %s4343_s1 }
 0x287   :  { %6489 = vmatpush3.bf16.msra.mxu0 %v6488_v44  ;;  %p6792_p0 = scmp.ne.s32.totalorder %s4343_s1, %s6791_s5  ;;  %p6797_p2 = scmp.lt.s32.totalorder %s6791_s5, %s6791_s5 }
 0x288   :  { %6522 = vmatpush1.bf16.msra.mxu1 %v6521_v49  ;;  %6491 = vmatprep.subr.bf16.mxu0 %v6490_v23 }
 0x289   :  { %v5338_v5 = vpop.f32.mrb[14].mxu0  ;;  %6523 = vmatprep.subr.bf16.mxu1 %v11514_v51  ;;  %p6798_p3 = por %p6797_p2, %p6796_p1 }
 0x28a   :  { %v5339_v29 = vpop.f32.mrb[15].mxu0 }
 0x28b   :  { %v5340_v38 = vadd.f32 %v5339_v29, %v5338_v5  ;;  %6493 = vmatpush3.bf16.msra.mxu0 %v6492_v42  ;;  %p6799_p4 = pnand %p6798_p3, %p6792_p0 }
 0x28c   :  { %6525 = vmatpush1.bf16.msra.mxu1 %v6524_v35  ;;  %6495 = vmatprep.subr.bf16.mxu0 %v6494_v27 }
 0x28d   :  { %v6545_v63 = vadd.f32 %v11159_v4, %v5340_v38  ;;  %6526 = vmatprep.subr.bf16.mxu1 %v11514_v51  ;;  %v6530_v4 = vpack.c.bf16 %v5090_v28, %v5089_v18 }
 0x28f   :  { %6497 = vmatpush3.bf16.msra.mxu0 %v6496_v8 }
 0x290   :  { %6528 = vmatpush1.bf16.msra.mxu1 %v6527_v20  ;;  %6499 = vmatprep.subr.bf16.mxu0 %v6498_v62 }
 0x291   :  { %6529 = vmatprep.subr.bf16.mxu1 %v11514_v51 }
 0x293   :  { %6501 = vmatpush3.bf16.msra.mxu0 %v6500_v10 }
 0x294   :  { %6531 = vmatpush1.bf16.msra.mxu1 %v6530_v4 }
 0x295   :  { %6532 = vmatprep.subr.bf16.mxu1 %v11514_v51 }
 0x296   :  { %4259 = vmatmul.mubr.f32.vlgmr.msra.gmra.mrb[28].mxu0 %v4130_v12 }
 0x298   :  { %6534 = vmatpush1.bf16.msra.mxu1 %v6533_v30 }
 0x299   :  { %6535 = vmatprep.subr.bf16.mxu1 %v11514_v51 }
 0x29c   :  { %6537 = vmatpush1.bf16.msra.mxu1 %v6536_v22 }
 0x29f   :  { %4329 = vmatmul.mubr.f32.vlgmr.msra.gmra.mrb[0].mxu1 %v4132_v41 }
 0x2a9   :  { %v5373_v15 = vpop.f32.mrb[16].mxu0 }
 0x2aa   :  { %v5374_v31 = vpop.f32.mrb[17].mxu0 }
 0x2ab   :  { %v5375_v24 = vadd.f32 %v5374_v31, %v5373_v15 }
 0x2ad   :  { %v6546_v1 = vadd.f32 %v6545_v63, %v5375_v24 }
 0x2c9   :  { %v5408_v44 = vpop.f32.mrb[18].mxu0 }
 0x2ca   :  { %v5409_v9 = vpop.f32.mrb[19].mxu0 }
 0x2cb   :  { %v5410_v21 = vadd.f32 %v5409_v9, %v5408_v44 }
 0x2cd   :  { %v6547_v49 = vadd.f32 %v6546_v1, %v5410_v21 }
 0x2e9   :  { %v5443_v23 = vpop.f32.mrb[20].mxu0 }
 0x2ea   :  { %v5444_v2 = vpop.f32.mrb[21].mxu0 }
 0x2eb   :  { %v5445_v60 = vadd.f32 %v5444_v2, %v5443_v23 }
 0x2ed   :  { %v6548_v58 = vadd.f32 %v6547_v49, %v5445_v60 }
 0x309   :  { %v5478_v19 = vpop.f32.mrb[22].mxu0 }
 0x30a   :  { %v5479_v32 = vpop.f32.mrb[23].mxu0 }
 0x30b   :  { %v5480_v17 = vadd.f32 %v5479_v32, %v5478_v19 }
 0x30d   :  { %v6549_v11 = vadd.f32 %v6548_v58, %v5480_v17 }
 0x329   :  { %v5513_v51 = vpop.f32.mrb[24].mxu0 }
 0x32a   :  { %v5514_v43 = vpop.f32.mrb[25].mxu0 }
 0x32b   :  { %v5515_v59 = vadd.f32 %v5514_v43, %v5513_v51 }
 0x32d   :  { %v6550_v13 = vadd.f32 %v6549_v11, %v5515_v59 }
 0x349   :  { %v5548_v42 = vpop.f32.mrb[26].mxu0 }
 0x34a   :  { %v5549_v35 = vpop.f32.mrb[27].mxu0 }
 0x34b   :  { %v5550_v27 = vadd.f32 %v5549_v35, %v5548_v42 }
 0x34d   :  { %v6551_v33 = vadd.f32 %v6550_v13, %v5550_v27 }
 0x369   :  { %v5583_v6 = vpop.f32.mrb[28].mxu0 }
 0x36a   :  { %v5584_v54 = vpop.f32.mrb[29].mxu0 }
 0x36b   :  { %v5585_v5 = vadd.f32 %v5584_v54, %v5583_v6 }
 0x36d   :  { %v6552_v57 = vadd.f32 %v6551_v33, %v5585_v5 }
 0x372   :  { %v4330_v48 = vpop.f32.mrb[0].mxu1 }
 0x373   :  { %v6553_v14 = vadd.f32 %v6552_v57, %v4330_v48  ;;  %v4332_v0 = vpop.f32.mrb[1].mxu1 }
 0x375   :  { %4335 = vst [vmem:[#allocation2] sm:$0xff] %v6553_v14 }
 0x376   :  { %6802 = shalt.err (!%p6799_p4)
}
 0x377   :  { %s6803_s8 = scalar_lea.hbm %s11386_s4, 128 }
 0x378   :  { %p6804_p5 = scmp.ne.s32.totalorder %s11386_s4, %s6803_s8  ;;  %p6807_p6 = scmp.lt.u32.totalorder %s6803_s8, %s11386_s4 }
 0x37a   :  { %p6809_p7 = pnand %p6807_p6, %p6804_p5 }
 0x37c   :  { %6812 = shalt.err (!%p6809_p7)
}
 0x37d   :  { %4345 = dma.vmem_to_hbm [thread:$0]  %s4343_s1, 128, %s11386_s4, [#allocation3]  }
 0x37e   :  { %6813 = dma.done.wait [#allocation3], 128  }
 0x37f   :  { %6814 = vsyncadd [#allocation3], 4294967168 }
 0x380   :  { %4349 = vsyncpa [#allocation3], 1 }

</bundles_post_ra>
